<compile_context>
chip_gen: v6e
topology: v6e:2x2x1
jax: 0.10.0
libtpu: 0.0.40
codegen_flags: <defaults>
</compile_context>

<pallas_src>
import jax
import jax.numpy as jnp
from jax.experimental import pallas as pl
from jax.experimental.pallas import tpu as pltpu

LRELU_SLOPE = 0.2
BN_EPS = 1e-5
LANE = 128


def _round_up(x, m):
    return (x + m - 1) // m * m


def _lrelu(y):
    return jnp.where(y > 0, y, LRELU_SLOPE * y)


# ----------------------------- Pallas kernels ------------------------------
def _conv_lrelu_kernel(x_ref, t_ref, b_ref, o_ref):
    """Layer 1: conv (two shifted banded bf16 GEMMs) + bias + LeakyReLU.

    One batch element per grid step ("parallel" axis).
    x_ref: (1, Hp2, Kp) bf16   t_ref: (2, Kp, F) bf16
    b_ref: (1, F) f32          o_ref: (OH, F) bf16,  F = OW*Cout (lane dense)
    """
    OH, _ = o_ref.shape
    acc = jnp.dot(x_ref[0, 0:OH, :], t_ref[0],
                  preferred_element_type=jnp.float32)
    acc = acc + jnp.dot(x_ref[0, 1:OH + 1, :], t_ref[1],
                        preferred_element_type=jnp.float32)
    o_ref[...] = _lrelu(acc + b_ref[...]).astype(o_ref.dtype)


def _conv_bn_body(x_ref, t_ref, g_ref, gt_ref, gamma_ref, beta_ref, acc_ref):
    """Shared body: conv (banded GEMM) + BatchNorm(batch stats) + LeakyReLU.

    Whole batch in one invocation so BN statistics can be taken in-kernel.
    Per-channel sums over the interleaved (OW, Cout) lane layout use 0/1
    gather/spread matmuls (MXU) instead of lane-dim reshapes.
    Returns the post-LReLU activation as an f32 (N*OH, F) value.
    """
    N = x_ref.shape[0]
    R, F = acc_ref.shape
    OH = R // N
    Cout = g_ref.shape[1]
    OW = F // Cout
    for n in range(N):                       # N is tiny and static
        a = jnp.dot(x_ref[n, 0:OH, :], t_ref[0],
                    preferred_element_type=jnp.float32)
        a = a + jnp.dot(x_ref[n, 1:OH + 1, :], t_ref[1],
                        preferred_element_type=jnp.float32)
        acc_ref[n * OH:(n + 1) * OH, :] = a
    y = acc_ref[...]                                         # (N*OH, F) f32
    cnt = float(N * OH * OW)
    mean = jnp.dot(jnp.sum(y, axis=0, keepdims=True), g_ref[...],
                   preferred_element_type=jnp.float32) / cnt        # (1, Cout)
    msq = jnp.dot(jnp.sum(y * y, axis=0, keepdims=True), g_ref[...],
                  preferred_element_type=jnp.float32) / cnt         # (1, Cout)
    var = msq - mean * mean                      # biased var (BN training mode)
    mean_row = jnp.dot(mean, gt_ref[...], preferred_element_type=jnp.float32)
    var_row = jnp.dot(var, gt_ref[...], preferred_element_type=jnp.float32)
    scale_row = gamma_ref[...] * jax.lax.rsqrt(var_row + BN_EPS)
    return _lrelu((y - mean_row) * scale_row + beta_ref[...]), N, OH


def _conv_bn_lrelu_kernel(x_ref, t_ref, g_ref, gt_ref, gamma_ref, beta_ref,
                          o_ref, acc_ref):
    act, _, _ = _conv_bn_body(x_ref, t_ref, g_ref, gt_ref, gamma_ref, beta_ref,
                              acc_ref)
    o_ref[...] = act.astype(o_ref.dtype)


def _conv_bn_lrelu_head_kernel(x_ref, t_ref, g_ref, gt_ref, gamma_ref,
                               beta_ref, w5_ref, b5_ref, o_ref, acc_ref):
    """Last block fused with the 4x4/s2/p0 head conv + sigmoid:
    layer-4's activation never leaves VMEM."""
    act, N, OH = _conv_bn_body(x_ref, t_ref, g_ref, gt_ref, gamma_ref,
                               beta_ref, acc_ref)
    w5 = w5_ref[...]                                          # (OH, F) f32
    for n in range(N):
        r = jnp.sum(act[n * OH:(n + 1) * OH, :] * w5, axis=0, keepdims=True)
        logit = jnp.sum(r, axis=1, keepdims=True) + b5_ref[...]       # (1, 1)
        o_ref[n:n + 1, :] = jax.nn.sigmoid(logit)


# ------------------------------ host-side prep ------------------------------
def _prep_input(x_nhwc, pad):
    """Zero-pad spatially, 2x2 space-to-depth, flatten rows, lane-pad K.

    Same-size relayout (no im2col duplication): the 4x4/stride-2 conv then
    only needs two row-shifted banded GEMMs inside the kernel.
    Returns (N, Hp2, Kp) bf16 and geometry.
    """
    if pad:
        x_nhwc = jnp.pad(x_nhwc, ((0, 0), (pad, pad), (pad, pad), (0, 0)))
    N, Hp, Wp, C = x_nhwc.shape
    Hp2, Wp2 = Hp // 2, Wp // 2
    xr = x_nhwc.reshape(N, Hp2, 2, Wp2, 2, C).transpose(0, 1, 3, 2, 4, 5)
    K = Wp2 * 4 * C
    Kp = _round_up(K, LANE)
    xr = xr.reshape(N, Hp2, K)
    if Kp != K:
        xr = jnp.pad(xr, ((0, 0), (0, 0), (0, Kp - K)))
    return xr.astype(jnp.bfloat16), (Hp2, Wp2, C, K, Kp)


def _banded_weight(w, Wp2, OW, Kp):
    """(Cout, Cin, 4, 4) torch weight -> banded GEMM weight T (2, Kp, OW*Cout).

    T[dh] maps one space-to-depth input row (Wp2*4Cin wide, lane-padded to Kp)
    to one full output row (OW*Cout = 256 wide -> lane-dense stores).
    """
    Cout, Cin = w.shape[0], w.shape[1]
    wt = jnp.transpose(w, (2, 3, 1, 0)).reshape(2, 2, 2, 2, Cin, Cout)
    w2 = jnp.transpose(wt, (0, 2, 1, 3, 4, 5)).reshape(2, 2, 4 * Cin, Cout)
    j = jnp.arange(Wp2)[:, None]
    o = jnp.arange(OW)[None, :]
    K = Wp2 * 4 * Cin
    ts = []
    for dh in range(2):
        t = jnp.zeros((Wp2, 4 * Cin, OW, Cout), jnp.float32)
        for dw in range(2):
            sel = (j == o + dw).astype(jnp.float32)           # (Wp2, OW) band
            t = t + jnp.einsum("jo,cf->jcof", sel, w2[dh, dw])
        ts.append(t.reshape(K, OW * Cout))
    T = jnp.stack(ts, axis=0)
    if Kp != K:
        T = jnp.pad(T, ((0, 0), (0, Kp - K), (0, 0)))
    return T.astype(jnp.bfloat16)


def _bn_consts(gamma, beta, OW, Cout):
    eye = jnp.eye(Cout, dtype=jnp.float32)
    gather = jnp.tile(eye, (OW, 1))            # (OW*Cout, Cout): per-chan sums
    spread = jnp.tile(eye, (1, OW))            # (Cout, OW*Cout): broadcast back
    grow = jnp.tile(gamma.astype(jnp.float32), OW).reshape(1, OW * Cout)
    brow = jnp.tile(beta.astype(jnp.float32), OW).reshape(1, OW * Cout)
    return gather, spread, grow, brow


# ------------------------------ layer wrappers -------------------------------
def conv_lrelu_layer(x_nhwc, w, b):
    N = x_nhwc.shape[0]
    xr, (Hp2, Wp2, _Cin, _K, Kp) = _prep_input(x_nhwc, 1)
    OH, OW = Hp2 - 1, Wp2 - 1
    Cout = w.shape[0]
    F = OW * Cout
    T = _banded_weight(w, Wp2, OW, Kp)
    brow = jnp.tile(b.astype(jnp.float32), OW).reshape(1, F)
    out = pl.pallas_call(
        _conv_lrelu_kernel,
        out_shape=jax.ShapeDtypeStruct((N * OH, F), jnp.bfloat16),
        grid=(N,),
        in_specs=[
            pl.BlockSpec((1, Hp2, Kp), lambda n: (n, 0, 0)),
            pl.BlockSpec((2, Kp, F), lambda n: (0, 0, 0)),
            pl.BlockSpec((1, F), lambda n: (0, 0)),
        ],
        out_specs=pl.BlockSpec((OH, F), lambda n: (n, 0)),
        compiler_params=pltpu.CompilerParams(dimension_semantics=("parallel",)),
    )(xr, T, brow)
    return out.reshape(N, OH, OW, Cout)


def conv_bn_lrelu_layer(x_nhwc, w, gamma, beta):
    N = x_nhwc.shape[0]
    xr, (Hp2, Wp2, _Cin, _K, Kp) = _prep_input(x_nhwc, 1)
    OH, OW = Hp2 - 1, Wp2 - 1
    Cout = w.shape[0]
    F = OW * Cout
    T = _banded_weight(w, Wp2, OW, Kp)
    gather, spread, grow, brow = _bn_consts(gamma, beta, OW, Cout)
    # Batch statistics couple the whole batch, so this fused block runs as a
    # single grid step (whole layer fits easily in VMEM at these sizes).
    out = pl.pallas_call(
        _conv_bn_lrelu_kernel,
        out_shape=jax.ShapeDtypeStruct((N * OH, F), jnp.bfloat16),
        grid=(1,),
        in_specs=[
            pl.BlockSpec((N, Hp2, Kp), lambda i: (0, 0, 0)),
            pl.BlockSpec((2, Kp, F), lambda i: (0, 0, 0)),
            pl.BlockSpec((F, Cout), lambda i: (0, 0)),
            pl.BlockSpec((Cout, F), lambda i: (0, 0)),
            pl.BlockSpec((1, F), lambda i: (0, 0)),
            pl.BlockSpec((1, F), lambda i: (0, 0)),
        ],
        out_specs=pl.BlockSpec((N * OH, F), lambda i: (0, 0)),
        scratch_shapes=[pltpu.VMEM((N * OH, F), jnp.float32)],
        compiler_params=pltpu.CompilerParams(dimension_semantics=("arbitrary",)),
    )(xr, T, gather, spread, grow, brow)
    return out.reshape(N, OH, OW, Cout)


def conv_bn_lrelu_head_layer(x_nhwc, w, gamma, beta, w5, b5):
    N = x_nhwc.shape[0]
    xr, (Hp2, Wp2, _Cin, _K, Kp) = _prep_input(x_nhwc, 1)
    OH, OW = Hp2 - 1, Wp2 - 1
    Cout = w.shape[0]
    F = OW * Cout
    # The head conv (k=4, s=2, p=0) must cover the OHxOW map exactly once.
    assert w5.shape[0] == 1 and OH == w5.shape[2] and OW == w5.shape[3]
    T = _banded_weight(w, Wp2, OW, Kp)
    gather, spread, grow, brow = _bn_consts(gamma, beta, OW, Cout)
    w5row = jnp.transpose(w5[0], (1, 2, 0)).reshape(OH, F).astype(jnp.float32)
    b5v = b5.reshape(1, 1).astype(jnp.float32)
    return pl.pallas_call(
        _conv_bn_lrelu_head_kernel,
        out_shape=jax.ShapeDtypeStruct((N, 1), jnp.float32),
        grid=(1,),
        in_specs=[
            pl.BlockSpec((N, Hp2, Kp), lambda i: (0, 0, 0)),
            pl.BlockSpec((2, Kp, F), lambda i: (0, 0, 0)),
            pl.BlockSpec((F, Cout), lambda i: (0, 0)),
            pl.BlockSpec((Cout, F), lambda i: (0, 0)),
            pl.BlockSpec((1, F), lambda i: (0, 0)),
            pl.BlockSpec((1, F), lambda i: (0, 0)),
            pl.BlockSpec((OH, F), lambda i: (0, 0)),
            pl.BlockSpec((1, 1), lambda i: (0, 0)),
        ],
        out_specs=pl.BlockSpec((N, 1), lambda i: (0, 0)),
        scratch_shapes=[pltpu.VMEM((N * OH, F), jnp.float32)],
        compiler_params=pltpu.CompilerParams(dimension_semantics=("arbitrary",)),
    )(xr, T, gather, spread, grow, brow, w5row, b5v)


def discriminator_forward(x_nchw, p):
    x = jnp.transpose(x_nchw, (0, 2, 3, 1)).astype(jnp.float32)  # NCHW -> NHWC
    x = conv_lrelu_layer(x, p["w1"], p["b1"])
    x = conv_bn_lrelu_layer(x, p["w2"], p["g2"], p["be2"])
    x = conv_bn_lrelu_layer(x, p["w3"], p["g3"], p["be3"])
    y = conv_bn_lrelu_head_layer(x, p["w4"], p["g4"], p["be4"],
                                 p["w5"], p["b5"])
    return y.reshape(y.shape[0], 1, 1, 1)                        # NCHW (N,1,1,1)


# ------------------------------ pure-JAX reference ---------------------------
def _conv_ref(x, w, b, stride, padding):
    w_hwio = jnp.transpose(w, (2, 3, 1, 0))
    y = jax.lax.conv_general_dilated(
        x, w_hwio, window_strides=(stride, stride),
        padding=[(padding, padding), (padding, padding)],
        dimension_numbers=("NHWC", "HWIO", "NHWC"))
    return y if b is None else y + b


def reference_forward(x_nchw, p):
    x = jnp.transpose(x_nchw, (0, 2, 3, 1))
    y = _conv_ref(x, p["w1"], p["b1"], 2, 1)
    y = jnp.where(y > 0, y, LRELU_SLOPE * y)
    for i in ("2", "3", "4"):
        y = _conv_ref(y, p[f"w{i}"], None, 2, 1)
        mean = jnp.mean(y, axis=(0, 1, 2))
        var = jnp.mean((y - mean) ** 2, axis=(0, 1, 2))
        y = (y - mean) / jnp.sqrt(var + BN_EPS) * p[f"g{i}"] + p[f"be{i}"]
        y = jnp.where(y > 0, y, LRELU_SLOPE * y)
    y = _conv_ref(y, p["w5"], p["b5"], 2, 0)
    y = jax.nn.sigmoid(y)
    return jnp.transpose(y, (0, 3, 1, 2))


if __name__ == "__main__":
    # 64x64 input so the final 4x4/stride-2/pad-0 conv yields a 1x1 map.
    N, C_IMG, FD, HW = 2, 3, 8, 64
    key = jax.random.PRNGKey(0)
    keys = jax.random.split(key, 8)

    def rnd(k, shape, fan_in):
        return jax.random.normal(k, shape, jnp.float32) / jnp.sqrt(float(fan_in))

    params = {
        "w1": rnd(keys[0], (FD, C_IMG, 4, 4), C_IMG * 16),
        "b1": rnd(keys[1], (FD,), C_IMG * 16),
        "w2": rnd(keys[2], (FD * 2, FD, 4, 4), FD * 16),
        "g2": jnp.ones((FD * 2,), jnp.float32),
        "be2": jnp.zeros((FD * 2,), jnp.float32),
        "w3": rnd(keys[3], (FD * 4, FD * 2, 4, 4), FD * 2 * 16),
        "g3": jnp.ones((FD * 4,), jnp.float32),
        "be3": jnp.zeros((FD * 4,), jnp.float32),
        "w4": rnd(keys[4], (FD * 8, FD * 4, 4, 4), FD * 4 * 16),
        "g4": jnp.ones((FD * 8,), jnp.float32),
        "be4": jnp.zeros((FD * 8,), jnp.float32),
        "w5": rnd(keys[5], (1, FD * 8, 4, 4), FD * 8 * 16),
        "b5": rnd(keys[6], (1,), FD * 8 * 16),
    }
    x = jax.random.normal(keys[7], (N, C_IMG, HW, HW), jnp.float32)

    out = jax.block_until_ready(jax.jit(discriminator_forward)(x, params))
    assert out.shape == (N, 1, 1, 1), out.shape

    ref = jax.block_until_ready(jax.jit(reference_forward)(x, params))
    max_err = float(jnp.max(jnp.abs(out - ref)))
    # bf16 MXU operands -> allow a small absolute tolerance vs the f32 ref.
    assert jnp.allclose(out, ref, atol=2e-2, rtol=2e-2), max_err

    print("KERNEL_OK")
</pallas_src>

<mosaic_0001>
module attributes {stable_mosaic.version = 11 : i64} {
  func.func @_conv_lrelu_kernel(%arg0: i32, %arg1: memref<1x33x512xbf16, #tpu.memory_space<vmem>>, %arg2: memref<2x512x256xbf16, #tpu.memory_space<vmem>>, %arg3: memref<1x256xf32, #tpu.memory_space<vmem>>, %arg4: memref<32x256xbf16, #tpu.memory_space<vmem>>) attributes {dimension_semantics = [#tpu.dimension_semantics<parallel>], iteration_bounds = array<i64: 2>, scalar_prefetch = 0 : i64, scratch_operands = 0 : i64, tpu.core_type = #tpu.core_type<tc>, window_params = [{transform_indices = @transform_0, window_bounds = array<i64: 1, 33, 512>}, {pipeline_mode = #tpu.pipeline_mode<synchronous>, transform_indices = @transform_1, window_bounds = array<i64: 2, 512, 256>}, {pipeline_mode = #tpu.pipeline_mode<synchronous>, transform_indices = @transform_2, window_bounds = array<i64: 1, 256>}, {transform_indices = @transform_3, window_bounds = array<i64: 32, 256>}]} {
    %c0 = arith.constant 0 : index
    %c0_0 = arith.constant 0 : index
    %c0_1 = arith.constant 0 : index
    %0 = vector.load %arg1[%c0, %c0_0, %c0_1] : memref<1x33x512xbf16, #tpu.memory_space<vmem>>, vector<1x32x512xbf16>
    %1 = vector.shape_cast %0 : vector<1x32x512xbf16> to vector<32x512xbf16>
    %c0_2 = arith.constant 0 : index
    %c0_3 = arith.constant 0 : index
    %c0_4 = arith.constant 0 : index
    %2 = vector.load %arg2[%c0_2, %c0_3, %c0_4] : memref<2x512x256xbf16, #tpu.memory_space<vmem>>, vector<1x512x256xbf16>
    %3 = vector.shape_cast %2 : vector<1x512x256xbf16> to vector<512x256xbf16>
    %cst = arith.constant dense<0.000000e+00> : vector<32x256xf32>
    %4 = tpu.matmul %1, %3, %cst {dimension_numbers = #tpu.dot_dimension_numbers<[1], [0], [0], [1], [0, 0, 1, 1], [], []>} : vector<32x512xbf16>, vector<512x256xbf16>, vector<32x256xf32> -> vector<32x256xf32>
    %c0_5 = arith.constant 0 : index
    %c1 = arith.constant 1 : index
    %c0_6 = arith.constant 0 : index
    %5 = vector.load %arg1[%c0_5, %c1, %c0_6] : memref<1x33x512xbf16, #tpu.memory_space<vmem>>, vector<1x32x512xbf16>
    %6 = vector.shape_cast %5 : vector<1x32x512xbf16> to vector<32x512xbf16>
    %c1_7 = arith.constant 1 : index
    %c0_8 = arith.constant 0 : index
    %c0_9 = arith.constant 0 : index
    %7 = vector.load %arg2[%c1_7, %c0_8, %c0_9] : memref<2x512x256xbf16, #tpu.memory_space<vmem>>, vector<1x512x256xbf16>
    %8 = vector.shape_cast %7 : vector<1x512x256xbf16> to vector<512x256xbf16>
    %cst_10 = arith.constant dense<0.000000e+00> : vector<32x256xf32>
    %9 = tpu.matmul %6, %8, %cst_10 {dimension_numbers = #tpu.dot_dimension_numbers<[1], [0], [0], [1], [0, 0, 1, 1], [], []>} : vector<32x512xbf16>, vector<512x256xbf16>, vector<32x256xf32> -> vector<32x256xf32>
    %10 = arith.addf %4, %9 : vector<32x256xf32>
    %c0_11 = arith.constant 0 : index
    %c0_12 = arith.constant 0 : index
    %11 = vector.load %arg3[%c0_11, %c0_12] : memref<1x256xf32, #tpu.memory_space<vmem>>, vector<1x256xf32>
    %12 = vector.broadcast %11 : vector<1x256xf32> to vector<32x256xf32>
    %13 = arith.addf %10, %12 : vector<32x256xf32>
    %cst_13 = arith.constant 0.000000e+00 : f32
    %14 = vector.broadcast %cst_13 : f32 to vector<32x256xf32>
    %15 = arith.cmpf ogt, %13, %14 : vector<32x256xf32>
    %cst_14 = arith.constant 2.000000e-01 : f32
    %16 = vector.broadcast %cst_14 : f32 to vector<32x256xf32>
    %17 = arith.mulf %16, %13 : vector<32x256xf32>
    %18 = arith.select %15, %13, %17 : vector<32x256xi1>, vector<32x256xf32>
    %19 = arith.truncf %18 : vector<32x256xf32> to vector<32x256xbf16>
    %c0_15 = arith.constant 0 : index
    %c0_16 = arith.constant 0 : index
    %20 = vector.load %arg4[%c0_15, %c0_16] : memref<32x256xbf16, #tpu.memory_space<vmem>>, vector<32x256xbf16>
    tpu.vector_store %arg4[%c0_15, %c0_16], %19 {strides = array<i32>} : memref<32x256xbf16, #tpu.memory_space<vmem>>, vector<32x256xbf16>,
    return
  }
  func.func @transform_0(%arg0: i32) -> (i32, i32, i32) {
    %c0_i32 = arith.constant 0 : i32
    %c0_i32_0 = arith.constant 0 : i32
    %c0_i32_1 = arith.constant 0 : i32
    return %arg0, %c0_i32, %c0_i32_0 : i32, i32, i32
  }
  func.func @transform_1(%arg0: i32) -> (i32, i32, i32) {
    %c0_i32 = arith.constant 0 : i32
    %c0_i32_0 = arith.constant 0 : i32
    %c0_i32_1 = arith.constant 0 : i32
    %c0_i32_2 = arith.constant 0 : i32
    return %c0_i32, %c0_i32_0, %c0_i32_1 : i32, i32, i32
  }
  func.func @transform_2(%arg0: i32) -> (i32, i32) {
    %c0_i32 = arith.constant 0 : i32
    %c0_i32_0 = arith.constant 0 : i32
    %c0_i32_1 = arith.constant 0 : i32
    return %c0_i32, %c0_i32_0 : i32, i32
  }
  func.func @transform_3(%arg0: i32) -> (i32, i32) {
    %c0_i32 = arith.constant 0 : i32
    %c0_i32_0 = arith.constant 0 : i32
    return %arg0, %c0_i32 : i32, i32
  }
}

module attributes {stable_mosaic.version = 11 : i64} {
  func.func @_conv_bn_lrelu_kernel(%arg0: i32, %arg1: memref<2x17x640xbf16, #tpu.memory_space<vmem>>, %arg2: memref<2x640x256xbf16, #tpu.memory_space<vmem>>, %arg3: memref<256x16xf32, #tpu.memory_space<vmem>>, %arg4: memref<16x256xf32, #tpu.memory_space<vmem>>, %arg5: memref<1x256xf32, #tpu.memory_space<vmem>>, %arg6: memref<1x256xf32, #tpu.memory_space<vmem>>, %arg7: memref<32x256xbf16, #tpu.memory_space<vmem>>, %arg8: memref<32x256xf32, #tpu.memory_space<vmem>>) attributes {dimension_semantics = [#tpu.dimension_semantics<arbitrary>], iteration_bounds = array<i64: 1>, scalar_prefetch = 0 : i64, scratch_operands = 1 : i64, tpu.core_type = #tpu.core_type<tc>, window_params = [{pipeline_mode = #tpu.pipeline_mode<synchronous>, transform_indices = @transform_0, window_bounds = array<i64: 2, 17, 640>}, {pipeline_mode = #tpu.pipeline_mode<synchronous>, transform_indices = @transform_1, window_bounds = array<i64: 2, 640, 256>}, {pipeline_mode = #tpu.pipeline_mode<synchronous>, transform_indices = @transform_2, window_bounds = array<i64: 256, 16>}, {pipeline_mode = #tpu.pipeline_mode<synchronous>, transform_indices = @transform_3, window_bounds = array<i64: 16, 256>}, {pipeline_mode = #tpu.pipeline_mode<synchronous>, transform_indices = @transform_4, window_bounds = array<i64: 1, 256>}, {pipeline_mode = #tpu.pipeline_mode<synchronous>, transform_indices = @transform_5, window_bounds = array<i64: 1, 256>}, {pipeline_mode = #tpu.pipeline_mode<synchronous>, transform_indices = @transform_6, window_bounds = array<i64: 32, 256>}]} {
    %c0 = arith.constant 0 : index
    %c0_0 = arith.constant 0 : index
    %c0_1 = arith.constant 0 : index
    %0 = vector.load %arg1[%c0, %c0_0, %c0_1] : memref<2x17x640xbf16, #tpu.memory_space<vmem>>, vector<1x16x640xbf16>
    %1 = vector.shape_cast %0 : vector<1x16x640xbf16> to vector<16x640xbf16>
    %c0_2 = arith.constant 0 : index
    %c0_3 = arith.constant 0 : index
    %c0_4 = arith.constant 0 : index
    %2 = vector.load %arg2[%c0_2, %c0_3, %c0_4] : memref<2x640x256xbf16, #tpu.memory_space<vmem>>, vector<1x640x256xbf16>
    %3 = vector.shape_cast %2 : vector<1x640x256xbf16> to vector<640x256xbf16>
    %cst = arith.constant dense<0.000000e+00> : vector<16x256xf32>
    %4 = tpu.matmul %1, %3, %cst {dimension_numbers = #tpu.dot_dimension_numbers<[1], [0], [0], [1], [0, 0, 1, 1], [], []>} : vector<16x640xbf16>, vector<640x256xbf16>, vector<16x256xf32> -> vector<16x256xf32>
    %c0_5 = arith.constant 0 : index
    %c1 = arith.constant 1 : index
    %c0_6 = arith.constant 0 : index
    %5 = vector.load %arg1[%c0_5, %c1, %c0_6] : memref<2x17x640xbf16, #tpu.memory_space<vmem>>, vector<1x16x640xbf16>
    %6 = vector.shape_cast %5 : vector<1x16x640xbf16> to vector<16x640xbf16>
    %c1_7 = arith.constant 1 : index
    %c0_8 = arith.constant 0 : index
    %c0_9 = arith.constant 0 : index
    %7 = vector.load %arg2[%c1_7, %c0_8, %c0_9] : memref<2x640x256xbf16, #tpu.memory_space<vmem>>, vector<1x640x256xbf16>
    %8 = vector.shape_cast %7 : vector<1x640x256xbf16> to vector<640x256xbf16>
    %cst_10 = arith.constant dense<0.000000e+00> : vector<16x256xf32>
    %9 = tpu.matmul %6, %8, %cst_10 {dimension_numbers = #tpu.dot_dimension_numbers<[1], [0], [0], [1], [0, 0, 1, 1], [], []>} : vector<16x640xbf16>, vector<640x256xbf16>, vector<16x256xf32> -> vector<16x256xf32>
    %10 = arith.addf %4, %9 : vector<16x256xf32>
    %c0_11 = arith.constant 0 : index
    %c0_12 = arith.constant 0 : index
    %11 = vector.load %arg8[%c0_11, %c0_12] : memref<32x256xf32, #tpu.memory_space<vmem>>, vector<16x256xf32>
    tpu.vector_store %arg8[%c0_11, %c0_12], %10 {strides = array<i32>} : memref<32x256xf32, #tpu.memory_space<vmem>>, vector<16x256xf32>,
    %c1_13 = arith.constant 1 : index
    %c0_14 = arith.constant 0 : index
    %c0_15 = arith.constant 0 : index
    %12 = vector.load %arg1[%c1_13, %c0_14, %c0_15] : memref<2x17x640xbf16, #tpu.memory_space<vmem>>, vector<1x16x640xbf16>
    %13 = vector.shape_cast %12 : vector<1x16x640xbf16> to vector<16x640xbf16>
    %c0_16 = arith.constant 0 : index
    %c0_17 = arith.constant 0 : index
    %c0_18 = arith.constant 0 : index
    %14 = vector.load %arg2[%c0_16, %c0_17, %c0_18] : memref<2x640x256xbf16, #tpu.memory_space<vmem>>, vector<1x640x256xbf16>
    %15 = vector.shape_cast %14 : vector<1x640x256xbf16> to vector<640x256xbf16>
    %cst_19 = arith.constant dense<0.000000e+00> : vector<16x256xf32>
    %16 = tpu.matmul %13, %15, %cst_19 {dimension_numbers = #tpu.dot_dimension_numbers<[1], [0], [0], [1], [0, 0, 1, 1], [], []>} : vector<16x640xbf16>, vector<640x256xbf16>, vector<16x256xf32> -> vector<16x256xf32>
    %c1_20 = arith.constant 1 : index
    %c1_21 = arith.constant 1 : index
    %c0_22 = arith.constant 0 : index
    %17 = vector.load %arg1[%c1_20, %c1_21, %c0_22] : memref<2x17x640xbf16, #tpu.memory_space<vmem>>, vector<1x16x640xbf16>
    %18 = vector.shape_cast %17 : vector<1x16x640xbf16> to vector<16x640xbf16>
    %c1_23 = arith.constant 1 : index
    %c0_24 = arith.constant 0 : index
    %c0_25 = arith.constant 0 : index
    %19 = vector.load %arg2[%c1_23, %c0_24, %c0_25] : memref<2x640x256xbf16, #tpu.memory_space<vmem>>, vector<1x640x256xbf16>
    %20 = vector.shape_cast %19 : vector<1x640x256xbf16> to vector<640x256xbf16>
    %cst_26 = arith.constant dense<0.000000e+00> : vector<16x256xf32>
    %21 = tpu.matmul %18, %20, %cst_26 {dimension_numbers = #tpu.dot_dimension_numbers<[1], [0], [0], [1], [0, 0, 1, 1], [], []>} : vector<16x640xbf16>, vector<640x256xbf16>, vector<16x256xf32> -> vector<16x256xf32>
    %22 = arith.addf %16, %21 : vector<16x256xf32>
    %c16 = arith.constant 16 : index
    %c0_27 = arith.constant 0 : index
    %23 = vector.load %arg8[%c16, %c0_27] : memref<32x256xf32, #tpu.memory_space<vmem>>, vector<16x256xf32>
    tpu.vector_store %arg8[%c16, %c0_27], %22 {strides = array<i32>} : memref<32x256xf32, #tpu.memory_space<vmem>>, vector<16x256xf32>,
    %c0_28 = arith.constant 0 : index
    %c0_29 = arith.constant 0 : index
    %24 = vector.load %arg8[%c0_28, %c0_29] : memref<32x256xf32, #tpu.memory_space<vmem>>, vector<32x256xf32>
    %cst_30 = arith.constant dense<0.000000e+00> : vector<256xf32>
    %25 = vector.multi_reduction <add>, %24, %cst_30 [0] : vector<32x256xf32> to vector<256xf32>
    %26 = vector.shape_cast %25 : vector<256xf32> to vector<1x256xf32>
    %c0_31 = arith.constant 0 : index
    %c0_32 = arith.constant 0 : index
    %27 = vector.load %arg3[%c0_31, %c0_32] : memref<256x16xf32, #tpu.memory_space<vmem>>, vector<256x16xf32>
    %cst_33 = arith.constant dense<0.000000e+00> : vector<1x16xf32>
    %28 = tpu.matmul %26, %27, %cst_33 {dimension_numbers = #tpu.dot_dimension_numbers<[1], [0], [0], [1], [0, 0, 1, 1], [], []>} : vector<1x256xf32>, vector<256x16xf32>, vector<1x16xf32> -> vector<1x16xf32>
    %cst_34 = arith.constant 5.120000e+02 : f32
    %29 = vector.broadcast %cst_34 : f32 to vector<1x16xf32>
    %30 = arith.divf %28, %29 : vector<1x16xf32>
    %31 = arith.mulf %24, %24 : vector<32x256xf32>
    %cst_35 = arith.constant dense<0.000000e+00> : vector<256xf32>
    %32 = vector.multi_reduction <add>, %31, %cst_35 [0] : vector<32x256xf32> to vector<256xf32>
    %33 = vector.shape_cast %32 : vector<256xf32> to vector<1x256xf32>
    %c0_36 = arith.constant 0 : index
    %c0_37 = arith.constant 0 : index
    %34 = vector.load %arg3[%c0_36, %c0_37] : memref<256x16xf32, #tpu.memory_space<vmem>>, vector<256x16xf32>
    %cst_38 = arith.constant dense<0.000000e+00> : vector<1x16xf32>
    %35 = tpu.matmul %33, %34, %cst_38 {dimension_numbers = #tpu.dot_dimension_numbers<[1], [0], [0], [1], [0, 0, 1, 1], [], []>} : vector<1x256xf32>, vector<256x16xf32>, vector<1x16xf32> -> vector<1x16xf32>
    %cst_39 = arith.constant 5.120000e+02 : f32
    %36 = vector.broadcast %cst_39 : f32 to vector<1x16xf32>
    %37 = arith.divf %35, %36 : vector<1x16xf32>
    %38 = arith.mulf %30, %30 : vector<1x16xf32>
    %39 = arith.subf %37, %38 : vector<1x16xf32>
    %c0_40 = arith.constant 0 : index
    %c0_41 = arith.constant 0 : index
    %40 = vector.load %arg4[%c0_40, %c0_41] : memref<16x256xf32, #tpu.memory_space<vmem>>, vector<16x256xf32>
    %cst_42 = arith.constant dense<0.000000e+00> : vector<1x256xf32>
    %41 = tpu.matmul %30, %40, %cst_42 {dimension_numbers = #tpu.dot_dimension_numbers<[1], [0], [0], [1], [0, 0, 1, 1], [], []>} : vector<1x16xf32>, vector<16x256xf32>, vector<1x256xf32> -> vector<1x256xf32>
    %c0_43 = arith.constant 0 : index
    %c0_44 = arith.constant 0 : index
    %42 = vector.load %arg4[%c0_43, %c0_44] : memref<16x256xf32, #tpu.memory_space<vmem>>, vector<16x256xf32>
    %cst_45 = arith.constant dense<0.000000e+00> : vector<1x256xf32>
    %43 = tpu.matmul %39, %42, %cst_45 {dimension_numbers = #tpu.dot_dimension_numbers<[1], [0], [0], [1], [0, 0, 1, 1], [], []>} : vector<1x16xf32>, vector<16x256xf32>, vector<1x256xf32> -> vector<1x256xf32>
    %c0_46 = arith.constant 0 : index
    %c0_47 = arith.constant 0 : index
    %44 = vector.load %arg5[%c0_46, %c0_47] : memref<1x256xf32, #tpu.memory_space<vmem>>, vector<1x256xf32>
    %cst_48 = arith.constant 9.99999974E-6 : f32
    %45 = vector.broadcast %cst_48 : f32 to vector<1x256xf32>
    %46 = arith.addf %43, %45 : vector<1x256xf32>
    %47 = math.rsqrt %46 : vector<1x256xf32>
    %48 = arith.mulf %44, %47 : vector<1x256xf32>
    %49 = vector.broadcast %41 : vector<1x256xf32> to vector<32x256xf32>
    %50 = arith.subf %24, %49 : vector<32x256xf32>
    %51 = vector.broadcast %48 : vector<1x256xf32> to vector<32x256xf32>
    %52 = arith.mulf %50, %51 : vector<32x256xf32>
    %c0_49 = arith.constant 0 : index
    %c0_50 = arith.constant 0 : index
    %53 = vector.load %arg6[%c0_49, %c0_50] : memref<1x256xf32, #tpu.memory_space<vmem>>, vector<1x256xf32>
    %54 = vector.broadcast %53 : vector<1x256xf32> to vector<32x256xf32>
    %55 = arith.addf %52, %54 : vector<32x256xf32>
    %cst_51 = arith.constant 0.000000e+00 : f32
    %56 = vector.broadcast %cst_51 : f32 to vector<32x256xf32>
    %57 = arith.cmpf ogt, %55, %56 : vector<32x256xf32>
    %cst_52 = arith.constant 2.000000e-01 : f32
    %58 = vector.broadcast %cst_52 : f32 to vector<32x256xf32>
    %59 = arith.mulf %58, %55 : vector<32x256xf32>
    %60 = arith.select %57, %55, %59 : vector<32x256xi1>, vector<32x256xf32>
    %61 = arith.truncf %60 : vector<32x256xf32> to vector<32x256xbf16>
    %c0_53 = arith.constant 0 : index
    %c0_54 = arith.constant 0 : index
    %62 = vector.load %arg7[%c0_53, %c0_54] : memref<32x256xbf16, #tpu.memory_space<vmem>>, vector<32x256xbf16>
    tpu.vector_store %arg7[%c0_53, %c0_54], %61 {strides = array<i32>} : memref<32x256xbf16, #tpu.memory_space<vmem>>, vector<32x256xbf16>,
    return
  }
  func.func @transform_0(%arg0: i32) -> (i32, i32, i32) {
    %c0_i32 = arith.constant 0 : i32
    %c0_i32_0 = arith.constant 0 : i32
    %c0_i32_1 = arith.constant 0 : i32
    %c0_i32_2 = arith.constant 0 : i32
    return %c0_i32, %c0_i32_0, %c0_i32_1 : i32, i32, i32
  }
  func.func @transform_1(%arg0: i32) -> (i32, i32, i32) {
    %c0_i32 = arith.constant 0 : i32
    %c0_i32_0 = arith.constant 0 : i32
    %c0_i32_1 = arith.constant 0 : i32
    %c0_i32_2 = arith.constant 0 : i32
    return %c0_i32, %c0_i32_0, %c0_i32_1 : i32, i32, i32
  }
  func.func @transform_2(%arg0: i32) -> (i32, i32) {
    %c0_i32 = arith.constant 0 : i32
    %c0_i32_0 = arith.constant 0 : i32
    %c0_i32_1 = arith.constant 0 : i32
    return %c0_i32, %c0_i32_0 : i32, i32
  }
  func.func @transform_3(%arg0: i32) -> (i32, i32) {
    %c0_i32 = arith.constant 0 : i32
    %c0_i32_0 = arith.constant 0 : i32
    %c0_i32_1 = arith.constant 0 : i32
    return %c0_i32, %c0_i32_0 : i32, i32
  }
  func.func @transform_4(%arg0: i32) -> (i32, i32) {
    %c0_i32 = arith.constant 0 : i32
    %c0_i32_0 = arith.constant 0 : i32
    %c0_i32_1 = arith.constant 0 : i32
    return %c0_i32, %c0_i32_0 : i32, i32
  }
  func.func @transform_5(%arg0: i32) -> (i32, i32) {
    %c0_i32 = arith.constant 0 : i32
    %c0_i32_0 = arith.constant 0 : i32
    %c0_i32_1 = arith.constant 0 : i32
    return %c0_i32, %c0_i32_0 : i32, i32
  }
  func.func @transform_6(%arg0: i32) -> (i32, i32) {
    %c0_i32 = arith.constant 0 : i32
    %c0_i32_0 = arith.constant 0 : i32
    %c0_i32_1 = arith.constant 0 : i32
    return %c0_i32, %c0_i32_0 : i32, i32
  }
}

module attributes {stable_mosaic.version = 11 : i64} {
  func.func @_conv_bn_lrelu_kernel(%arg0: i32, %arg1: memref<2x9x640xbf16, #tpu.memory_space<vmem>>, %arg2: memref<2x640x256xbf16, #tpu.memory_space<vmem>>, %arg3: memref<256x32xf32, #tpu.memory_space<vmem>>, %arg4: memref<32x256xf32, #tpu.memory_space<vmem>>, %arg5: memref<1x256xf32, #tpu.memory_space<vmem>>, %arg6: memref<1x256xf32, #tpu.memory_space<vmem>>, %arg7: memref<16x256xbf16, #tpu.memory_space<vmem>>, %arg8: memref<16x256xf32, #tpu.memory_space<vmem>>) attributes {dimension_semantics = [#tpu.dimension_semantics<arbitrary>], iteration_bounds = array<i64: 1>, scalar_prefetch = 0 : i64, scratch_operands = 1 : i64, tpu.core_type = #tpu.core_type<tc>, window_params = [{pipeline_mode = #tpu.pipeline_mode<synchronous>, transform_indices = @transform_0, window_bounds = array<i64: 2, 9, 640>}, {pipeline_mode = #tpu.pipeline_mode<synchronous>, transform_indices = @transform_1, window_bounds = array<i64: 2, 640, 256>}, {pipeline_mode = #tpu.pipeline_mode<synchronous>, transform_indices = @transform_2, window_bounds = array<i64: 256, 32>}, {pipeline_mode = #tpu.pipeline_mode<synchronous>, transform_indices = @transform_3, window_bounds = array<i64: 32, 256>}, {pipeline_mode = #tpu.pipeline_mode<synchronous>, transform_indices = @transform_4, window_bounds = array<i64: 1, 256>}, {pipeline_mode = #tpu.pipeline_mode<synchronous>, transform_indices = @transform_5, window_bounds = array<i64: 1, 256>}, {pipeline_mode = #tpu.pipeline_mode<synchronous>, transform_indices = @transform_6, window_bounds = array<i64: 16, 256>}]} {
    %c0 = arith.constant 0 : index
    %c0_0 = arith.constant 0 : index
    %c0_1 = arith.constant 0 : index
    %0 = vector.load %arg1[%c0, %c0_0, %c0_1] : memref<2x9x640xbf16, #tpu.memory_space<vmem>>, vector<1x8x640xbf16>
    %1 = vector.shape_cast %0 : vector<1x8x640xbf16> to vector<8x640xbf16>
    %c0_2 = arith.constant 0 : index
    %c0_3 = arith.constant 0 : index
    %c0_4 = arith.constant 0 : index
    %2 = vector.load %arg2[%c0_2, %c0_3, %c0_4] : memref<2x640x256xbf16, #tpu.memory_space<vmem>>, vector<1x640x256xbf16>
    %3 = vector.shape_cast %2 : vector<1x640x256xbf16> to vector<640x256xbf16>
    %cst = arith.constant dense<0.000000e+00> : vector<8x256xf32>
    %4 = tpu.matmul %1, %3, %cst {dimension_numbers = #tpu.dot_dimension_numbers<[1], [0], [0], [1], [0, 0, 1, 1], [], []>} : vector<8x640xbf16>, vector<640x256xbf16>, vector<8x256xf32> -> vector<8x256xf32>
    %c0_5 = arith.constant 0 : index
    %c1 = arith.constant 1 : index
    %c0_6 = arith.constant 0 : index
    %5 = vector.load %arg1[%c0_5, %c1, %c0_6] : memref<2x9x640xbf16, #tpu.memory_space<vmem>>, vector<1x8x640xbf16>
    %6 = vector.shape_cast %5 : vector<1x8x640xbf16> to vector<8x640xbf16>
    %c1_7 = arith.constant 1 : index
    %c0_8 = arith.constant 0 : index
    %c0_9 = arith.constant 0 : index
    %7 = vector.load %arg2[%c1_7, %c0_8, %c0_9] : memref<2x640x256xbf16, #tpu.memory_space<vmem>>, vector<1x640x256xbf16>
    %8 = vector.shape_cast %7 : vector<1x640x256xbf16> to vector<640x256xbf16>
    %cst_10 = arith.constant dense<0.000000e+00> : vector<8x256xf32>
    %9 = tpu.matmul %6, %8, %cst_10 {dimension_numbers = #tpu.dot_dimension_numbers<[1], [0], [0], [1], [0, 0, 1, 1], [], []>} : vector<8x640xbf16>, vector<640x256xbf16>, vector<8x256xf32> -> vector<8x256xf32>
    %10 = arith.addf %4, %9 : vector<8x256xf32>
    %c0_11 = arith.constant 0 : index
    %c0_12 = arith.constant 0 : index
    %11 = vector.load %arg8[%c0_11, %c0_12] : memref<16x256xf32, #tpu.memory_space<vmem>>, vector<8x256xf32>
    tpu.vector_store %arg8[%c0_11, %c0_12], %10 {strides = array<i32>} : memref<16x256xf32, #tpu.memory_space<vmem>>, vector<8x256xf32>,
    %c1_13 = arith.constant 1 : index
    %c0_14 = arith.constant 0 : index
    %c0_15 = arith.constant 0 : index
    %12 = vector.load %arg1[%c1_13, %c0_14, %c0_15] : memref<2x9x640xbf16, #tpu.memory_space<vmem>>, vector<1x8x640xbf16>
    %13 = vector.shape_cast %12 : vector<1x8x640xbf16> to vector<8x640xbf16>
    %c0_16 = arith.constant 0 : index
    %c0_17 = arith.constant 0 : index
    %c0_18 = arith.constant 0 : index
    %14 = vector.load %arg2[%c0_16, %c0_17, %c0_18] : memref<2x640x256xbf16, #tpu.memory_space<vmem>>, vector<1x640x256xbf16>
    %15 = vector.shape_cast %14 : vector<1x640x256xbf16> to vector<640x256xbf16>
    %cst_19 = arith.constant dense<0.000000e+00> : vector<8x256xf32>
    %16 = tpu.matmul %13, %15, %cst_19 {dimension_numbers = #tpu.dot_dimension_numbers<[1], [0], [0], [1], [0, 0, 1, 1], [], []>} : vector<8x640xbf16>, vector<640x256xbf16>, vector<8x256xf32> -> vector<8x256xf32>
    %c1_20 = arith.constant 1 : index
    %c1_21 = arith.constant 1 : index
    %c0_22 = arith.constant 0 : index
    %17 = vector.load %arg1[%c1_20, %c1_21, %c0_22] : memref<2x9x640xbf16, #tpu.memory_space<vmem>>, vector<1x8x640xbf16>
    %18 = vector.shape_cast %17 : vector<1x8x640xbf16> to vector<8x640xbf16>
    %c1_23 = arith.constant 1 : index
    %c0_24 = arith.constant 0 : index
    %c0_25 = arith.constant 0 : index
    %19 = vector.load %arg2[%c1_23, %c0_24, %c0_25] : memref<2x640x256xbf16, #tpu.memory_space<vmem>>, vector<1x640x256xbf16>
    %20 = vector.shape_cast %19 : vector<1x640x256xbf16> to vector<640x256xbf16>
    %cst_26 = arith.constant dense<0.000000e+00> : vector<8x256xf32>
    %21 = tpu.matmul %18, %20, %cst_26 {dimension_numbers = #tpu.dot_dimension_numbers<[1], [0], [0], [1], [0, 0, 1, 1], [], []>} : vector<8x640xbf16>, vector<640x256xbf16>, vector<8x256xf32> -> vector<8x256xf32>
    %22 = arith.addf %16, %21 : vector<8x256xf32>
    %c8 = arith.constant 8 : index
    %c0_27 = arith.constant 0 : index
    %23 = vector.load %arg8[%c8, %c0_27] : memref<16x256xf32, #tpu.memory_space<vmem>>, vector<8x256xf32>
    tpu.vector_store %arg8[%c8, %c0_27], %22 {strides = array<i32>} : memref<16x256xf32, #tpu.memory_space<vmem>>, vector<8x256xf32>,
    %c0_28 = arith.constant 0 : index
    %c0_29 = arith.constant 0 : index
    %24 = vector.load %arg8[%c0_28, %c0_29] : memref<16x256xf32, #tpu.memory_space<vmem>>, vector<16x256xf32>
    %cst_30 = arith.constant dense<0.000000e+00> : vector<256xf32>
    %25 = vector.multi_reduction <add>, %24, %cst_30 [0] : vector<16x256xf32> to vector<256xf32>
    %26 = vector.shape_cast %25 : vector<256xf32> to vector<1x256xf32>
    %c0_31 = arith.constant 0 : index
    %c0_32 = arith.constant 0 : index
    %27 = vector.load %arg3[%c0_31, %c0_32] : memref<256x32xf32, #tpu.memory_space<vmem>>, vector<256x32xf32>
    %cst_33 = arith.constant dense<0.000000e+00> : vector<1x32xf32>
    %28 = tpu.matmul %26, %27, %cst_33 {dimension_numbers = #tpu.dot_dimension_numbers<[1], [0], [0], [1], [0, 0, 1, 1], [], []>} : vector<1x256xf32>, vector<256x32xf32>, vector<1x32xf32> -> vector<1x32xf32>
    %cst_34 = arith.constant 1.280000e+02 : f32
    %29 = vector.broadcast %cst_34 : f32 to vector<1x32xf32>
    %30 = arith.divf %28, %29 : vector<1x32xf32>
    %31 = arith.mulf %24, %24 : vector<16x256xf32>
    %cst_35 = arith.constant dense<0.000000e+00> : vector<256xf32>
    %32 = vector.multi_reduction <add>, %31, %cst_35 [0] : vector<16x256xf32> to vector<256xf32>
    %33 = vector.shape_cast %32 : vector<256xf32> to vector<1x256xf32>
    %c0_36 = arith.constant 0 : index
    %c0_37 = arith.constant 0 : index
    %34 = vector.load %arg3[%c0_36, %c0_37] : memref<256x32xf32, #tpu.memory_space<vmem>>, vector<256x32xf32>
    %cst_38 = arith.constant dense<0.000000e+00> : vector<1x32xf32>
    %35 = tpu.matmul %33, %34, %cst_38 {dimension_numbers = #tpu.dot_dimension_numbers<[1], [0], [0], [1], [0, 0, 1, 1], [], []>} : vector<1x256xf32>, vector<256x32xf32>, vector<1x32xf32> -> vector<1x32xf32>
    %cst_39 = arith.constant 1.280000e+02 : f32
    %36 = vector.broadcast %cst_39 : f32 to vector<1x32xf32>
    %37 = arith.divf %35, %36 : vector<1x32xf32>
    %38 = arith.mulf %30, %30 : vector<1x32xf32>
    %39 = arith.subf %37, %38 : vector<1x32xf32>
    %c0_40 = arith.constant 0 : index
    %c0_41 = arith.constant 0 : index
    %40 = vector.load %arg4[%c0_40, %c0_41] : memref<32x256xf32, #tpu.memory_space<vmem>>, vector<32x256xf32>
    %cst_42 = arith.constant dense<0.000000e+00> : vector<1x256xf32>
    %41 = tpu.matmul %30, %40, %cst_42 {dimension_numbers = #tpu.dot_dimension_numbers<[1], [0], [0], [1], [0, 0, 1, 1], [], []>} : vector<1x32xf32>, vector<32x256xf32>, vector<1x256xf32> -> vector<1x256xf32>
    %c0_43 = arith.constant 0 : index
    %c0_44 = arith.constant 0 : index
    %42 = vector.load %arg4[%c0_43, %c0_44] : memref<32x256xf32, #tpu.memory_space<vmem>>, vector<32x256xf32>
    %cst_45 = arith.constant dense<0.000000e+00> : vector<1x256xf32>
    %43 = tpu.matmul %39, %42, %cst_45 {dimension_numbers = #tpu.dot_dimension_numbers<[1], [0], [0], [1], [0, 0, 1, 1], [], []>} : vector<1x32xf32>, vector<32x256xf32>, vector<1x256xf32> -> vector<1x256xf32>
    %c0_46 = arith.constant 0 : index
    %c0_47 = arith.constant 0 : index
    %44 = vector.load %arg5[%c0_46, %c0_47] : memref<1x256xf32, #tpu.memory_space<vmem>>, vector<1x256xf32>
    %cst_48 = arith.constant 9.99999974E-6 : f32
    %45 = vector.broadcast %cst_48 : f32 to vector<1x256xf32>
    %46 = arith.addf %43, %45 : vector<1x256xf32>
    %47 = math.rsqrt %46 : vector<1x256xf32>
    %48 = arith.mulf %44, %47 : vector<1x256xf32>
    %49 = vector.broadcast %41 : vector<1x256xf32> to vector<16x256xf32>
    %50 = arith.subf %24, %49 : vector<16x256xf32>
    %51 = vector.broadcast %48 : vector<1x256xf32> to vector<16x256xf32>
    %52 = arith.mulf %50, %51 : vector<16x256xf32>
    %c0_49 = arith.constant 0 : index
    %c0_50 = arith.constant 0 : index
    %53 = vector.load %arg6[%c0_49, %c0_50] : memref<1x256xf32, #tpu.memory_space<vmem>>, vector<1x256xf32>
    %54 = vector.broadcast %53 : vector<1x256xf32> to vector<16x256xf32>
    %55 = arith.addf %52, %54 : vector<16x256xf32>
    %cst_51 = arith.constant 0.000000e+00 : f32
    %56 = vector.broadcast %cst_51 : f32 to vector<16x256xf32>
    %57 = arith.cmpf ogt, %55, %56 : vector<16x256xf32>
    %cst_52 = arith.constant 2.000000e-01 : f32
    %58 = vector.broadcast %cst_52 : f32 to vector<16x256xf32>
    %59 = arith.mulf %58, %55 : vector<16x256xf32>
    %60 = arith.select %57, %55, %59 : vector<16x256xi1>, vector<16x256xf32>
    %61 = arith.truncf %60 : vector<16x256xf32> to vector<16x256xbf16>
    %c0_53 = arith.constant 0 : index
    %c0_54 = arith.constant 0 : index
    %62 = vector.load %arg7[%c0_53, %c0_54] : memref<16x256xbf16, #tpu.memory_space<vmem>>, vector<16x256xbf16>
    tpu.vector_store %arg7[%c0_53, %c0_54], %61 {strides = array<i32>} : memref<16x256xbf16, #tpu.memory_space<vmem>>, vector<16x256xbf16>,
    return
  }
  func.func @transform_0(%arg0: i32) -> (i32, i32, i32) {
    %c0_i32 = arith.constant 0 : i32
    %c0_i32_0 = arith.constant 0 : i32
    %c0_i32_1 = arith.constant 0 : i32
    %c0_i32_2 = arith.constant 0 : i32
    return %c0_i32, %c0_i32_0, %c0_i32_1 : i32, i32, i32
  }
  func.func @transform_1(%arg0: i32) -> (i32, i32, i32) {
    %c0_i32 = arith.constant 0 : i32
    %c0_i32_0 = arith.constant 0 : i32
    %c0_i32_1 = arith.constant 0 : i32
    %c0_i32_2 = arith.constant 0 : i32
    return %c0_i32, %c0_i32_0, %c0_i32_1 : i32, i32, i32
  }
  func.func @transform_2(%arg0: i32) -> (i32, i32) {
    %c0_i32 = arith.constant 0 : i32
    %c0_i32_0 = arith.constant 0 : i32
    %c0_i32_1 = arith.constant 0 : i32
    return %c0_i32, %c0_i32_0 : i32, i32
  }
  func.func @transform_3(%arg0: i32) -> (i32, i32) {
    %c0_i32 = arith.constant 0 : i32
    %c0_i32_0 = arith.constant 0 : i32
    %c0_i32_1 = arith.constant 0 : i32
    return %c0_i32, %c0_i32_0 : i32, i32
  }
  func.func @transform_4(%arg0: i32) -> (i32, i32) {
    %c0_i32 = arith.constant 0 : i32
    %c0_i32_0 = arith.constant 0 : i32
    %c0_i32_1 = arith.constant 0 : i32
    return %c0_i32, %c0_i32_0 : i32, i32
  }
  func.func @transform_5(%arg0: i32) -> (i32, i32) {
    %c0_i32 = arith.constant 0 : i32
    %c0_i32_0 = arith.constant 0 : i32
    %c0_i32_1 = arith.constant 0 : i32
    return %c0_i32, %c0_i32_0 : i32, i32
  }
  func.func @transform_6(%arg0: i32) -> (i32, i32) {
    %c0_i32 = arith.constant 0 : i32
    %c0_i32_0 = arith.constant 0 : i32
    %c0_i32_1 = arith.constant 0 : i32
    return %c0_i32, %c0_i32_0 : i32, i32
  }
}

module attributes {stable_mosaic.version = 11 : i64} {
  func.func @_conv_bn_lrelu_head_kernel(%arg0: i32, %arg1: memref<2x5x640xbf16, #tpu.memory_space<vmem>>, %arg2: memref<2x640x256xbf16, #tpu.memory_space<vmem>>, %arg3: memref<256x64xf32, #tpu.memory_space<vmem>>, %arg4: memref<64x256xf32, #tpu.memory_space<vmem>>, %arg5: memref<1x256xf32, #tpu.memory_space<vmem>>, %arg6: memref<1x256xf32, #tpu.memory_space<vmem>>, %arg7: memref<4x256xf32, #tpu.memory_space<vmem>>, %arg8: memref<1x1xf32, #tpu.memory_space<vmem>>, %arg9: memref<2x1xf32, #tpu.memory_space<vmem>>, %arg10: memref<8x256xf32, #tpu.memory_space<vmem>>) attributes {dimension_semantics = [#tpu.dimension_semantics<arbitrary>], iteration_bounds = array<i64: 1>, scalar_prefetch = 0 : i64, scratch_operands = 1 : i64, tpu.core_type = #tpu.core_type<tc>, window_params = [{pipeline_mode = #tpu.pipeline_mode<synchronous>, transform_indices = @transform_0, window_bounds = array<i64: 2, 5, 640>}, {pipeline_mode = #tpu.pipeline_mode<synchronous>, transform_indices = @transform_1, window_bounds = array<i64: 2, 640, 256>}, {pipeline_mode = #tpu.pipeline_mode<synchronous>, transform_indices = @transform_2, window_bounds = array<i64: 256, 64>}, {pipeline_mode = #tpu.pipeline_mode<synchronous>, transform_indices = @transform_3, window_bounds = array<i64: 64, 256>}, {pipeline_mode = #tpu.pipeline_mode<synchronous>, transform_indices = @transform_4, window_bounds = array<i64: 1, 256>}, {pipeline_mode = #tpu.pipeline_mode<synchronous>, transform_indices = @transform_5, window_bounds = array<i64: 1, 256>}, {pipeline_mode = #tpu.pipeline_mode<synchronous>, transform_indices = @transform_6, window_bounds = array<i64: 4, 256>}, {pipeline_mode = #tpu.pipeline_mode<synchronous>, transform_indices = @transform_7, window_bounds = array<i64: 1, 1>}, {pipeline_mode = #tpu.pipeline_mode<synchronous>, transform_indices = @transform_8, window_bounds = array<i64: 2, 1>}]} {
    %c0 = arith.constant 0 : index
    %c0_0 = arith.constant 0 : index
    %c0_1 = arith.constant 0 : index
    %0 = vector.load %arg1[%c0, %c0_0, %c0_1] : memref<2x5x640xbf16, #tpu.memory_space<vmem>>, vector<1x4x640xbf16>
    %1 = vector.shape_cast %0 : vector<1x4x640xbf16> to vector<4x640xbf16>
    %c0_2 = arith.constant 0 : index
    %c0_3 = arith.constant 0 : index
    %c0_4 = arith.constant 0 : index
    %2 = vector.load %arg2[%c0_2, %c0_3, %c0_4] : memref<2x640x256xbf16, #tpu.memory_space<vmem>>, vector<1x640x256xbf16>
    %3 = vector.shape_cast %2 : vector<1x640x256xbf16> to vector<640x256xbf16>
    %cst = arith.constant dense<0.000000e+00> : vector<4x256xf32>
    %4 = tpu.matmul %1, %3, %cst {dimension_numbers = #tpu.dot_dimension_numbers<[1], [0], [0], [1], [0, 0, 1, 1], [], []>} : vector<4x640xbf16>, vector<640x256xbf16>, vector<4x256xf32> -> vector<4x256xf32>
    %c0_5 = arith.constant 0 : index
    %c1 = arith.constant 1 : index
    %c0_6 = arith.constant 0 : index
    %5 = vector.load %arg1[%c0_5, %c1, %c0_6] : memref<2x5x640xbf16, #tpu.memory_space<vmem>>, vector<1x4x640xbf16>
    %6 = vector.shape_cast %5 : vector<1x4x640xbf16> to vector<4x640xbf16>
    %c1_7 = arith.constant 1 : index
    %c0_8 = arith.constant 0 : index
    %c0_9 = arith.constant 0 : index
    %7 = vector.load %arg2[%c1_7, %c0_8, %c0_9] : memref<2x640x256xbf16, #tpu.memory_space<vmem>>, vector<1x640x256xbf16>
    %8 = vector.shape_cast %7 : vector<1x640x256xbf16> to vector<640x256xbf16>
    %cst_10 = arith.constant dense<0.000000e+00> : vector<4x256xf32>
    %9 = tpu.matmul %6, %8, %cst_10 {dimension_numbers = #tpu.dot_dimension_numbers<[1], [0], [0], [1], [0, 0, 1, 1], [], []>} : vector<4x640xbf16>, vector<640x256xbf16>, vector<4x256xf32> -> vector<4x256xf32>
    %10 = arith.addf %4, %9 : vector<4x256xf32>
    %c0_11 = arith.constant 0 : index
    %c0_12 = arith.constant 0 : index
    %11 = vector.load %arg10[%c0_11, %c0_12] : memref<8x256xf32, #tpu.memory_space<vmem>>, vector<4x256xf32>
    tpu.vector_store %arg10[%c0_11, %c0_12], %10 {strides = array<i32>} : memref<8x256xf32, #tpu.memory_space<vmem>>, vector<4x256xf32>,
    %c1_13 = arith.constant 1 : index
    %c0_14 = arith.constant 0 : index
    %c0_15 = arith.constant 0 : index
    %12 = vector.load %arg1[%c1_13, %c0_14, %c0_15] : memref<2x5x640xbf16, #tpu.memory_space<vmem>>, vector<1x4x640xbf16>
    %13 = vector.shape_cast %12 : vector<1x4x640xbf16> to vector<4x640xbf16>
    %c0_16 = arith.constant 0 : index
    %c0_17 = arith.constant 0 : index
    %c0_18 = arith.constant 0 : index
    %14 = vector.load %arg2[%c0_16, %c0_17, %c0_18] : memref<2x640x256xbf16, #tpu.memory_space<vmem>>, vector<1x640x256xbf16>
    %15 = vector.shape_cast %14 : vector<1x640x256xbf16> to vector<640x256xbf16>
    %cst_19 = arith.constant dense<0.000000e+00> : vector<4x256xf32>
    %16 = tpu.matmul %13, %15, %cst_19 {dimension_numbers = #tpu.dot_dimension_numbers<[1], [0], [0], [1], [0, 0, 1, 1], [], []>} : vector<4x640xbf16>, vector<640x256xbf16>, vector<4x256xf32> -> vector<4x256xf32>
    %c1_20 = arith.constant 1 : index
    %c1_21 = arith.constant 1 : index
    %c0_22 = arith.constant 0 : index
    %17 = vector.load %arg1[%c1_20, %c1_21, %c0_22] : memref<2x5x640xbf16, #tpu.memory_space<vmem>>, vector<1x4x640xbf16>
    %18 = vector.shape_cast %17 : vector<1x4x640xbf16> to vector<4x640xbf16>
    %c1_23 = arith.constant 1 : index
    %c0_24 = arith.constant 0 : index
    %c0_25 = arith.constant 0 : index
    %19 = vector.load %arg2[%c1_23, %c0_24, %c0_25] : memref<2x640x256xbf16, #tpu.memory_space<vmem>>, vector<1x640x256xbf16>
    %20 = vector.shape_cast %19 : vector<1x640x256xbf16> to vector<640x256xbf16>
    %cst_26 = arith.constant dense<0.000000e+00> : vector<4x256xf32>
    %21 = tpu.matmul %18, %20, %cst_26 {dimension_numbers = #tpu.dot_dimension_numbers<[1], [0], [0], [1], [0, 0, 1, 1], [], []>} : vector<4x640xbf16>, vector<640x256xbf16>, vector<4x256xf32> -> vector<4x256xf32>
    %22 = arith.addf %16, %21 : vector<4x256xf32>
    %c4 = arith.constant 4 : index
    %c0_27 = arith.constant 0 : index
    %23 = vector.load %arg10[%c4, %c0_27] : memref<8x256xf32, #tpu.memory_space<vmem>>, vector<4x256xf32>
    tpu.vector_store %arg10[%c4, %c0_27], %22 {strides = array<i32>} : memref<8x256xf32, #tpu.memory_space<vmem>>, vector<4x256xf32>,
    %c0_28 = arith.constant 0 : index
    %c0_29 = arith.constant 0 : index
    %24 = vector.load %arg10[%c0_28, %c0_29] : memref<8x256xf32, #tpu.memory_space<vmem>>, vector<8x256xf32>
    %cst_30 = arith.constant dense<0.000000e+00> : vector<256xf32>
    %25 = vector.multi_reduction <add>, %24, %cst_30 [0] : vector<8x256xf32> to vector<256xf32>
    %26 = vector.shape_cast %25 : vector<256xf32> to vector<1x256xf32>
    %c0_31 = arith.constant 0 : index
    %c0_32 = arith.constant 0 : index
    %27 = vector.load %arg3[%c0_31, %c0_32] : memref<256x64xf32, #tpu.memory_space<vmem>>, vector<256x64xf32>
    %cst_33 = arith.constant dense<0.000000e+00> : vector<1x64xf32>
    %28 = tpu.matmul %26, %27, %cst_33 {dimension_numbers = #tpu.dot_dimension_numbers<[1], [0], [0], [1], [0, 0, 1, 1], [], []>} : vector<1x256xf32>, vector<256x64xf32>, vector<1x64xf32> -> vector<1x64xf32>
    %cst_34 = arith.constant 3.200000e+01 : f32
    %29 = vector.broadcast %cst_34 : f32 to vector<1x64xf32>
    %30 = arith.divf %28, %29 : vector<1x64xf32>
    %31 = arith.mulf %24, %24 : vector<8x256xf32>
    %cst_35 = arith.constant dense<0.000000e+00> : vector<256xf32>
    %32 = vector.multi_reduction <add>, %31, %cst_35 [0] : vector<8x256xf32> to vector<256xf32>
    %33 = vector.shape_cast %32 : vector<256xf32> to vector<1x256xf32>
    %c0_36 = arith.constant 0 : index
    %c0_37 = arith.constant 0 : index
    %34 = vector.load %arg3[%c0_36, %c0_37] : memref<256x64xf32, #tpu.memory_space<vmem>>, vector<256x64xf32>
    %cst_38 = arith.constant dense<0.000000e+00> : vector<1x64xf32>
    %35 = tpu.matmul %33, %34, %cst_38 {dimension_numbers = #tpu.dot_dimension_numbers<[1], [0], [0], [1], [0, 0, 1, 1], [], []>} : vector<1x256xf32>, vector<256x64xf32>, vector<1x64xf32> -> vector<1x64xf32>
    %cst_39 = arith.constant 3.200000e+01 : f32
    %36 = vector.broadcast %cst_39 : f32 to vector<1x64xf32>
    %37 = arith.divf %35, %36 : vector<1x64xf32>
    %38 = arith.mulf %30, %30 : vector<1x64xf32>
    %39 = arith.subf %37, %38 : vector<1x64xf32>
    %c0_40 = arith.constant 0 : index
    %c0_41 = arith.constant 0 : index
    %40 = vector.load %arg4[%c0_40, %c0_41] : memref<64x256xf32, #tpu.memory_space<vmem>>, vector<64x256xf32>
    %cst_42 = arith.constant dense<0.000000e+00> : vector<1x256xf32>
    %41 = tpu.matmul %30, %40, %cst_42 {dimension_numbers = #tpu.dot_dimension_numbers<[1], [0], [0], [1], [0, 0, 1, 1], [], []>} : vector<1x64xf32>, vector<64x256xf32>, vector<1x256xf32> -> vector<1x256xf32>
    %c0_43 = arith.constant 0 : index
    %c0_44 = arith.constant 0 : index
    %42 = vector.load %arg4[%c0_43, %c0_44] : memref<64x256xf32, #tpu.memory_space<vmem>>, vector<64x256xf32>
    %cst_45 = arith.constant dense<0.000000e+00> : vector<1x256xf32>
    %43 = tpu.matmul %39, %42, %cst_45 {dimension_numbers = #tpu.dot_dimension_numbers<[1], [0], [0], [1], [0, 0, 1, 1], [], []>} : vector<1x64xf32>, vector<64x256xf32>, vector<1x256xf32> -> vector<1x256xf32>
    %c0_46 = arith.constant 0 : index
    %c0_47 = arith.constant 0 : index
    %44 = vector.load %arg5[%c0_46, %c0_47] : memref<1x256xf32, #tpu.memory_space<vmem>>, vector<1x256xf32>
    %cst_48 = arith.constant 9.99999974E-6 : f32
    %45 = vector.broadcast %cst_48 : f32 to vector<1x256xf32>
    %46 = arith.addf %43, %45 : vector<1x256xf32>
    %47 = math.rsqrt %46 : vector<1x256xf32>
    %48 = arith.mulf %44, %47 : vector<1x256xf32>
    %49 = vector.broadcast %41 : vector<1x256xf32> to vector<8x256xf32>
    %50 = arith.subf %24, %49 : vector<8x256xf32>
    %51 = vector.broadcast %48 : vector<1x256xf32> to vector<8x256xf32>
    %52 = arith.mulf %50, %51 : vector<8x256xf32>
    %c0_49 = arith.constant 0 : index
    %c0_50 = arith.constant 0 : index
    %53 = vector.load %arg6[%c0_49, %c0_50] : memref<1x256xf32, #tpu.memory_space<vmem>>, vector<1x256xf32>
    %54 = vector.broadcast %53 : vector<1x256xf32> to vector<8x256xf32>
    %55 = arith.addf %52, %54 : vector<8x256xf32>
    %cst_51 = arith.constant 0.000000e+00 : f32
    %56 = vector.broadcast %cst_51 : f32 to vector<8x256xf32>
    %57 = arith.cmpf ogt, %55, %56 : vector<8x256xf32>
    %cst_52 = arith.constant 2.000000e-01 : f32
    %58 = vector.broadcast %cst_52 : f32 to vector<8x256xf32>
    %59 = arith.mulf %58, %55 : vector<8x256xf32>
    %60 = arith.select %57, %55, %59 : vector<8x256xi1>, vector<8x256xf32>
    %c0_53 = arith.constant 0 : index
    %c0_54 = arith.constant 0 : index
    %61 = vector.load %arg7[%c0_53, %c0_54] : memref<4x256xf32, #tpu.memory_space<vmem>>, vector<4x256xf32>
    %62 = vector.extract_strided_slice %60 {offsets = [0, 0], sizes = [4, 256], strides = [1, 1]} : vector<8x256xf32> to vector<4x256xf32>
    %63 = arith.mulf %62, %61 : vector<4x256xf32>
    %cst_55 = arith.constant dense<0.000000e+00> : vector<256xf32>
    %64 = vector.multi_reduction <add>, %63, %cst_55 [0] : vector<4x256xf32> to vector<256xf32>
    %65 = vector.shape_cast %64 : vector<256xf32> to vector<1x256xf32>
    %cst_56 = arith.constant dense<0.000000e+00> : vector<1xf32>
    %66 = vector.multi_reduction <add>, %65, %cst_56 [1] : vector<1x256xf32> to vector<1xf32>
    %67 = vector.shape_cast %66 : vector<1xf32> to vector<1x1xf32>
    %c0_57 = arith.constant 0 : index
    %c0_58 = arith.constant 0 : index
    %68 = vector.load %arg8[%c0_57, %c0_58] : memref<1x1xf32, #tpu.memory_space<vmem>>, vector<1x1xf32>
    %69 = arith.addf %67, %68 : vector<1x1xf32>
    %70 = arith.negf %69 : vector<1x1xf32>
    %71 = math.exp %70 : vector<1x1xf32>
    %cst_59 = arith.constant 1.000000e+00 : f32
    %72 = vector.broadcast %cst_59 : f32 to vector<1x1xf32>
    %73 = arith.addf %72, %71 : vector<1x1xf32>
    %74 = arith.divf %72, %73 : vector<1x1xf32>
    %c0_60 = arith.constant 0 : index
    %c0_61 = arith.constant 0 : index
    %75 = vector.load %arg9[%c0_60, %c0_61] : memref<2x1xf32, #tpu.memory_space<vmem>>, vector<1x1xf32>
    tpu.vector_store %arg9[%c0_60, %c0_61], %74 {strides = array<i32>} : memref<2x1xf32, #tpu.memory_space<vmem>>, vector<1x1xf32>,
    %76 = vector.extract_strided_slice %60 {offsets = [4, 0], sizes = [4, 256], strides = [1, 1]} : vector<8x256xf32> to vector<4x256xf32>
    %77 = arith.mulf %76, %61 : vector<4x256xf32>
    %cst_62 = arith.constant dense<0.000000e+00> : vector<256xf32>
    %78 = vector.multi_reduction <add>, %77, %cst_62 [0] : vector<4x256xf32> to vector<256xf32>
    %79 = vector.shape_cast %78 : vector<256xf32> to vector<1x256xf32>
    %cst_63 = arith.constant dense<0.000000e+00> : vector<1xf32>
    %80 = vector.multi_reduction <add>, %79, %cst_63 [1] : vector<1x256xf32> to vector<1xf32>
    %81 = vector.shape_cast %80 : vector<1xf32> to vector<1x1xf32>
    %c0_64 = arith.constant 0 : index
    %c0_65 = arith.constant 0 : index
    %82 = vector.load %arg8[%c0_64, %c0_65] : memref<1x1xf32, #tpu.memory_space<vmem>>, vector<1x1xf32>
    %83 = arith.addf %81, %82 : vector<1x1xf32>
    %84 = arith.negf %83 : vector<1x1xf32>
    %85 = math.exp %84 : vector<1x1xf32>
    %cst_66 = arith.constant 1.000000e+00 : f32
    %86 = vector.broadcast %cst_66 : f32 to vector<1x1xf32>
    %87 = arith.addf %86, %85 : vector<1x1xf32>
    %88 = arith.divf %86, %87 : vector<1x1xf32>
    %c1_67 = arith.constant 1 : index
    %c0_68 = arith.constant 0 : index
    %89 = vector.load %arg9[%c1_67, %c0_68] : memref<2x1xf32, #tpu.memory_space<vmem>>, vector<1x1xf32>
    tpu.vector_store %arg9[%c1_67, %c0_68], %88 {strides = array<i32>} : memref<2x1xf32, #tpu.memory_space<vmem>>, vector<1x1xf32>,
    return
  }
  func.func @transform_0(%arg0: i32) -> (i32, i32, i32) {
    %c0_i32 = arith.constant 0 : i32
    %c0_i32_0 = arith.constant 0 : i32
    %c0_i32_1 = arith.constant 0 : i32
    %c0_i32_2 = arith.constant 0 : i32
    return %c0_i32, %c0_i32_0, %c0_i32_1 : i32, i32, i32
  }
  func.func @transform_1(%arg0: i32) -> (i32, i32, i32) {
    %c0_i32 = arith.constant 0 : i32
    %c0_i32_0 = arith.constant 0 : i32
    %c0_i32_1 = arith.constant 0 : i32
    %c0_i32_2 = arith.constant 0 : i32
    return %c0_i32, %c0_i32_0, %c0_i32_1 : i32, i32, i32
  }
  func.func @transform_2(%arg0: i32) -> (i32, i32) {
    %c0_i32 = arith.constant 0 : i32
    %c0_i32_0 = arith.constant 0 : i32
    %c0_i32_1 = arith.constant 0 : i32
    return %c0_i32, %c0_i32_0 : i32, i32
  }
  func.func @transform_3(%arg0: i32) -> (i32, i32) {
    %c0_i32 = arith.constant 0 : i32
    %c0_i32_0 = arith.constant 0 : i32
    %c0_i32_1 = arith.constant 0 : i32
    return %c0_i32, %c0_i32_0 : i32, i32
  }
  func.func @transform_4(%arg0: i32) -> (i32, i32) {
    %c0_i32 = arith.constant 0 : i32
    %c0_i32_0 = arith.constant 0 : i32
    %c0_i32_1 = arith.constant 0 : i32
    return %c0_i32, %c0_i32_0 : i32, i32
  }
  func.func @transform_5(%arg0: i32) -> (i32, i32) {
    %c0_i32 = arith.constant 0 : i32
    %c0_i32_0 = arith.constant 0 : i32
    %c0_i32_1 = arith.constant 0 : i32
    return %c0_i32, %c0_i32_0 : i32, i32
  }
  func.func @transform_6(%arg0: i32) -> (i32, i32) {
    %c0_i32 = arith.constant 0 : i32
    %c0_i32_0 = arith.constant 0 : i32
    %c0_i32_1 = arith.constant 0 : i32
    return %c0_i32, %c0_i32_0 : i32, i32
  }
  func.func @transform_7(%arg0: i32) -> (i32, i32) {
    %c0_i32 = arith.constant 0 : i32
    %c0_i32_0 = arith.constant 0 : i32
    %c0_i32_1 = arith.constant 0 : i32
    return %c0_i32, %c0_i32_0 : i32, i32
  }
  func.func @transform_8(%arg0: i32) -> (i32, i32) {
    %c0_i32 = arith.constant 0 : i32
    %c0_i32_0 = arith.constant 0 : i32
    %c0_i32_1 = arith.constant 0 : i32
    return %c0_i32, %c0_i32_0 : i32, i32
  }
}

</mosaic_0001>

<bundles_post_ra>
// kernel: tile.68
= control target key start
LH: loop header
LB: loop body
LE: loop exit
PB: predicated region body
PF: predicated region fallthrough
CT: control target
= control target key end

     0   :  { %s40_s0 = inlined_call_operand.vmem [shape: f32[8], index: 0, kind: input, shape index: {}]   ;;  %s41_s1 = inlined_call_operand.vmem [shape: f32[32,8], index: 1, kind: output, shape index: {}]  }
   0x1   :  { %v4_v0 = vld [vmem:[%s40_s0] ss:$0 sm:$0xff] }
   0x2   :  { %5 = vst [vmem:[%s41_s1] sm:$0xff] %v4_v0  ;;  %12 = vst [vmem:[%s41_s1 + $0x8] sm:$0xff] %v4_v0 }
   0x3   :  { %13 = vst [vmem:[%s41_s1 + $0x10] sm:$0xff] %v4_v0  ;;  %14 = vst [vmem:[%s41_s1 + $0x18] sm:$0xff] %v4_v0 }

// kernel: tile.69
= control target key start
LH: loop header
LB: loop body
LE: loop exit
PB: predicated region body
PF: predicated region fallthrough
CT: control target
= control target key end

     0   :  { %s7_s6 = smov 3  ;;  %s21_s9 = smov 3  ;;  %vm4_vm0 = vcmask 64512   ;;  %vm11_vm1 = vcmask 1048512   ;;  %vm18_vm2 = vcmask 982912   ;;  %vm25_vm3 = vcmask 917312   ;;  %s235_s0 = inlined_call_operand.vmem [shape: f32[32,8], index: 0, kind: input, shape index: {}]   ;;  %s236_s1 = inlined_call_operand.vmem [shape: f32[1,256], index: 1, kind: output, shape index: {}]  }
   0x1   :  { %v125_v0 = vld [vmem:[%s235_s0 + $0xf] ss:$16 sm:%s7_s6]   ;;  %s156_s10 = smov 120   ;;  %v127_v1 = vld [vmem:[%s235_s0 + $0xd] ss:$16 sm:%s21_s9]   ;;  %s14_s13 = smov 3 }
   0x2   :  { %9 = vrot.lane.b32.xlu0 %v125_v0, %s156_s10  ;;  %s157_s14 = smov 104   ;;  %v126_v2 = vld [vmem:[%s235_s0 + $0xe] ss:$16 sm:%s14_s13]   ;;  %s28_s17 = smov 3  ;;  %vm32_vm4 = vcmask 851712   ;;  %vm39_vm5 = vcmask 786112  }
   0x3   :  { %23 = vrot.lane.b32.xlu1 %v127_v1, %s157_s14  ;;  %v128_v3 = vld [vmem:[%s235_s0 + $0xc] ss:$16 sm:%s28_s17]   ;;  %s35_s20 = smov 3  ;;  %s42_s21 = smov 3  ;;  %vm46_vm6 = vcmask 720512   ;;  %vm53_vm7 = vcmask 654912  }
   0x4   :  { %s158_s22 = smov 112   ;;  %s159_s23 = smov 96   ;;  %v129_v4 = vld [vmem:[%s235_s0 + $0xb] ss:$16 sm:%s35_s20]   ;;  %v130_v5 = vld [vmem:[%s235_s0 + $0xa] ss:$16 sm:%s42_s21]  }
   0x5   :  { %s49_s28 = smov 3  ;;  %s56_s29 = smov 3  ;;  %vm60_vm8 = vcmask 589312   ;;  %vm67_vm9 = vcmask 523712   ;;  %vm74_vm10 = vcmask 458112   ;;  %vm81_vm11 = vcmask 392512  }
   0x6   :  { %16 = vrot.lane.b32.xlu0 %v126_v2, %s158_s22  ;;  %s160_s30 = smov 88   ;;  %s161_s2 = smov 80   ;;  %v131_v6 = vld [vmem:[%s235_s0 + $0x9] ss:$16 sm:%s49_s28]   ;;  %vm88_vm12 = vcmask 326912   ;;  %vm95_vm13 = vcmask 261312  }
   0x7   :  { %30 = vrot.lane.b32.xlu1 %v128_v3, %s159_s23  ;;  %v132_v7 = vld [vmem:[%s235_s0 + $0x8] ss:$16 sm:%s56_s29]   ;;  %s63_s7 = smov 3  ;;  %s70_s8 = smov 3  ;;  %vm102_vm14 = vcmask 195712   ;;  %vm109_vm15 = vcmask 130112  }
   0x8   :  { %s162_s9 = smov 72   ;;  %s163_s10 = smov 64   ;;  %v133_v8 = vld [vmem:[%s235_s0 + $0x7] ss:$16 sm:%s63_s7]   ;;  %v134_v9 = vld [vmem:[%s235_s0 + $0x6] ss:$16 sm:%s70_s8]  }
   0x9   :  { %s2_s13 = smov 3  ;;  %s77_s16 = smov 3 }
   0xa   :  { %37 = vrot.lane.b32.xlu0 %v129_v4, %s160_s30  ;;  %v3_v10 = vld [vmem:[%s235_s0] ss:$16 sm:%s2_s13]   ;;  %s84_s19 = smov 3  ;;  %s164_s20 = smov 56  }
   0xb   :  { %44 = vrot.lane.b32.xlu1 %v130_v5, %s161_s2  ;;  %5 = vst.msk [vmem:[#allocation0] ss:$8 sm:$0x3] %vm4_vm0, %v3_v10   ;;  %s165_s21 = smov 48   ;;  %v135_v11 = vld [vmem:[%s235_s0 + $0x5] ss:$16 sm:%s77_s16]  }
   0xc   :  { %v136_v12 = vld [vmem:[%s235_s0 + $0x4] ss:$16 sm:%s84_s19]   ;;  %s91_s26 = smov 3  ;;  %s98_s27 = smov 3 }
   0xd   :  { %s166_s28 = smov 40   ;;  %s167_s29 = smov 32   ;;  %v137_v13 = vld [vmem:[%s235_s0 + $0x3] ss:$16 sm:%s91_s26]   ;;  %v138_v14 = vld [vmem:[%s235_s0 + $0x2] ss:$16 sm:%s98_s27]  }
   0xe   :  { %51 = vrot.lane.b32.xlu0 %v131_v6, %s162_s9  ;;  %s105_s5 = smov 3  ;;  %s168_s6 = smov 24  }
   0xf   :  { %58 = vrot.lane.b32.xlu1 %v132_v7, %s163_s10  ;;  %s169_s7 = smov 16   ;;  %v139_v15 = vld [vmem:[%s235_s0 + $0x1] ss:$16 sm:%s105_s5]   ;;  %s170_s0 = smov 8  }
  0x12   :  { %65 = vrot.lane.b32.xlu0 %v133_v8, %s164_s20 }
  0x13   :  { %72 = vrot.lane.b32.xlu1 %v134_v9, %s165_s21 }
  0x16   :  { %79 = vrot.lane.b32.xlu0 %v135_v11, %s166_s28 }
  0x17   :  { %86 = vrot.lane.b32.xlu1 %v136_v12, %s167_s29 }
  0x1a   :  { %93 = vrot.lane.b32.xlu0 %v137_v13, %s168_s6 }
  0x1b   :  { %100 = vrot.lane.b32.xlu1 %v138_v14, %s169_s7 }
  0x1e   :  { %107 = vrot.lane.b32.xlu0 %v139_v15, %s170_s0 }
  0x74   :  { %v10_v16 = vpop.permute.xlu0 %9  }
  0x75   :  { %12 = vst.msk [vmem:[#allocation0] ss:$8 sm:$0x3] %vm11_vm1, %v10_v16   ;;  %v24_v17 = vpop.permute.xlu1 %23  }
  0x78   :  { %v17_v18 = vpop.permute.xlu0 %16  }
  0x79   :  { %19 = vst.msk [vmem:[#allocation0] ss:$8 sm:$0x3] %vm18_vm2, %v17_v18   ;;  %v31_v19 = vpop.permute.xlu1 %30  }
  0x7a   :  { %26 = vst.msk [vmem:[#allocation0] ss:$8 sm:$0x3] %vm25_vm3, %v24_v17  }
  0x7b   :  { %33 = vst.msk [vmem:[#allocation0] ss:$8 sm:$0x3] %vm32_vm4, %v31_v19  }
  0x7c   :  { %v38_v20 = vpop.permute.xlu0 %37  }
  0x7d   :  { %40 = vst.msk [vmem:[#allocation0] ss:$8 sm:$0x3] %vm39_vm5, %v38_v20   ;;  %v45_v21 = vpop.permute.xlu1 %44  }
  0x7e   :  { %47 = vst.msk [vmem:[#allocation0] ss:$8 sm:$0x3] %vm46_vm6, %v45_v21  }
  0x80   :  { %v52_v22 = vpop.permute.xlu0 %51  }
  0x81   :  { %54 = vst.msk [vmem:[#allocation0] ss:$8 sm:$0x3] %vm53_vm7, %v52_v22   ;;  %v59_v23 = vpop.permute.xlu1 %58  }
  0x82   :  { %61 = vst.msk [vmem:[#allocation0] ss:$8 sm:$0x3] %vm60_vm8, %v59_v23  }
  0x84   :  { %v66_v24 = vpop.permute.xlu0 %65  }
  0x85   :  { %68 = vst.msk [vmem:[#allocation0] ss:$8 sm:$0x3] %vm67_vm9, %v66_v24   ;;  %v73_v25 = vpop.permute.xlu1 %72  }
  0x86   :  { %75 = vst.msk [vmem:[#allocation0] ss:$8 sm:$0x3] %vm74_vm10, %v73_v25  }
  0x88   :  { %v80_v26 = vpop.permute.xlu0 %79  }
  0x89   :  { %82 = vst.msk [vmem:[#allocation0] ss:$8 sm:$0x3] %vm81_vm11, %v80_v26   ;;  %v87_v27 = vpop.permute.xlu1 %86  }
  0x8a   :  { %89 = vst.msk [vmem:[#allocation0] ss:$8 sm:$0x3] %vm88_vm12, %v87_v27  }
  0x8c   :  { %v94_v28 = vpop.permute.xlu0 %93  }
  0x8d   :  { %96 = vst.msk [vmem:[#allocation0] ss:$8 sm:$0x3] %vm95_vm13, %v94_v28   ;;  %v101_v29 = vpop.permute.xlu1 %100  }
  0x8e   :  { %103 = vst.msk [vmem:[#allocation0] ss:$8 sm:$0x3] %vm102_vm14, %v101_v29  }
  0x90   :  { %v108_v30 = vpop.permute.xlu0 %107  }
  0x91   :  { %110 = vst.msk [vmem:[#allocation0] ss:$8 sm:$0x3] %vm109_vm15, %v108_v30  }
  0x98   :  { %v115_v31 = vld [vmem:[#allocation0] sm:$0x1]  ;;  %v120_v32 = vld [vmem:[#allocation0 + $0x8] sm:$0x1] }
  0x99   :  { %118 = vst [vmem:[%s236_s1] sm:$0x1] %v115_v31  ;;  %140 = vst [vmem:[%s236_s1 + $0x1] sm:$0x1] %v120_v32 }

// kernel: discriminator_forward.4
= control target key start
LH: loop header
LB: loop body
LE: loop exit
PB: predicated region body
PF: predicated region fallthrough
CT: control target
= control target key end

     0   :  { %s1903_s12 = smov 0   ;;  %s2409_s0 = inlined_call_operand.vmem [shape: bf16[2,33,512], index: 0, kind: input, shape index: {}]   ;;  %s2410_s1 = inlined_call_operand.vmem [shape: bf16[2,512,256], index: 1, kind: input, shape index: {}]   ;;  %s2411_s2 = inlined_call_operand.vmem [shape: f32[1,256], index: 2, kind: input, shape index: {}]   ;;  %s2412_s3 = inlined_call_operand.vmem [shape: bf16[64,256], index: 3, kind: output, shape index: {}]  }
   0x1 LB: > { %s1909_s13 = sadd.s32 4294967295, %s1881_s12   ;;  %p1438_p0 = scmp.ge.s32.totalorder %s1881_s12, 1  ;;  %s1881_s12 = sphi %s1903_s12, %s13_s12  }
   0x2   : > { %p137_p1 = scmp.lt.s32.totalorder %s1881_s12, 3 }
   0x4   : > { %p138_p2 = pnand %p1438_p0, %p137_p1 }
   0x5   : > { %p162_p3 = scmp.lt.s32.totalorder (!%p138_p2), %s1909_s13, 1  ;;  %s1440_s28 = sshll.u32 (!%p138_p2), %s1909_s13, 2 }
   0x6   : > { %141 = sbr.rel (%p138_p2) target bundleno = 360 (0x168), region = 32  ;;  %p168_p4 = scmp.lt.s32.totalorder (!%p138_p2), %s1440_s28, 7 }
   0xb   : > { %v1667_v0 = vld [vmem:[%s2410_s1 + $0x274] ss:$8 sps:$4 sm:$0xff]   ;;  %v1671_v2 = vld [vmem:[%s2410_s1 + $0x270] ss:$8 sps:$4 sm:$0xff]   ;;  %v1673_v4 = vld [vmem:[%s2410_s1 + $0x264] ss:$8 sps:$4 sm:$0xff]  }
   0xc   : > { %v1669_v1 = vld [vmem:[%s2410_s1 + $0x374] ss:$8 sps:$4 sm:$0xff]   ;;  %764 = vmatprep.subr.bf16.mxu0 %v1667_v0  ;;  %v1672_v3 = vld [vmem:[%s2410_s1 + $0x370] ss:$8 sps:$4 sm:$0xff]   ;;  %v1675_v5 = vld [vmem:[%s2410_s1 + $0x364] ss:$8 sps:$4 sm:$0xff]  }
   0xd   : > { %817 = vmatprep.subr.bf16.mxu1 %v1669_v1  ;;  %765 = vmatpush1.bf16.msra.mxu0 %v1671_v2  ;;  %v1677_v6 = vld [vmem:[%s2410_s1 + $0x260] ss:$8 sps:$4 sm:$0xff]   ;;  %v1679_v8 = vld [vmem:[%s2410_s1 + $0x254] ss:$8 sps:$4 sm:$0xff]   ;;  %v1683_v10 = vld [vmem:[%s2410_s1 + $0x250] ss:$8 sps:$4 sm:$0xff]  }
   0xe   : > { %818 = vmatpush1.bf16.msra.mxu1 %v1672_v3  ;;  %766 = vmatprep.subr.bf16.mxu0 %v1673_v4  ;;  %v1678_v7 = vld [vmem:[%s2410_s1 + $0x360] ss:$8 sps:$4 sm:$0xff]   ;;  %v1681_v9 = vld [vmem:[%s2410_s1 + $0x354] ss:$8 sps:$4 sm:$0xff]   ;;  %v1684_v11 = vld [vmem:[%s2410_s1 + $0x350] ss:$8 sps:$4 sm:$0xff]  }
   0xf   : > { %819 = vmatprep.subr.bf16.mxu1 %v1675_v5  ;;  %v1685_v12 = vld [vmem:[%s2410_s1 + $0x244] ss:$8 sps:$4 sm:$0xff]   ;;  %v1689_v14 = vld [vmem:[%s2410_s1 + $0x240] ss:$8 sps:$4 sm:$0xff]   ;;  %v1691_v16 = vld [vmem:[%s2410_s1 + $0x234] ss:$8 sps:$4 sm:$0xff]  }
  0x10   : > { %v1687_v13 = vld [vmem:[%s2410_s1 + $0x344] ss:$8 sps:$4 sm:$0xff]   ;;  %v1690_v15 = vld [vmem:[%s2410_s1 + $0x340] ss:$8 sps:$4 sm:$0xff]   ;;  %v1693_v17 = vld [vmem:[%s2410_s1 + $0x334] ss:$8 sps:$4 sm:$0xff]  }
  0x11   : > { %767 = vmatpush1.bf16.msra.mxu0 %v1677_v6  ;;  %v1695_v18 = vld [vmem:[%s2410_s1 + $0x230] ss:$8 sps:$4 sm:$0xff]   ;;  %v1697_v20 = vld [vmem:[%s2410_s1 + $0x224] ss:$8 sps:$4 sm:$0xff]   ;;  %v1701_v22 = vld [vmem:[%s2410_s1 + $0x220] ss:$8 sps:$4 sm:$0xff]  }
  0x12   : > { %820 = vmatpush1.bf16.msra.mxu1 %v1678_v7  ;;  %768 = vmatprep.subr.bf16.mxu0 %v1679_v8  ;;  %v1696_v19 = vld [vmem:[%s2410_s1 + $0x330] ss:$8 sps:$4 sm:$0xff]   ;;  %v1699_v21 = vld [vmem:[%s2410_s1 + $0x324] ss:$8 sps:$4 sm:$0xff]   ;;  %v1702_v23 = vld [vmem:[%s2410_s1 + $0x320] ss:$8 sps:$4 sm:$0xff]  }
  0x13   : > { %821 = vmatprep.subr.bf16.mxu1 %v1681_v9  ;;  %v1703_v24 = vld [vmem:[%s2410_s1 + $0x214] ss:$8 sps:$4 sm:$0xff]   ;;  %v1707_v26 = vld [vmem:[%s2410_s1 + $0x210] ss:$8 sps:$4 sm:$0xff]   ;;  %v1709_v28 = vld [vmem:[%s2410_s1 + $0x204] ss:$8 sps:$4 sm:$0xff]  }
  0x14   : > { %v1705_v25 = vld [vmem:[%s2410_s1 + $0x314] ss:$8 sps:$4 sm:$0xff]   ;;  %v1708_v27 = vld [vmem:[%s2410_s1 + $0x310] ss:$8 sps:$4 sm:$0xff]   ;;  %v1711_v29 = vld [vmem:[%s2410_s1 + $0x304] ss:$8 sps:$4 sm:$0xff]  }
  0x15   : > { %769 = vmatpush1.bf16.msra.mxu0 %v1683_v10  ;;  %v1713_v30 = vld [vmem:[%s2410_s1 + $0x200] ss:$8 sps:$4 sm:$0xff]   ;;  %v1715_v32 = vld [vmem:[%s2410_s1 + $0x2f4] ss:$8 sps:$4 sm:$0xff]   ;;  %v1719_v34 = vld [vmem:[%s2410_s1 + $0x2f0] ss:$8 sps:$4 sm:$0xff]  }
  0x16   : > { %822 = vmatpush1.bf16.msra.mxu1 %v1684_v11  ;;  %770 = vmatprep.subr.bf16.mxu0 %v1685_v12  ;;  %v1714_v31 = vld [vmem:[%s2410_s1 + $0x300] ss:$8 sps:$4 sm:$0xff]   ;;  %v1717_v33 = vld [vmem:[%s2410_s1 + $0x3f4] ss:$8 sps:$4 sm:$0xff]   ;;  %v1720_v35 = vld [vmem:[%s2410_s1 + $0x3f0] ss:$8 sps:$4 sm:$0xff]  }
  0x17   : > { %823 = vmatprep.subr.bf16.mxu1 %v1687_v13  ;;  %v1721_v36 = vld [vmem:[%s2410_s1 + $0x2e4] ss:$8 sps:$4 sm:$0xff]   ;;  %s163_s15 = scalar_select %p162_p3, %s1909_s13, 1  ;;  %v1725_v38 = vld [vmem:[%s2410_s1 + $0x2e0] ss:$8 sps:$4 sm:$0xff]  }
  0x18   : > { %v1723_v37 = vld [vmem:[%s2410_s1 + $0x3e4] ss:$8 sps:$4 sm:$0xff]   ;;  %v1726_v39 = vld [vmem:[%s2410_s1 + $0x3e0] ss:$8 sps:$4 sm:$0xff]   ;;  %v1727_v40 = vld [vmem:[%s2410_s1 + $0x2d4] ss:$8 sps:$4 sm:$0xff]  }
  0x19   : > { %771 = vmatpush1.bf16.msra.mxu0 %v1689_v14  ;;  %v1729_v41 = vld [vmem:[%s2410_s1 + $0x3d4] ss:$8 sps:$4 sm:$0xff]   ;;  %s1658_s24 = smul.u32 80, %s163_s15  ;;  %v1731_v42 = vld [vmem:[%s2410_s1 + $0x2d0] ss:$8 sps:$4 sm:$0xff]   ;;  %s2414_s28 = smov (!%p168_p4, %s1440_s28), 7 }
  0x1a   : > { %824 = vmatpush1.bf16.msra.mxu1 %v1690_v15  ;;  %772 = vmatprep.subr.bf16.mxu0 %v1691_v16  ;;  %v1732_v43 = vld [vmem:[%s2410_s1 + $0x3d0] ss:$8 sps:$4 sm:$0xff]   ;;  %v1733_v44 = vld [vmem:[%s2410_s1 + $0x2c4] ss:$8 sps:$4 sm:$0xff]   ;;  %v1737_v46 = vld [vmem:[%s2410_s1 + $0x2c0] ss:$8 sps:$4 sm:$0xff]  }
  0x1b   : > { %825 = vmatprep.subr.bf16.mxu1 %v1693_v17  ;;  %v1735_v45 = vld [vmem:[%s2410_s1 + $0x3c4] ss:$8 sps:$4 sm:$0xff]   ;;  %s2056_s8 = scalar_lea.vmem %s2409_s0, %s1658_s24  ;;  %v1738_v47 = vld [vmem:[%s2410_s1 + $0x3c0] ss:$8 sps:$4 sm:$0xff]   ;;  %v1739_v48 = vld [vmem:[%s2410_s1 + $0x2b4] ss:$8 sps:$4 sm:$0xff]  }
  0x1c   : > { %v1741_v49 = vld [vmem:[%s2410_s1 + $0x3b4] ss:$8 sps:$4 sm:$0xff]   ;;  %vm355_vm0 = vsmask.f32 7424  ;;  %v1743_v52 = vld [vmem:[%s2410_s1 + $0x2b0] ss:$8 sps:$4 sm:$0xff]  }
  0x1d   : > { %773 = vmatpush1.bf16.msra.mxu0 %v1695_v18  ;;  %v2071_v50 = vld [vmem:[%s2056_s8 + $0x4] ss:$16 sps:$4 sm:$0xff]   ;;  %v2083_v56 = vld [vmem:[%s2056_s8 + $0xc] ss:$16 sps:$4 sm:$0xff]   ;;  %v1744_v57 = vld [vmem:[%s2410_s1 + $0x3b0] ss:$8 sps:$4 sm:$0xff]  }
  0x1e   : > { %826 = vmatpush1.bf16.msra.mxu1 %v1696_v19  ;;  %774 = vmatprep.subr.bf16.mxu0 %v1697_v20  ;;  %v2074_v51 = vld [vmem:[%s2056_s8 + $0x24] ss:$16 sps:$4 sm:$0xff]   ;;  %v369_v53 = vshrl.u32 %v2071_v50, 16  ;;  %v371_v54 = vshll.u32 %v2071_v50, 16  ;;  %v2089_v58 = vld [vmem:[%s2056_s8 + $0x2c] ss:$16 sps:$4 sm:$0xff]  }
  0x1f   : > { %827 = vmatprep.subr.bf16.mxu1 %v1699_v21  ;;  %v376_v55 = vshll.u32 %v2074_v51, 16  ;;  %v2092_v59 = vld [vmem:[%s2056_s8] ss:$16 sps:$4 sm:$0xff]   ;;  %v393_v62 = vshrl.u32 %v2083_v56, 16  ;;  %v395_v63 = vshll.u32 %v2083_v56, 16  ;;  %v400_v3 = vshll.u32 %v2089_v58, 16 }
  0x20   : > { %v373_v60 = vrot.slane %v371_v54, 1  ;;  %v2099_v0 = vld [vmem:[%s2056_s8 + $0x8] ss:$16 sps:$4 sm:$0xff]   ;;  %v1745_v1 = vld [vmem:[%s2410_s1 + $0x2a4] ss:$8 sps:$4 sm:$0xff]   ;;  %v359_v13 = vshll.u32 %v2092_v59, 16 }
  0x21   : > { %775 = vmatpush1.bf16.msra.mxu0 %v1701_v22  ;;  %v2094_v61 = vrot.slane %v376_v55, 1  ;;  %v1747_v2 = vld [vmem:[%s2410_s1 + $0x3a4] ss:$8 sps:$4 sm:$0xff]   ;;  %v1749_v4 = vld [vmem:[%s2410_s1 + $0x2a0] ss:$8 sps:$4 sm:$0xff]   ;;  %v397_v7 = vrot.slane %v395_v63, 1 }
  0x22   : > { %828 = vmatpush1.bf16.msra.mxu1 %v1702_v23  ;;  %776 = vmatprep.subr.bf16.mxu0 %v1703_v24  ;;  %v1750_v5 = vld [vmem:[%s2410_s1 + $0x3a0] ss:$8 sps:$4 sm:$0xff]   ;;  %v374_v6 = vor.u32 %v373_v60, %v369_v53  ;;  %v1751_v8 = vld [vmem:[%s2410_s1 + $0x294] ss:$8 sps:$4 sm:$0xff]   ;;  %v2117_v9 = vrot.slane %v400_v3, 1  ;;  %v383_v15 = vshll.u32 %v2099_v0, 16 }
  0x23   : > { %829 = vmatprep.subr.bf16.mxu1 %v1705_v25  ;;  %v2120_v10 = vld [vmem:[%s2056_s8 + $0x20] ss:$16 sps:$4 sm:$0xff]   ;;  %v398_v12 = vor.u32 %v397_v7, %v393_v62  ;;  %v2126_v14 = vld [vmem:[%s2056_s8 + $0x28] ss:$16 sps:$4 sm:$0xff]   ;;  %v1753_v16 = vld [vmem:[%s2410_s1 + $0x394] ss:$8 sps:$4 sm:$0xff]  }
  0x24   : > { %v379_v11 = vsel %vm355_vm0, %v374_v6, %v2094_v61  ;;  %v1755_v17 = vld [vmem:[%s2410_s1 + $0x290] ss:$8 sps:$4 sm:$0xff]   ;;  %v1757_v20 = vld [vmem:[%s2410_s1 + $0x284] ss:$8 sps:$4 sm:$0xff]   ;;  %v357_v21 = vshrl.u32 %v2092_v59, 16  ;;  %v364_v22 = vshll.u32 %v2120_v10, 16 }
  0x25   : > { %777 = vmatpush1.bf16.msra.mxu0 %v1707_v26  ;;  %v1756_v18 = vld [vmem:[%s2410_s1 + $0x390] ss:$8 sps:$4 sm:$0xff]   ;;  %796 = vmatprep.mubr.bf16.mxu0 %v379_v11  ;;  %v403_v19 = vsel %vm355_vm0, %v398_v12, %v2117_v9  ;;  %v361_v23 = vrot.slane %v359_v13, 1  ;;  %v381_v24 = vshrl.u32 %v2099_v0, 16  ;;  %v385_v25 = vrot.slane %v383_v15, 1  ;;  %s1653_s13 = sshll.u32 %s2414_s28, 3 }
  0x26   : > { %830 = vmatpush1.bf16.msra.mxu1 %v1708_v27  ;;  %778 = vmatprep.subr.bf16.mxu0 %v1709_v28  ;;  %v388_v26 = vshll.u32 %v2126_v14, 16  ;;  %v1759_v27 = vld [vmem:[%s2410_s1 + $0x384] ss:$8 sps:$4 sm:$0xff]   ;;  %v1761_v28 = vld [vmem:[%s2410_s1 + $0x280] ss:$8 sps:$4 sm:$0xff]   ;;  %v420_v7 = vshrl.u32 %v2126_v14, 16  ;;  %s2395_s5 = scalar_lea.vmem %s2412_s3, %s1653_s13 }
  0x27   : > { %831 = vmatprep.subr.bf16.mxu1 %v1711_v29  ;;  %849 = vmatprep.mubr.bf16.mxu1 %v403_v19  ;;  %v1762_v29 = vld [vmem:[%s2410_s1 + $0x380] ss:$8 sps:$4 sm:$0xff]   ;;  %v1801_v54 = vld [vmem:[%s2410_s1 + $0x34] ss:$8 sps:$4 sm:$0xff]   ;;  %v1802_v60 = vld [vmem:[%s2410_s1 + $0x130] ss:$8 sps:$4 sm:$0xff]  }
  0x28   : > { %v1796_v53 = vld [vmem:[%s2410_s1 + $0x140] ss:$8 sps:$4 sm:$0xff]   ;;  %v1804_v55 = vld [vmem:[%s2410_s1 + $0x134] ss:$8 sps:$4 sm:$0xff]   ;;  %v1807_v62 = vld [vmem:[%s2410_s1 + $0x24] ss:$8 sps:$4 sm:$0xff]  }
  0x29   : > { %779 = vmatpush1.bf16.msra.mxu0 %v1713_v30  ;;  %v362_v30 = vor.u32 %v361_v23, %v357_v21  ;;  %v1810_v63 = vld [vmem:[%s2410_s1 + $0x124] ss:$8 sps:$4 sm:$0xff]   ;;  %v1805_v3 = vld [vmem:[%s2410_s1 + $0x20] ss:$8 sps:$4 sm:$0xff]   ;;  %v1813_v6 = vld [vmem:[%s2410_s1 + $0x14] ss:$8 sps:$4 sm:$0xff]  }
  0x2a   : > { %832 = vmatpush1.bf16.msra.mxu1 %v1714_v31  ;;  %780 = vmatprep.subr.bf16.mxu0 %v1715_v32  ;;  %v2156_v31 = vrot.slane %v364_v22, 1  ;;  %v386_v32 = vor.u32 %v385_v25, %v381_v24  ;;  %v246_v11 = vld [vmem:[%s2056_s8 + $0x40] sm:$0x11]  ;;  %v247_v12 = vld [vmem:[%s2056_s8 + $0x48] sm:$0x11] }
  0x2b   : > { %833 = vmatprep.subr.bf16.mxu1 %v1717_v33  ;;  %v2158_v33 = vrot.slane %v388_v26, 1  ;;  %v1811_v13 = vld [vmem:[%s2410_s1 + $0x10] ss:$8 sps:$4 sm:$0xff]   ;;  %v1516_v15 = vcombine.high %v246_v11, %v246_v11  ;;  %v1819_v23 = vld [vmem:[%s2410_s1 + $0x4] ss:$8 sps:$4 sm:$0xff]  }
  0x2c   : > { %v1814_v19 = vld [vmem:[%s2410_s1 + $0x110] ss:$8 sps:$4 sm:$0xff]  }
  0x2d   : > { %781 = vmatpush2.bf16.msra.mxu0 %v1719_v34  ;;  %v1777_v34 = vld [vmem:[%s2410_s1 + $0x74] ss:$8 sps:$4 sm:$0xff]   ;;  %v416_v24 = vshll.u32 %v1516_v15, 16 }
  0x2e   : > { %834 = vmatpush2.bf16.msra.mxu1 %v1720_v35  ;;  %782 = vmatprep.subr.bf16.mxu0 %v1721_v36  ;;  %v1780_v35 = vld [vmem:[%s2410_s1 + $0x174] ss:$8 sps:$4 sm:$0xff]   ;;  %v1775_v36 = vld [vmem:[%s2410_s1 + $0x70] ss:$8 sps:$4 sm:$0xff]  }
  0x2f   : > { %835 = vmatprep.subr.bf16.mxu1 %v1723_v37  ;;  %v1778_v37 = vld [vmem:[%s2410_s1 + $0x170] ss:$8 sps:$4 sm:$0xff]  }
  0x31   : > { %783 = vmatpush2.bf16.msra.mxu0 %v1725_v38  ;;  %v367_v38 = vsel %vm355_vm0, %v362_v30, %v2156_v31 }
  0x32   : > { %836 = vmatpush2.bf16.msra.mxu1 %v1726_v39  ;;  %784 = vmatprep.subr.bf16.mxu0 %v1727_v40  ;;  %v391_v39 = vsel %vm355_vm0, %v386_v32, %v2158_v33  ;;  %v1783_v40 = vld [vmem:[%s2410_s1 + $0x64] ss:$8 sps:$4 sm:$0xff]   ;;  %v1817_v32 = vld [vmem:[%s2410_s1] ss:$8 sps:$4 sm:$0xff]  }
  0x33   : > { %837 = vmatprep.subr.bf16.mxu1 %v1729_v41  ;;  %v1786_v41 = vld [vmem:[%s2410_s1 + $0x164] ss:$8 sps:$4 sm:$0xff]  }
  0x35   : > { %785 = vmatpush2.bf16.msra.mxu0 %v1731_v42  ;;  %v1781_v42 = vld [vmem:[%s2410_s1 + $0x60] ss:$8 sps:$4 sm:$0xff]  }
  0x36   : > { %838 = vmatpush2.bf16.msra.mxu1 %v1732_v43  ;;  %786 = vmatprep.subr.bf16.mxu0 %v1733_v44  ;;  %v1784_v43 = vld [vmem:[%s2410_s1 + $0x160] ss:$8 sps:$4 sm:$0xff]   ;;  %v1789_v44 = vld [vmem:[%s2410_s1 + $0x54] ss:$8 sps:$4 sm:$0xff]  }
  0x37   : > { %839 = vmatprep.subr.bf16.mxu1 %v1735_v45  ;;  %v1792_v45 = vld [vmem:[%s2410_s1 + $0x154] ss:$8 sps:$4 sm:$0xff]  }
  0x39   : > { %787 = vmatpush2.bf16.msra.mxu0 %v1737_v46  ;;  %v1787_v46 = vld [vmem:[%s2410_s1 + $0x50] ss:$8 sps:$4 sm:$0xff]  }
  0x3a   : > { %840 = vmatpush2.bf16.msra.mxu1 %v1738_v47  ;;  %788 = vmatprep.subr.bf16.mxu0 %v1739_v48  ;;  %v1790_v47 = vld [vmem:[%s2410_s1 + $0x150] ss:$8 sps:$4 sm:$0xff]   ;;  %v1795_v48 = vld [vmem:[%s2410_s1 + $0x44] ss:$8 sps:$4 sm:$0xff]  }
  0x3b   : > { %841 = vmatprep.subr.bf16.mxu1 %v1741_v49  ;;  %v1798_v49 = vld [vmem:[%s2410_s1 + $0x144] ss:$8 sps:$4 sm:$0xff]  }
  0x3d   : > { %789 = vmatpush2.bf16.msra.mxu0 %v1743_v52  ;;  %v1793_v52 = vld [vmem:[%s2410_s1 + $0x40] ss:$8 sps:$4 sm:$0xff]  }
  0x3e   : > { %842 = vmatpush2.bf16.msra.mxu1 %v1744_v57  ;;  %790 = vmatprep.subr.bf16.mxu0 %v1745_v1  ;;  %v1799_v57 = vld [vmem:[%s2410_s1 + $0x30] ss:$8 sps:$4 sm:$0xff]   ;;  %v412_v1 = vshrl.u32 %v2074_v51, 16 }
  0x3f   : > { %843 = vmatprep.subr.bf16.mxu1 %v1747_v2  ;;  %v428_v2 = vshrl.u32 %v2089_v58, 16 }
  0x41   : > { %791 = vmatpush2.bf16.msra.mxu0 %v1749_v4  ;;  %v1808_v4 = vld [vmem:[%s2410_s1 + $0x120] ss:$8 sps:$4 sm:$0xff]   ;;  %v430_v21 = vor.u32 %v428_v2, %v2117_v9  ;;  %v422_v9 = vor.u32 %v420_v7, %v2158_v33  ;;  %v1871_v7 = vld [vmem:[%s2410_s1 + $0x84] ss:$8 sps:$4 sm:$0xff]  }
  0x42   : > { %844 = vmatpush2.bf16.msra.mxu1 %v1750_v5  ;;  %792 = vmatprep.subr.bf16.mxu0 %v1751_v8  ;;  %v404_v5 = vshrl.u32 %v2120_v10, 16  ;;  %v1816_v8 = vld [vmem:[%s2410_s1 + $0x114] ss:$8 sps:$4 sm:$0xff]   ;;  %v1860_v2 = vld [vmem:[%s2410_s1 + $0x1a0] ss:$8 sps:$4 sm:$0xff]  }
  0x43   : > { %845 = vmatprep.subr.bf16.mxu1 %v1753_v16  ;;  %v1518_v16 = vcombine.high %v247_v12, %v247_v12 }
  0x44   : > { %v406_v22 = vor.u32 %v404_v5, %v2156_v31  ;;  %v1863_v5 = vld [vmem:[%s2410_s1 + $0x90] ss:$8 sps:$4 sm:$0xff]  }
  0x45   : > { %793 = vmatpush2.bf16.msra.mxu0 %v1755_v17  ;;  %v1515_v17 = vcombine.low %v246_v11, %v246_v11  ;;  %v432_v25 = vshll.u32 %v1518_v16, 16  ;;  %v1869_v11 = vld [vmem:[%s2410_s1 + $0x80] ss:$8 sps:$4 sm:$0xff]  }
  0x46   : > { %846 = vmatpush2.bf16.msra.mxu1 %v1756_v18  ;;  %794 = vmatprep.subr.bf16.mxu0 %v1757_v20  ;;  %v1517_v18 = vcombine.low %v247_v12, %v247_v12  ;;  %v414_v20 = vor.u32 %v412_v1, %v2094_v61  ;;  %v1822_v61 = vld [vmem:[%s2410_s1 + $0x104] ss:$8 sps:$4 sm:$0xff]   ;;  %v1857_v1 = vld [vmem:[%s2410_s1 + $0xa0] ss:$8 sps:$4 sm:$0xff]  }
  0x47   : > { %847 = vmatprep.subr.bf16.mxu1 %v1759_v27  ;;  %v408_v26 = vshll.u32 %v1515_v17, 16  ;;  %v1872_v12 = vld [vmem:[%s2410_s1 + $0x180] ss:$8 sps:$4 sm:$0xff]  }
  0x48   : > { %v424_v27 = vshll.u32 %v1517_v18, 16 }
  0x49   : > { %795 = vmatpush2.bf16.msra.mxu0 %v1761_v28  ;;  %v418_v28 = vrot.slane %v416_v24, 1  ;;  %v410_v30 = vrot.slane %v408_v26, 1 }
  0x4a   : > { %848 = vmatpush2.bf16.msra.mxu1 %v1762_v29  ;;  %1198 = vmatprep.subr.bf16.mxu0 %v1777_v34  ;;  %v434_v29 = vrot.slane %v432_v25, 1  ;;  %v426_v31 = vrot.slane %v424_v27, 1  ;;  %v1820_v34 = vld [vmem:[%s2410_s1 + $0x100] ss:$8 sps:$4 sm:$0xff]  }
  0x4b   : > { %1251 = vmatprep.subr.bf16.mxu1 %v1780_v35  ;;  %v419_v35 = vsel %vm355_vm0, %v414_v20, %v418_v28  ;;  %v411_v33 = vsel %vm355_vm0, %v406_v22, %v410_v30  ;;  %v1304_v27 = vld [vmem:[%s2411_s2] sm:$0x3] }
  0x4c   : > { %797 = vmatmul.mubr.bf16.vlgmr.msra.gmra.mxu0 %v367_v38  ;;  %v1828_v38 = vld [vmem:[%s2410_s1 + $0x1f4] ss:$8 sps:$4 sm:$0xff]  }
  0x4d   : > { %850 = vmatmul.mubr.bf16.vlgmr.msra.gmra.mxu1 %v391_v39  ;;  %1199 = vmatpush1.bf16.msra.mxu0 %v1775_v36  ;;  %v435_v36 = vsel %vm355_vm0, %v430_v21, %v434_v29  ;;  %v427_v39 = vsel %vm355_vm0, %v422_v9, %v426_v31 }
  0x4e   : > { %1252 = vmatpush1.bf16.msra.mxu1 %v1778_v37  ;;  %1200 = vmatprep.subr.bf16.mxu0 %v1783_v40  ;;  %v1825_v37 = vld [vmem:[%s2410_s1 + $0xf4] ss:$8 sps:$4 sm:$0xff]   ;;  %v1823_v40 = vld [vmem:[%s2410_s1 + $0xf0] ss:$8 sps:$4 sm:$0xff]  }
  0x4f   : > { %1253 = vmatprep.subr.bf16.mxu1 %v1786_v41  ;;  %806 = vmatprep.mubr.bf16.mxu0 %v419_v35  ;;  %v1826_v41 = vld [vmem:[%s2410_s1 + $0x1f0] ss:$8 sps:$4 sm:$0xff]  }
  0x50   : > { %859 = vmatprep.mubr.bf16.mxu1 %v435_v36 }
  0x51   : > { %1201 = vmatpush1.bf16.msra.mxu0 %v1781_v42  ;;  %v1831_v42 = vld [vmem:[%s2410_s1 + $0xe4] ss:$8 sps:$4 sm:$0xff]  }
  0x52   : > { %1254 = vmatpush1.bf16.msra.mxu1 %v1784_v43  ;;  %1202 = vmatprep.subr.bf16.mxu0 %v1789_v44  ;;  %v1834_v43 = vld [vmem:[%s2410_s1 + $0x1e4] ss:$8 sps:$4 sm:$0xff]   ;;  %v1829_v44 = vld [vmem:[%s2410_s1 + $0xe0] ss:$8 sps:$4 sm:$0xff]  }
  0x53   : > { %1255 = vmatprep.subr.bf16.mxu1 %v1792_v45  ;;  %v1832_v45 = vld [vmem:[%s2410_s1 + $0x1e0] ss:$8 sps:$4 sm:$0xff]  }
  0x54   : > { %807 = vmatmul.mubr.bf16.gmra.mxu0 %v411_v33 }
  0x55   : > { %1203 = vmatpush1.bf16.msra.mxu0 %v1787_v46  ;;  %860 = vmatmul.mubr.bf16.gmra.mxu1 %v427_v39  ;;  %v1837_v46 = vld [vmem:[%s2410_s1 + $0xd4] ss:$8 sps:$4 sm:$0xff]  }
  0x56   : > { %1256 = vmatpush1.bf16.msra.mxu1 %v1790_v47  ;;  %1204 = vmatprep.subr.bf16.mxu0 %v1795_v48  ;;  %v1838_v47 = vld [vmem:[%s2410_s1 + $0x1d0] ss:$8 sps:$4 sm:$0xff]   ;;  %v1843_v48 = vld [vmem:[%s2410_s1 + $0xc4] ss:$8 sps:$4 sm:$0xff]  }
  0x57   : > { %1257 = vmatprep.subr.bf16.mxu1 %v1798_v49  ;;  %1230 = vmatprep.mubr.bf16.mxu0 %v2071_v50  ;;  %v1840_v50 = vld [vmem:[%s2410_s1 + $0x1d4] ss:$8 sps:$4 sm:$0xff]   ;;  %v1846_v49 = vld [vmem:[%s2410_s1 + $0x1c4] ss:$8 sps:$4 sm:$0xff]  }
  0x58   : > { %1283 = vmatprep.mubr.bf16.mxu1 %v2083_v56  ;;  %v1835_v56 = vld [vmem:[%s2410_s1 + $0xd0] ss:$8 sps:$4 sm:$0xff]  }
  0x59   : > { %1205 = vmatpush1.bf16.msra.mxu0 %v1793_v52  ;;  %v1841_v52 = vld [vmem:[%s2410_s1 + $0xc0] ss:$8 sps:$4 sm:$0xff]  }
  0x5a   : > { %1258 = vmatpush1.bf16.msra.mxu1 %v1796_v53  ;;  %1206 = vmatprep.subr.bf16.mxu0 %v1801_v54  ;;  %v1844_v53 = vld [vmem:[%s2410_s1 + $0x1c0] ss:$8 sps:$4 sm:$0xff]   ;;  %v1849_v54 = vld [vmem:[%s2410_s1 + $0xb4] ss:$8 sps:$4 sm:$0xff]  }
  0x5b   : > { %1259 = vmatprep.subr.bf16.mxu1 %v1804_v55  ;;  %v1852_v55 = vld [vmem:[%s2410_s1 + $0x1b4] ss:$8 sps:$4 sm:$0xff]  }
  0x5d   : > { %1207 = vmatpush1.bf16.msra.mxu0 %v1799_v57  ;;  %v1847_v57 = vld [vmem:[%s2410_s1 + $0xb0] ss:$8 sps:$4 sm:$0xff]  }
  0x5e   : > { %1260 = vmatpush1.bf16.msra.mxu1 %v1802_v60  ;;  %1208 = vmatprep.subr.bf16.mxu0 %v1807_v62  ;;  %v1850_v60 = vld [vmem:[%s2410_s1 + $0x1b0] ss:$8 sps:$4 sm:$0xff]   ;;  %v1859_v62 = vld [vmem:[%s2410_s1 + $0xa4] ss:$8 sps:$4 sm:$0xff]  }
  0x5f   : > { %1261 = vmatprep.subr.bf16.mxu1 %v1810_v63  ;;  %v1862_v63 = vld [vmem:[%s2410_s1 + $0x1a4] ss:$8 sps:$4 sm:$0xff]  }
  0x61   : > { %1209 = vmatpush1.bf16.msra.mxu0 %v1805_v3  ;;  %v1865_v3 = vld [vmem:[%s2410_s1 + $0x94] ss:$8 sps:$4 sm:$0xff]  }
  0x62   : > { %1262 = vmatpush1.bf16.msra.mxu1 %v1808_v4  ;;  %1210 = vmatprep.subr.bf16.mxu0 %v1813_v6  ;;  %v1868_v4 = vld [vmem:[%s2410_s1 + $0x194] ss:$8 sps:$4 sm:$0xff]   ;;  %v1866_v6 = vld [vmem:[%s2410_s1 + $0x190] ss:$8 sps:$4 sm:$0xff]  }
  0x63   : > { %1263 = vmatprep.subr.bf16.mxu1 %v1816_v8  ;;  %v1874_v8 = vld [vmem:[%s2410_s1 + $0x184] ss:$8 sps:$4 sm:$0xff]  }
  0x65   : > { %1211 = vmatpush1.bf16.msra.mxu0 %v1811_v13 }
  0x66   : > { %1264 = vmatpush1.bf16.msra.mxu1 %v1814_v19  ;;  %1212 = vmatprep.subr.bf16.mxu0 %v1819_v23 }
  0x67   : > { %1265 = vmatprep.subr.bf16.mxu1 %v1822_v61 }
  0x69   : > { %1213 = vmatpush1.bf16.msra.mxu0 %v1817_v32 }
  0x6a   : > { %1266 = vmatpush1.bf16.msra.mxu1 %v1820_v34  ;;  %1214 = vmatprep.subr.bf16.mxu0 %v1825_v37 }
  0x6b   : > { %1267 = vmatprep.subr.bf16.mxu1 %v1828_v38 }
  0x6d   : > { %1215 = vmatpush2.bf16.msra.mxu0 %v1823_v40 }
  0x6e   : > { %1268 = vmatpush2.bf16.msra.mxu1 %v1826_v41  ;;  %1216 = vmatprep.subr.bf16.mxu0 %v1831_v42 }
  0x6f   : > { %1269 = vmatprep.subr.bf16.mxu1 %v1834_v43 }
  0x71   : > { %1217 = vmatpush2.bf16.msra.mxu0 %v1829_v44 }
  0x72   : > { %1270 = vmatpush2.bf16.msra.mxu1 %v1832_v45  ;;  %1218 = vmatprep.subr.bf16.mxu0 %v1837_v46 }
  0x73   : > { %1271 = vmatprep.subr.bf16.mxu1 %v1840_v50 }
  0x75   : > { %1219 = vmatpush2.bf16.msra.mxu0 %v1835_v56 }
  0x76   : > { %1272 = vmatpush2.bf16.msra.mxu1 %v1838_v47  ;;  %1220 = vmatprep.subr.bf16.mxu0 %v1843_v48 }
  0x77   : > { %1273 = vmatprep.subr.bf16.mxu1 %v1846_v49 }
  0x79   : > { %1221 = vmatpush2.bf16.msra.mxu0 %v1841_v52 }
  0x7a   : > { %1274 = vmatpush2.bf16.msra.mxu1 %v1844_v53  ;;  %1222 = vmatprep.subr.bf16.mxu0 %v1849_v54 }
  0x7b   : > { %1275 = vmatprep.subr.bf16.mxu1 %v1852_v55 }
  0x7d   : > { %1223 = vmatpush2.bf16.msra.mxu0 %v1847_v57 }
  0x7e   : > { %1276 = vmatpush2.bf16.msra.mxu1 %v1850_v60  ;;  %1224 = vmatprep.subr.bf16.mxu0 %v1859_v62 }
  0x7f   : > { %1277 = vmatprep.subr.bf16.mxu1 %v1862_v63 }
  0x81   : > { %1225 = vmatpush2.bf16.msra.mxu0 %v1857_v1 }
  0x82   : > { %1278 = vmatpush2.bf16.msra.mxu1 %v1860_v2  ;;  %1226 = vmatprep.subr.bf16.mxu0 %v1865_v3 }
  0x83   : > { %1279 = vmatprep.subr.bf16.mxu1 %v1868_v4 }
  0x85   : > { %1227 = vmatpush2.bf16.msra.mxu0 %v1863_v5 }
  0x86   : > { %1280 = vmatpush2.bf16.msra.mxu1 %v1866_v6  ;;  %1228 = vmatprep.subr.bf16.mxu0 %v1871_v7 }
  0x87   : > { %1281 = vmatprep.subr.bf16.mxu1 %v1874_v8 }
  0x89   : > { %1229 = vmatpush2.bf16.msra.mxu0 %v1869_v11 }
  0x8a   : > { %1282 = vmatpush2.bf16.msra.mxu1 %v1872_v12 }
  0x8c   : > { %1231 = vmatmul.mubr.bf16.vlgmr.msra.gmra.mxu0 %v2092_v59 }
  0x8d   : > { %1284 = vmatmul.mubr.bf16.vlgmr.msra.gmra.mxu1 %v2099_v0  ;;  %1240 = vmatprep.mubr.bf16.mxu0 %v2074_v51  ;;  %v1306_v0 = vlaneseq }
  0x8e   : > { %1293 = vmatprep.mubr.bf16.mxu1 %v2089_v58 }
  0x8f   : > { %v1307_v24 = vshrl.u32 %v1306_v0, 7 }
  0x91   : > { %v1312_v9 = vsub.s32 1, %v1307_v24 }
  0x93   : > { %v2384_v38 = vrot.slane %v1304_v27, %v1312_v9 }
  0x94   : > { %1241 = vmatmul.mubr.bf16.gmra.mxu0 %v2120_v10  ;;  %v1308_v10 = vsub.s32 0, %v1307_v24 }
  0x95   : > { %1294 = vmatmul.mubr.bf16.gmra.mxu1 %v2126_v14 }
  0x96   : > { %v2382_v32 = vrot.slane %v1304_v27, %v1308_v10 }
 0x10c   : > { %v798_v13 = vpop.f32.mrf.mxu0 }
 0x10d   : > { %v851_v15 = vpop.f32.mrf.mxu1 }
 0x10e   : > { %v800_v16 = vpop.f32.mrf.mxu0  ;;  %v852_v61 = vadd.f32 %v851_v15, %v798_v13 }
 0x10f   : > { %v853_v17 = vpop.f32.mrf.mxu1 }
 0x110   : > { %v802_v18 = vpop.f32.mrf.mxu0  ;;  %v854_v30 = vadd.f32 %v853_v17, %v800_v16 }
 0x111   : > { %v855_v19 = vpop.f32.mrf.mxu1 }
 0x112   : > { %v804_v20 = vpop.f32.mrf.mxu0  ;;  %v856_v36 = vadd.f32 %v855_v19, %v802_v18 }
 0x113   : > { %v857_v21 = vpop.f32.mrf.mxu1 }
 0x114   : > { %v808_v59 = vpop.f32.mrf.mxu0  ;;  %v858_v44 = vadd.f32 %v857_v21, %v804_v20 }
 0x115   : > { %v861_v22 = vpop.f32.mrf.mxu1 }
 0x116   : > { %v810_v23 = vpop.f32.mrf.mxu0  ;;  %v862_v48 = vadd.f32 %v861_v22, %v808_v59 }
 0x117   : > { %v863_v51 = vpop.f32.mrf.mxu1 }
 0x118   : > { %v812_v58 = vpop.f32.mrf.mxu0  ;;  %v864_v54 = vadd.f32 %v863_v51, %v810_v23 }
 0x119   : > { %v865_v25 = vpop.f32.mrf.mxu1 }
 0x11a   : > { %v814_v14 = vpop.f32.mrf.mxu0  ;;  %v866_v2 = vadd.f32 %v865_v25, %v812_v58 }
 0x11b   : > { %v867_v26 = vpop.f32.mrf.mxu1 }
 0x11c   : > { %v868_v13 = vadd.f32 %v867_v26, %v814_v14 }
 0x14c   : > { %v1232_v28 = vpop.f32.mrf.mxu0 }
 0x14d   : > { %v1285_v29 = vpop.f32.mrf.mxu1  ;;  %v1233_v31 = vadd.f32 %v1232_v28, %v852_v61 }
 0x14e   : > { %v1234_v34 = vpop.f32.mrf.mxu0 }
 0x14f   : > { %v1287_v35 = vpop.f32.mrf.mxu1  ;;  %v1286_v33 = vadd.f32 %v1285_v29, %v1233_v31  ;;  %v1235_v37 = vadd.f32 %v1234_v34, %v854_v30 }
 0x150   : > { %v1236_v39 = vpop.f32.mrf.mxu0 }
 0x151   : > { %v1289_v40 = vpop.f32.mrf.mxu1  ;;  %v1316_v41 = vadd.f32 %v2382_v32, %v1286_v33  ;;  %v1288_v42 = vadd.f32 %v1287_v35, %v1235_v37  ;;  %v1237_v43 = vadd.f32 %v1236_v39, %v856_v36 }
 0x152   : > { %v1238_v45 = vpop.f32.mrf.mxu0 }
 0x153   : > { %v1291_v46 = vpop.f32.mrf.mxu1  ;;  %v1332_v50 = vmul.f32 0.2, %v1316_v41  ;;  %v1317_v56 = vadd.f32 %v2384_v38, %v1288_v42  ;;  %v1290_v47 = vadd.f32 %v1289_v40, %v1237_v43  ;;  %vm1324_vm1 = vcmp.gt.f32.partialorder %v1316_v41, 0.0 }
 0x154   : > { %v1239_v49 = vadd.f32 %v1238_v45, %v858_v44  ;;  %v1242_v52 = vpop.f32.mrf.mxu0 }
 0x155   : > { %v1295_v53 = vpop.f32.mrf.mxu1  ;;  %vm1325_vm2 = vcmp.gt.f32.partialorder %v1317_v56, 0.0  ;;  %v1333_v55 = vmul.f32 0.2, %v1317_v56  ;;  %v1318_v57 = vadd.f32 %v2382_v32, %v1290_v47  ;;  %v1243_v62 = vadd.f32 %v1242_v52, %v862_v48 }
 0x156   : > { %v1292_v60 = vadd.f32 %v1291_v46, %v1239_v49  ;;  %v1244_v63 = vpop.f32.mrf.mxu0  ;;  %v1340_v3 = vsel %vm1324_vm1, %v1316_v41, %v1332_v50 }
 0x157   : > { %v1297_v1 = vpop.f32.mrf.mxu1  ;;  %v1341_v4 = vsel %vm1325_vm2, %v1317_v56, %v1333_v55  ;;  %v1245_v5 = vadd.f32 %v1244_v63, %v864_v54  ;;  %v1334_v7 = vmul.f32 0.2, %v1318_v57  ;;  %v1296_v11 = vadd.f32 %v1295_v53, %v1243_v62 }
 0x158   : > { %v1654_v6 = vpack.c.bf16 %v1341_v4, %v1340_v3  ;;  %v1319_v8 = vadd.f32 %v2384_v38, %v1292_v60  ;;  %v1246_v12 = vpop.f32.mrf.mxu0  ;;  %vm1326_vm3 = vcmp.gt.f32.partialorder %v1318_v57, 0.0 }
 0x159   : > { %v1298_v15 = vadd.f32 %v1297_v1, %v1245_v5  ;;  %v1247_v16 = vadd.f32 %v1246_v12, %v866_v2  ;;  %v1299_v17 = vpop.f32.mrf.mxu1  ;;  %v1320_v19 = vadd.f32 %v2382_v32, %v1296_v11  ;;  %v1342_v0 = vsel %vm1326_vm3, %v1318_v57, %v1334_v7 }
 0x15a   : > { %1372 = vst [vmem:[%s2395_s5] sm:$0xff] %v1654_v6  ;;  %vm1327_vm4 = vcmp.gt.f32.partialorder %v1319_v8, 0.0  ;;  %v1335_v18 = vmul.f32 0.2, %v1319_v8  ;;  %v1248_v20 = vpop.f32.mrf.mxu0 }
 0x15b   : > { %v1321_v21 = vadd.f32 %v2384_v38, %v1298_v15  ;;  %v1300_v59 = vadd.f32 %v1299_v17, %v1247_v16  ;;  %v1249_v22 = vadd.f32 %v1248_v20, %v868_v13  ;;  %vm1328_vm5 = vcmp.gt.f32.partialorder %v1320_v19, 0.0  ;;  %v1301_v10 = vpop.f32.mrf.mxu1 }
 0x15c   : > { %v1343_v23 = vsel %vm1327_vm4, %v1319_v8, %v1335_v18  ;;  %v1336_v51 = vmul.f32 0.2, %v1320_v19 }
 0x15d   : > { %v1655_v24 = vpack.c.bf16 %v1343_v23, %v1342_v0  ;;  %vm1329_vm6 = vcmp.gt.f32.partialorder %v1321_v21, 0.0  ;;  %v1337_v58 = vmul.f32 0.2, %v1321_v21  ;;  %v1322_v25 = vadd.f32 %v2382_v32, %v1300_v59 }
 0x15e   : > { %v1302_v14 = vadd.f32 %v1301_v10, %v1249_v22  ;;  %v1344_v26 = vsel %vm1328_vm5, %v1320_v19, %v1336_v51 }
 0x15f   : > { %1373 = vst [vmem:[%s2395_s5 + $0x8] sm:$0xff] %v1655_v24  ;;  %v1345_v27 = vsel %vm1329_vm6, %v1321_v21, %v1337_v58  ;;  %v1338_v9 = vmul.f32 0.2, %v1322_v25  ;;  %vm1330_vm7 = vcmp.gt.f32.partialorder %v1322_v25, 0.0 }
 0x160   : > { %v1656_v61 = vpack.c.bf16 %v1345_v27, %v1344_v26  ;;  %v1323_v28 = vadd.f32 %v2384_v38, %v1302_v14 }
 0x161   : > { %v1346_v30 = vsel %vm1330_vm7, %v1322_v25, %v1338_v9 }
 0x162   : > { %1374 = vst [vmem:[%s2395_s5 + $0x10] sm:$0xff] %v1656_v61  ;;  %vm1331_vm8 = vcmp.gt.f32.partialorder %v1323_v28, 0.0  ;;  %v1339_v29 = vmul.f32 0.2, %v1323_v28 }
 0x164   : > { %v1347_v31 = vsel %vm1331_vm8, %v1323_v28, %v1339_v29 }
 0x165   : > { %v1657_v34 = vpack.c.bf16 %v1347_v31, %v1346_v30 }
 0x167   : > { %1375 = vst [vmem:[%s2395_s5 + $0x18] sm:$0xff] %v1657_v34 }
 0x168 PF: > { %s13_s12 = sadd.s32 1, %s1881_s12  }
 0x169   : > { %p10_p5 = scmp.ge.s32.totalorder %s13_s12, 4  }
 0x16b   :  { %12 = sbr.rel (!%p10_p5) target bundleno = 1 (0x1), region = 63 }

// kernel: tile.79
= control target key start
LH: loop header
LB: loop body
LE: loop exit
PB: predicated region body
PF: predicated region fallthrough
CT: control target
= control target key end

     0   :  { %vm65_vm0 = vcmask 1043458   ;;  %s105_s6 = smov 3  ;;  %vm70_vm1 = vcmask 1045508   ;;  %vm75_vm2 = vcmask 1047558   ;;  %s108_s9 = smov 12  ;;  %vm4_vm3 = vcmask 1047556   ;;  %s1498_s0 = inlined_call_operand.vmem [shape: f32[16,16,16], index: 0, kind: input, shape index: {}]   ;;  %s1499_s1 = inlined_call_operand.vmem [shape: f32[16,256], index: 1, kind: output, shape index: {}]  }
   0x1   :  { %v726_v0 = vld [vmem:[%s1498_s0 + $0x87] ss:$16 sm:%s105_s6]   ;;  %s113_s10 = smov 48  ;;  %s118_s15 = smov 192  ;;  %vm6_vm4 = vcmask 130048   ;;  %vm79_vm5 = vcmask 1048448  }
   0x2   :  { %v727_v1 = vld [vmem:[%s1498_s0 + $0x87] ss:$16 sm:%s108_s9]   ;;  %s60_s16 = smov 3  ;;  %s63_s21 = smov 12  ;;  %vm170_vm6 = vcmask 917248   ;;  %vm261_vm7 = vcmask 786048  }
   0x3   :  { %v728_v2 = vld [vmem:[%s1498_s0 + $0x87] ss:$16 sm:%s113_s10]   ;;  %v111_v3 = vsel %vm65_vm0, %v727_v1, %v726_v0  ;;  %s68_s22 = smov 48  ;;  %s73_s27 = smov 192  ;;  %vm352_vm8 = vcmask 654848   ;;  %vm443_vm9 = vcmask 523648  }
   0x4   :  { %v729_v4 = vld [vmem:[%s1498_s0 + $0x87] ss:$16 sm:%s118_s15]   ;;  %v116_v6 = vsel %vm70_vm1, %v728_v2, %v111_v3  ;;  %s128_s28 = smov 3  ;;  %s131_s4 = smov 12  ;;  %vm534_vm10 = vcmask 392448   ;;  %vm625_vm11 = vcmask 261248  }
   0x5   :  { %v717_v5 = vld [vmem:[%s1498_s0 + $0x7] ss:$16 sm:%s60_s16]   ;;  %v121_v9 = vsel %vm75_vm2, %v729_v4, %v116_v6  ;;  %v731_v12 = vld [vmem:[%s1498_s0 + $0x8f] ss:$16 sm:%s128_s28]   ;;  %s136_s5 = smov 48  ;;  %s857_s6 = smov 112  }
   0x6   :  { %v718_v7 = vld [vmem:[%s1498_s0 + $0x7] ss:$16 sm:%s63_s21]   ;;  %122 = vrot.lane.b32.xlu1 %v121_v9, %s857_s6  ;;  %s141_s9 = smov 192  ;;  %s82_s10 = smov 3 }
   0x7   :  { %v719_v8 = vld [vmem:[%s1498_s0 + $0x7] ss:$16 sm:%s68_s22]   ;;  %v66_v10 = vsel %vm65_vm0, %v718_v7, %v717_v5  ;;  %v732_v14 = vld [vmem:[%s1498_s0 + $0x8f] ss:$16 sm:%s131_s4]   ;;  %s85_s15 = smov 12  ;;  %s90_s16 = smov 48 }
   0x8   :  { %v720_v11 = vld [vmem:[%s1498_s0 + $0x7] ss:$16 sm:%s73_s27]   ;;  %v71_v13 = vsel %vm70_vm1, %v719_v8, %v66_v10  ;;  %v134_v16 = vsel %vm65_vm0, %v732_v14, %v731_v12  ;;  %v733_v17 = vld [vmem:[%s1498_s0 + $0x8f] ss:$16 sm:%s136_s5]   ;;  %s95_s19 = smov 192  ;;  %s173_s24 = smov 3 }
   0x9   :  { %v76_v15 = vsel %vm75_vm2, %v720_v11, %v71_v13  ;;  %v734_v18 = vld [vmem:[%s1498_s0 + $0x8f] ss:$16 sm:%s141_s9]   ;;  %v139_v19 = vsel %vm70_vm1, %v733_v17, %v134_v16  ;;  %s176_s25 = smov 12  ;;  %s181_s28 = smov 48  ;;  %v740_v27 = vld [vmem:[%s1498_s0 + $0xe] ss:$16 sm:%s173_s24]  }
   0xa   :  { %77 = vrot.lane.b32.xlu0 %v76_v15, %s857_s6  ;;  %v721_v20 = vld [vmem:[%s1498_s0 + $0xf] ss:$16 sm:%s82_s10]   ;;  %v144_v21 = vsel %vm75_vm2, %v734_v18, %v139_v19  ;;  %s186_s29 = smov 192  ;;  %s151_s5 = smov 3 }
   0xb   :  { %v722_v22 = vld [vmem:[%s1498_s0 + $0xf] ss:$16 sm:%s85_s15]   ;;  %145 = vrot.lane.b32.xlu1 %v144_v21, %s857_s6  ;;  %s154_s7 = smov 12  ;;  %s159_s12 = smov 48 }
   0xc   :  { %v723_v23 = vld [vmem:[%s1498_s0 + $0xf] ss:$16 sm:%s90_s16]   ;;  %v88_v24 = vsel %vm65_vm0, %v722_v22, %v721_v20  ;;  %v741_v28 = vld [vmem:[%s1498_s0 + $0xe] ss:$16 sm:%s176_s25]   ;;  %s164_s13 = smov 192  ;;  %s219_s15 = smov 3 }
   0xd   :  { %v724_v25 = vld [vmem:[%s1498_s0 + $0xf] ss:$16 sm:%s95_s19]   ;;  %v93_v26 = vsel %vm70_vm1, %v723_v23, %v88_v24  ;;  %v179_v30 = vsel %vm65_vm0, %v741_v28, %v740_v27  ;;  %v742_v31 = vld [vmem:[%s1498_s0 + $0xe] ss:$16 sm:%s181_s28]   ;;  %s222_s16 = smov 12  ;;  %s227_s21 = smov 48 }
   0xe   :  { %v98_v29 = vsel %vm75_vm2, %v724_v25, %v93_v26  ;;  %v743_v32 = vld [vmem:[%s1498_s0 + $0xe] ss:$16 sm:%s186_s29]   ;;  %v184_v33 = vsel %vm70_vm1, %v742_v31, %v179_v30  ;;  %v736_v34 = vld [vmem:[%s1498_s0 + $0x6] ss:$16 sm:%s151_s5]   ;;  %s232_s22 = smov 192  ;;  %s858_s23 = smov 96  }
   0xf   :  { %99 = vrot.lane.b32.xlu0 %v98_v29, %s857_s6  ;;  %v189_v35 = vsel %vm75_vm2, %v743_v32, %v184_v33  ;;  %v737_v36 = vld [vmem:[%s1498_s0 + $0x6] ss:$16 sm:%s154_s7]   ;;  %s196_s26 = smov 3  ;;  %s199_s2 = smov 12 }
  0x10   :  { %v738_v37 = vld [vmem:[%s1498_s0 + $0x6] ss:$16 sm:%s159_s12]   ;;  %190 = vrot.lane.b32.xlu1 %v189_v35, %s858_s23  ;;  %v157_v38 = vsel %vm65_vm0, %v737_v36, %v736_v34  ;;  %s204_s3 = smov 48  ;;  %s209_s9 = smov 192 }
  0x11   :  { %v739_v39 = vld [vmem:[%s1498_s0 + $0x6] ss:$16 sm:%s164_s13]   ;;  %v162_v40 = vsel %vm70_vm1, %v738_v37, %v157_v38  ;;  %v750_v41 = vld [vmem:[%s1498_s0 + $0x8e] ss:$16 sm:%s219_s15]   ;;  %s264_s12 = smov 3  ;;  %s267_s13 = smov 12 }
  0x12   :  { %v751_v42 = vld [vmem:[%s1498_s0 + $0x8e] ss:$16 sm:%s222_s16]   ;;  %v167_v43 = vsel %vm75_vm2, %v739_v39, %v162_v40  ;;  %v745_v48 = vld [vmem:[%s1498_s0 + $0x86] ss:$16 sm:%s196_s26]   ;;  %s272_s17 = smov 48  ;;  %s277_s18 = smov 192 }
  0x13   :  { %v225_v44 = vsel %vm65_vm0, %v751_v42, %v750_v41  ;;  %v752_v45 = vld [vmem:[%s1498_s0 + $0x8e] ss:$16 sm:%s227_s21]   ;;  %168 = vrot.lane.b32.xlu0 %v167_v43, %s858_s23  ;;  %s242_s21 = smov 3  ;;  %s245_s27 = smov 12 }
  0x14   :  { %v753_v46 = vld [vmem:[%s1498_s0 + $0x8e] ss:$16 sm:%s232_s22]   ;;  %v230_v47 = vsel %vm70_vm1, %v752_v45, %v225_v44  ;;  %v746_v50 = vld [vmem:[%s1498_s0 + $0x86] ss:$16 sm:%s199_s2]   ;;  %s250_s28 = smov 48  ;;  %s255_s4 = smov 192 }
  0x15   :  { %v235_v49 = vsel %vm75_vm2, %v753_v46, %v230_v47  ;;  %v747_v51 = vld [vmem:[%s1498_s0 + $0x86] ss:$16 sm:%s204_s3]   ;;  %v202_v52 = vsel %vm65_vm0, %v746_v50, %v745_v48  ;;  %v759_v55 = vld [vmem:[%s1498_s0 + $0xd] ss:$16 sm:%s264_s12]   ;;  %s310_s7 = smov 3  ;;  %s313_s8 = smov 12 }
  0x16   :  { %236 = vrot.lane.b32.xlu1 %v235_v49, %s858_s23  ;;  %v748_v53 = vld [vmem:[%s1498_s0 + $0x86] ss:$16 sm:%s209_s9]   ;;  %v207_v54 = vsel %vm70_vm1, %v747_v51, %v202_v52  ;;  %s323_s6 = smov 192  ;;  %s859_s14 = smov 80  }
  0x17   :  { %v760_v56 = vld [vmem:[%s1498_s0 + $0xd] ss:$16 sm:%s267_s13]   ;;  %v212_v57 = vsel %vm75_vm2, %v748_v53, %v207_v54  ;;  %v755_v62 = vld [vmem:[%s1498_s0 + $0x5] ss:$16 sm:%s242_s21]   ;;  %s318_s13 = smov 48  ;;  %s290_s22 = smov 12 }
  0x18   :  { %v270_v58 = vsel %vm65_vm0, %v760_v56, %v759_v55  ;;  %v761_v59 = vld [vmem:[%s1498_s0 + $0xd] ss:$16 sm:%s272_s17]   ;;  %213 = vrot.lane.b32.xlu0 %v212_v57, %s858_s23  ;;  %s287_s17 = smov 3  ;;  %s295_s24 = smov 48 }
  0x19   :  { %v762_v60 = vld [vmem:[%s1498_s0 + $0xd] ss:$16 sm:%s277_s18]   ;;  %v275_v61 = vsel %vm70_vm1, %v761_v59, %v270_v58  ;;  %v756_v0 = vld [vmem:[%s1498_s0 + $0x5] ss:$16 sm:%s245_s27]   ;;  %s300_s29 = smov 192  ;;  %s355_s3 = smov 3 }
  0x1a   :  { %v280_v63 = vsel %vm75_vm2, %v762_v60, %v275_v61  ;;  %v757_v1 = vld [vmem:[%s1498_s0 + $0x5] ss:$16 sm:%s250_s28]   ;;  %v248_v2 = vsel %vm65_vm0, %v756_v0, %v755_v62  ;;  %v769_v5 = vld [vmem:[%s1498_s0 + $0x8d] ss:$16 sm:%s310_s7]   ;;  %s363_s9 = smov 48  ;;  %s368_s10 = smov 192 }
  0x1b   :  { %281 = vrot.lane.b32.xlu1 %v280_v63, %s859_s14  ;;  %v758_v3 = vld [vmem:[%s1498_s0 + $0x5] ss:$16 sm:%s255_s4]   ;;  %v253_v4 = vsel %vm70_vm1, %v757_v1, %v248_v2  ;;  %s358_s4 = smov 12  ;;  %s336_s18 = smov 12 }
  0x1c   :  { %v770_v6 = vld [vmem:[%s1498_s0 + $0x8d] ss:$16 sm:%s313_s8]   ;;  %v258_v7 = vsel %vm75_vm2, %v758_v3, %v253_v4  ;;  %v764_v12 = vld [vmem:[%s1498_s0 + $0x85] ss:$16 sm:%s287_s17]   ;;  %s341_s19 = smov 48  ;;  %s346_s25 = smov 192 }
  0x1d   :  { %v316_v8 = vsel %vm65_vm0, %v770_v6, %v769_v5  ;;  %v771_v9 = vld [vmem:[%s1498_s0 + $0x8d] ss:$16 sm:%s318_s13]   ;;  %259 = vrot.lane.b32.xlu0 %v258_v7, %s859_s14  ;;  %s333_s13 = smov 3  ;;  %s401_s27 = smov 3 }
  0x1e   :  { %v772_v10 = vld [vmem:[%s1498_s0 + $0x8d] ss:$16 sm:%s323_s6]   ;;  %v321_v11 = vsel %vm70_vm1, %v771_v9, %v316_v8  ;;  %v765_v14 = vld [vmem:[%s1498_s0 + $0x85] ss:$16 sm:%s290_s22]   ;;  %s404_s28 = smov 12  ;;  %s414_s23 = smov 192 }
  0x1f   :  { %v326_v13 = vsel %vm75_vm2, %v772_v10, %v321_v11  ;;  %v766_v15 = vld [vmem:[%s1498_s0 + $0x85] ss:$16 sm:%s295_s24]   ;;  %v293_v16 = vsel %vm65_vm0, %v765_v14, %v764_v12  ;;  %v778_v19 = vld [vmem:[%s1498_s0 + $0xc] ss:$16 sm:%s355_s3]   ;;  %s860_s5 = smov 64   ;;  %s381_s6 = smov 12 }
  0x20   :  { %327 = vrot.lane.b32.xlu1 %v326_v13, %s859_s14  ;;  %v767_v17 = vld [vmem:[%s1498_s0 + $0x85] ss:$16 sm:%s300_s29]   ;;  %v298_v18 = vsel %vm70_vm1, %v766_v15, %v293_v16  ;;  %s386_s15 = smov 48  ;;  %s391_s20 = smov 192 }
  0x21   :  { %v779_v20 = vld [vmem:[%s1498_s0 + $0xc] ss:$16 sm:%s358_s4]   ;;  %v303_v21 = vsel %vm75_vm2, %v767_v17, %v298_v18  ;;  %v774_v26 = vld [vmem:[%s1498_s0 + $0x4] ss:$16 sm:%s333_s13]   ;;  %s409_s4 = smov 48  ;;  %s446_s24 = smov 3 }
  0x22   :  { %v361_v22 = vsel %vm65_vm0, %v779_v20, %v778_v19  ;;  %v780_v23 = vld [vmem:[%s1498_s0 + $0xc] ss:$16 sm:%s363_s9]   ;;  %304 = vrot.lane.b32.xlu0 %v303_v21, %s859_s14  ;;  %s378_s9 = smov 3  ;;  %s454_s29 = smov 48 }
  0x23   :  { %v781_v24 = vld [vmem:[%s1498_s0 + $0xc] ss:$16 sm:%s368_s10]   ;;  %v366_v25 = vsel %vm70_vm1, %v780_v23, %v361_v22  ;;  %v775_v28 = vld [vmem:[%s1498_s0 + $0x4] ss:$16 sm:%s336_s18]   ;;  %s459_s30 = smov 192  ;;  %s427_s10 = smov 12 }
  0x24   :  { %v371_v27 = vsel %vm75_vm2, %v781_v24, %v366_v25  ;;  %v776_v29 = vld [vmem:[%s1498_s0 + $0x4] ss:$16 sm:%s341_s19]   ;;  %v339_v30 = vsel %vm65_vm0, %v775_v28, %v774_v26  ;;  %v788_v33 = vld [vmem:[%s1498_s0 + $0x8c] ss:$16 sm:%s401_s27]   ;;  %s432_s11 = smov 48  ;;  %s437_s16 = smov 192 }
  0x25   :  { %372 = vrot.lane.b32.xlu1 %v371_v27, %s860_s5  ;;  %v777_v31 = vld [vmem:[%s1498_s0 + $0x4] ss:$16 sm:%s346_s25]   ;;  %v344_v32 = vsel %vm70_vm1, %v776_v29, %v339_v30  ;;  %s449_s25 = smov 12  ;;  %s492_s18 = smov 3 }
  0x26   :  { %v789_v34 = vld [vmem:[%s1498_s0 + $0x8c] ss:$16 sm:%s404_s28]   ;;  %v349_v35 = vsel %vm75_vm2, %v777_v31, %v344_v32  ;;  %v783_v40 = vld [vmem:[%s1498_s0 + $0x84] ss:$16 sm:%s378_s9]   ;;  %s495_s19 = smov 12  ;;  %s505_s14 = smov 192 }
  0x27   :  { %v407_v36 = vsel %vm65_vm0, %v789_v34, %v788_v33  ;;  %v790_v37 = vld [vmem:[%s1498_s0 + $0x8c] ss:$16 sm:%s409_s4]   ;;  %350 = vrot.lane.b32.xlu0 %v349_v35, %s860_s5  ;;  %s424_s4 = smov 3  ;;  %s861_s26 = smov 48  }
  0x28   :  { %v791_v38 = vld [vmem:[%s1498_s0 + $0x8c] ss:$16 sm:%s414_s23]   ;;  %v412_v39 = vsel %vm70_vm1, %v790_v37, %v407_v36  ;;  %v784_v42 = vld [vmem:[%s1498_s0 + $0x84] ss:$16 sm:%s381_s6]   ;;  %s472_s23 = smov 12  ;;  %s477_s7 = smov 48 }
  0x29   :  { %v417_v41 = vsel %vm75_vm2, %v791_v38, %v412_v39  ;;  %v785_v43 = vld [vmem:[%s1498_s0 + $0x84] ss:$16 sm:%s386_s15]   ;;  %v384_v44 = vsel %vm65_vm0, %v784_v42, %v783_v40  ;;  %v797_v47 = vld [vmem:[%s1498_s0 + $0xb] ss:$16 sm:%s446_s24]   ;;  %s482_s12 = smov 192  ;;  %s537_s15 = smov 3 }
  0x2a   :  { %418 = vrot.lane.b32.xlu1 %v417_v41, %s860_s5  ;;  %v786_v45 = vld [vmem:[%s1498_s0 + $0x84] ss:$16 sm:%s391_s20]   ;;  %v389_v46 = vsel %vm70_vm1, %v785_v43, %v384_v44  ;;  %s545_s20 = smov 48  ;;  %s550_s21 = smov 192 }
  0x2b   :  { %v798_v48 = vld [vmem:[%s1498_s0 + $0xb] ss:$16 sm:%s449_s25]   ;;  %v394_v49 = vsel %vm75_vm2, %v786_v45, %v389_v46  ;;  %v793_v54 = vld [vmem:[%s1498_s0 + $0x3] ss:$16 sm:%s424_s4]   ;;  %s500_s25 = smov 48  ;;  %s523_s2 = smov 48 }
  0x2c   :  { %v452_v50 = vsel %vm65_vm0, %v798_v48, %v797_v47  ;;  %v799_v51 = vld [vmem:[%s1498_s0 + $0xb] ss:$16 sm:%s454_s29]   ;;  %395 = vrot.lane.b32.xlu0 %v394_v49, %s860_s5  ;;  %s469_s29 = smov 3  ;;  %s528_s8 = smov 192 }
  0x2d   :  { %v800_v52 = vld [vmem:[%s1498_s0 + $0xb] ss:$16 sm:%s459_s30]   ;;  %v457_v53 = vsel %vm70_vm1, %v799_v51, %v452_v50  ;;  %v794_v56 = vld [vmem:[%s1498_s0 + $0x3] ss:$16 sm:%s427_s10]   ;;  %s518_s30 = smov 12  ;;  %s583_s10 = smov 3 }
  0x2e   :  { %v462_v55 = vsel %vm75_vm2, %v800_v52, %v457_v53  ;;  %v795_v57 = vld [vmem:[%s1498_s0 + $0x3] ss:$16 sm:%s432_s11]   ;;  %v430_v58 = vsel %vm65_vm0, %v794_v56, %v793_v54  ;;  %v807_v61 = vld [vmem:[%s1498_s0 + $0x8b] ss:$16 sm:%s492_s18]   ;;  %s586_s11 = smov 12  ;;  %s596_s5 = smov 192 }
  0x2f   :  { %463 = vrot.lane.b32.xlu1 %v462_v55, %s861_s26  ;;  %v796_v59 = vld [vmem:[%s1498_s0 + $0x3] ss:$16 sm:%s437_s16]   ;;  %v435_v60 = vsel %vm70_vm1, %v795_v57, %v430_v58  ;;  %s540_s16 = smov 12  ;;  %s862_s17 = smov 32  }
  0x30   :  { %v808_v62 = vld [vmem:[%s1498_s0 + $0x8b] ss:$16 sm:%s495_s19]   ;;  %v440_v63 = vsel %vm75_vm2, %v796_v59, %v435_v60  ;;  %v802_v4 = vld [vmem:[%s1498_s0 + $0x83] ss:$16 sm:%s469_s29]   ;;  %s568_s27 = smov 48  ;;  %s573_s3 = smov 192 }
  0x31   :  { %v498_v0 = vsel %vm65_vm0, %v808_v62, %v807_v61  ;;  %v809_v1 = vld [vmem:[%s1498_s0 + $0x8b] ss:$16 sm:%s500_s25]   ;;  %441 = vrot.lane.b32.xlu0 %v440_v63, %s861_s26  ;;  %s515_s25 = smov 3  ;;  %s641_s13 = smov 192 }
  0x32   :  { %v810_v2 = vld [vmem:[%s1498_s0 + $0x8b] ss:$16 sm:%s505_s14]   ;;  %v503_v3 = vsel %vm70_vm1, %v809_v1, %v498_v0  ;;  %v803_v6 = vld [vmem:[%s1498_s0 + $0x83] ss:$16 sm:%s472_s23]   ;;  %s563_s14 = smov 12  ;;  %s609_s24 = smov 12 }
  0x33   :  { %v508_v5 = vsel %vm75_vm2, %v810_v2, %v503_v3  ;;  %v804_v7 = vld [vmem:[%s1498_s0 + $0x83] ss:$16 sm:%s477_s7]   ;;  %v475_v8 = vsel %vm65_vm0, %v803_v6, %v802_v4  ;;  %v816_v11 = vld [vmem:[%s1498_s0 + $0xa] ss:$16 sm:%s537_s15]   ;;  %s628_s7 = smov 3  ;;  %s677_s4 = smov 12 }
  0x34   :  { %509 = vrot.lane.b32.xlu1 %v508_v5, %s861_s26  ;;  %v805_v9 = vld [vmem:[%s1498_s0 + $0x83] ss:$16 sm:%s482_s12]   ;;  %v480_v10 = vsel %vm70_vm1, %v804_v7, %v475_v8  ;;  %s636_s12 = smov 48  ;;  %v2_v38 = vld [vmem:[%s1498_s0] ss:$8 sm:$0xf]  }
  0x35   :  { %v817_v12 = vld [vmem:[%s1498_s0 + $0xa] ss:$16 sm:%s540_s16]   ;;  %v485_v13 = vsel %vm75_vm2, %v805_v9, %v480_v10  ;;  %v812_v18 = vld [vmem:[%s1498_s0 + $0x2] ss:$16 sm:%s515_s25]   ;;  %s591_s16 = smov 48  ;;  %s614_s25 = smov 48 }
  0x36   :  { %v543_v14 = vsel %vm65_vm0, %v817_v12, %v816_v11  ;;  %v818_v15 = vld [vmem:[%s1498_s0 + $0xa] ss:$16 sm:%s545_s20]   ;;  %486 = vrot.lane.b32.xlu0 %v485_v13, %s861_s26  ;;  %s560_s20 = smov 3  ;;  %v3_v48 = vld [vmem:[%s1498_s0] ss:$8 sm:$0xf0]  }
  0x37   :  { %v819_v16 = vld [vmem:[%s1498_s0 + $0xa] ss:$16 sm:%s550_s21]   ;;  %v548_v17 = vsel %vm70_vm1, %v818_v15, %v543_v14  ;;  %v813_v20 = vld [vmem:[%s1498_s0 + $0x2] ss:$16 sm:%s518_s30]   ;;  %s619_s30 = smov 192  ;;  %v5_v52 = vsel %vm4_vm3, %v3_v48, %v2_v38  ;;  %s664_s26 = smov 192 }
  0x38   :  { %v553_v19 = vsel %vm75_vm2, %v819_v16, %v548_v17  ;;  %v814_v21 = vld [vmem:[%s1498_s0 + $0x2] ss:$16 sm:%s523_s2]   ;;  %v521_v22 = vsel %vm65_vm0, %v813_v20, %v812_v18  ;;  %v826_v25 = vld [vmem:[%s1498_s0 + $0x8a] ss:$16 sm:%s583_s10]   ;;  %s674_s2 = smov 3 }
  0x39   :  { %554 = vrot.lane.b32.xlu1 %v553_v19, %s862_s17  ;;  %v815_v23 = vld [vmem:[%s1498_s0 + $0x2] ss:$16 sm:%s528_s8]   ;;  %v526_v24 = vsel %vm70_vm1, %v814_v21, %v521_v22  ;;  %s631_s8 = smov 12  ;;  %7 = vst.msk [vmem:[%s1499_s1] ss:$8 sm:$0x3] %vm6_vm4, %v5_v52  }
  0x3a   :  { %v827_v26 = vld [vmem:[%s1498_s0 + $0x8a] ss:$16 sm:%s586_s11]   ;;  %v531_v27 = vsel %vm75_vm2, %v815_v23, %v526_v24  ;;  %v821_v32 = vld [vmem:[%s1498_s0 + $0x82] ss:$16 sm:%s560_s20]   ;;  %s682_s11 = smov 48 }
  0x3b   :  { %v589_v28 = vsel %vm65_vm0, %v827_v26, %v826_v25  ;;  %v828_v29 = vld [vmem:[%s1498_s0 + $0x8a] ss:$16 sm:%s591_s16]   ;;  %532 = vrot.lane.b32.xlu0 %v531_v27, %s862_s17  ;;  %s606_s16 = smov 3  ;;  %696 = vst.msk [vmem:[%s1499_s1 - $0xf] ss:$8 sm:$0xc] %vm6_vm4, %v5_v52  }
  0x3c   :  { %v829_v30 = vld [vmem:[%s1498_s0 + $0x8a] ss:$16 sm:%s596_s5]   ;;  %v594_v31 = vsel %vm70_vm1, %v828_v29, %v589_v28  ;;  %v822_v34 = vld [vmem:[%s1498_s0 + $0x82] ss:$16 sm:%s563_s14]  }
  0x3d   :  { %v599_v33 = vsel %vm75_vm2, %v829_v30, %v594_v31  ;;  %v823_v35 = vld [vmem:[%s1498_s0 + $0x82] ss:$16 sm:%s568_s27]   ;;  %v566_v36 = vsel %vm65_vm0, %v822_v34, %v821_v32  ;;  %v835_v40 = vld [vmem:[%s1498_s0 + $0x9] ss:$16 sm:%s628_s7]  }
  0x3e   :  { %600 = vrot.lane.b32.xlu1 %v599_v33, %s862_s17  ;;  %v824_v37 = vld [vmem:[%s1498_s0 + $0x82] ss:$16 sm:%s573_s3]   ;;  %v571_v39 = vsel %vm70_vm1, %v823_v35, %v566_v36  ;;  %697 = vst.msk [vmem:[%s1499_s1 - $0x1e] ss:$8 sm:$0x30] %vm6_vm4, %v5_v52   ;;  %s659_s3 = smov 48 }
  0x3f   :  { %v836_v41 = vld [vmem:[%s1498_s0 + $0x9] ss:$16 sm:%s631_s8]   ;;  %v576_v42 = vsel %vm75_vm2, %v824_v37, %v571_v39  ;;  %v831_v47 = vld [vmem:[%s1498_s0 + $0x1] ss:$16 sm:%s606_s16]   ;;  %s651_s16 = smov 3 }
  0x40   :  { %v634_v43 = vsel %vm65_vm0, %v836_v41, %v835_v40  ;;  %v837_v44 = vld [vmem:[%s1498_s0 + $0x9] ss:$16 sm:%s636_s12]   ;;  %577 = vrot.lane.b32.xlu0 %v576_v42, %s862_s17  ;;  %s687_s12 = smov 192  ;;  %698 = vst.msk [vmem:[%s1499_s1 - $0x2d] ss:$8 sm:$0xc0] %vm6_vm4, %v5_v52  }
  0x41   :  { %v838_v45 = vld [vmem:[%s1498_s0 + $0x9] ss:$16 sm:%s641_s13]   ;;  %v639_v46 = vsel %vm70_vm1, %v837_v44, %v634_v43  ;;  %v832_v50 = vld [vmem:[%s1498_s0 + $0x1] ss:$16 sm:%s609_s24]   ;;  %s863_s13 = smov 16   ;;  %s654_s17 = smov 12 }
  0x42   :  { %v644_v49 = vsel %vm75_vm2, %v838_v45, %v639_v46  ;;  %v833_v51 = vld [vmem:[%s1498_s0 + $0x1] ss:$16 sm:%s614_s25]   ;;  %v612_v53 = vsel %vm65_vm0, %v832_v50, %v831_v47  ;;  %v699_v55 = vld [vmem:[%s1498_s0 + $0x40] ss:$8 sm:$0xf]  }
  0x43   :  { %645 = vrot.lane.b32.xlu1 %v644_v49, %s863_s13  ;;  %v834_v54 = vld [vmem:[%s1498_s0 + $0x1] ss:$16 sm:%s619_s30]   ;;  %v617_v56 = vsel %vm70_vm1, %v833_v51, %v612_v53  ;;  %v700_v1 = vld [vmem:[%s1498_s0 + $0x40] ss:$8 sm:$0xf0]  }
  0x44   :  { %v845_v57 = vld [vmem:[%s1498_s0 + $0x89] ss:$16 sm:%s674_s2]   ;;  %v622_v59 = vsel %vm75_vm2, %v834_v54, %v617_v56  ;;  %v840_v0 = vld [vmem:[%s1498_s0 + $0x81] ss:$16 sm:%s651_s16]   ;;  %v19_v5 = vsel %vm4_vm3, %v700_v1, %v699_v55 }
  0x45   :  { %v846_v58 = vld [vmem:[%s1498_s0 + $0x89] ss:$16 sm:%s677_s4]   ;;  %623 = vrot.lane.b32.xlu0 %v622_v59, %s863_s13  ;;  %701 = vst.msk [vmem:[%s1499_s1 + $0x4] ss:$8 sm:$0x3] %vm6_vm4, %v19_v5  }
  0x46   :  { %v680_v60 = vsel %vm65_vm0, %v846_v58, %v845_v57  ;;  %v847_v61 = vld [vmem:[%s1498_s0 + $0x89] ss:$16 sm:%s682_s11]   ;;  %v841_v3 = vld [vmem:[%s1498_s0 + $0x81] ss:$16 sm:%s654_s17]  }
  0x47   :  { %v848_v62 = vld [vmem:[%s1498_s0 + $0x89] ss:$16 sm:%s687_s12]   ;;  %v685_v63 = vsel %vm70_vm1, %v847_v61, %v680_v60  ;;  %v842_v4 = vld [vmem:[%s1498_s0 + $0x81] ss:$16 sm:%s659_s3]   ;;  %v657_v6 = vsel %vm65_vm0, %v841_v3, %v840_v0 }
  0x48   :  { %v690_v2 = vsel %vm75_vm2, %v848_v62, %v685_v63  ;;  %v843_v7 = vld [vmem:[%s1498_s0 + $0x81] ss:$16 sm:%s664_s26]   ;;  %702 = vst.msk [vmem:[%s1499_s1 - $0xb] ss:$8 sm:$0xc] %vm6_vm4, %v19_v5   ;;  %v662_v9 = vsel %vm70_vm1, %v842_v4, %v657_v6 }
  0x49   :  { %691 = vrot.lane.b32.xlu1 %v690_v2, %s863_s13  ;;  %703 = vst.msk [vmem:[%s1499_s1 - $0x1a] ss:$8 sm:$0x30] %vm6_vm4, %v19_v5   ;;  %704 = vst.msk [vmem:[%s1499_s1 - $0x29] ss:$8 sm:$0xc0] %vm6_vm4, %v19_v5   ;;  %v667_v12 = vsel %vm75_vm2, %v843_v7, %v662_v9 }
  0x4a   :  { %v705_v8 = vld [vmem:[%s1498_s0 + $0x80] ss:$8 sm:$0xf]   ;;  %668 = vrot.lane.b32.xlu0 %v667_v12, %s863_s13 }
  0x4b   :  { %v706_v10 = vld [vmem:[%s1498_s0 + $0x80] ss:$8 sm:$0xf0]  }
  0x4c   :  { %v711_v11 = vld [vmem:[%s1498_s0 + $0xc0] ss:$8 sm:$0xf]   ;;  %v34_v13 = vsel %vm4_vm3, %v706_v10, %v705_v8 }
  0x4d   :  { %v712_v14 = vld [vmem:[%s1498_s0 + $0xc0] ss:$8 sm:$0xf0]   ;;  %707 = vst.msk [vmem:[%s1499_s1 + $0x10] ss:$8 sm:$0x3] %vm6_vm4, %v34_v13  }
  0x4e   :  { %708 = vst.msk [vmem:[%s1499_s1 + $0x1] ss:$8 sm:$0xc] %vm6_vm4, %v34_v13   ;;  %709 = vst.msk [vmem:[%s1499_s1 - $0xe] ss:$8 sm:$0x30] %vm6_vm4, %v34_v13   ;;  %v49_v15 = vsel %vm4_vm3, %v712_v14, %v711_v11 }
  0x4f   :  { %710 = vst.msk [vmem:[%s1499_s1 - $0x1d] ss:$8 sm:$0xc0] %vm6_vm4, %v34_v13   ;;  %713 = vst.msk [vmem:[%s1499_s1 + $0x14] ss:$8 sm:$0x3] %vm6_vm4, %v49_v15  }
  0x50   :  { %714 = vst.msk [vmem:[%s1499_s1 + $0x5] ss:$8 sm:$0xc] %vm6_vm4, %v49_v15   ;;  %715 = vst.msk [vmem:[%s1499_s1 - $0xa] ss:$8 sm:$0x30] %vm6_vm4, %v49_v15  }
  0x51   :  { %716 = vst.msk [vmem:[%s1499_s1 - $0x19] ss:$8 sm:$0xc0] %vm6_vm4, %v49_v15  }
  0x78   :  { %v123_v16 = vpop.permute.xlu1 %122  }
  0x79   :  { %730 = vst.msk [vmem:[%s1499_s1 + $0x10] sm:$0xff] %vm79_vm5, %v123_v16  }
  0x7c   :  { %v78_v17 = vpop.permute.xlu0 %77  }
  0x7d   :  { %80 = vst.msk [vmem:[%s1499_s1] sm:$0xff] %vm79_vm5, %v78_v17   ;;  %v146_v18 = vpop.permute.xlu1 %145  }
  0x7e   :  { %735 = vst.msk [vmem:[%s1499_s1 + $0x18] sm:$0xff] %vm79_vm5, %v146_v18  }
  0x81   :  { %v100_v19 = vpop.permute.xlu0 %99  }
  0x82   :  { %725 = vst.msk [vmem:[%s1499_s1 + $0x8] sm:$0xff] %vm79_vm5, %v100_v19   ;;  %v191_v20 = vpop.permute.xlu1 %190  }
  0x83   :  { %744 = vst.msk [vmem:[%s1499_s1 + $0x8] sm:$0xff] %vm170_vm6, %v191_v20  }
  0x85   :  { %v169_v21 = vpop.permute.xlu0 %168  }
  0x86   :  { %171 = vst.msk [vmem:[%s1499_s1] sm:$0xff] %vm170_vm6, %v169_v21  }
  0x88   :  { %v237_v22 = vpop.permute.xlu1 %236  }
  0x89   :  { %754 = vst.msk [vmem:[%s1499_s1 + $0x18] sm:$0xff] %vm170_vm6, %v237_v22  }
  0x8a   :  { %v214_v23 = vpop.permute.xlu0 %213  }
  0x8b   :  { %749 = vst.msk [vmem:[%s1499_s1 + $0x10] sm:$0xff] %vm170_vm6, %v214_v23  }
  0x8d   :  { %v282_v24 = vpop.permute.xlu1 %281  }
  0x8e   :  { %763 = vst.msk [vmem:[%s1499_s1 + $0x8] sm:$0xff] %vm261_vm7, %v282_v24  }
  0x8f   :  { %v260_v25 = vpop.permute.xlu0 %259  }
  0x90   :  { %262 = vst.msk [vmem:[%s1499_s1] sm:$0xff] %vm261_vm7, %v260_v25  }
  0x92   :  { %v328_v26 = vpop.permute.xlu1 %327  }
  0x93   :  { %773 = vst.msk [vmem:[%s1499_s1 + $0x18] sm:$0xff] %vm261_vm7, %v328_v26  }
  0x94   :  { %v305_v27 = vpop.permute.xlu0 %304  }
  0x95   :  { %768 = vst.msk [vmem:[%s1499_s1 + $0x10] sm:$0xff] %vm261_vm7, %v305_v27  }
  0x97   :  { %v373_v28 = vpop.permute.xlu1 %372  }
  0x98   :  { %782 = vst.msk [vmem:[%s1499_s1 + $0x8] sm:$0xff] %vm352_vm8, %v373_v28  }
  0x99   :  { %v351_v29 = vpop.permute.xlu0 %350  }
  0x9a   :  { %353 = vst.msk [vmem:[%s1499_s1] sm:$0xff] %vm352_vm8, %v351_v29  }
  0x9c   :  { %v419_v30 = vpop.permute.xlu1 %418  }
  0x9d   :  { %792 = vst.msk [vmem:[%s1499_s1 + $0x18] sm:$0xff] %vm352_vm8, %v419_v30  }
  0x9e   :  { %v396_v31 = vpop.permute.xlu0 %395  }
  0x9f   :  { %787 = vst.msk [vmem:[%s1499_s1 + $0x10] sm:$0xff] %vm352_vm8, %v396_v31  }
  0xa1   :  { %v464_v32 = vpop.permute.xlu1 %463  }
  0xa2   :  { %801 = vst.msk [vmem:[%s1499_s1 + $0x8] sm:$0xff] %vm443_vm9, %v464_v32  }
  0xa3   :  { %v442_v33 = vpop.permute.xlu0 %441  }
  0xa4   :  { %444 = vst.msk [vmem:[%s1499_s1] sm:$0xff] %vm443_vm9, %v442_v33  }
  0xa6   :  { %v510_v34 = vpop.permute.xlu1 %509  }
  0xa7   :  { %811 = vst.msk [vmem:[%s1499_s1 + $0x18] sm:$0xff] %vm443_vm9, %v510_v34  }
  0xa8   :  { %v487_v35 = vpop.permute.xlu0 %486  }
  0xa9   :  { %806 = vst.msk [vmem:[%s1499_s1 + $0x10] sm:$0xff] %vm443_vm9, %v487_v35  }
  0xab   :  { %v555_v36 = vpop.permute.xlu1 %554  }
  0xac   :  { %820 = vst.msk [vmem:[%s1499_s1 + $0x8] sm:$0xff] %vm534_vm10, %v555_v36  }
  0xad   :  { %v533_v37 = vpop.permute.xlu0 %532  }
  0xae   :  { %535 = vst.msk [vmem:[%s1499_s1] sm:$0xff] %vm534_vm10, %v533_v37  }
  0xb0   :  { %v601_v38 = vpop.permute.xlu1 %600  }
  0xb1   :  { %830 = vst.msk [vmem:[%s1499_s1 + $0x18] sm:$0xff] %vm534_vm10, %v601_v38  }
  0xb2   :  { %v578_v39 = vpop.permute.xlu0 %577  }
  0xb3   :  { %825 = vst.msk [vmem:[%s1499_s1 + $0x10] sm:$0xff] %vm534_vm10, %v578_v39  }
  0xb5   :  { %v646_v40 = vpop.permute.xlu1 %645  }
  0xb6   :  { %839 = vst.msk [vmem:[%s1499_s1 + $0x8] sm:$0xff] %vm625_vm11, %v646_v40  }
  0xb7   :  { %v624_v41 = vpop.permute.xlu0 %623  }
  0xb8   :  { %626 = vst.msk [vmem:[%s1499_s1] sm:$0xff] %vm625_vm11, %v624_v41  }
  0xbb   :  { %v692_v42 = vpop.permute.xlu1 %691  }
  0xbc   :  { %849 = vst.msk [vmem:[%s1499_s1 + $0x18] sm:$0xff] %vm625_vm11, %v692_v42   ;;  %v669_v43 = vpop.permute.xlu0 %668  }
  0xbd   :  { %844 = vst.msk [vmem:[%s1499_s1 + $0x10] sm:$0xff] %vm625_vm11, %v669_v43  }

// kernel: tile.83
= control target key start
LH: loop header
LB: loop body
LE: loop exit
PB: predicated region body
PF: predicated region fallthrough
CT: control target
= control target key end

     0   :  { %s28_s0 = inlined_call_operand.vmem [shape: f32[16], index: 0, kind: input, shape index: {}]   ;;  %s29_s1 = inlined_call_operand.vmem [shape: f32[16,16], index: 1, kind: output, shape index: {}]  }
   0x1   :  { %v4_v0 = vld [vmem:[%s28_s0] ss:$0 sm:$0xff] }
   0x2   :  { %5 = vst [vmem:[%s29_s1] sm:$0xff] %v4_v0  ;;  %8 = vst [vmem:[%s29_s1 + $0x8] sm:$0xff] %v4_v0 }

// kernel: tile.84
= control target key start
LH: loop header
LB: loop body
LE: loop exit
PB: predicated region body
PF: predicated region fallthrough
CT: control target
= control target key end

     0   :  { %s7_s6 = smov 3  ;;  %s21_s9 = smov 3  ;;  %vm4_vm0 = vcmask 130048   ;;  %vm11_vm1 = vcmask 1048448   ;;  %vm18_vm2 = vcmask 917248   ;;  %vm25_vm3 = vcmask 786048   ;;  %s131_s0 = inlined_call_operand.vmem [shape: f32[16,16], index: 0, kind: input, shape index: {}]   ;;  %s132_s1 = inlined_call_operand.vmem [shape: f32[1,256], index: 1, kind: output, shape index: {}]  }
   0x1   :  { %v69_v0 = vld [vmem:[%s131_s0 + $0x7] ss:$8 sm:%s7_s6]   ;;  %s84_s10 = smov 112   ;;  %v71_v1 = vld [vmem:[%s131_s0 + $0x5] ss:$8 sm:%s21_s9]   ;;  %s14_s13 = smov 3 }
   0x2   :  { %9 = vrot.lane.b32.xlu0 %v69_v0, %s84_s10  ;;  %s85_s14 = smov 80   ;;  %v70_v2 = vld [vmem:[%s131_s0 + $0x6] ss:$8 sm:%s14_s13]   ;;  %s28_s17 = smov 3  ;;  %vm32_vm4 = vcmask 654848   ;;  %vm39_vm5 = vcmask 523648  }
   0x3   :  { %23 = vrot.lane.b32.xlu1 %v71_v1, %s85_s14  ;;  %v72_v3 = vld [vmem:[%s131_s0 + $0x4] ss:$8 sm:%s28_s17]   ;;  %s35_s20 = smov 3  ;;  %s42_s21 = smov 3  ;;  %vm46_vm6 = vcmask 392448   ;;  %vm53_vm7 = vcmask 261248  }
   0x4   :  { %s86_s22 = smov 96   ;;  %s87_s23 = smov 64   ;;  %v73_v4 = vld [vmem:[%s131_s0 + $0x3] ss:$8 sm:%s35_s20]   ;;  %v74_v5 = vld [vmem:[%s131_s0 + $0x2] ss:$8 sm:%s42_s21]  }
   0x5   :  { %s2_s26 = smov 3  ;;  %s49_s29 = smov 3 }
   0x6   :  { %16 = vrot.lane.b32.xlu0 %v70_v2, %s86_s22  ;;  %v3_v6 = vld [vmem:[%s131_s0] ss:$8 sm:%s2_s26]   ;;  %s88_s3 = smov 48   ;;  %s89_s4 = smov 32  }
   0x7   :  { %30 = vrot.lane.b32.xlu1 %v72_v3, %s87_s23  ;;  %5 = vst.msk [vmem:[#allocation0] ss:$8 sm:$0x3] %vm4_vm0, %v3_v6   ;;  %v75_v7 = vld [vmem:[%s131_s0 + $0x1] ss:$8 sm:%s49_s29]   ;;  %s90_s0 = smov 16  }
   0xa   :  { %37 = vrot.lane.b32.xlu0 %v73_v4, %s88_s3 }
   0xb   :  { %44 = vrot.lane.b32.xlu1 %v74_v5, %s89_s4 }
   0xe   :  { %51 = vrot.lane.b32.xlu0 %v75_v7, %s90_s0 }
  0x74   :  { %v10_v8 = vpop.permute.xlu0 %9  }
  0x75   :  { %12 = vst.msk [vmem:[#allocation0] ss:$8 sm:$0x3] %vm11_vm1, %v10_v8   ;;  %v24_v9 = vpop.permute.xlu1 %23  }
  0x78   :  { %v17_v10 = vpop.permute.xlu0 %16  }
  0x79   :  { %19 = vst.msk [vmem:[#allocation0] ss:$8 sm:$0x3] %vm18_vm2, %v17_v10   ;;  %v31_v11 = vpop.permute.xlu1 %30  }
  0x7a   :  { %26 = vst.msk [vmem:[#allocation0] ss:$8 sm:$0x3] %vm25_vm3, %v24_v9  }
  0x7b   :  { %33 = vst.msk [vmem:[#allocation0] ss:$8 sm:$0x3] %vm32_vm4, %v31_v11  }
  0x7c   :  { %v38_v12 = vpop.permute.xlu0 %37  }
  0x7d   :  { %40 = vst.msk [vmem:[#allocation0] ss:$8 sm:$0x3] %vm39_vm5, %v38_v12   ;;  %v45_v13 = vpop.permute.xlu1 %44  }
  0x7e   :  { %47 = vst.msk [vmem:[#allocation0] ss:$8 sm:$0x3] %vm46_vm6, %v45_v13  }
  0x80   :  { %v52_v14 = vpop.permute.xlu0 %51  }
  0x81   :  { %54 = vst.msk [vmem:[#allocation0] ss:$8 sm:$0x3] %vm53_vm7, %v52_v14  }
  0x88   :  { %v59_v15 = vld [vmem:[#allocation0] sm:$0x1]  ;;  %v64_v16 = vld [vmem:[#allocation0 + $0x8] sm:$0x1] }
  0x89   :  { %62 = vst [vmem:[%s132_s1] sm:$0x1] %v59_v15  ;;  %76 = vst [vmem:[%s132_s1 + $0x1] sm:$0x1] %v64_v16 }

// kernel: discriminator_forward.5
= control target key start
LH: loop header
LB: loop body
LE: loop exit
PB: predicated region body
PF: predicated region fallthrough
CT: control target
= control target key end

     0   :  { %vm228_vm0 = vsmask.f32 7424  ;;  %vm2930_vm1 = vcmask 130048   ;;  %s5616_s1 = inlined_call_operand.vmem [shape: bf16[2,640,256], index: 1, kind: input, shape index: {}]   ;;  %s5617_s0 = inlined_call_operand.vmem [shape: bf16[2,17,640], index: 0, kind: input, shape index: {}]   ;;  %s5618_s2 = inlined_call_operand.vmem [shape: f32[256,16], index: 2, kind: input, shape index: {}]   ;;  %s5619_s3 = inlined_call_operand.vmem [shape: f32[16,256], index: 3, kind: input, shape index: {}]   ;;  %s5620_s4 = inlined_call_operand.vmem [shape: f32[1,256], index: 4, kind: input, shape index: {}]   ;;  %s5621_s5 = inlined_call_operand.vmem [shape: f32[1,256], index: 5, kind: input, shape index: {}]   ;;  %s5622_s6 = inlined_call_operand.vmem [shape: bf16[32,256], index: 6, kind: output, shape index: {}]  }
   0x1   :  { %v3804_v0 = vld [vmem:[%s5616_s1 + $0x2f4] ss:$8 sps:$4 sm:$0xff]   ;;  %v3808_v2 = vld [vmem:[%s5616_s1 + $0x2f0] ss:$8 sps:$4 sm:$0xff]   ;;  %v3810_v4 = vld [vmem:[%s5616_s1 + $0x2e4] ss:$8 sps:$4 sm:$0xff]  }
   0x2   :  { %v3806_v1 = vld [vmem:[%s5616_s1 + $0x3f4] ss:$8 sps:$4 sm:$0xff]   ;;  %694 = vmatprep.subr.bf16.mxu0 %v3804_v0  ;;  %v3809_v3 = vld [vmem:[%s5616_s1 + $0x3f0] ss:$8 sps:$4 sm:$0xff]   ;;  %v3812_v5 = vld [vmem:[%s5616_s1 + $0x3e4] ss:$8 sps:$4 sm:$0xff]  }
   0x3   :  { %737 = vmatprep.subr.bf16.mxu1 %v3806_v1  ;;  %695 = vmatpush1.bf16.msra.mxu0 %v3808_v2  ;;  %v3814_v6 = vld [vmem:[%s5616_s1 + $0x2e0] ss:$8 sps:$4 sm:$0xff]   ;;  %v3816_v8 = vld [vmem:[%s5616_s1 + $0x2d4] ss:$8 sps:$4 sm:$0xff]   ;;  %v3820_v10 = vld [vmem:[%s5616_s1 + $0x2d0] ss:$8 sps:$4 sm:$0xff]  }
   0x4   :  { %738 = vmatpush1.bf16.msra.mxu1 %v3809_v3  ;;  %696 = vmatprep.subr.bf16.mxu0 %v3810_v4  ;;  %v3815_v7 = vld [vmem:[%s5616_s1 + $0x3e0] ss:$8 sps:$4 sm:$0xff]   ;;  %v3818_v9 = vld [vmem:[%s5616_s1 + $0x3d4] ss:$8 sps:$4 sm:$0xff]   ;;  %v3821_v11 = vld [vmem:[%s5616_s1 + $0x3d0] ss:$8 sps:$4 sm:$0xff]  }
   0x5   :  { %739 = vmatprep.subr.bf16.mxu1 %v3812_v5  ;;  %v3822_v12 = vld [vmem:[%s5616_s1 + $0x2c4] ss:$8 sps:$4 sm:$0xff]   ;;  %v3826_v14 = vld [vmem:[%s5616_s1 + $0x2c0] ss:$8 sps:$4 sm:$0xff]   ;;  %v3828_v16 = vld [vmem:[%s5616_s1 + $0x2b4] ss:$8 sps:$4 sm:$0xff]  }
   0x6   :  { %v3824_v13 = vld [vmem:[%s5616_s1 + $0x3c4] ss:$8 sps:$4 sm:$0xff]   ;;  %v3827_v15 = vld [vmem:[%s5616_s1 + $0x3c0] ss:$8 sps:$4 sm:$0xff]   ;;  %v3830_v17 = vld [vmem:[%s5616_s1 + $0x3b4] ss:$8 sps:$4 sm:$0xff]  }
   0x7   :  { %697 = vmatpush1.bf16.msra.mxu0 %v3814_v6  ;;  %v3832_v18 = vld [vmem:[%s5616_s1 + $0x2b0] ss:$8 sps:$4 sm:$0xff]   ;;  %v3834_v20 = vld [vmem:[%s5616_s1 + $0x2a4] ss:$8 sps:$4 sm:$0xff]   ;;  %v3838_v22 = vld [vmem:[%s5616_s1 + $0x2a0] ss:$8 sps:$4 sm:$0xff]  }
   0x8   :  { %740 = vmatpush1.bf16.msra.mxu1 %v3815_v7  ;;  %698 = vmatprep.subr.bf16.mxu0 %v3816_v8  ;;  %v3833_v19 = vld [vmem:[%s5616_s1 + $0x3b0] ss:$8 sps:$4 sm:$0xff]   ;;  %v3836_v21 = vld [vmem:[%s5616_s1 + $0x3a4] ss:$8 sps:$4 sm:$0xff]   ;;  %v3839_v23 = vld [vmem:[%s5616_s1 + $0x3a0] ss:$8 sps:$4 sm:$0xff]  }
   0x9   :  { %741 = vmatprep.subr.bf16.mxu1 %v3818_v9  ;;  %v3840_v24 = vld [vmem:[%s5616_s1 + $0x294] ss:$8 sps:$4 sm:$0xff]   ;;  %v3844_v26 = vld [vmem:[%s5616_s1 + $0x290] ss:$8 sps:$4 sm:$0xff]   ;;  %v3846_v28 = vld [vmem:[%s5616_s1 + $0x284] ss:$8 sps:$4 sm:$0xff]  }
   0xa   :  { %v3842_v25 = vld [vmem:[%s5616_s1 + $0x394] ss:$8 sps:$4 sm:$0xff]   ;;  %v3845_v27 = vld [vmem:[%s5616_s1 + $0x390] ss:$8 sps:$4 sm:$0xff]   ;;  %v3848_v29 = vld [vmem:[%s5616_s1 + $0x384] ss:$8 sps:$4 sm:$0xff]  }
   0xb   :  { %699 = vmatpush1.bf16.msra.mxu0 %v3820_v10  ;;  %v3850_v30 = vld [vmem:[%s5616_s1 + $0x280] ss:$8 sps:$4 sm:$0xff]   ;;  %v3852_v32 = vld [vmem:[%s5616_s1 + $0x374] ss:$8 sps:$4 sm:$0xff]   ;;  %v3856_v34 = vld [vmem:[%s5616_s1 + $0x370] ss:$8 sps:$4 sm:$0xff]  }
   0xc   :  { %742 = vmatpush1.bf16.msra.mxu1 %v3821_v11  ;;  %700 = vmatprep.subr.bf16.mxu0 %v3822_v12  ;;  %v3851_v31 = vld [vmem:[%s5616_s1 + $0x380] ss:$8 sps:$4 sm:$0xff]   ;;  %v3854_v33 = vld [vmem:[%s5616_s1 + $0x474] ss:$8 sps:$4 sm:$0xff]   ;;  %v3857_v35 = vld [vmem:[%s5616_s1 + $0x470] ss:$8 sps:$4 sm:$0xff]  }
   0xd   :  { %743 = vmatprep.subr.bf16.mxu1 %v3824_v13  ;;  %v3858_v36 = vld [vmem:[%s5616_s1 + $0x364] ss:$8 sps:$4 sm:$0xff]   ;;  %v3862_v38 = vld [vmem:[%s5616_s1 + $0x360] ss:$8 sps:$4 sm:$0xff]   ;;  %v3864_v40 = vld [vmem:[%s5616_s1 + $0x354] ss:$8 sps:$4 sm:$0xff]  }
   0xe   :  { %v3860_v37 = vld [vmem:[%s5616_s1 + $0x464] ss:$8 sps:$4 sm:$0xff]   ;;  %v3863_v39 = vld [vmem:[%s5616_s1 + $0x460] ss:$8 sps:$4 sm:$0xff]   ;;  %v3866_v41 = vld [vmem:[%s5616_s1 + $0x454] ss:$8 sps:$4 sm:$0xff]  }
   0xf   :  { %701 = vmatpush1.bf16.msra.mxu0 %v3826_v14  ;;  %v3868_v42 = vld [vmem:[%s5616_s1 + $0x350] ss:$8 sps:$4 sm:$0xff]   ;;  %v3870_v44 = vld [vmem:[%s5616_s1 + $0x344] ss:$8 sps:$4 sm:$0xff]   ;;  %v3874_v46 = vld [vmem:[%s5616_s1 + $0x340] ss:$8 sps:$4 sm:$0xff]  }
  0x10   :  { %744 = vmatpush1.bf16.msra.mxu1 %v3827_v15  ;;  %702 = vmatprep.subr.bf16.mxu0 %v3828_v16  ;;  %v3869_v43 = vld [vmem:[%s5616_s1 + $0x450] ss:$8 sps:$4 sm:$0xff]   ;;  %v3872_v45 = vld [vmem:[%s5616_s1 + $0x444] ss:$8 sps:$4 sm:$0xff]   ;;  %v3875_v47 = vld [vmem:[%s5616_s1 + $0x440] ss:$8 sps:$4 sm:$0xff]  }
  0x11   :  { %745 = vmatprep.subr.bf16.mxu1 %v3830_v17  ;;  %v3876_v48 = vld [vmem:[%s5616_s1 + $0x334] ss:$8 sps:$4 sm:$0xff]   ;;  %v110_v49 = vld [vmem:[%s5617_s0 + $0x28] sm:$0x11]  ;;  %v4503_v50 = vld [vmem:[%s5617_s0 + $0x4] ss:$20 sps:$4 sm:$0xff]  }
  0x12   :  { %v3298_v51 = vcombine.high %v110_v49, %v110_v49  ;;  %v111_v52 = vld [vmem:[%s5617_s0 + $0x30] sm:$0x11]  ;;  %v242_v54 = vshrl.u32 %v4503_v50, 16  ;;  %v244_v55 = vshll.u32 %v4503_v50, 16  ;;  %v4516_v56 = vld [vmem:[%s5617_s0 + $0xc] ss:$20 sps:$4 sm:$0xff]   ;;  %v3297_v13 = vcombine.low %v110_v49, %v110_v49 }
  0x13   :  { %703 = vmatpush1.bf16.msra.mxu0 %v3832_v18  ;;  %v3878_v53 = vld [vmem:[%s5616_s1 + $0x434] ss:$8 sps:$4 sm:$0xff]   ;;  %v3300_v57 = vcombine.high %v111_v52, %v111_v52  ;;  %v3880_v58 = vld [vmem:[%s5616_s1 + $0x330] ss:$8 sps:$4 sm:$0xff]   ;;  %v3882_v61 = vld [vmem:[%s5616_s1 + $0x324] ss:$8 sps:$4 sm:$0xff]   ;;  %v3299_v16 = vcombine.low %v111_v52, %v111_v52 }
  0x14   :  { %746 = vmatpush1.bf16.msra.mxu1 %v3833_v19  ;;  %704 = vmatprep.subr.bf16.mxu0 %v3834_v20  ;;  %v3881_v59 = vld [vmem:[%s5616_s1 + $0x430] ss:$8 sps:$4 sm:$0xff]   ;;  %v249_v60 = vshll.u32 %v3298_v51, 16  ;;  %v3884_v62 = vld [vmem:[%s5616_s1 + $0x424] ss:$8 sps:$4 sm:$0xff]   ;;  %v246_v63 = vrot.slane %v244_v55, 1 }
  0x15   :  { %747 = vmatprep.subr.bf16.mxu1 %v3836_v21  ;;  %v266_v0 = vshrl.u32 %v4516_v56, 16  ;;  %v268_v1 = vshll.u32 %v4516_v56, 16  ;;  %v273_v2 = vshll.u32 %v3300_v57, 16  ;;  %v4535_v4 = vld [vmem:[%s5617_s0] ss:$20 sps:$4 sm:$0xff]  }
  0x16   :  { %v251_v3 = vrot.slane %v249_v60, 1  ;;  %v4540_v5 = vld [vmem:[%s5617_s0 + $0x8] ss:$20 sps:$4 sm:$0xff]   ;;  %v247_v6 = vor.u32 %v246_v63, %v242_v54  ;;  %v232_v15 = vshll.u32 %v4535_v4, 16  ;;  %v3892_v20 = vld [vmem:[%s5616_s1 + $0x310] ss:$8 sps:$4 sm:$0xff]  }
  0x17   :  { %705 = vmatpush1.bf16.msra.mxu0 %v3838_v22  ;;  %v270_v7 = vrot.slane %v268_v1, 1  ;;  %v275_v8 = vrot.slane %v273_v2, 1  ;;  %v3886_v9 = vld [vmem:[%s5616_s1 + $0x320] ss:$8 sps:$4 sm:$0xff]   ;;  %v3888_v14 = vld [vmem:[%s5616_s1 + $0x314] ss:$8 sps:$4 sm:$0xff]  }
  0x18   :  { %748 = vmatpush1.bf16.msra.mxu1 %v3839_v23  ;;  %706 = vmatprep.subr.bf16.mxu0 %v3840_v24  ;;  %v3887_v10 = vld [vmem:[%s5616_s1 + $0x420] ss:$8 sps:$4 sm:$0xff]   ;;  %v252_v11 = vsel %vm228_vm0, %v247_v6, %v251_v3  ;;  %v256_v17 = vshll.u32 %v4540_v5, 16  ;;  %v3890_v18 = vld [vmem:[%s5616_s1 + $0x414] ss:$8 sps:$4 sm:$0xff]   ;;  %v230_v23 = vshrl.u32 %v4535_v4, 16 }
  0x19   :  { %749 = vmatprep.subr.bf16.mxu1 %v3842_v25  ;;  %v271_v12 = vor.u32 %v270_v7, %v266_v0  ;;  %v3893_v21 = vld [vmem:[%s5616_s1 + $0x410] ss:$8 sps:$4 sm:$0xff]   ;;  %726 = vmatprep.mubr.bf16.mxu0 %v252_v11  ;;  %v3894_v22 = vld [vmem:[%s5616_s1 + $0x304] ss:$8 sps:$4 sm:$0xff]   ;;  %v237_v24 = vshll.u32 %v3297_v13, 16  ;;  %v234_v25 = vrot.slane %v232_v15, 1 }
  0x1a   :  { %v3922_v49 = vld [vmem:[%s5616_s1 + $0x4d0] ss:$8 sps:$4 sm:$0xff]   ;;  %v3930_v52 = vld [vmem:[%s5616_s1 + $0x4c4] ss:$8 sps:$4 sm:$0xff]   ;;  %v3931_v54 = vld [vmem:[%s5616_s1 + $0x40] ss:$8 sps:$4 sm:$0xff]  }
  0x1b   :  { %707 = vmatpush1.bf16.msra.mxu0 %v3844_v26  ;;  %v276_v19 = vsel %vm228_vm0, %v271_v12, %v275_v8  ;;  %v254_v26 = vshrl.u32 %v4540_v5, 16  ;;  %v3925_v51 = vld [vmem:[%s5616_s1 + $0x50] ss:$8 sps:$4 sm:$0xff]   ;;  %v3936_v55 = vld [vmem:[%s5616_s1 + $0x4b4] ss:$8 sps:$4 sm:$0xff]  }
  0x1c   :  { %750 = vmatpush1.bf16.msra.mxu1 %v3845_v27  ;;  %708 = vmatprep.subr.bf16.mxu0 %v3846_v28  ;;  %v258_v27 = vrot.slane %v256_v17, 1  ;;  %v261_v28 = vshll.u32 %v3299_v16, 16  ;;  %v3939_v57 = vld [vmem:[%s5616_s1 + $0x34] ss:$8 sps:$4 sm:$0xff]   ;;  %v4645_v60 = vld [vmem:[%s5617_s0 + $0x10] ss:$20 sps:$4 sm:$0xff]  }
  0x1d   :  { %751 = vmatprep.subr.bf16.mxu1 %v3848_v29  ;;  %769 = vmatprep.mubr.bf16.mxu1 %v276_v19  ;;  %v3896_v29 = vld [vmem:[%s5616_s1 + $0x404] ss:$8 sps:$4 sm:$0xff]   ;;  %v3940_v63 = vld [vmem:[%s5616_s1 + $0x4a0] ss:$8 sps:$4 sm:$0xff]   ;;  %v280_v2 = vshll.u32 %v4645_v60, 16 }
  0x1e   :  { %v3943_v0 = vld [vmem:[%s5616_s1 + $0x20] ss:$8 sps:$4 sm:$0xff]   ;;  %v3959_v1 = vld [vmem:[%s5617_s0 + $0x38] ss:$0 sps:$4 sm:$0x11]  }
  0x1f   :  { %709 = vmatpush1.bf16.msra.mxu0 %v3850_v30  ;;  %v3898_v30 = vld [vmem:[%s5616_s1 + $0x300] ss:$8 sps:$4 sm:$0xff]   ;;  %v3948_v3 = vld [vmem:[%s5616_s1 + $0x494] ss:$8 sps:$4 sm:$0xff]   ;;  %v3946_v7 = vld [vmem:[%s5616_s1 + $0x490] ss:$8 sps:$4 sm:$0xff]  }
  0x20   :  { %752 = vmatpush1.bf16.msra.mxu1 %v3851_v31  ;;  %710 = vmatprep.subr.bf16.mxu0 %v3852_v32  ;;  %v3899_v31 = vld [vmem:[%s5616_s1 + $0x400] ss:$8 sps:$4 sm:$0xff]   ;;  %v235_v32 = vor.u32 %v234_v25, %v230_v23  ;;  %v3951_v6 = vld [vmem:[%s5616_s1 + $0x14] ss:$8 sps:$4 sm:$0xff]   ;;  %v3949_v8 = vld [vmem:[%s5616_s1 + $0x10] ss:$8 sps:$4 sm:$0xff]  }
  0x21   :  { %753 = vmatprep.subr.bf16.mxu1 %v3854_v33  ;;  %v239_v33 = vrot.slane %v237_v24, 1  ;;  %v285_v11 = vshll.u32 %v3959_v1, 16  ;;  %v3954_v12 = vld [vmem:[%s5616_s1 + $0x484] ss:$8 sps:$4 sm:$0xff]   ;;  %v3955_v15 = vld [vmem:[%s5616_s1] ss:$8 sps:$4 sm:$0xff]  }
  0x22   :  { %v3957_v13 = vld [vmem:[%s5616_s1 + $0x4] ss:$8 sps:$4 sm:$0xff]   ;;  %v3965_v19 = vld [vmem:[%s5616_s1 + $0x174] ss:$8 sps:$4 sm:$0xff]   ;;  %v3966_v25 = vld [vmem:[%s5616_s1 + $0xe0] ss:$8 sps:$4 sm:$0xff]  }
  0x23   :  { %711 = vmatpush2.bf16.msra.mxu0 %v3856_v34  ;;  %v259_v34 = vor.u32 %v258_v27, %v254_v26  ;;  %v287_v17 = vrot.slane %v285_v11, 1  ;;  %v3968_v23 = vld [vmem:[%s5616_s1 + $0xe4] ss:$8 sps:$4 sm:$0xff]   ;;  %v3969_v26 = vld [vmem:[%s5616_s1 + $0x160] ss:$8 sps:$4 sm:$0xff]  }
  0x24   :  { %754 = vmatpush2.bf16.msra.mxu1 %v3857_v35  ;;  %712 = vmatprep.subr.bf16.mxu0 %v3858_v36  ;;  %v263_v35 = vrot.slane %v261_v28, 1  ;;  %v3912_v36 = vld [vmem:[%s5616_s1 + $0x4f4] ss:$8 sps:$4 sm:$0xff]   ;;  %v3971_v24 = vld [vmem:[%s5616_s1 + $0x164] ss:$8 sps:$4 sm:$0xff]  }
  0x25   :  { %755 = vmatprep.subr.bf16.mxu1 %v3860_v37  ;;  %v3915_v37 = vld [vmem:[%s5616_s1 + $0x74] ss:$8 sps:$4 sm:$0xff]   ;;  %v4031_v1 = vld [vmem:[%s5616_s1 + $0x244] ss:$8 sps:$4 sm:$0xff]  }
  0x26   :  { %v3974_v27 = vld [vmem:[%s5616_s1 + $0xd4] ss:$8 sps:$4 sm:$0xff]   ;;  %v4043_v11 = vld [vmem:[%s5616_s1 + $0x224] ss:$8 sps:$4 sm:$0xff]  }
  0x27   :  { %713 = vmatpush2.bf16.msra.mxu0 %v3862_v38  ;;  %v3910_v38 = vld [vmem:[%s5616_s1 + $0x4f0] ss:$8 sps:$4 sm:$0xff]   ;;  %v3977_v28 = vld [vmem:[%s5616_s1 + $0x154] ss:$8 sps:$4 sm:$0xff]  }
  0x28   :  { %756 = vmatpush2.bf16.msra.mxu1 %v3863_v39  ;;  %714 = vmatprep.subr.bf16.mxu0 %v3864_v40  ;;  %v3913_v39 = vld [vmem:[%s5616_s1 + $0x70] ss:$8 sps:$4 sm:$0xff]   ;;  %v240_v40 = vsel %vm228_vm0, %v235_v32, %v239_v33  ;;  %v3978_v32 = vld [vmem:[%s5616_s1 + $0xc0] ss:$8 sps:$4 sm:$0xff]  }
  0x29   :  { %757 = vmatprep.subr.bf16.mxu1 %v3866_v41  ;;  %v264_v41 = vsel %vm228_vm0, %v259_v34, %v263_v35  ;;  %v3981_v33 = vld [vmem:[%s5616_s1 + $0x140] ss:$8 sps:$4 sm:$0xff]   ;;  %v3986_v34 = vld [vmem:[%s5616_s1 + $0xb4] ss:$8 sps:$4 sm:$0xff]  }
  0x2a   :  { %v3989_v35 = vld [vmem:[%s5616_s1 + $0x134] ss:$8 sps:$4 sm:$0xff]  }
  0x2b   :  { %715 = vmatpush2.bf16.msra.mxu0 %v3868_v42  ;;  %v3918_v42 = vld [vmem:[%s5616_s1 + $0x4e4] ss:$8 sps:$4 sm:$0xff]  }
  0x2c   :  { %758 = vmatpush2.bf16.msra.mxu1 %v3869_v43  ;;  %716 = vmatprep.subr.bf16.mxu0 %v3870_v44  ;;  %v3921_v43 = vld [vmem:[%s5616_s1 + $0x64] ss:$8 sps:$4 sm:$0xff]   ;;  %v3916_v44 = vld [vmem:[%s5616_s1 + $0x4e0] ss:$8 sps:$4 sm:$0xff]  }
  0x2d   :  { %759 = vmatprep.subr.bf16.mxu1 %v3872_v45  ;;  %v3919_v45 = vld [vmem:[%s5616_s1 + $0x60] ss:$8 sps:$4 sm:$0xff]  }
  0x2f   :  { %717 = vmatpush2.bf16.msra.mxu0 %v3874_v46  ;;  %v3924_v46 = vld [vmem:[%s5616_s1 + $0x4d4] ss:$8 sps:$4 sm:$0xff]  }
  0x30   :  { %760 = vmatpush2.bf16.msra.mxu1 %v3875_v47  ;;  %718 = vmatprep.subr.bf16.mxu0 %v3876_v48  ;;  %v3927_v47 = vld [vmem:[%s5616_s1 + $0x54] ss:$8 sps:$4 sm:$0xff]   ;;  %v4312_v48 = vmov 0  }
  0x31   :  { %761 = vmatprep.subr.bf16.mxu1 %v3878_v53  ;;  %v3928_v53 = vld [vmem:[%s5616_s1 + $0x4c0] ss:$8 sps:$4 sm:$0xff]  }
  0x33   :  { %719 = vmatpush2.bf16.msra.mxu0 %v3880_v58  ;;  %v3934_v58 = vld [vmem:[%s5616_s1 + $0x4b0] ss:$8 sps:$4 sm:$0xff]  }
  0x34   :  { %762 = vmatpush2.bf16.msra.mxu1 %v3881_v59  ;;  %720 = vmatprep.subr.bf16.mxu0 %v3882_v61  ;;  %v3937_v59 = vld [vmem:[%s5616_s1 + $0x30] ss:$8 sps:$4 sm:$0xff]   ;;  %v3942_v61 = vld [vmem:[%s5616_s1 + $0x4a4] ss:$8 sps:$4 sm:$0xff]  }
  0x35   :  { %763 = vmatprep.subr.bf16.mxu1 %v3884_v62  ;;  %v3945_v62 = vld [vmem:[%s5616_s1 + $0x24] ss:$8 sps:$4 sm:$0xff]  }
  0x37   :  { %721 = vmatpush2.bf16.msra.mxu0 %v3886_v9  ;;  %v278_v9 = vshrl.u32 %v4645_v60, 16 }
  0x38   :  { %764 = vmatpush2.bf16.msra.mxu1 %v3887_v10  ;;  %722 = vmatprep.subr.bf16.mxu0 %v3888_v14  ;;  %v282_v10 = vrot.slane %v280_v2, 1  ;;  %v3952_v14 = vld [vmem:[%s5616_s1 + $0x480] ss:$8 sps:$4 sm:$0xff]  }
  0x39   :  { %765 = vmatprep.subr.bf16.mxu1 %v3890_v18  ;;  %v3962_v18 = vld [vmem:[%s5616_s1 + $0xf4] ss:$8 sps:$4 sm:$0xff]   ;;  %v4026_v2 = vld [vmem:[%s5616_s1 + $0x1c0] ss:$8 sps:$4 sm:$0xff]  }
  0x3a   :  { %v283_v16 = vor.u32 %v282_v10, %v278_v9  ;;  %v4035_v9 = vld [vmem:[%s5616_s1 + $0x230] ss:$8 sps:$4 sm:$0xff]   ;;  %v4040_v10 = vld [vmem:[%s5616_s1 + $0x1a4] ss:$8 sps:$4 sm:$0xff]  }
  0x3b   :  { %723 = vmatpush2.bf16.msra.mxu0 %v3892_v20  ;;  %v3960_v20 = vld [vmem:[%s5616_s1 + $0xf0] ss:$8 sps:$4 sm:$0xff]  }
  0x3c   :  { %766 = vmatpush2.bf16.msra.mxu1 %v3893_v21  ;;  %724 = vmatprep.subr.bf16.mxu0 %v3894_v22  ;;  %v288_v21 = vsel %vm228_vm0, %v283_v16, %v287_v17  ;;  %v3963_v22 = vld [vmem:[%s5616_s1 + $0x170] ss:$8 sps:$4 sm:$0xff]  }
  0x3d   :  { %767 = vmatprep.subr.bf16.mxu1 %v3896_v29  ;;  %v3972_v29 = vld [vmem:[%s5616_s1 + $0xd0] ss:$8 sps:$4 sm:$0xff]  }
  0x3e   :  { %v4044_v16 = vld [vmem:[%s5616_s1 + $0x190] ss:$8 sps:$4 sm:$0xff]  }
  0x3f   :  { %725 = vmatpush2.bf16.msra.mxu0 %v3898_v30  ;;  %v3975_v30 = vld [vmem:[%s5616_s1 + $0x150] ss:$8 sps:$4 sm:$0xff]  }
  0x40   :  { %768 = vmatpush2.bf16.msra.mxu1 %v3899_v31  ;;  %780 = vmatprep.subr.bf16.mxu0 %v3912_v36  ;;  %v3980_v31 = vld [vmem:[%s5616_s1 + $0xc4] ss:$8 sps:$4 sm:$0xff]   ;;  %v3984_v36 = vld [vmem:[%s5616_s1 + $0xb0] ss:$8 sps:$4 sm:$0xff]  }
  0x41   :  { %1228 = vmatprep.subr.bf16.mxu1 %v3915_v37  ;;  %v3987_v37 = vld [vmem:[%s5616_s1 + $0x130] ss:$8 sps:$4 sm:$0xff]  }
  0x42   :  { %727 = vmatmul.mubr.bf16.vlgmr.msra.gmra.mxu0 %v240_v40  ;;  %v3990_v40 = vld [vmem:[%s5616_s1 + $0xa0] ss:$8 sps:$4 sm:$0xff]   ;;  %v4047_v17 = vld [vmem:[%s5616_s1 + $0x210] ss:$8 sps:$4 sm:$0xff]  }
  0x43   :  { %770 = vmatmul.mubr.bf16.vlgmr.msra.gmra.mxu1 %v264_v41  ;;  %781 = vmatpush1.bf16.msra.mxu0 %v3910_v38  ;;  %v3992_v38 = vld [vmem:[%s5616_s1 + $0xa4] ss:$8 sps:$4 sm:$0xff]   ;;  %v3993_v41 = vld [vmem:[%s5616_s1 + $0x120] ss:$8 sps:$4 sm:$0xff]  }
  0x44   :  { %1229 = vmatpush1.bf16.msra.mxu1 %v3913_v39  ;;  %782 = vmatprep.subr.bf16.mxu0 %v3918_v42  ;;  %v3995_v39 = vld [vmem:[%s5616_s1 + $0x124] ss:$8 sps:$4 sm:$0xff]   ;;  %v3998_v42 = vld [vmem:[%s5616_s1 + $0x94] ss:$8 sps:$4 sm:$0xff]  }
  0x45   :  { %1230 = vmatprep.subr.bf16.mxu1 %v3921_v43  ;;  %812 = vmatprep.mubr.bf16.mxu0 %v4312_v48  ;;  %v4001_v43 = vld [vmem:[%s5616_s1 + $0x114] ss:$8 sps:$4 sm:$0xff]  }
  0x46   :  { %1260 = vmatprep.mubr.bf16.mxu1 %v4503_v50  ;;  %v3933_v50 = vld [vmem:[%s5616_s1 + $0x44] ss:$8 sps:$4 sm:$0xff]  }
  0x47   :  { %783 = vmatpush1.bf16.msra.mxu0 %v3916_v44  ;;  %v3996_v44 = vld [vmem:[%s5616_s1 + $0x90] ss:$8 sps:$4 sm:$0xff]  }
  0x48   :  { %1231 = vmatpush1.bf16.msra.mxu1 %v3919_v45  ;;  %784 = vmatprep.subr.bf16.mxu0 %v3924_v46  ;;  %v3999_v45 = vld [vmem:[%s5616_s1 + $0x110] ss:$8 sps:$4 sm:$0xff]   ;;  %v4004_v46 = vld [vmem:[%s5616_s1 + $0x84] ss:$8 sps:$4 sm:$0xff]  }
  0x49   :  { %1232 = vmatprep.subr.bf16.mxu1 %v3927_v47  ;;  %v4007_v47 = vld [vmem:[%s5616_s1 + $0x104] ss:$8 sps:$4 sm:$0xff]  }
  0x4b   :  { %785 = vmatpush1.bf16.msra.mxu0 %v3922_v49  ;;  %v4002_v49 = vld [vmem:[%s5616_s1 + $0x80] ss:$8 sps:$4 sm:$0xff]  }
  0x4c   :  { %1233 = vmatpush1.bf16.msra.mxu1 %v3925_v51  ;;  %786 = vmatprep.subr.bf16.mxu0 %v3930_v52  ;;  %v4005_v51 = vld [vmem:[%s5616_s1 + $0x100] ss:$8 sps:$4 sm:$0xff]   ;;  %v4010_v52 = vld [vmem:[%s5616_s1 + $0x1f4] ss:$8 sps:$4 sm:$0xff]  }
  0x4d   :  { %1234 = vmatprep.subr.bf16.mxu1 %v3933_v50  ;;  %v4013_v50 = vld [vmem:[%s5616_s1 + $0x274] ss:$8 sps:$4 sm:$0xff]  }
  0x4f   :  { %787 = vmatpush1.bf16.msra.mxu0 %v3928_v53  ;;  %v4008_v53 = vld [vmem:[%s5616_s1 + $0x1f0] ss:$8 sps:$4 sm:$0xff]  }
  0x50   :  { %1235 = vmatpush1.bf16.msra.mxu1 %v3931_v54  ;;  %788 = vmatprep.subr.bf16.mxu0 %v3936_v55  ;;  %v4011_v54 = vld [vmem:[%s5616_s1 + $0x270] ss:$8 sps:$4 sm:$0xff]   ;;  %v4016_v55 = vld [vmem:[%s5616_s1 + $0x1e4] ss:$8 sps:$4 sm:$0xff]  }
  0x51   :  { %1236 = vmatprep.subr.bf16.mxu1 %v3939_v57  ;;  %v4019_v57 = vld [vmem:[%s5616_s1 + $0x264] ss:$8 sps:$4 sm:$0xff]  }
  0x53   :  { %789 = vmatpush1.bf16.msra.mxu0 %v3934_v58  ;;  %v4014_v58 = vld [vmem:[%s5616_s1 + $0x1e0] ss:$8 sps:$4 sm:$0xff]  }
  0x54   :  { %1237 = vmatpush1.bf16.msra.mxu1 %v3937_v59  ;;  %790 = vmatprep.subr.bf16.mxu0 %v3942_v61  ;;  %v4017_v59 = vld [vmem:[%s5616_s1 + $0x260] ss:$8 sps:$4 sm:$0xff]   ;;  %v4022_v61 = vld [vmem:[%s5616_s1 + $0x1d4] ss:$8 sps:$4 sm:$0xff]  }
  0x55   :  { %1238 = vmatprep.subr.bf16.mxu1 %v3945_v62  ;;  %v4020_v62 = vld [vmem:[%s5616_s1 + $0x1d0] ss:$8 sps:$4 sm:$0xff]  }
  0x57   :  { %791 = vmatpush1.bf16.msra.mxu0 %v3940_v63  ;;  %v4023_v63 = vld [vmem:[%s5616_s1 + $0x250] ss:$8 sps:$4 sm:$0xff]  }
  0x58   :  { %1239 = vmatpush1.bf16.msra.mxu1 %v3943_v0  ;;  %792 = vmatprep.subr.bf16.mxu0 %v3948_v3  ;;  %v4028_v0 = vld [vmem:[%s5616_s1 + $0x1c4] ss:$8 sps:$4 sm:$0xff]   ;;  %v4029_v3 = vld [vmem:[%s5616_s1 + $0x240] ss:$8 sps:$4 sm:$0xff]  }
  0x59   :  { %1240 = vmatprep.subr.bf16.mxu1 %v3951_v6  ;;  %v4034_v6 = vld [vmem:[%s5616_s1 + $0x1b4] ss:$8 sps:$4 sm:$0xff]  }
  0x5b   :  { %793 = vmatpush1.bf16.msra.mxu0 %v3946_v7  ;;  %v4037_v7 = vld [vmem:[%s5616_s1 + $0x234] ss:$8 sps:$4 sm:$0xff]  }
  0x5c   :  { %1241 = vmatpush1.bf16.msra.mxu1 %v3949_v8  ;;  %794 = vmatprep.subr.bf16.mxu0 %v3954_v12  ;;  %v4032_v8 = vld [vmem:[%s5616_s1 + $0x1b0] ss:$8 sps:$4 sm:$0xff]   ;;  %v4038_v12 = vld [vmem:[%s5616_s1 + $0x1a0] ss:$8 sps:$4 sm:$0xff]  }
  0x5d   :  { %1242 = vmatprep.subr.bf16.mxu1 %v3957_v13  ;;  %v4041_v13 = vld [vmem:[%s5616_s1 + $0x220] ss:$8 sps:$4 sm:$0xff]  }
  0x5f   :  { %795 = vmatpush1.bf16.msra.mxu0 %v3952_v14  ;;  %v4046_v14 = vld [vmem:[%s5616_s1 + $0x194] ss:$8 sps:$4 sm:$0xff]  }
  0x60   :  { %1243 = vmatpush1.bf16.msra.mxu1 %v3955_v15  ;;  %1271 = vmatprep.subr.bf16.mxu0 %v3965_v19  ;;  %v4049_v15 = vld [vmem:[%s5616_s1 + $0x214] ss:$8 sps:$4 sm:$0xff]   ;;  %v4055_v19 = vld [vmem:[%s5616_s1 + $0x204] ss:$8 sps:$4 sm:$0xff]  }
  0x61   :  { %1244 = vmatprep.subr.bf16.mxu1 %v3962_v18  ;;  %v4052_v18 = vld [vmem:[%s5616_s1 + $0x184] ss:$8 sps:$4 sm:$0xff]  }
  0x62   :  { %813 = vmatmul.mubr.bf16.vlgmr.msra.gmra.mxu0 %v288_v21  ;;  %v4053_v21 = vld [vmem:[%s5616_s1 + $0x200] ss:$8 sps:$4 sm:$0xff]  }
  0x63   :  { %1272 = vmatpush1.bf16.msra.mxu0 %v3963_v22  ;;  %1303 = vmatprep.mubr.bf16.mxu0 %v4516_v56  ;;  %v3983_v56 = vld [vmem:[%s5616_s1 + $0x144] ss:$8 sps:$4 sm:$0xff]   ;;  %v4058_v22 = vld [vmem:[%s5616_s1 + $0x2f4] ss:$8 sps:$4 sm:$0xff]  }
  0x64   :  { %1245 = vmatpush2.bf16.msra.mxu1 %v3960_v20  ;;  %1273 = vmatprep.subr.bf16.mxu0 %v3971_v24  ;;  %v4050_v20 = vld [vmem:[%s5616_s1 + $0x180] ss:$8 sps:$4 sm:$0xff]  }
  0x65   :  { %1246 = vmatprep.subr.bf16.mxu1 %v3968_v23  ;;  %v4061_v23 = vld [vmem:[%s5616_s1 + $0x3f4] ss:$8 sps:$4 sm:$0xff]   ;;  %v4893_v24 = vld [vmem:[%s5617_s0 + $0x64] sm:$0x11] }
  0x67   :  { %1274 = vmatpush1.bf16.msra.mxu0 %v3969_v26  ;;  %v3557_v26 = vcombine.high %v4893_v24, %v4893_v24 }
  0x68   :  { %1247 = vmatpush2.bf16.msra.mxu1 %v3966_v25  ;;  %1275 = vmatprep.subr.bf16.mxu0 %v3977_v28  ;;  %v4898_v25 = vld [vmem:[%s5617_s0 + $0x40] ss:$20 sps:$4 sm:$0xff]   ;;  %v4910_v28 = vld [vmem:[%s5617_s0 + $0x48] ss:$20 sps:$4 sm:$0xff]  }
  0x69   :  { %1248 = vmatprep.subr.bf16.mxu1 %v3974_v27  ;;  %v4905_v27 = vld [vmem:[%s5617_s0 + $0x6c] sm:$0x11] }
  0x6b   :  { %1276 = vmatpush1.bf16.msra.mxu0 %v3975_v30  ;;  %v4059_v30 = vld [vmem:[%s5616_s1 + $0x3f0] ss:$8 sps:$4 sm:$0xff]  }
  0x6c   :  { %1249 = vmatpush2.bf16.msra.mxu1 %v3972_v29  ;;  %1277 = vmatprep.subr.bf16.mxu0 %v3983_v56  ;;  %v4056_v29 = vld [vmem:[%s5616_s1 + $0x2f0] ss:$8 sps:$4 sm:$0xff]   ;;  %v1580_v56 = vshll.u32 %v4898_v25, 16 }
  0x6d   :  { %1250 = vmatprep.subr.bf16.mxu1 %v3980_v31  ;;  %v1578_v31 = vshrl.u32 %v4898_v25, 16 }
  0x6f   :  { %1278 = vmatpush1.bf16.msra.mxu0 %v3981_v33  ;;  %v1585_v33 = vshll.u32 %v3557_v26, 16  ;;  %v4127_v26 = vld [vmem:[%s5616_s1 + $0x444] ss:$8 sps:$4 sm:$0xff]  }
  0x70   :  { %1251 = vmatpush2.bf16.msra.mxu1 %v3978_v32  ;;  %1279 = vmatprep.subr.bf16.mxu0 %v3989_v35  ;;  %v3559_v32 = vcombine.high %v4905_v27, %v4905_v27  ;;  %v1604_v35 = vshll.u32 %v4910_v28, 16 }
  0x71   :  { %1252 = vmatprep.subr.bf16.mxu1 %v3986_v34  ;;  %v1602_v34 = vshrl.u32 %v4910_v28, 16 }
  0x73   :  { %1280 = vmatpush1.bf16.msra.mxu0 %v3987_v37  ;;  %v4067_v37 = vld [vmem:[%s5616_s1 + $0x3e4] ss:$8 sps:$4 sm:$0xff]  }
  0x74   :  { %1253 = vmatpush2.bf16.msra.mxu1 %v3984_v36  ;;  %1281 = vmatprep.subr.bf16.mxu0 %v3995_v39  ;;  %v4064_v36 = vld [vmem:[%s5616_s1 + $0x2e4] ss:$8 sps:$4 sm:$0xff]   ;;  %v1609_v39 = vshll.u32 %v3559_v32, 16  ;;  %v4128_v32 = vld [vmem:[%s5616_s1 + $0x330] ss:$8 sps:$4 sm:$0xff]  }
  0x75   :  { %1254 = vmatprep.subr.bf16.mxu1 %v3992_v38  ;;  %v1582_v38 = vrot.slane %v1580_v56, 1  ;;  %v4133_v56 = vld [vmem:[%s5616_s1 + $0x434] ss:$8 sps:$4 sm:$0xff]  }
  0x77   :  { %1282 = vmatpush1.bf16.msra.mxu0 %v3993_v41  ;;  %v1606_v41 = vrot.slane %v1604_v35, 1  ;;  %v5078_v35 = vld [vmem:[%s5617_s0 + $0x3c] ss:$20 sps:$4 sm:$0xff]  }
  0x78   :  { %1255 = vmatpush2.bf16.msra.mxu1 %v3990_v40  ;;  %1283 = vmatprep.subr.bf16.mxu0 %v4001_v43  ;;  %v1587_v40 = vrot.slane %v1585_v33, 1  ;;  %v1611_v43 = vrot.slane %v1609_v39, 1  ;;  %v4131_v33 = vld [vmem:[%s5616_s1 + $0x430] ss:$8 sps:$4 sm:$0xff]   ;;  %v4137_v39 = vld [vmem:[%s5616_s1 + $0x420] ss:$8 sps:$4 sm:$0xff]  }
  0x79   :  { %1256 = vmatprep.subr.bf16.mxu1 %v3998_v42  ;;  %v1583_v42 = vor.u32 %v1582_v38, %v1578_v31  ;;  %v4130_v31 = vld [vmem:[%s5616_s1 + $0x334] ss:$8 sps:$4 sm:$0xff]   ;;  %v4134_v38 = vld [vmem:[%s5616_s1 + $0x320] ss:$8 sps:$4 sm:$0xff]  }
  0x7b   :  { %1284 = vmatpush1.bf16.msra.mxu0 %v3999_v45  ;;  %v4065_v45 = vld [vmem:[%s5616_s1 + $0x3e0] ss:$8 sps:$4 sm:$0xff]  }
  0x7c   :  { %1257 = vmatpush2.bf16.msra.mxu1 %v3996_v44  ;;  %1285 = vmatprep.subr.bf16.mxu0 %v4007_v47  ;;  %v4062_v44 = vld [vmem:[%s5616_s1 + $0x2e0] ss:$8 sps:$4 sm:$0xff]   ;;  %v1588_v47 = vsel %vm228_vm0, %v1583_v42, %v1587_v40  ;;  %v3556_v40 = vcombine.low %v4893_v24, %v4893_v24  ;;  %v1568_v42 = vshll.u32 %v5078_v35, 16  ;;  %v4140_v24 = vld [vmem:[%s5616_s1 + $0x310] ss:$8 sps:$4 sm:$0xff]  }
  0x7d   :  { %1258 = vmatprep.subr.bf16.mxu1 %v4004_v46  ;;  %v1607_v46 = vor.u32 %v1606_v41, %v1602_v34  ;;  %v4136_v34 = vld [vmem:[%s5616_s1 + $0x324] ss:$8 sps:$4 sm:$0xff]   ;;  %v4142_v41 = vld [vmem:[%s5616_s1 + $0x314] ss:$8 sps:$4 sm:$0xff]  }
  0x7f   :  { %1286 = vmatpush1.bf16.msra.mxu0 %v4005_v51  ;;  %v4068_v51 = vld [vmem:[%s5616_s1 + $0x2d0] ss:$8 sps:$4 sm:$0xff]  }
  0x80   :  { %1259 = vmatpush2.bf16.msra.mxu1 %v4002_v49  ;;  %1287 = vmatprep.subr.bf16.mxu0 %v4010_v52  ;;  %v1612_v49 = vsel %vm228_vm0, %v1607_v46, %v1611_v43  ;;  %v4071_v52 = vld [vmem:[%s5616_s1 + $0x3d0] ss:$8 sps:$4 sm:$0xff]   ;;  %v3558_v43 = vcombine.low %v4905_v27, %v4905_v27  ;;  %v4148_v27 = vld [vmem:[%s5616_s1 + $0x304] ss:$8 sps:$4 sm:$0xff]  }
  0x81   :  { %1314 = vmatprep.subr.bf16.mxu1 %v4013_v50  ;;  %v4076_v50 = vld [vmem:[%s5616_s1 + $0x2c4] ss:$8 sps:$4 sm:$0xff]   ;;  %v4143_v46 = vld [vmem:[%s5616_s1 + $0x410] ss:$8 sps:$4 sm:$0xff]  }
  0x83   :  { %1261 = vmatmul.mubr.bf16.vlgmr.msra.gmra.mxu1 %v4535_v4  ;;  %1288 = vmatpush2.bf16.msra.mxu0 %v4008_v53  ;;  %v4025_v4 = vld [vmem:[%s5616_s1 + $0x254] ss:$8 sps:$4 sm:$0xff]   ;;  %v4079_v53 = vld [vmem:[%s5616_s1 + $0x3c4] ss:$8 sps:$4 sm:$0xff]  }
  0x84   :  { %1315 = vmatpush1.bf16.msra.mxu1 %v4011_v54  ;;  %1289 = vmatprep.subr.bf16.mxu0 %v4016_v55  ;;  %v4074_v54 = vld [vmem:[%s5616_s1 + $0x2c0] ss:$8 sps:$4 sm:$0xff]  }
  0x85   :  { %1316 = vmatprep.subr.bf16.mxu1 %v4019_v57  ;;  %1346 = vmatprep.mubr.bf16.mxu1 %v4312_v48  ;;  %v4077_v55 = vld [vmem:[%s5616_s1 + $0x3c0] ss:$8 sps:$4 sm:$0xff]   ;;  %v4082_v57 = vld [vmem:[%s5616_s1 + $0x2b4] ss:$8 sps:$4 sm:$0xff]  }
  0x87   :  { %1290 = vmatpush2.bf16.msra.mxu0 %v4014_v58  ;;  %v4085_v58 = vld [vmem:[%s5616_s1 + $0x3b4] ss:$8 sps:$4 sm:$0xff]  }
  0x88   :  { %1317 = vmatpush1.bf16.msra.mxu1 %v4017_v59  ;;  %1291 = vmatprep.subr.bf16.mxu0 %v4022_v61  ;;  %v4080_v59 = vld [vmem:[%s5616_s1 + $0x2b0] ss:$8 sps:$4 sm:$0xff]  }
  0x89   :  { %1318 = vmatprep.subr.bf16.mxu1 %v4025_v4  ;;  %v4083_v61 = vld [vmem:[%s5616_s1 + $0x3b0] ss:$8 sps:$4 sm:$0xff]   ;;  %v4088_v4 = vld [vmem:[%s5616_s1 + $0x2a4] ss:$8 sps:$4 sm:$0xff]  }
  0x8b   :  { %1292 = vmatpush2.bf16.msra.mxu0 %v4020_v62  ;;  %v4091_v62 = vld [vmem:[%s5616_s1 + $0x3a4] ss:$8 sps:$4 sm:$0xff]  }
  0x8c   :  { %1319 = vmatpush1.bf16.msra.mxu1 %v4023_v63  ;;  %1293 = vmatprep.subr.bf16.mxu0 %v4028_v0  ;;  %v4086_v63 = vld [vmem:[%s5616_s1 + $0x2a0] ss:$8 sps:$4 sm:$0xff]  }
  0x8d   :  { %1320 = vmatprep.subr.bf16.mxu1 %v4031_v1  ;;  %v4089_v0 = vld [vmem:[%s5616_s1 + $0x3a0] ss:$8 sps:$4 sm:$0xff]   ;;  %v4094_v1 = vld [vmem:[%s5616_s1 + $0x294] ss:$8 sps:$4 sm:$0xff]  }
  0x8f   :  { %1294 = vmatpush2.bf16.msra.mxu0 %v4026_v2  ;;  %v4097_v2 = vld [vmem:[%s5616_s1 + $0x394] ss:$8 sps:$4 sm:$0xff]  }
  0x90   :  { %1321 = vmatpush1.bf16.msra.mxu1 %v4029_v3  ;;  %1295 = vmatprep.subr.bf16.mxu0 %v4034_v6  ;;  %v4092_v3 = vld [vmem:[%s5616_s1 + $0x290] ss:$8 sps:$4 sm:$0xff]  }
  0x91   :  { %1322 = vmatprep.subr.bf16.mxu1 %v4037_v7  ;;  %v4095_v6 = vld [vmem:[%s5616_s1 + $0x390] ss:$8 sps:$4 sm:$0xff]   ;;  %v4100_v7 = vld [vmem:[%s5616_s1 + $0x284] ss:$8 sps:$4 sm:$0xff]  }
  0x93   :  { %1296 = vmatpush2.bf16.msra.mxu0 %v4032_v8  ;;  %v4103_v8 = vld [vmem:[%s5616_s1 + $0x384] ss:$8 sps:$4 sm:$0xff]  }
  0x94   :  { %1323 = vmatpush1.bf16.msra.mxu1 %v4035_v9  ;;  %1297 = vmatprep.subr.bf16.mxu0 %v4040_v10  ;;  %v4098_v9 = vld [vmem:[%s5616_s1 + $0x280] ss:$8 sps:$4 sm:$0xff]  }
  0x95   :  { %1324 = vmatprep.subr.bf16.mxu1 %v4043_v11  ;;  %v4101_v10 = vld [vmem:[%s5616_s1 + $0x380] ss:$8 sps:$4 sm:$0xff]   ;;  %v4106_v11 = vld [vmem:[%s5616_s1 + $0x374] ss:$8 sps:$4 sm:$0xff]  }
  0x97   :  { %1298 = vmatpush2.bf16.msra.mxu0 %v4038_v12  ;;  %v4109_v12 = vld [vmem:[%s5616_s1 + $0x474] ss:$8 sps:$4 sm:$0xff]  }
  0x98   :  { %1325 = vmatpush1.bf16.msra.mxu1 %v4041_v13  ;;  %1299 = vmatprep.subr.bf16.mxu0 %v4046_v14  ;;  %v4104_v13 = vld [vmem:[%s5616_s1 + $0x370] ss:$8 sps:$4 sm:$0xff]  }
  0x99   :  { %1326 = vmatprep.subr.bf16.mxu1 %v4049_v15  ;;  %v4107_v14 = vld [vmem:[%s5616_s1 + $0x470] ss:$8 sps:$4 sm:$0xff]   ;;  %v4112_v15 = vld [vmem:[%s5616_s1 + $0x364] ss:$8 sps:$4 sm:$0xff]  }
  0x9b   :  { %1300 = vmatpush2.bf16.msra.mxu0 %v4044_v16  ;;  %v4115_v16 = vld [vmem:[%s5616_s1 + $0x464] ss:$8 sps:$4 sm:$0xff]  }
  0x9c   :  { %1327 = vmatpush1.bf16.msra.mxu1 %v4047_v17  ;;  %1301 = vmatprep.subr.bf16.mxu0 %v4052_v18  ;;  %v4110_v17 = vld [vmem:[%s5616_s1 + $0x360] ss:$8 sps:$4 sm:$0xff]  }
  0x9d   :  { %1328 = vmatprep.subr.bf16.mxu1 %v4055_v19  ;;  %v4113_v18 = vld [vmem:[%s5616_s1 + $0x460] ss:$8 sps:$4 sm:$0xff]   ;;  %v4118_v19 = vld [vmem:[%s5616_s1 + $0x354] ss:$8 sps:$4 sm:$0xff]  }
  0x9f   :  { %1302 = vmatpush2.bf16.msra.mxu0 %v4050_v20  ;;  %v4121_v20 = vld [vmem:[%s5616_s1 + $0x454] ss:$8 sps:$4 sm:$0xff]  }
  0xa0   :  { %1329 = vmatpush1.bf16.msra.mxu1 %v4053_v21  ;;  %2030 = vmatprep.subr.bf16.mxu0 %v4058_v22  ;;  %v4116_v21 = vld [vmem:[%s5616_s1 + $0x350] ss:$8 sps:$4 sm:$0xff]  }
  0xa1   :  { %2073 = vmatprep.subr.bf16.mxu1 %v4061_v23  ;;  %v4119_v22 = vld [vmem:[%s5616_s1 + $0x450] ss:$8 sps:$4 sm:$0xff]   ;;  %v4124_v23 = vld [vmem:[%s5616_s1 + $0x344] ss:$8 sps:$4 sm:$0xff]  }
  0xa2   :  { %1304 = vmatmul.mubr.bf16.vlgmr.msra.gmra.mxu0 %v4540_v5  ;;  %v4070_v5 = vld [vmem:[%s5616_s1 + $0x2d4] ss:$8 sps:$4 sm:$0xff]  }
  0xa3   :  { %1347 = vmatmul.mubr.bf16.vlgmr.msra.gmra.mxu1 %v4645_v60  ;;  %2031 = vmatpush1.bf16.msra.mxu0 %v4056_v29  ;;  %v4073_v60 = vld [vmem:[%s5616_s1 + $0x3d4] ss:$8 sps:$4 sm:$0xff]   ;;  %v4122_v29 = vld [vmem:[%s5616_s1 + $0x340] ss:$8 sps:$4 sm:$0xff]  }
  0xa4   :  { %2074 = vmatpush1.bf16.msra.mxu1 %v4059_v30  ;;  %2032 = vmatprep.subr.bf16.mxu0 %v4064_v36  ;;  %v4125_v30 = vld [vmem:[%s5616_s1 + $0x440] ss:$8 sps:$4 sm:$0xff]   ;;  %v5083_v36 = vld [vmem:[%s5617_s0 + $0x44] ss:$20 sps:$4 sm:$0xff]  }
  0xa5   :  { %2075 = vmatprep.subr.bf16.mxu1 %v4067_v37  ;;  %2062 = vmatprep.mubr.bf16.mxu0 %v1588_v47  ;;  %v4139_v37 = vld [vmem:[%s5616_s1 + $0x424] ss:$8 sps:$4 sm:$0xff]   ;;  %v1570_v47 = vrot.slane %v1568_v42, 1 }
  0xa6   :  { %2105 = vmatprep.mubr.bf16.mxu1 %v1612_v49  ;;  %v1590_v49 = vshrl.u32 %v5083_v36, 16 }
  0xa7   :  { %2033 = vmatpush1.bf16.msra.mxu0 %v4062_v44  ;;  %v1592_v44 = vshll.u32 %v5083_v36, 16 }
  0xa8   :  { %2076 = vmatpush1.bf16.msra.mxu1 %v4065_v45  ;;  %2034 = vmatprep.subr.bf16.mxu0 %v4070_v5  ;;  %v4145_v45 = vld [vmem:[%s5616_s1 + $0x414] ss:$8 sps:$4 sm:$0xff]   ;;  %v1566_v5 = vshrl.u32 %v5078_v35, 16 }
  0xa9   :  { %2077 = vmatprep.subr.bf16.mxu1 %v4073_v60  ;;  %v1573_v60 = vshll.u32 %v3556_v40, 16  ;;  %v4204_v40 = vld [vmem:[%s5616_s1 + $0x480] ss:$8 sps:$4 sm:$0xff]  }
  0xab   :  { %2035 = vmatpush1.bf16.msra.mxu0 %v4068_v51  ;;  %v1594_v51 = vrot.slane %v1592_v44, 1  ;;  %v4214_v44 = vld [vmem:[%s5616_s1 + $0xf4] ss:$8 sps:$4 sm:$0xff]  }
  0xac   :  { %2078 = vmatpush1.bf16.msra.mxu1 %v4071_v52  ;;  %2036 = vmatprep.subr.bf16.mxu0 %v4076_v50  ;;  %v1597_v52 = vshll.u32 %v3558_v43, 16  ;;  %v4151_v50 = vld [vmem:[%s5616_s1 + $0x404] ss:$8 sps:$4 sm:$0xff]  }
  0xad   :  { %2079 = vmatprep.subr.bf16.mxu1 %v4079_v53  ;;  %v4146_v53 = vld [vmem:[%s5616_s1 + $0x300] ss:$8 sps:$4 sm:$0xff]  }
  0xaf   :  { %2037 = vmatpush1.bf16.msra.mxu0 %v4074_v54  ;;  %v4149_v54 = vld [vmem:[%s5616_s1 + $0x400] ss:$8 sps:$4 sm:$0xff]  }
  0xb0   :  { %2080 = vmatpush1.bf16.msra.mxu1 %v4077_v55  ;;  %2038 = vmatprep.subr.bf16.mxu0 %v4082_v57  ;;  %v1571_v55 = vor.u32 %v1570_v47, %v1566_v5  ;;  %v1575_v57 = vrot.slane %v1573_v60, 1  ;;  %v4220_v5 = vld [vmem:[%s5616_s1 + $0xe4] ss:$8 sps:$4 sm:$0xff]   ;;  %v4218_v47 = vld [vmem:[%s5616_s1 + $0xe0] ss:$8 sps:$4 sm:$0xff]  }
  0xb1   :  { %2081 = vmatprep.subr.bf16.mxu1 %v4085_v58  ;;  %v1595_v58 = vor.u32 %v1594_v51, %v1590_v49  ;;  %v4223_v60 = vld [vmem:[%s5616_s1 + $0x164] ss:$8 sps:$4 sm:$0xff]   ;;  %v4221_v49 = vld [vmem:[%s5616_s1 + $0x160] ss:$8 sps:$4 sm:$0xff]   ;;  %v4226_v51 = vld [vmem:[%s5616_s1 + $0xd4] ss:$8 sps:$4 sm:$0xff]  }
  0xb3   :  { %2039 = vmatpush1.bf16.msra.mxu0 %v4080_v59  ;;  %v1599_v59 = vrot.slane %v1597_v52, 1  ;;  %v4229_v52 = vld [vmem:[%s5616_s1 + $0x154] ss:$8 sps:$4 sm:$0xff]  }
  0xb4   :  { %2082 = vmatpush1.bf16.msra.mxu1 %v4083_v61  ;;  %2040 = vmatprep.subr.bf16.mxu0 %v4088_v4  ;;  %v4164_v61 = vld [vmem:[%s5616_s1 + $0x4f4] ss:$8 sps:$4 sm:$0xff]  }
  0xb5   :  { %2083 = vmatprep.subr.bf16.mxu1 %v4091_v62  ;;  %v4167_v4 = vld [vmem:[%s5616_s1 + $0x74] ss:$8 sps:$4 sm:$0xff]   ;;  %v4162_v62 = vld [vmem:[%s5616_s1 + $0x4f0] ss:$8 sps:$4 sm:$0xff]  }
  0xb7   :  { %2041 = vmatpush1.bf16.msra.mxu0 %v4086_v63  ;;  %v1576_v63 = vsel %vm228_vm0, %v1571_v55, %v1575_v57  ;;  %v4230_v55 = vld [vmem:[%s5616_s1 + $0xc0] ss:$8 sps:$4 sm:$0xff]  }
  0xb8   :  { %2084 = vmatpush1.bf16.msra.mxu1 %v4089_v0  ;;  %2042 = vmatprep.subr.bf16.mxu0 %v4094_v1  ;;  %v1600_v0 = vsel %vm228_vm0, %v1595_v58, %v1599_v59  ;;  %v4165_v1 = vld [vmem:[%s5616_s1 + $0x70] ss:$8 sps:$4 sm:$0xff]   ;;  %v4233_v57 = vld [vmem:[%s5616_s1 + $0x140] ss:$8 sps:$4 sm:$0xff]   ;;  %v4238_v58 = vld [vmem:[%s5616_s1 + $0xb4] ss:$8 sps:$4 sm:$0xff]  }
  0xb9   :  { %2085 = vmatprep.subr.bf16.mxu1 %v4097_v2  ;;  %v4170_v2 = vld [vmem:[%s5616_s1 + $0x4e4] ss:$8 sps:$4 sm:$0xff]   ;;  %v4241_v59 = vld [vmem:[%s5616_s1 + $0x134] ss:$8 sps:$4 sm:$0xff]  }
  0xbb   :  { %2043 = vmatpush1.bf16.msra.mxu0 %v4092_v3  ;;  %v4173_v3 = vld [vmem:[%s5616_s1 + $0x64] ss:$8 sps:$4 sm:$0xff]  }
  0xbc   :  { %2086 = vmatpush1.bf16.msra.mxu1 %v4095_v6  ;;  %2044 = vmatprep.subr.bf16.mxu0 %v4100_v7  ;;  %v4168_v6 = vld [vmem:[%s5616_s1 + $0x4e0] ss:$8 sps:$4 sm:$0xff]  }
  0xbd   :  { %2087 = vmatprep.subr.bf16.mxu1 %v4103_v8  ;;  %v4171_v7 = vld [vmem:[%s5616_s1 + $0x60] ss:$8 sps:$4 sm:$0xff]   ;;  %v4176_v8 = vld [vmem:[%s5616_s1 + $0x4d4] ss:$8 sps:$4 sm:$0xff]  }
  0xbf   :  { %2045 = vmatpush1.bf16.msra.mxu0 %v4098_v9  ;;  %v4179_v9 = vld [vmem:[%s5616_s1 + $0x54] ss:$8 sps:$4 sm:$0xff]  }
  0xc0   :  { %2088 = vmatpush1.bf16.msra.mxu1 %v4101_v10  ;;  %2046 = vmatprep.subr.bf16.mxu0 %v4106_v11  ;;  %v4174_v10 = vld [vmem:[%s5616_s1 + $0x4d0] ss:$8 sps:$4 sm:$0xff]  }
  0xc1   :  { %2089 = vmatprep.subr.bf16.mxu1 %v4109_v12  ;;  %v4177_v11 = vld [vmem:[%s5616_s1 + $0x50] ss:$8 sps:$4 sm:$0xff]   ;;  %v4182_v12 = vld [vmem:[%s5616_s1 + $0x4c4] ss:$8 sps:$4 sm:$0xff]  }
  0xc3   :  { %2047 = vmatpush2.bf16.msra.mxu0 %v4104_v13  ;;  %v4180_v13 = vld [vmem:[%s5616_s1 + $0x4c0] ss:$8 sps:$4 sm:$0xff]  }
  0xc4   :  { %2090 = vmatpush2.bf16.msra.mxu1 %v4107_v14  ;;  %2048 = vmatprep.subr.bf16.mxu0 %v4112_v15  ;;  %v4183_v14 = vld [vmem:[%s5616_s1 + $0x40] ss:$8 sps:$4 sm:$0xff]   ;;  %v4188_v15 = vld [vmem:[%s5616_s1 + $0x4b4] ss:$8 sps:$4 sm:$0xff]  }
  0xc5   :  { %2091 = vmatprep.subr.bf16.mxu1 %v4115_v16  ;;  %v4191_v16 = vld [vmem:[%s5616_s1 + $0x34] ss:$8 sps:$4 sm:$0xff]  }
  0xc7   :  { %2049 = vmatpush2.bf16.msra.mxu0 %v4110_v17  ;;  %v4186_v17 = vld [vmem:[%s5616_s1 + $0x4b0] ss:$8 sps:$4 sm:$0xff]  }
  0xc8   :  { %2092 = vmatpush2.bf16.msra.mxu1 %v4113_v18  ;;  %2050 = vmatprep.subr.bf16.mxu0 %v4118_v19  ;;  %v4189_v18 = vld [vmem:[%s5616_s1 + $0x30] ss:$8 sps:$4 sm:$0xff]   ;;  %v5193_v19 = vld [vmem:[%s5617_s0 + $0x4c] ss:$20 sps:$4 sm:$0xff]  }
  0xc9   :  { %2093 = vmatprep.subr.bf16.mxu1 %v4121_v20  ;;  %v4194_v20 = vld [vmem:[%s5616_s1 + $0x4a4] ss:$8 sps:$4 sm:$0xff]  }
  0xcb   :  { %2051 = vmatpush2.bf16.msra.mxu0 %v4116_v21  ;;  %v4197_v21 = vld [vmem:[%s5616_s1 + $0x24] ss:$8 sps:$4 sm:$0xff]  }
  0xcc   :  { %2094 = vmatpush2.bf16.msra.mxu1 %v4119_v22  ;;  %2052 = vmatprep.subr.bf16.mxu0 %v4124_v23  ;;  %v4192_v22 = vld [vmem:[%s5616_s1 + $0x4a0] ss:$8 sps:$4 sm:$0xff]  }
  0xcd   :  { %2095 = vmatprep.subr.bf16.mxu1 %v4127_v26  ;;  %v4195_v23 = vld [vmem:[%s5616_s1 + $0x20] ss:$8 sps:$4 sm:$0xff]   ;;  %v4211_v26 = vld [vmem:[%s5617_s0 + $0x74] ss:$0 sps:$4 sm:$0x11]  }
  0xcf   :  { %2053 = vmatpush2.bf16.msra.mxu0 %v4122_v29  ;;  %v1616_v29 = vshll.u32 %v5193_v19, 16 }
  0xd0   :  { %2096 = vmatpush2.bf16.msra.mxu1 %v4125_v30  ;;  %2054 = vmatprep.subr.bf16.mxu0 %v4130_v31  ;;  %v4200_v30 = vld [vmem:[%s5616_s1 + $0x494] ss:$8 sps:$4 sm:$0xff]  }
  0xd1   :  { %2097 = vmatprep.subr.bf16.mxu1 %v4133_v56  ;;  %v4203_v31 = vld [vmem:[%s5616_s1 + $0x14] ss:$8 sps:$4 sm:$0xff]   ;;  %v4198_v56 = vld [vmem:[%s5616_s1 + $0x490] ss:$8 sps:$4 sm:$0xff]  }
  0xd3   :  { %2055 = vmatpush2.bf16.msra.mxu0 %v4128_v32  ;;  %v4201_v32 = vld [vmem:[%s5616_s1 + $0x10] ss:$8 sps:$4 sm:$0xff]  }
  0xd4   :  { %2098 = vmatpush2.bf16.msra.mxu1 %v4131_v33  ;;  %2056 = vmatprep.subr.bf16.mxu0 %v4136_v34  ;;  %v1614_v33 = vshrl.u32 %v5193_v19, 16  ;;  %v1618_v34 = vrot.slane %v1616_v29, 1  ;;  %v4281_v29 = vld [vmem:[%s5616_s1 + $0x240] ss:$8 sps:$4 sm:$0xff]  }
  0xd5   :  { %2099 = vmatprep.subr.bf16.mxu1 %v4139_v37  ;;  %v1621_v37 = vshll.u32 %v4211_v26, 16  ;;  %v4278_v26 = vld [vmem:[%s5616_s1 + $0x1c0] ss:$8 sps:$4 sm:$0xff]  }
  0xd6   :  { %v1619_v42 = vor.u32 %v1618_v34, %v1614_v33  ;;  %v4292_v33 = vld [vmem:[%s5616_s1 + $0x1a4] ss:$8 sps:$4 sm:$0xff]  }
  0xd7   :  { %2057 = vmatpush2.bf16.msra.mxu0 %v4134_v38  ;;  %v4206_v38 = vld [vmem:[%s5616_s1 + $0x484] ss:$8 sps:$4 sm:$0xff]   ;;  %v1623_v43 = vrot.slane %v1621_v37, 1  ;;  %v4290_v37 = vld [vmem:[%s5616_s1 + $0x1a0] ss:$8 sps:$4 sm:$0xff]  }
  0xd8   :  { %2100 = vmatpush2.bf16.msra.mxu1 %v4137_v39  ;;  %2058 = vmatprep.subr.bf16.mxu0 %v4142_v41  ;;  %v4209_v39 = vld [vmem:[%s5616_s1 + $0x4] ss:$8 sps:$4 sm:$0xff]   ;;  %v4207_v41 = vld [vmem:[%s5616_s1] ss:$8 sps:$4 sm:$0xff]  }
  0xd9   :  { %2101 = vmatprep.subr.bf16.mxu1 %v4145_v45  ;;  %v4217_v45 = vld [vmem:[%s5616_s1 + $0x174] ss:$8 sps:$4 sm:$0xff]   ;;  %v4295_v34 = vld [vmem:[%s5616_s1 + $0x224] ss:$8 sps:$4 sm:$0xff]  }
  0xdb   :  { %2059 = vmatpush2.bf16.msra.mxu0 %v4140_v24  ;;  %v1624_v24 = vsel %vm228_vm0, %v1619_v42, %v1623_v43  ;;  %v4299_v42 = vld [vmem:[%s5616_s1 + $0x210] ss:$8 sps:$4 sm:$0xff]   ;;  %v4304_v43 = vld [vmem:[%s5616_s1 + $0x184] ss:$8 sps:$4 sm:$0xff]  }
  0xdc   :  { %2102 = vmatpush2.bf16.msra.mxu1 %v4143_v46  ;;  %2060 = vmatprep.subr.bf16.mxu0 %v4148_v27  ;;  %v4212_v46 = vld [vmem:[%s5616_s1 + $0xf0] ss:$8 sps:$4 sm:$0xff]  }
  0xdd   :  { %2103 = vmatprep.subr.bf16.mxu1 %v4151_v50  ;;  %v4215_v27 = vld [vmem:[%s5616_s1 + $0x170] ss:$8 sps:$4 sm:$0xff]  }
  0xde   :  { %v4224_v50 = vld [vmem:[%s5616_s1 + $0xd0] ss:$8 sps:$4 sm:$0xff]  }
  0xdf   :  { %2061 = vmatpush2.bf16.msra.mxu0 %v4146_v53  ;;  %v4227_v53 = vld [vmem:[%s5616_s1 + $0x150] ss:$8 sps:$4 sm:$0xff]  }
  0xe0   :  { %2104 = vmatpush2.bf16.msra.mxu1 %v4149_v54  ;;  %2116 = vmatprep.subr.bf16.mxu0 %v4164_v61  ;;  %v4232_v54 = vld [vmem:[%s5616_s1 + $0xc4] ss:$8 sps:$4 sm:$0xff]   ;;  %v4236_v61 = vld [vmem:[%s5616_s1 + $0xb0] ss:$8 sps:$4 sm:$0xff]  }
  0xe1   :  { %2564 = vmatprep.subr.bf16.mxu1 %v4167_v4  ;;  %v4239_v4 = vld [vmem:[%s5616_s1 + $0x130] ss:$8 sps:$4 sm:$0xff]  }
  0xe2   :  { %2063 = vmatmul.mubr.bf16.vlgmr.msra.gmra.mxu0 %v1576_v63  ;;  %v4247_v63 = vld [vmem:[%s5616_s1 + $0x124] ss:$8 sps:$4 sm:$0xff]  }
  0xe3   :  { %2106 = vmatmul.mubr.bf16.vlgmr.msra.gmra.mxu1 %v1600_v0  ;;  %2117 = vmatpush1.bf16.msra.mxu0 %v4162_v62  ;;  %v4244_v62 = vld [vmem:[%s5616_s1 + $0xa4] ss:$8 sps:$4 sm:$0xff]   ;;  %v4242_v0 = vld [vmem:[%s5616_s1 + $0xa0] ss:$8 sps:$4 sm:$0xff]  }
  0xe4   :  { %2565 = vmatpush1.bf16.msra.mxu1 %v4165_v1  ;;  %2118 = vmatprep.subr.bf16.mxu0 %v4170_v2  ;;  %v4245_v1 = vld [vmem:[%s5616_s1 + $0x120] ss:$8 sps:$4 sm:$0xff]   ;;  %v4250_v2 = vld [vmem:[%s5616_s1 + $0x94] ss:$8 sps:$4 sm:$0xff]  }
  0xe5   :  { %2566 = vmatprep.subr.bf16.mxu1 %v4173_v3  ;;  %2148 = vmatprep.mubr.bf16.mxu0 %v4312_v48  ;;  %v4253_v3 = vld [vmem:[%s5616_s1 + $0x114] ss:$8 sps:$4 sm:$0xff]  }
  0xe6   :  { %2596 = vmatprep.mubr.bf16.mxu1 %v4898_v25  ;;  %v4185_v25 = vld [vmem:[%s5616_s1 + $0x44] ss:$8 sps:$4 sm:$0xff]  }
  0xe7   :  { %2119 = vmatpush1.bf16.msra.mxu0 %v4168_v6  ;;  %v4248_v6 = vld [vmem:[%s5616_s1 + $0x90] ss:$8 sps:$4 sm:$0xff]  }
  0xe8   :  { %2567 = vmatpush1.bf16.msra.mxu1 %v4171_v7  ;;  %2120 = vmatprep.subr.bf16.mxu0 %v4176_v8  ;;  %v4251_v7 = vld [vmem:[%s5616_s1 + $0x110] ss:$8 sps:$4 sm:$0xff]   ;;  %v4256_v8 = vld [vmem:[%s5616_s1 + $0x84] ss:$8 sps:$4 sm:$0xff]  }
  0xe9   :  { %2568 = vmatprep.subr.bf16.mxu1 %v4179_v9  ;;  %v4259_v9 = vld [vmem:[%s5616_s1 + $0x104] ss:$8 sps:$4 sm:$0xff]  }
  0xeb   :  { %2121 = vmatpush1.bf16.msra.mxu0 %v4174_v10  ;;  %v4254_v10 = vld [vmem:[%s5616_s1 + $0x80] ss:$8 sps:$4 sm:$0xff]  }
  0xec   :  { %2569 = vmatpush1.bf16.msra.mxu1 %v4177_v11  ;;  %2122 = vmatprep.subr.bf16.mxu0 %v4182_v12  ;;  %v4257_v11 = vld [vmem:[%s5616_s1 + $0x100] ss:$8 sps:$4 sm:$0xff]   ;;  %v4262_v12 = vld [vmem:[%s5616_s1 + $0x1f4] ss:$8 sps:$4 sm:$0xff]  }
  0xed   :  { %2570 = vmatprep.subr.bf16.mxu1 %v4185_v25  ;;  %v4265_v25 = vld [vmem:[%s5616_s1 + $0x274] ss:$8 sps:$4 sm:$0xff]  }
  0xef   :  { %2123 = vmatpush1.bf16.msra.mxu0 %v4180_v13  ;;  %v4260_v13 = vld [vmem:[%s5616_s1 + $0x1f0] ss:$8 sps:$4 sm:$0xff]  }
  0xf0   :  { %2571 = vmatpush1.bf16.msra.mxu1 %v4183_v14  ;;  %2124 = vmatprep.subr.bf16.mxu0 %v4188_v15  ;;  %v4263_v14 = vld [vmem:[%s5616_s1 + $0x270] ss:$8 sps:$4 sm:$0xff]   ;;  %v4268_v15 = vld [vmem:[%s5616_s1 + $0x1e4] ss:$8 sps:$4 sm:$0xff]  }
  0xf1   :  { %2572 = vmatprep.subr.bf16.mxu1 %v4191_v16  ;;  %v4271_v16 = vld [vmem:[%s5616_s1 + $0x264] ss:$8 sps:$4 sm:$0xff]  }
  0xf3   :  { %2125 = vmatpush1.bf16.msra.mxu0 %v4186_v17  ;;  %v4266_v17 = vld [vmem:[%s5616_s1 + $0x1e0] ss:$8 sps:$4 sm:$0xff]  }
  0xf4   :  { %2573 = vmatpush1.bf16.msra.mxu1 %v4189_v18  ;;  %2126 = vmatprep.subr.bf16.mxu0 %v4194_v20  ;;  %v4269_v18 = vld [vmem:[%s5616_s1 + $0x260] ss:$8 sps:$4 sm:$0xff]   ;;  %v4274_v20 = vld [vmem:[%s5616_s1 + $0x1d4] ss:$8 sps:$4 sm:$0xff]  }
  0xf5   :  { %2574 = vmatprep.subr.bf16.mxu1 %v4197_v21  ;;  %v4272_v21 = vld [vmem:[%s5616_s1 + $0x1d0] ss:$8 sps:$4 sm:$0xff]  }
  0xf7   :  { %2127 = vmatpush1.bf16.msra.mxu0 %v4192_v22  ;;  %v4275_v22 = vld [vmem:[%s5616_s1 + $0x250] ss:$8 sps:$4 sm:$0xff]  }
  0xf8   :  { %2575 = vmatpush1.bf16.msra.mxu1 %v4195_v23  ;;  %2128 = vmatprep.subr.bf16.mxu0 %v4200_v30  ;;  %v4280_v23 = vld [vmem:[%s5616_s1 + $0x1c4] ss:$8 sps:$4 sm:$0xff]   ;;  %v4286_v30 = vld [vmem:[%s5616_s1 + $0x1b4] ss:$8 sps:$4 sm:$0xff]  }
  0xf9   :  { %2576 = vmatprep.subr.bf16.mxu1 %v4203_v31  ;;  %v4289_v31 = vld [vmem:[%s5616_s1 + $0x234] ss:$8 sps:$4 sm:$0xff]  }
  0xfb   :  { %2129 = vmatpush1.bf16.msra.mxu0 %v4198_v56  ;;  %v4284_v56 = vld [vmem:[%s5616_s1 + $0x1b0] ss:$8 sps:$4 sm:$0xff]  }
  0xfc   :  { %2577 = vmatpush1.bf16.msra.mxu1 %v4201_v32  ;;  %2130 = vmatprep.subr.bf16.mxu0 %v4206_v38  ;;  %v4287_v32 = vld [vmem:[%s5616_s1 + $0x230] ss:$8 sps:$4 sm:$0xff]   ;;  %v4293_v38 = vld [vmem:[%s5616_s1 + $0x220] ss:$8 sps:$4 sm:$0xff]  }
  0xfd   :  { %2578 = vmatprep.subr.bf16.mxu1 %v4209_v39  ;;  %v4298_v39 = vld [vmem:[%s5616_s1 + $0x194] ss:$8 sps:$4 sm:$0xff]  }
  0xff   :  { %2131 = vmatpush1.bf16.msra.mxu0 %v4204_v40  ;;  %v4301_v40 = vld [vmem:[%s5616_s1 + $0x214] ss:$8 sps:$4 sm:$0xff]  }
 0x100   :  { %2579 = vmatpush1.bf16.msra.mxu1 %v4207_v41  ;;  %2607 = vmatprep.subr.bf16.mxu0 %v4217_v45  ;;  %v4296_v41 = vld [vmem:[%s5616_s1 + $0x190] ss:$8 sps:$4 sm:$0xff]   ;;  %v4302_v45 = vld [vmem:[%s5616_s1 + $0x180] ss:$8 sps:$4 sm:$0xff]  }
 0x101   :  { %2580 = vmatprep.subr.bf16.mxu1 %v4214_v44  ;;  %v4307_v44 = vld [vmem:[%s5616_s1 + $0x204] ss:$8 sps:$4 sm:$0xff]  }
 0x102   :  { %2149 = vmatmul.mubr.bf16.vlgmr.msra.gmra.mxu0 %v1624_v24  ;;  %v4305_v24 = vld [vmem:[%s5616_s1 + $0x200] ss:$8 sps:$4 sm:$0xff]  }
 0x103   :  { %2608 = vmatpush1.bf16.msra.mxu0 %v4215_v27  ;;  %2639 = vmatprep.mubr.bf16.mxu0 %v4910_v28  ;;  %v4235_v28 = vld [vmem:[%s5616_s1 + $0x144] ss:$8 sps:$4 sm:$0xff]   ;;  %v2738_v27 = vld [vmem:[%s5618_s2 + $0x78] sm:$0xff] }
 0x104   :  { %2581 = vmatpush2.bf16.msra.mxu1 %v4212_v46  ;;  %2609 = vmatprep.subr.bf16.mxu0 %v4223_v60  ;;  %v2754_v46 = vld [vmem:[%s5618_s2 + $0xf8] sm:$0xff]  ;;  %v2736_v60 = vld [vmem:[%s5618_s2 + $0x68] sm:$0xff] }
 0x105   :  { %2582 = vmatprep.subr.bf16.mxu1 %v4220_v5  ;;  %v2753_v5 = vld [vmem:[%s5618_s2 + $0xf0] sm:$0xff] }
 0x107   :  { %2610 = vmatpush1.bf16.msra.mxu0 %v4221_v49  ;;  %v2735_v49 = vld [vmem:[%s5618_s2 + $0x60] sm:$0xff] }
 0x108   :  { %2583 = vmatpush2.bf16.msra.mxu1 %v4218_v47  ;;  %2611 = vmatprep.subr.bf16.mxu0 %v4229_v52  ;;  %v2751_v47 = vld [vmem:[%s5618_s2 + $0xe0] sm:$0xff]  ;;  %v2734_v52 = vld [vmem:[%s5618_s2 + $0x58] sm:$0xff] }
 0x109   :  { %2584 = vmatprep.subr.bf16.mxu1 %v4226_v51  ;;  %v2750_v51 = vld [vmem:[%s5618_s2 + $0xd8] sm:$0xff] }
 0x10b   :  { %2612 = vmatpush1.bf16.msra.mxu0 %v4227_v53  ;;  %v2733_v53 = vld [vmem:[%s5618_s2 + $0x50] sm:$0xff] }
 0x10c   :  { %2585 = vmatpush2.bf16.msra.mxu1 %v4224_v50  ;;  %2613 = vmatprep.subr.bf16.mxu0 %v4235_v28  ;;  %v2749_v50 = vld [vmem:[%s5618_s2 + $0xd0] sm:$0xff]  ;;  %v2732_v28 = vld [vmem:[%s5618_s2 + $0x48] sm:$0xff] }
 0x10d   :  { %2586 = vmatprep.subr.bf16.mxu1 %v4232_v54  ;;  %v2748_v54 = vld [vmem:[%s5618_s2 + $0xc8] sm:$0xff] }
 0x10f   :  { %2614 = vmatpush1.bf16.msra.mxu0 %v4233_v57  ;;  %v2731_v57 = vld [vmem:[%s5618_s2 + $0x40] sm:$0xff] }
 0x110   :  { %2587 = vmatpush2.bf16.msra.mxu1 %v4230_v55  ;;  %2615 = vmatprep.subr.bf16.mxu0 %v4241_v59  ;;  %v2747_v55 = vld [vmem:[%s5618_s2 + $0xc0] sm:$0xff]  ;;  %v2730_v59 = vld [vmem:[%s5618_s2 + $0x38] sm:$0xff] }
 0x111   :  { %2588 = vmatprep.subr.bf16.mxu1 %v4238_v58  ;;  %v2746_v58 = vld [vmem:[%s5618_s2 + $0xb8] sm:$0xff] }
 0x113   :  { %2616 = vmatpush1.bf16.msra.mxu0 %v4239_v4  ;;  %v2729_v4 = vld [vmem:[%s5618_s2 + $0x30] sm:$0xff] }
 0x114   :  { %2589 = vmatpush2.bf16.msra.mxu1 %v4236_v61  ;;  %2617 = vmatprep.subr.bf16.mxu0 %v4247_v63  ;;  %v2745_v61 = vld [vmem:[%s5618_s2 + $0xb0] sm:$0xff]  ;;  %v2728_v63 = vld [vmem:[%s5618_s2 + $0x28] sm:$0xff] }
 0x115   :  { %2590 = vmatprep.subr.bf16.mxu1 %v4244_v62  ;;  %v2744_v62 = vld [vmem:[%s5618_s2 + $0xa8] sm:$0xff] }
 0x117   :  { %2618 = vmatpush1.bf16.msra.mxu0 %v4245_v1  ;;  %v2727_v1 = vld [vmem:[%s5618_s2 + $0x20] sm:$0xff] }
 0x118   :  { %2591 = vmatpush2.bf16.msra.mxu1 %v4242_v0  ;;  %2619 = vmatprep.subr.bf16.mxu0 %v4253_v3  ;;  %v2743_v0 = vld [vmem:[%s5618_s2 + $0xa0] sm:$0xff]  ;;  %v2726_v3 = vld [vmem:[%s5618_s2 + $0x18] sm:$0xff] }
 0x119   :  { %2592 = vmatprep.subr.bf16.mxu1 %v4250_v2  ;;  %v2742_v2 = vld [vmem:[%s5618_s2 + $0x98] sm:$0xff] }
 0x11b   :  { %2620 = vmatpush1.bf16.msra.mxu0 %v4251_v7  ;;  %v2725_v7 = vld [vmem:[%s5618_s2 + $0x10] sm:$0xff] }
 0x11c   :  { %2593 = vmatpush2.bf16.msra.mxu1 %v4248_v6  ;;  %2621 = vmatprep.subr.bf16.mxu0 %v4259_v9  ;;  %v2741_v6 = vld [vmem:[%s5618_s2 + $0x90] sm:$0xff]  ;;  %v2724_v9 = vld [vmem:[%s5618_s2 + $0x8] sm:$0xff] }
 0x11d   :  { %2594 = vmatprep.subr.bf16.mxu1 %v4256_v8  ;;  %v2740_v8 = vld [vmem:[%s5618_s2 + $0x88] sm:$0xff] }
 0x11f   :  { %2622 = vmatpush1.bf16.msra.mxu0 %v4257_v11  ;;  %v2723_v11 = vld [vmem:[%s5618_s2] sm:$0xff] }
 0x120   :  { %2595 = vmatpush2.bf16.msra.mxu1 %v4254_v10  ;;  %2623 = vmatprep.subr.bf16.mxu0 %v4262_v12  ;;  %v2739_v10 = vld [vmem:[%s5618_s2 + $0x80] sm:$0xff]  ;;  %v728_v12 = vpop.f32.mrf.mxu0 }
 0x121   :  { %2650 = vmatprep.subr.bf16.mxu1 %v4265_v25  ;;  %v771_v25 = vpop.f32.mrf.mxu1 }
 0x123   :  { %2597 = vmatmul.mubr.bf16.vlgmr.msra.gmra.mxu1 %v5078_v35  ;;  %2624 = vmatpush2.bf16.msra.mxu0 %v4260_v13  ;;  %v4277_v35 = vld [vmem:[%s5616_s1 + $0x254] ss:$8 sps:$4 sm:$0xff]   ;;  %v730_v13 = vpop.f32.mrf.mxu0 }
 0x124   :  { %2651 = vmatpush1.bf16.msra.mxu1 %v4263_v14  ;;  %2625 = vmatprep.subr.bf16.mxu0 %v4268_v15  ;;  %v773_v14 = vpop.f32.mrf.mxu1 }
 0x125   :  { %2652 = vmatprep.subr.bf16.mxu1 %v4271_v16  ;;  %2682 = vmatprep.mubr.bf16.mxu1 %v4312_v48  ;;  %v4283_v48 = vld [vmem:[%s5616_s1 + $0x244] ss:$8 sps:$4 sm:$0xff]   ;;  %v732_v15 = vpop.f32.mrf.mxu0 }
 0x126   :  { %v775_v16 = vpop.f32.mrf.mxu1 }
 0x127   :  { %2626 = vmatpush2.bf16.msra.mxu0 %v4266_v17  ;;  %v734_v17 = vpop.f32.mrf.mxu0 }
 0x128   :  { %2653 = vmatpush1.bf16.msra.mxu1 %v4269_v18  ;;  %2627 = vmatprep.subr.bf16.mxu0 %v4274_v20  ;;  %v777_v18 = vpop.f32.mrf.mxu1 }
 0x129   :  { %2654 = vmatprep.subr.bf16.mxu1 %v4277_v35  ;;  %v814_v20 = vpop.f32.mrf.mxu0 }
 0x12b   :  { %2628 = vmatpush2.bf16.msra.mxu0 %v4272_v21  ;;  %v816_v21 = vpop.f32.mrf.mxu0 }
 0x12c   :  { %2655 = vmatpush1.bf16.msra.mxu1 %v4275_v22  ;;  %2629 = vmatprep.subr.bf16.mxu0 %v4280_v23 }
 0x12d   :  { %2656 = vmatprep.subr.bf16.mxu1 %v4283_v48  ;;  %v818_v23 = vpop.f32.mrf.mxu0 }
 0x12f   :  { %2630 = vmatpush2.bf16.msra.mxu0 %v4278_v26  ;;  %v820_v26 = vpop.f32.mrf.mxu0 }
 0x130   :  { %2657 = vmatpush1.bf16.msra.mxu1 %v4281_v29  ;;  %2631 = vmatprep.subr.bf16.mxu0 %v4286_v30 }
 0x131   :  { %2658 = vmatprep.subr.bf16.mxu1 %v4289_v31 }
 0x133   :  { %2632 = vmatpush2.bf16.msra.mxu0 %v4284_v56 }
 0x134   :  { %2659 = vmatpush1.bf16.msra.mxu1 %v4287_v32  ;;  %2633 = vmatprep.subr.bf16.mxu0 %v4292_v33 }
 0x135   :  { %2660 = vmatprep.subr.bf16.mxu1 %v4295_v34 }
 0x137   :  { %2634 = vmatpush2.bf16.msra.mxu0 %v4290_v37 }
 0x138   :  { %2661 = vmatpush1.bf16.msra.mxu1 %v4293_v38  ;;  %2635 = vmatprep.subr.bf16.mxu0 %v4298_v39 }
 0x139   :  { %2662 = vmatprep.subr.bf16.mxu1 %v4301_v40 }
 0x13b   :  { %2636 = vmatpush2.bf16.msra.mxu0 %v4296_v41 }
 0x13c   :  { %2663 = vmatpush1.bf16.msra.mxu1 %v4299_v42  ;;  %2637 = vmatprep.subr.bf16.mxu0 %v4304_v43 }
 0x13d   :  { %2664 = vmatprep.subr.bf16.mxu1 %v4307_v44 }
 0x13f   :  { %2638 = vmatpush2.bf16.msra.mxu0 %v4302_v45 }
 0x140   :  { %2665 = vmatpush1.bf16.msra.mxu1 %v4305_v24  ;;  %3731 = vmatprep.subr.mxu0 %v2754_v46 }
 0x141   :  { %3766 = vmatprep.subr.mxu1 %v2754_v46 }
 0x142   :  { %2640 = vmatmul.mubr.bf16.vlgmr.msra.gmra.mxu0 %v5083_v36  ;;  %v2737_v36 = vld [vmem:[%s5618_s2 + $0x70] sm:$0xff] }
 0x143   :  { %2683 = vmatmul.mubr.bf16.vlgmr.msra.gmra.mxu1 %v5193_v19  ;;  %3732 = vmatpush3.msra.mxu0 %v2738_v27  ;;  %v2752_v19 = vld [vmem:[%s5618_s2 + $0xe8] sm:$0xff]  ;;  %v1262_v35 = vpop.f32.mrf.mxu1 }
 0x144   :  { %3767 = vmatpush3.msra.mxu1 %v2738_v27  ;;  %3733 = vmatprep.subr.mxu0 %v2753_v5 }
 0x145   :  { %3768 = vmatprep.subr.mxu1 %v2753_v5  ;;  %3734 = vmatpush3.msra.mxu0 %v2737_v36  ;;  %v1264_v22 = vpop.f32.mrf.mxu1  ;;  %v776_v5 = vadd.f32 %v775_v16, %v732_v15 }
 0x146   :  { %3769 = vmatpush3.msra.mxu1 %v2737_v36  ;;  %3735 = vmatprep.subr.mxu0 %v2752_v19  ;;  %v772_v36 = vadd.f32 %v771_v25, %v728_v12 }
 0x147   :  { %3770 = vmatprep.subr.mxu1 %v2752_v19  ;;  %3736 = vmatpush3.msra.mxu0 %v2736_v60  ;;  %v1266_v48 = vpop.f32.mrf.mxu1 }
 0x148   :  { %3771 = vmatpush3.msra.mxu1 %v2736_v60  ;;  %3737 = vmatprep.subr.mxu0 %v2751_v47 }
 0x149   :  { %3772 = vmatprep.subr.mxu1 %v2751_v47  ;;  %3738 = vmatpush3.msra.mxu0 %v2735_v49  ;;  %v1268_v29 = vpop.f32.mrf.mxu1  ;;  %v819_v47 = vadd.f32 %v818_v23, %v776_v5 }
 0x14a   :  { %3773 = vmatpush3.msra.mxu1 %v2735_v49  ;;  %3739 = vmatprep.subr.mxu0 %v2750_v51  ;;  %v778_v49 = vadd.f32 %v777_v18, %v734_v17 }
 0x14b   :  { %3774 = vmatprep.subr.mxu1 %v2750_v51  ;;  %3740 = vmatpush3.msra.mxu0 %v2734_v52  ;;  %v815_v51 = vadd.f32 %v814_v20, %v772_v36 }
 0x14c   :  { %3775 = vmatpush3.msra.mxu1 %v2734_v52  ;;  %3741 = vmatprep.subr.mxu0 %v2749_v50  ;;  %v1267_v52 = vadd.f32 %v1266_v48, %v819_v47 }
 0x14d   :  { %3776 = vmatprep.subr.mxu1 %v2749_v50  ;;  %3742 = vmatpush3.msra.mxu0 %v2733_v53  ;;  %v774_v50 = vadd.f32 %v773_v14, %v730_v13 }
 0x14e   :  { %3777 = vmatpush3.msra.mxu1 %v2733_v53  ;;  %3743 = vmatprep.subr.mxu0 %v2748_v54  ;;  %v821_v53 = vadd.f32 %v820_v26, %v778_v49 }
 0x14f   :  { %3778 = vmatprep.subr.mxu1 %v2748_v54  ;;  %3744 = vmatpush3.msra.mxu0 %v2732_v28  ;;  %v1263_v54 = vadd.f32 %v1262_v35, %v815_v51 }
 0x150   :  { %3779 = vmatpush3.msra.mxu1 %v2732_v28  ;;  %3745 = vmatprep.subr.mxu0 %v2747_v55 }
 0x151   :  { %3780 = vmatprep.subr.mxu1 %v2747_v55  ;;  %3746 = vmatpush3.msra.mxu0 %v2731_v57 }
 0x152   :  { %3781 = vmatpush3.msra.mxu1 %v2731_v57  ;;  %3747 = vmatprep.subr.mxu0 %v2746_v58 }
 0x153   :  { %3782 = vmatprep.subr.mxu1 %v2746_v58  ;;  %3748 = vmatpush3.msra.mxu0 %v2730_v59 }
 0x154   :  { %3783 = vmatpush3.msra.mxu1 %v2730_v59  ;;  %3749 = vmatprep.subr.mxu0 %v2745_v61  ;;  %v817_v59 = vadd.f32 %v816_v21, %v774_v50 }
 0x155   :  { %3784 = vmatprep.subr.mxu1 %v2745_v61  ;;  %3750 = vmatpush3.msra.mxu0 %v2729_v4  ;;  %v1269_v61 = vadd.f32 %v1268_v29, %v821_v53 }
 0x156   :  { %3785 = vmatpush3.msra.mxu1 %v2729_v4  ;;  %3751 = vmatprep.subr.mxu0 %v2744_v62 }
 0x157   :  { %3786 = vmatprep.subr.mxu1 %v2744_v62  ;;  %3752 = vmatpush3.msra.mxu0 %v2728_v63 }
 0x158   :  { %3787 = vmatpush3.msra.mxu1 %v2728_v63  ;;  %3753 = vmatprep.subr.mxu0 %v2743_v0 }
 0x159   :  { %3788 = vmatprep.subr.mxu1 %v2743_v0  ;;  %3754 = vmatpush3.msra.mxu0 %v2727_v1  ;;  %v1265_v0 = vadd.f32 %v1264_v22, %v817_v59 }
 0x15a   :  { %3789 = vmatpush3.msra.mxu1 %v2727_v1  ;;  %3755 = vmatprep.subr.mxu0 %v2742_v2 }
 0x15b   :  { %3790 = vmatprep.subr.mxu1 %v2742_v2  ;;  %3756 = vmatpush3.msra.mxu0 %v2726_v3 }
 0x15c   :  { %3791 = vmatpush3.msra.mxu1 %v2726_v3  ;;  %3757 = vmatprep.subr.mxu0 %v2741_v6 }
 0x15d   :  { %3792 = vmatprep.subr.mxu1 %v2741_v6  ;;  %3758 = vmatpush3.msra.mxu0 %v2725_v7 }
 0x15e   :  { %3793 = vmatpush3.msra.mxu1 %v2725_v7  ;;  %3759 = vmatprep.subr.mxu0 %v2740_v8 }
 0x15f   :  { %3794 = vmatprep.subr.mxu1 %v2740_v8  ;;  %3760 = vmatpush3.msra.mxu0 %v2724_v9 }
 0x160   :  { %3795 = vmatpush3.msra.mxu1 %v2724_v9  ;;  %3761 = vmatprep.subr.mxu0 %v2739_v10 }
 0x161   :  { %3796 = vmatprep.subr.mxu1 %v2739_v10  ;;  %3762 = vmatpush3.msra.mxu0 %v2723_v11 }
 0x162   :  { %3797 = vmatpush3.msra.mxu1 %v2723_v11  ;;  %v1305_v30 = vpop.f32.mrf.mxu0 }
 0x163   :  { %v1348_v31 = vpop.f32.mrf.mxu1  ;;  %v1306_v4 = vadd.f32 %v1305_v30, %v1263_v54 }
 0x164   :  { %v1307_v56 = vpop.f32.mrf.mxu0 }
 0x165   :  { %v1350_v32 = vpop.f32.mrf.mxu1  ;;  %v5532_v10 = vadd.f32 %v1348_v31, %v1306_v4  ;;  %v1308_v11 = vadd.f32 %v1307_v56, %v1265_v0 }
 0x166   :  { %v1309_v33 = vpop.f32.mrf.mxu0 }
 0x167   :  { %v1352_v34 = vpop.f32.mrf.mxu1  ;;  %v1310_v57 = vadd.f32 %v1309_v33, %v1267_v52  ;;  %v2827_v48 = vmul.f32 %v5532_v10, %v5532_v10  ;;  %v5542_v26 = vadd.f32 %v1350_v32, %v1308_v11 }
 0x168   :  { %v1311_v37 = vpop.f32.mrf.mxu0 }
 0x169   :  { %v1354_v38 = vpop.f32.mrf.mxu1  ;;  %v1312_v1 = vadd.f32 %v1311_v37, %v1269_v61  ;;  %v5530_v6 = vadd.f32 %v1352_v34, %v1310_v57 }
 0x16b   :  { %v5534_v16 = vadd.f32 %v1354_v38, %v1312_v1  ;;  %v2829_v35 = vmul.f32 %v5530_v6, %v5530_v6  ;;  %v2705_v31 = vadd.f32 %v5530_v6, %v5532_v10 }
 0x16d   :  { %v2830_v38 = vmul.f32 %v5534_v16, %v5534_v16 }
 0x1a2   :  { %v2064_v39 = vpop.f32.mrf.mxu0 }
 0x1a3   :  { %v2107_v40 = vpop.f32.mrf.mxu1 }
 0x1a4   :  { %v2066_v41 = vpop.f32.mrf.mxu0  ;;  %v2108_v58 = vadd.f32 %v2107_v40, %v2064_v39 }
 0x1a5   :  { %v2109_v42 = vpop.f32.mrf.mxu1 }
 0x1a6   :  { %v2068_v43 = vpop.f32.mrf.mxu0  ;;  %v2110_v62 = vadd.f32 %v2109_v42, %v2066_v41  ;;  %v2835_v41 = vadd.f32 %v2829_v35, %v2827_v48  ;;  %v2927_v35 = vld [vmem:[%s5619_s3 + $0x8] sm:$0xff] }
 0x1a7   :  { %v2111_v44 = vpop.f32.mrf.mxu1 }
 0x1a8   :  { %v2070_v45 = vpop.f32.mrf.mxu0  ;;  %v2112_v7 = vadd.f32 %v2111_v44, %v2068_v43  ;;  %v2828_v43 = vmul.f32 %v5542_v26, %v5542_v26  ;;  %v2714_v44 = vadd.f32 %v5534_v16, %v5542_v26 }
 0x1a9   :  { %v2113_v24 = vpop.f32.mrf.mxu1 }
 0x1aa   :  { %v2114_v17 = vadd.f32 %v2113_v24, %v2070_v45 }
 0x1c2   :  { %v2150_v46 = vpop.f32.mrf.mxu0 }
 0x1c3   :  { %v2151_v63 = vadd.f32 %v2150_v46, %v2108_v58 }
 0x1c4   :  { %v2152_v19 = vpop.f32.mrf.mxu0 }
 0x1c5   :  { %v2153_v8 = vadd.f32 %v2152_v19, %v2110_v62  ;;  %v2844_v19 = vadd.f32 %v2830_v38, %v2828_v43 }
 0x1c6   :  { %v2154_v28 = vpop.f32.mrf.mxu0 }
 0x1c7   :  { %v2155_v13 = vadd.f32 %v2154_v28, %v2112_v7 }
 0x1c8   :  { %v2156_v2 = vpop.f32.mrf.mxu0 }
 0x1c9   :  { %v2157_v29 = vadd.f32 %v2156_v2, %v2114_v17 }
 0x1e3   :  { %v2598_v27 = vpop.f32.mrf.mxu1 }
 0x1e4   :  { %v2599_v9 = vadd.f32 %v2598_v27, %v2151_v63 }
 0x1e5   :  { %v2600_v60 = vpop.f32.mrf.mxu1 }
 0x1e6   :  { %v2601_v14 = vadd.f32 %v2600_v60, %v2153_v8 }
 0x1e7   :  { %v2602_v55 = vpop.f32.mrf.mxu1 }
 0x1e8   :  { %v2603_v21 = vadd.f32 %v2602_v55, %v2155_v13 }
 0x1e9   :  { %v2604_v3 = vpop.f32.mrf.mxu1 }
 0x1ea   :  { %v2605_v39 = vadd.f32 %v2604_v3, %v2157_v29 }
 0x202   :  { %v2641_v12 = vpop.f32.mrf.mxu0 }
 0x203   :  { %v2684_v25 = vpop.f32.mrf.mxu1  ;;  %v2642_v15 = vadd.f32 %v2641_v12, %v2599_v9 }
 0x204   :  { %v2643_v18 = vpop.f32.mrf.mxu0 }
 0x205   :  { %v2686_v20 = vpop.f32.mrf.mxu1  ;;  %v5538_v22 = vadd.f32 %v2684_v25, %v2642_v15  ;;  %v2644_v23 = vadd.f32 %v2643_v18, %v2601_v14  ;;  %v2929_v18 = vld [vmem:[%s5619_s3 + $0x18] sm:$0xff] }
 0x206   :  { %v2645_v30 = vpop.f32.mrf.mxu0  ;;  %2962 = vmatprep.subr.mxu0 %v2929_v18  ;;  %3037 = vmatprep.subr.mxu1 %v2929_v18 }
 0x207   :  { %v2831_v56 = vmul.f32 %v5538_v22, %v5538_v22  ;;  %v5548_v33 = vadd.f32 %v2686_v20, %v2644_v23  ;;  %v2646_v34 = vadd.f32 %v2645_v30, %v2603_v21  ;;  %v2688_v37 = vpop.f32.mrf.mxu1  ;;  %v2706_v32 = vadd.f32 %v2705_v31, %v5538_v22  ;;  %v2928_v20 = vld [vmem:[%s5619_s3 + $0x10] sm:$0xff]  ;;  %v2926_v21 = vld [vmem:[%s5619_s3] sm:$0xff] }
 0x208   :  { %v2647_v40 = vpop.f32.mrf.mxu0  ;;  %v4313_v23 = vmov 0.0  }
 0x209   :  { %v5553_v42 = vadd.f32 %v2688_v37, %v2646_v34  ;;  %v2832_v45 = vmul.f32 %v5548_v33, %v5548_v33  ;;  %v2648_v24 = vadd.f32 %v2647_v40, %v2605_v39  ;;  %v2836_v46 = vadd.f32 %v2835_v41, %v2831_v56  ;;  %v2690_v36 = vpop.f32.mrf.mxu1 }
 0x20a   :  { %v2715_v60 = vadd.f32 %v2714_v44, %v5548_v33 }
 0x20b   :  { %v2707_v27 = vadd.f32 %v2706_v32, %v5553_v42  ;;  %v2833_v5 = vmul.f32 %v5553_v42, %v5553_v42  ;;  %v5565_v47 = vadd.f32 %v2690_v36, %v2648_v24  ;;  %v2845_v52 = vadd.f32 %v2844_v19, %v2832_v45 }
 0x20c   :  { %v4314_v45 = vmov 1966171168  }
 0x20d   :  { %v2708_v49 = vrot.slane %v2707_v27, 4  ;;  %v2837_v51 = vadd.f32 %v2836_v46, %v2833_v5  ;;  %v2716_v50 = vadd.f32 %v2715_v60, %v5565_v47  ;;  %v2834_v53 = vmul.f32 %v5565_v47, %v5565_v47 }
 0x20e   :  { %v3086_v24 = vunpack.c.l.s4 %v4314_v45  ;;  %v3088_v46 = vlaneseq }
 0x20f   :  { %v2709_v54 = vadd.f32 %v2708_v49, %v2707_v27  ;;  %v2838_v28 = vrot.slane %v2837_v51, 4  ;;  %v2717_v55 = vrot.slane %v2716_v50, 4  ;;  %v2846_v57 = vadd.f32 %v2845_v52, %v2834_v53 }
 0x210   :  { %v3087_v27 = vunpack.c.0.s8 %v3086_v24  ;;  %v3089_v5 = vshrl.u32 %v3088_v46, 7 }
 0x211   :  { %v2710_v58 = vrot.slane %v2709_v54, 2  ;;  %v2839_v59 = vadd.f32 %v2838_v28, %v2837_v51  ;;  %v2718_v61 = vadd.f32 %v2717_v55, %v2716_v50  ;;  %v2847_v4 = vrot.slane %v2846_v57, 4  ;;  %v3005_v28 = vld [vmem:[%s5620_s4] sm:$0x3] }
 0x212   :  { %v3090_v60 = vsub.s32 %v3087_v27, %v3089_v5  ;;  %v3103_v51 = vsub.s32 0, %v3089_v5  ;;  %v3124_v55 = vsub.s32 1, %v3089_v5 }
 0x213   :  { %v2711_v62 = vadd.f32 %v2710_v58, %v2709_v54  ;;  %v2840_v63 = vrot.slane %v2839_v59, 2  ;;  %v2719_v0 = vrot.slane %v2718_v61, 2  ;;  %v2848_v1 = vadd.f32 %v2847_v4, %v2846_v57  ;;  %v3136_v57 = vld [vmem:[%s5621_s5] sm:$0x3] }
 0x215   :  { %v2841_v2 = vadd.f32 %v2840_v63, %v2839_v59  ;;  %v2720_v3 = vadd.f32 %v2719_v0, %v2718_v61  ;;  %v2849_v7 = vrot.slane %v2848_v1, 2  ;;  %v2712_v8 = vrot.slane %v2711_v62, 1 }
 0x216   :  { %v3141_v63 = vrot.slane %v3136_v57, %v3103_v51  ;;  %v3145_v0 = vrot.slane %v3136_v57, %v3124_v55 }
 0x217   :  { %v2721_v9 = vrot.slane %v2720_v3, 1  ;;  %v2850_v11 = vadd.f32 %v2849_v7, %v2848_v1  ;;  %v2842_v12 = vrot.slane %v2841_v2, 1  ;;  %v2713_v14 = vadd.f32 %v2712_v8, %v2711_v62 }
 0x219   :  { %v2722_v25 = vadd.f32 %v2721_v9, %v2720_v3  ;;  %v2851_v13 = vrot.slane %v2850_v11, 1  ;;  %v2843_v17 = vadd.f32 %v2842_v12, %v2841_v2 }
 0x21b   :  { %2819 = vmatprep.mubr.f32.mxu0 %v2722_v25  ;;  %v2852_v15 = vadd.f32 %v2851_v13, %v2850_v11 }
 0x21c   :  { %2820 = vmatmul.mubr.f32.vlgmr.msra.gmra.mxu0 %v2713_v14 }
 0x21d   :  { %2917 = vmatprep.mubr.f32.mxu1 %v2852_v15  ;;  %2963 = vmatpush1.msra.mxu0 %v2928_v20 }
 0x21e   :  { %2918 = vmatmul.mubr.f32.vlgmr.msra.gmra.mxu1 %v2843_v17  ;;  %2964 = vmatprep.subr.mxu0 %v2927_v35 }
 0x21f   :  { %3038 = vmatpush1.msra.mxu1 %v2928_v20  ;;  %2965 = vmatpush1.msra.mxu0 %v2926_v21 }
 0x220   :  { %3039 = vmatprep.subr.mxu1 %v2927_v35  ;;  %2998 = vmatprep.mubr.f32.mxu0 %v4313_v23 }
 0x221   :  { %3040 = vmatpush1.msra.mxu1 %v2926_v21  ;;  %3073 = vmatprep.mubr.f32.mxu1 %v4313_v23 }
 0x2dc   :  { %v3763_v48 = vpop.f32.mrf.mxu0 }
 0x2de   :  { %v3764_v29 = vpop.f32.mrf.mxu0  ;;  %v3798_v30 = vpop.f32.mrf.mxu1 }
 0x2df   :  { %v3765_v31 = vadd.f32 %v3764_v29, %v3763_v48 }
 0x2e0   :  { %v3799_v56 = vpop.f32.mrf.mxu1 }
 0x2e1   :  { %v2826_v34 = vmul.f32 0.001953125, %v3765_v31  ;;  %v3800_v37 = vadd.f32 %v3799_v56, %v3798_v30 }
 0x2e3   :  { %v2924_v38 = vmul.f32 %v2826_v34, %v2826_v34  ;;  %v2923_v39 = vmul.f32 0.001953125, %v3800_v37  ;;  %3721 = vmatmul.mubr.msk.f32.vlgmr.msra.gmra.mxu0 %vm2930_vm1, %v2826_v34 }
 0x2e5   :  { %v2925_v40 = vsub.f32 %v2923_v39, %v2924_v38 }
 0x2e7   :  { %3722 = vmatmul.mubr.msk.f32.vlgmr.msra.gmra.mxu1 %vm2930_vm1, %v2925_v40 }
 0x3a3   :  { %v3000_v36 = vpop.f32.mrf.mxu0 }
 0x3a4   :  { %v3104_v54 = vrot.slane %v3000_v36, %v3103_v51 }
 0x3a5   :  { %v3002_v50 = vpop.f32.mrf.mxu0 }
 0x3a6   :  { %v3108_v58 = vrot.slane %v3002_v50, %v3103_v51  ;;  %v3109_v4 = vsub.f32 %v5532_v10, %v3104_v54  ;;  %v3111_v62 = vsub.f32 %v5530_v6, %v3104_v54  ;;  %v3113_v8 = vsub.f32 %v5538_v22, %v3104_v54 }
 0x3a7   :  { %v3075_v41 = vpop.f32.mrf.mxu1  ;;  %v3115_v9 = vsub.f32 %v5553_v42, %v3104_v54 }
 0x3a8   :  { %v3076_v32 = vadd.f32 1e-05, %v3075_v41  ;;  %v3110_v1 = vsub.f32 %v5542_v26, %v3108_v58  ;;  %v3112_v2 = vsub.f32 %v5534_v16, %v3108_v58  ;;  %v3114_v11 = vsub.f32 %v5548_v33, %v3108_v58 }
 0x3a9   :  { %v3077_v43 = vpop.f32.mrf.mxu1  ;;  %v3116_v12 = vsub.f32 %v5565_v47, %v3108_v58 }
 0x3aa   :  { %v3078_v44 = vadd.f32 1e-05, %v3077_v43  ;;  %4308 = vrsqrt.f32 %v3076_v32 }
 0x3ac   :  { %4310 = vrsqrt.f32 %v3078_v44 }
 0x3b7   :  { %v4309_v19 = vpop.eup %4308 }
 0x3b9   :  { %v4311_v49 = vpop.eup %4310 }
 0x3ba   :  { %v3084_v52 = vcombine.low %v4309_v19, %v4311_v49 }
 0x3bc   :  { %v3091_v53 = vrot.slane %v3084_v52, %v3090_v60 }
 0x3be   :  { %v3098_v59 = vrot.slane %v3091_v53, %v3090_v60 }
 0x3c0   :  { %v3100_v61 = vmul.f32 %v3098_v59, %v3005_v28 }
 0x3c2   :  { %v3121_v3 = vrot.slane %v3100_v61, %v3103_v51  ;;  %v3125_v7 = vrot.slane %v3100_v61, %v3124_v55 }
 0x3c4   :  { %v3128_v25 = vmul.f32 %v3121_v3, %v3109_v4  ;;  %v3129_v10 = vmul.f32 %v3125_v7, %v3110_v1  ;;  %v3130_v13 = vmul.f32 %v3121_v3, %v3111_v62  ;;  %v3131_v6 = vmul.f32 %v3125_v7, %v3112_v2 }
 0x3c5   :  { %v3132_v14 = vmul.f32 %v3121_v3, %v3113_v8  ;;  %v3133_v15 = vmul.f32 %v3125_v7, %v3114_v11  ;;  %v3134_v17 = vmul.f32 %v3121_v3, %v3115_v9  ;;  %v3135_v26 = vmul.f32 %v3125_v7, %v3116_v12 }
 0x3c6   :  { %v3148_v18 = vadd.f32 %v3141_v63, %v3128_v25  ;;  %v3149_v16 = vadd.f32 %v3145_v0, %v3129_v10  ;;  %v3150_v20 = vadd.f32 %v3141_v63, %v3130_v13  ;;  %v3151_v35 = vadd.f32 %v3145_v0, %v3131_v6 }
 0x3c7   :  { %v3152_v21 = vadd.f32 %v3141_v63, %v3132_v14  ;;  %v3153_v22 = vadd.f32 %v3145_v0, %v3133_v15  ;;  %v3154_v23 = vadd.f32 %v3141_v63, %v3134_v17  ;;  %v3155_v42 = vadd.f32 %v3145_v0, %v3135_v26 }
 0x3c8   :  { %vm3156_vm2 = vcmp.gt.f32.partialorder %v3148_v18, 0.0  ;;  %vm3157_vm3 = vcmp.gt.f32.partialorder %v3149_v16, 0.0  ;;  %vm3158_vm4 = vcmp.gt.f32.partialorder %v3150_v20, 0.0  ;;  %vm3159_vm5 = vcmp.gt.f32.partialorder %v3151_v35, 0.0 }
 0x3c9   :  { %vm3160_vm6 = vcmp.gt.f32.partialorder %v3152_v21, 0.0  ;;  %vm3161_vm7 = vcmp.gt.f32.partialorder %v3153_v22, 0.0  ;;  %vm3162_vm8 = vcmp.gt.f32.partialorder %v3154_v23, 0.0  ;;  %vm3163_vm9 = vcmp.gt.f32.partialorder %v3155_v42, 0.0 }
 0x3ca   :  { %v3164_v33 = vmul.f32 0.2, %v3148_v18  ;;  %v3165_v47 = vmul.f32 0.2, %v3149_v16  ;;  %v3166_v48 = vmul.f32 0.2, %v3150_v20 }
 0x3cb   :  { %v3167_v29 = vmul.f32 0.2, %v3151_v35  ;;  %v3168_v30 = vmul.f32 0.2, %v3152_v21  ;;  %v3169_v31 = vmul.f32 0.2, %v3153_v22 }
 0x3cc   :  { %v3170_v56 = vmul.f32 0.2, %v3154_v23  ;;  %v3171_v34 = vmul.f32 0.2, %v3155_v42  ;;  %v3172_v37 = vsel %vm3156_vm2, %v3148_v18, %v3164_v33  ;;  %v3173_v38 = vsel %vm3157_vm3, %v3149_v16, %v3165_v47 }
 0x3cd   :  { %v3174_v39 = vsel %vm3158_vm4, %v3150_v20, %v3166_v48  ;;  %v3175_v40 = vsel %vm3159_vm5, %v3151_v35, %v3167_v29  ;;  %v3176_v41 = vsel %vm3160_vm6, %v3152_v21, %v3168_v30  ;;  %v3177_v32 = vsel %vm3161_vm7, %v3153_v22, %v3169_v31 }
 0x3ce   :  { %v3178_v43 = vsel %vm3162_vm8, %v3154_v23, %v3170_v56  ;;  %v3179_v44 = vsel %vm3163_vm9, %v3155_v42, %v3171_v34  ;;  %v3727_v45 = vpack.c.bf16 %v3173_v38, %v3172_v37  ;;  %v3728_v24 = vpack.c.bf16 %v3175_v40, %v3174_v39 }
 0x3cf   :  { %v3729_v46 = vpack.c.bf16 %v3177_v32, %v3176_v41  ;;  %v3730_v27 = vpack.c.bf16 %v3179_v44, %v3178_v43 }
 0x3d0   :  { %3204 = vst [vmem:[%s5622_s6] sm:$0xff] %v3727_v45  ;;  %3205 = vst [vmem:[%s5622_s6 + $0x8] sm:$0xff] %v3728_v24 }
 0x3d1   :  { %3206 = vst [vmem:[%s5622_s6 + $0x10] sm:$0xff] %v3729_v46  ;;  %3207 = vst [vmem:[%s5622_s6 + $0x18] sm:$0xff] %v3730_v27 }

// kernel: tile.99
= control target key start
LH: loop header
LB: loop body
LE: loop exit
PB: predicated region body
PF: predicated region fallthrough
CT: control target
= control target key end

     0   :  { %vm92_vm0 = vcmask 1047556   ;;  %s459_s14 = smov 96   ;;  %s460_s26 = smov 64   ;;  %vm3_vm1 = vcmask 261120   ;;  %vm96_vm2 = vcmask 1048320   ;;  %vm183_vm3 = vcmask 785920   ;;  %s904_s0 = inlined_call_operand.vmem [shape: f32[32,8,32], index: 0, kind: input, shape index: {}]   ;;  %s905_s1 = inlined_call_operand.vmem [shape: f32[32,256], index: 1, kind: output, shape index: {}]  }
   0x1   :  { %v392_v0 = vld [vmem:[%s904_s0 + $0x7] ss:$8 sm:$0xf]   ;;  %v387_v3 = vld [vmem:[%s904_s0 + $0x3] ss:$8 sm:$0xf]  }
   0x2   :  { %v393_v1 = vld [vmem:[%s904_s0 + $0x7] ss:$8 sm:$0xf0]   ;;  %v388_v4 = vld [vmem:[%s904_s0 + $0x3] ss:$8 sm:$0xf0]  }
   0x3   :  { %v114_v2 = vsel %vm92_vm0, %v393_v1, %v392_v0  ;;  %v93_v5 = vsel %vm92_vm0, %v388_v4, %v387_v3  ;;  %v395_v6 = vld [vmem:[%s904_s0 + $0x87] ss:$8 sm:$0xf]   ;;  %v389_v9 = vld [vmem:[%s904_s0 + $0x83] ss:$8 sm:$0xf]  }
   0x4   :  { %115 = vrot.lane.b32.xlu1 %v114_v2, %s459_s14  ;;  %v396_v7 = vld [vmem:[%s904_s0 + $0x87] ss:$8 sm:$0xf0]   ;;  %94 = vrot.lane.b32.xlu0 %v93_v5, %s459_s14  ;;  %v390_v10 = vld [vmem:[%s904_s0 + $0x83] ss:$8 sm:$0xf0]  }
   0x5   :  { %v125_v8 = vsel %vm92_vm0, %v396_v7, %v395_v6  ;;  %v103_v11 = vsel %vm92_vm0, %v390_v10, %v389_v9  ;;  %v401_v12 = vld [vmem:[%s904_s0 + $0xc3] ss:$8 sm:$0xf]   ;;  %v407_v18 = vld [vmem:[%s904_s0 + $0xc7] ss:$8 sm:$0xf]  }
   0x6   :  { %v402_v13 = vld [vmem:[%s904_s0 + $0xc3] ss:$8 sm:$0xf0]   ;;  %v408_v19 = vld [vmem:[%s904_s0 + $0xc7] ss:$8 sm:$0xf0]  }
   0x7   :  { %v398_v14 = vld [vmem:[%s904_s0 + $0x43] ss:$8 sm:$0xf]   ;;  %v147_v16 = vsel %vm92_vm0, %v402_v13, %v401_v12  ;;  %v404_v20 = vld [vmem:[%s904_s0 + $0x47] ss:$8 sm:$0xf]   ;;  %v169_v22 = vsel %vm92_vm0, %v408_v19, %v407_v18 }
   0x8   :  { %v399_v15 = vld [vmem:[%s904_s0 + $0x43] ss:$8 sm:$0xf0]   ;;  %126 = vrot.lane.b32.xlu1 %v125_v8, %s459_s14  ;;  %104 = vrot.lane.b32.xlu0 %v103_v11, %s459_s14  ;;  %v405_v21 = vld [vmem:[%s904_s0 + $0x47] ss:$8 sm:$0xf0]  }
   0x9   :  { %v136_v17 = vsel %vm92_vm0, %v399_v15, %v398_v14  ;;  %v158_v23 = vsel %vm92_vm0, %v405_v21, %v404_v20  ;;  %v412_v24 = vld [vmem:[%s904_s0 + $0x82] ss:$8 sm:$0xf]   ;;  %v418_v30 = vld [vmem:[%s904_s0 + $0x86] ss:$8 sm:$0xf]  }
   0xa   :  { %v413_v25 = vld [vmem:[%s904_s0 + $0x82] ss:$8 sm:$0xf0]   ;;  %v419_v31 = vld [vmem:[%s904_s0 + $0x86] ss:$8 sm:$0xf0]  }
   0xb   :  { %v410_v26 = vld [vmem:[%s904_s0 + $0x2] ss:$8 sm:$0xf]   ;;  %v190_v28 = vsel %vm92_vm0, %v413_v25, %v412_v24  ;;  %v415_v32 = vld [vmem:[%s904_s0 + $0x6] ss:$8 sm:$0xf]   ;;  %v212_v34 = vsel %vm92_vm0, %v419_v31, %v418_v30 }
   0xc   :  { %148 = vrot.lane.b32.xlu1 %v147_v16, %s459_s14  ;;  %137 = vrot.lane.b32.xlu0 %v136_v17, %s459_s14  ;;  %v411_v27 = vld [vmem:[%s904_s0 + $0x2] ss:$8 sm:$0xf0]   ;;  %v416_v33 = vld [vmem:[%s904_s0 + $0x6] ss:$8 sm:$0xf0]  }
   0xd   :  { %v180_v29 = vsel %vm92_vm0, %v411_v27, %v410_v26  ;;  %v201_v35 = vsel %vm92_vm0, %v416_v33, %v415_v32  ;;  %v424_v36 = vld [vmem:[%s904_s0 + $0xc2] ss:$8 sm:$0xf]   ;;  %v430_v40 = vld [vmem:[%s904_s0 + $0xc6] ss:$8 sm:$0xf]  }
   0xe   :  { %v425_v37 = vld [vmem:[%s904_s0 + $0xc2] ss:$8 sm:$0xf0]   ;;  %v431_v42 = vld [vmem:[%s904_s0 + $0xc6] ss:$8 sm:$0xf0]  }
   0xf   :  { %v421_v38 = vld [vmem:[%s904_s0 + $0x42] ss:$8 sm:$0xf]   ;;  %v234_v41 = vsel %vm92_vm0, %v425_v37, %v424_v36  ;;  %v427_v43 = vld [vmem:[%s904_s0 + $0x46] ss:$8 sm:$0xf]   ;;  %v256_v53 = vsel %vm92_vm0, %v431_v42, %v430_v40 }
  0x10   :  { %170 = vrot.lane.b32.xlu1 %v169_v22, %s459_s14  ;;  %159 = vrot.lane.b32.xlu0 %v158_v23, %s459_s14  ;;  %v422_v39 = vld [vmem:[%s904_s0 + $0x42] ss:$8 sm:$0xf0]   ;;  %v428_v45 = vld [vmem:[%s904_s0 + $0x46] ss:$8 sm:$0xf0]  }
  0x11   :  { %v223_v44 = vsel %vm92_vm0, %v422_v39, %v421_v38  ;;  %v367_v46 = vld [vmem:[%s904_s0 + $0x80] ss:$4 sm:$0xff]   ;;  %v245_v55 = vsel %vm92_vm0, %v428_v45, %v427_v43  ;;  %v435_v56 = vld [vmem:[%s904_s0 + $0x81] ss:$8 sm:$0xf]   ;;  %s461_s25 = smov 32  }
  0x12   :  { %368 = vst.msk [vmem:[%s905_s1 + $0x20] ss:$8 sm:$0x3] %vm3_vm1, %v367_v46   ;;  %369 = vst.msk [vmem:[%s905_s1 + $0x11] ss:$8 sm:$0xc] %vm3_vm1, %v367_v46  }
  0x13   :  { %370 = vst.msk [vmem:[%s905_s1 + $0x2] ss:$8 sm:$0x30] %vm3_vm1, %v367_v46   ;;  %371 = vst.msk [vmem:[%s905_s1 - $0xd] ss:$8 sm:$0xc0] %vm3_vm1, %v367_v46  }
  0x14   :  { %191 = vrot.lane.b32.xlu1 %v190_v28, %s460_s26  ;;  %181 = vrot.lane.b32.xlu0 %v180_v29, %s460_s26  ;;  %v372_v47 = vld [vmem:[%s904_s0 + $0xa0] ss:$4 sm:$0xff]   ;;  %v436_v57 = vld [vmem:[%s904_s0 + $0x81] ss:$8 sm:$0xf0]   ;;  %vm270_vm4 = vcmask 523520  }
  0x15   :  { %v2_v48 = vld [vmem:[%s904_s0] ss:$4 sm:$0xff]   ;;  %373 = vst.msk [vmem:[%s905_s1 + $0x24] ss:$8 sm:$0x3] %vm3_vm1, %v372_v47   ;;  %v277_v60 = vsel %vm92_vm0, %v436_v57, %v435_v56 }
  0x16   :  { %v352_v49 = vld [vmem:[%s904_s0 + $0x20] ss:$4 sm:$0xff]   ;;  %374 = vst.msk [vmem:[%s905_s1 + $0x15] ss:$8 sm:$0xc] %vm3_vm1, %v372_v47  }
  0x17   :  { %375 = vst.msk [vmem:[%s905_s1 + $0x6] ss:$8 sm:$0x30] %vm3_vm1, %v372_v47   ;;  %376 = vst.msk [vmem:[%s905_s1 - $0x9] ss:$8 sm:$0xc0] %vm3_vm1, %v372_v47  }
  0x18   :  { %213 = vrot.lane.b32.xlu1 %v212_v34, %s460_s26  ;;  %202 = vrot.lane.b32.xlu0 %v201_v35, %s460_s26  ;;  %4 = vst.msk [vmem:[%s905_s1] ss:$8 sm:$0x3] %vm3_vm1, %v2_v48   ;;  %349 = vst.msk [vmem:[%s905_s1 - $0xf] ss:$8 sm:$0xc] %vm3_vm1, %v2_v48  }
  0x19   :  { %350 = vst.msk [vmem:[%s905_s1 - $0x1e] ss:$8 sm:$0x30] %vm3_vm1, %v2_v48   ;;  %351 = vst.msk [vmem:[%s905_s1 - $0x2d] ss:$8 sm:$0xc0] %vm3_vm1, %v2_v48  }
  0x1a   :  { %353 = vst.msk [vmem:[%s905_s1 + $0x4] ss:$8 sm:$0x3] %vm3_vm1, %v352_v49   ;;  %354 = vst.msk [vmem:[%s905_s1 - $0xb] ss:$8 sm:$0xc] %vm3_vm1, %v352_v49  }
  0x1b   :  { %355 = vst.msk [vmem:[%s905_s1 - $0x1a] ss:$8 sm:$0x30] %vm3_vm1, %v352_v49   ;;  %356 = vst.msk [vmem:[%s905_s1 - $0x29] ss:$8 sm:$0xc0] %vm3_vm1, %v352_v49  }
  0x1c   :  { %235 = vrot.lane.b32.xlu1 %v234_v41, %s460_s26  ;;  %v377_v50 = vld [vmem:[%s904_s0 + $0xc0] ss:$4 sm:$0xff]   ;;  %224 = vrot.lane.b32.xlu0 %v223_v44, %s460_s26  ;;  %v433_v58 = vld [vmem:[%s904_s0 + $0x1] ss:$8 sm:$0xf]  }
  0x1d   :  { %v382_v51 = vld [vmem:[%s904_s0 + $0xe0] ss:$4 sm:$0xff]   ;;  %378 = vst.msk [vmem:[%s905_s1 + $0x30] ss:$8 sm:$0x3] %vm3_vm1, %v377_v50  }
  0x1e   :  { %v357_v52 = vld [vmem:[%s904_s0 + $0x40] ss:$4 sm:$0xff]   ;;  %379 = vst.msk [vmem:[%s905_s1 + $0x21] ss:$8 sm:$0xc] %vm3_vm1, %v377_v50  }
  0x1f   :  { %380 = vst.msk [vmem:[%s905_s1 + $0x12] ss:$8 sm:$0x30] %vm3_vm1, %v377_v50   ;;  %381 = vst.msk [vmem:[%s905_s1 + $0x3] ss:$8 sm:$0xc0] %vm3_vm1, %v377_v50  }
  0x20   :  { %383 = vst.msk [vmem:[%s905_s1 + $0x34] ss:$8 sm:$0x3] %vm3_vm1, %v382_v51   ;;  %384 = vst.msk [vmem:[%s905_s1 + $0x25] ss:$8 sm:$0xc] %vm3_vm1, %v382_v51   ;;  %257 = vrot.lane.b32.xlu1 %v256_v53, %s460_s26  ;;  %246 = vrot.lane.b32.xlu0 %v245_v55, %s460_s26 }
  0x21   :  { %385 = vst.msk [vmem:[%s905_s1 + $0x16] ss:$8 sm:$0x30] %vm3_vm1, %v382_v51   ;;  %386 = vst.msk [vmem:[%s905_s1 + $0x7] ss:$8 sm:$0xc0] %vm3_vm1, %v382_v51  }
  0x22   :  { %358 = vst.msk [vmem:[%s905_s1 + $0x10] ss:$8 sm:$0x3] %vm3_vm1, %v357_v52   ;;  %359 = vst.msk [vmem:[%s905_s1 + $0x1] ss:$8 sm:$0xc] %vm3_vm1, %v357_v52  }
  0x23   :  { %360 = vst.msk [vmem:[%s905_s1 - $0xe] ss:$8 sm:$0x30] %vm3_vm1, %v357_v52   ;;  %361 = vst.msk [vmem:[%s905_s1 - $0x1d] ss:$8 sm:$0xc0] %vm3_vm1, %v357_v52  }
  0x24   :  { %v362_v54 = vld [vmem:[%s904_s0 + $0x60] ss:$4 sm:$0xff]   ;;  %v434_v59 = vld [vmem:[%s904_s0 + $0x1] ss:$8 sm:$0xf0]   ;;  %278 = vrot.lane.b32.xlu1 %v277_v60, %s461_s25 }
  0x25   :  { %363 = vst.msk [vmem:[%s905_s1 + $0x14] ss:$8 sm:$0x3] %vm3_vm1, %v362_v54   ;;  %364 = vst.msk [vmem:[%s905_s1 + $0x5] ss:$8 sm:$0xc] %vm3_vm1, %v362_v54   ;;  %v267_v61 = vsel %vm92_vm0, %v434_v59, %v433_v58 }
  0x26   :  { %365 = vst.msk [vmem:[%s905_s1 - $0xa] ss:$8 sm:$0x30] %vm3_vm1, %v362_v54   ;;  %366 = vst.msk [vmem:[%s905_s1 - $0x19] ss:$8 sm:$0xc0] %vm3_vm1, %v362_v54   ;;  %268 = vrot.lane.b32.xlu0 %v267_v61, %s461_s25 }
  0x27   :  { %v441_v62 = vld [vmem:[%s904_s0 + $0x85] ss:$8 sm:$0xf]   ;;  %v447_v4 = vld [vmem:[%s904_s0 + $0xc1] ss:$8 sm:$0xf]  }
  0x28   :  { %v442_v63 = vld [vmem:[%s904_s0 + $0x85] ss:$8 sm:$0xf0]   ;;  %v448_v5 = vld [vmem:[%s904_s0 + $0xc1] ss:$8 sm:$0xf0]  }
  0x29   :  { %v438_v0 = vld [vmem:[%s904_s0 + $0x5] ss:$8 sm:$0xf]   ;;  %v299_v2 = vsel %vm92_vm0, %v442_v63, %v441_v62  ;;  %v444_v6 = vld [vmem:[%s904_s0 + $0x41] ss:$8 sm:$0xf]   ;;  %v321_v8 = vsel %vm92_vm0, %v448_v5, %v447_v4 }
  0x2a   :  { %v439_v1 = vld [vmem:[%s904_s0 + $0x5] ss:$8 sm:$0xf0]   ;;  %v445_v7 = vld [vmem:[%s904_s0 + $0x41] ss:$8 sm:$0xf0]   ;;  %300 = vrot.lane.b32.xlu1 %v299_v2, %s461_s25 }
  0x2b   :  { %v288_v3 = vsel %vm92_vm0, %v439_v1, %v438_v0  ;;  %v310_v9 = vsel %vm92_vm0, %v445_v7, %v444_v6  ;;  %v453_v10 = vld [vmem:[%s904_s0 + $0xc5] ss:$8 sm:$0xf]  }
  0x2c   :  { %289 = vrot.lane.b32.xlu0 %v288_v3, %s461_s25  ;;  %v454_v11 = vld [vmem:[%s904_s0 + $0xc5] ss:$8 sm:$0xf0]  }
  0x2d   :  { %v450_v12 = vld [vmem:[%s904_s0 + $0x45] ss:$8 sm:$0xf]   ;;  %v343_v14 = vsel %vm92_vm0, %v454_v11, %v453_v10 }
  0x2e   :  { %v451_v13 = vld [vmem:[%s904_s0 + $0x45] ss:$8 sm:$0xf0]   ;;  %322 = vrot.lane.b32.xlu1 %v321_v8, %s461_s25 }
  0x2f   :  { %v332_v15 = vsel %vm92_vm0, %v451_v13, %v450_v12 }
  0x30   :  { %311 = vrot.lane.b32.xlu0 %v310_v9, %s461_s25 }
  0x32   :  { %344 = vrot.lane.b32.xlu1 %v343_v14, %s461_s25 }
  0x34   :  { %333 = vrot.lane.b32.xlu0 %v332_v15, %s461_s25 }
  0x76   :  { %v116_v16 = vpop.permute.xlu1 %115   ;;  %v95_v17 = vpop.permute.xlu0 %94  }
  0x77   :  { %394 = vst.msk [vmem:[%s905_s1 + $0x8] sm:$0xff] %vm96_vm2, %v116_v16   ;;  %97 = vst.msk [vmem:[%s905_s1] sm:$0xff] %vm96_vm2, %v95_v17  }
  0x7a   :  { %v127_v18 = vpop.permute.xlu1 %126   ;;  %v105_v19 = vpop.permute.xlu0 %104  }
  0x7b   :  { %397 = vst.msk [vmem:[%s905_s1 + $0x28] sm:$0xff] %vm96_vm2, %v127_v18   ;;  %391 = vst.msk [vmem:[%s905_s1 + $0x20] sm:$0xff] %vm96_vm2, %v105_v19  }
  0x7e   :  { %v149_v20 = vpop.permute.xlu1 %148   ;;  %v138_v21 = vpop.permute.xlu0 %137  }
  0x7f   :  { %403 = vst.msk [vmem:[%s905_s1 + $0x30] sm:$0xff] %vm96_vm2, %v149_v20   ;;  %400 = vst.msk [vmem:[%s905_s1 + $0x10] sm:$0xff] %vm96_vm2, %v138_v21  }
  0x82   :  { %v171_v22 = vpop.permute.xlu1 %170   ;;  %v160_v23 = vpop.permute.xlu0 %159  }
  0x83   :  { %409 = vst.msk [vmem:[%s905_s1 + $0x38] sm:$0xff] %vm96_vm2, %v171_v22   ;;  %406 = vst.msk [vmem:[%s905_s1 + $0x18] sm:$0xff] %vm96_vm2, %v160_v23  }
  0x86   :  { %v192_v24 = vpop.permute.xlu1 %191   ;;  %v182_v25 = vpop.permute.xlu0 %181  }
  0x87   :  { %414 = vst.msk [vmem:[%s905_s1 + $0x20] sm:$0xff] %vm183_vm3, %v192_v24   ;;  %184 = vst.msk [vmem:[%s905_s1] sm:$0xff] %vm183_vm3, %v182_v25  }
  0x8a   :  { %v214_v26 = vpop.permute.xlu1 %213   ;;  %v203_v27 = vpop.permute.xlu0 %202  }
  0x8b   :  { %420 = vst.msk [vmem:[%s905_s1 + $0x28] sm:$0xff] %vm183_vm3, %v214_v26   ;;  %417 = vst.msk [vmem:[%s905_s1 + $0x8] sm:$0xff] %vm183_vm3, %v203_v27  }
  0x8e   :  { %v236_v28 = vpop.permute.xlu1 %235   ;;  %v225_v29 = vpop.permute.xlu0 %224  }
  0x8f   :  { %426 = vst.msk [vmem:[%s905_s1 + $0x30] sm:$0xff] %vm183_vm3, %v236_v28   ;;  %423 = vst.msk [vmem:[%s905_s1 + $0x10] sm:$0xff] %vm183_vm3, %v225_v29  }
  0x92   :  { %v258_v30 = vpop.permute.xlu1 %257   ;;  %v247_v31 = vpop.permute.xlu0 %246  }
  0x93   :  { %432 = vst.msk [vmem:[%s905_s1 + $0x38] sm:$0xff] %vm183_vm3, %v258_v30   ;;  %429 = vst.msk [vmem:[%s905_s1 + $0x18] sm:$0xff] %vm183_vm3, %v247_v31  }
  0x96   :  { %v279_v32 = vpop.permute.xlu1 %278  }
  0x97   :  { %437 = vst.msk [vmem:[%s905_s1 + $0x20] sm:$0xff] %vm270_vm4, %v279_v32  }
  0x98   :  { %v269_v33 = vpop.permute.xlu0 %268  }
  0x99   :  { %271 = vst.msk [vmem:[%s905_s1] sm:$0xff] %vm270_vm4, %v269_v33  }
  0x9c   :  { %v301_v34 = vpop.permute.xlu1 %300  }
  0x9d   :  { %443 = vst.msk [vmem:[%s905_s1 + $0x28] sm:$0xff] %vm270_vm4, %v301_v34  }
  0x9e   :  { %v290_v35 = vpop.permute.xlu0 %289  }
  0x9f   :  { %440 = vst.msk [vmem:[%s905_s1 + $0x8] sm:$0xff] %vm270_vm4, %v290_v35  }
  0xa0   :  { %v323_v36 = vpop.permute.xlu1 %322  }
  0xa1   :  { %449 = vst.msk [vmem:[%s905_s1 + $0x30] sm:$0xff] %vm270_vm4, %v323_v36  }
  0xa2   :  { %v312_v37 = vpop.permute.xlu0 %311  }
  0xa3   :  { %446 = vst.msk [vmem:[%s905_s1 + $0x10] sm:$0xff] %vm270_vm4, %v312_v37  }
  0xa4   :  { %v345_v38 = vpop.permute.xlu1 %344  }
  0xa5   :  { %455 = vst.msk [vmem:[%s905_s1 + $0x38] sm:$0xff] %vm270_vm4, %v345_v38  }
  0xa6   :  { %v334_v39 = vpop.permute.xlu0 %333  }
  0xa7   :  { %452 = vst.msk [vmem:[%s905_s1 + $0x18] sm:$0xff] %vm270_vm4, %v334_v39  }

// kernel: tile.103
= control target key start
LH: loop header
LB: loop body
LE: loop exit
PB: predicated region body
PF: predicated region fallthrough
CT: control target
= control target key end

     0   :  { %s22_s0 = inlined_call_operand.vmem [shape: f32[32], index: 0, kind: input, shape index: {}]   ;;  %s23_s1 = inlined_call_operand.vmem [shape: f32[8,32], index: 1, kind: output, shape index: {}]  }
   0x1   :  { %v4_v0 = vld [vmem:[%s22_s0] ss:$0 sm:$0xff] }
   0x2   :  { %5 = vst [vmem:[%s23_s1] sm:$0xff] %v4_v0 }

// kernel: tile.104
= control target key start
LH: loop header
LB: loop body
LE: loop exit
PB: predicated region body
PF: predicated region fallthrough
CT: control target
= control target key end

     0   :  { %s7_s6 = smov 3  ;;  %s14_s9 = smov 3  ;;  %vm4_vm0 = vcmask 261120   ;;  %vm11_vm1 = vcmask 1048320   ;;  %vm18_vm2 = vcmask 785920   ;;  %vm25_vm3 = vcmask 523520   ;;  %s79_s0 = inlined_call_operand.vmem [shape: f32[8,32], index: 0, kind: input, shape index: {}]   ;;  %s80_s1 = inlined_call_operand.vmem [shape: f32[1,256], index: 1, kind: output, shape index: {}]  }
   0x1   :  { %v41_v0 = vld [vmem:[%s79_s0 + $0x3] ss:$4 sm:%s7_s6]   ;;  %s48_s10 = smov 96   ;;  %s21_s11 = smov 3  ;;  %v42_v1 = vld [vmem:[%s79_s0 + $0x2] ss:$4 sm:%s14_s9]  }
   0x2   :  { %9 = vrot.lane.b32.xlu0 %v41_v0, %s48_s10  ;;  %v43_v2 = vld [vmem:[%s79_s0 + $0x1] ss:$4 sm:%s21_s11]   ;;  %s2_s16 = smov 3  ;;  %s49_s17 = smov 32  }
   0x3   :  { %23 = vrot.lane.b32.xlu1 %v43_v2, %s49_s17  ;;  %v3_v3 = vld [vmem:[%s79_s0] ss:$4 sm:%s2_s16]   ;;  %s50_s0 = smov 64  }
   0x4   :  { %5 = vst.msk [vmem:[#allocation0] ss:$8 sm:$0x3] %vm4_vm0, %v3_v3  }
   0x6   :  { %16 = vrot.lane.b32.xlu0 %v42_v1, %s50_s0 }
  0x74   :  { %v10_v4 = vpop.permute.xlu0 %9  }
  0x75   :  { %12 = vst.msk [vmem:[#allocation0] ss:$8 sm:$0x3] %vm11_vm1, %v10_v4   ;;  %v24_v5 = vpop.permute.xlu1 %23  }
  0x78   :  { %v17_v6 = vpop.permute.xlu0 %16  }
  0x79   :  { %19 = vst.msk [vmem:[#allocation0] ss:$8 sm:$0x3] %vm18_vm2, %v17_v6  }
  0x7a   :  { %26 = vst.msk [vmem:[#allocation0] ss:$8 sm:$0x3] %vm25_vm3, %v24_v5  }
  0x81   :  { %v31_v7 = vld [vmem:[#allocation0] sm:$0x1]  ;;  %v36_v8 = vld [vmem:[#allocation0 + $0x8] sm:$0x1] }
  0x82   :  { %34 = vst [vmem:[%s80_s1] sm:$0x1] %v31_v7  ;;  %44 = vst [vmem:[%s80_s1 + $0x1] sm:$0x1] %v36_v8 }

// kernel: discriminator_forward.6
= control target key start
LH: loop header
LB: loop body
LE: loop exit
PB: predicated region body
PF: predicated region fallthrough
CT: control target
= control target key end

     0   :  { %vm2817_vm0 = vcmask 261120   ;;  %s5403_s1 = inlined_call_operand.vmem [shape: bf16[2,640,256], index: 1, kind: input, shape index: {}]   ;;  %s5404_s0 = inlined_call_operand.vmem [shape: bf16[2,9,640], index: 0, kind: input, shape index: {}]   ;;  %s5405_s2 = inlined_call_operand.vmem [shape: f32[256,32], index: 2, kind: input, shape index: {}]   ;;  %s5406_s3 = inlined_call_operand.vmem [shape: f32[32,256], index: 3, kind: input, shape index: {}]   ;;  %s5407_s4 = inlined_call_operand.vmem [shape: f32[1,256], index: 4, kind: input, shape index: {}]   ;;  %s5408_s5 = inlined_call_operand.vmem [shape: f32[1,256], index: 5, kind: input, shape index: {}]   ;;  %s5409_s6 = inlined_call_operand.vmem [shape: bf16[16,256], index: 6, kind: output, shape index: {}]  }
   0x1   :  { %v3646_v0 = vld [vmem:[%s5403_s1 + $0x2f4] ss:$8 sps:$4 sm:$0xff]   ;;  %v3650_v2 = vld [vmem:[%s5403_s1 + $0x2f0] ss:$8 sps:$4 sm:$0xff]   ;;  %v3652_v4 = vld [vmem:[%s5403_s1 + $0x2e4] ss:$8 sps:$4 sm:$0xff]  }
   0x2   :  { %v3648_v1 = vld [vmem:[%s5403_s1 + $0x3f4] ss:$8 sps:$4 sm:$0xff]   ;;  %652 = vmatprep.subr.bf16.mxu0 %v3646_v0  ;;  %v3651_v3 = vld [vmem:[%s5403_s1 + $0x3f0] ss:$8 sps:$4 sm:$0xff]   ;;  %v3654_v5 = vld [vmem:[%s5403_s1 + $0x3e4] ss:$8 sps:$4 sm:$0xff]  }
   0x3   :  { %693 = vmatprep.subr.bf16.mxu1 %v3648_v1  ;;  %653 = vmatpush1.bf16.msra.mxu0 %v3650_v2  ;;  %v3656_v6 = vld [vmem:[%s5403_s1 + $0x2e0] ss:$8 sps:$4 sm:$0xff]   ;;  %v3658_v8 = vld [vmem:[%s5403_s1 + $0x2d4] ss:$8 sps:$4 sm:$0xff]   ;;  %v3662_v10 = vld [vmem:[%s5403_s1 + $0x2d0] ss:$8 sps:$4 sm:$0xff]  }
   0x4   :  { %694 = vmatpush1.bf16.msra.mxu1 %v3651_v3  ;;  %654 = vmatprep.subr.bf16.mxu0 %v3652_v4  ;;  %v3657_v7 = vld [vmem:[%s5403_s1 + $0x3e0] ss:$8 sps:$4 sm:$0xff]   ;;  %v3660_v9 = vld [vmem:[%s5403_s1 + $0x3d4] ss:$8 sps:$4 sm:$0xff]   ;;  %v3663_v11 = vld [vmem:[%s5403_s1 + $0x3d0] ss:$8 sps:$4 sm:$0xff]  }
   0x5   :  { %695 = vmatprep.subr.bf16.mxu1 %v3654_v5  ;;  %v3664_v12 = vld [vmem:[%s5403_s1 + $0x2c4] ss:$8 sps:$4 sm:$0xff]   ;;  %v3668_v14 = vld [vmem:[%s5403_s1 + $0x2c0] ss:$8 sps:$4 sm:$0xff]   ;;  %v3670_v16 = vld [vmem:[%s5403_s1 + $0x2b4] ss:$8 sps:$4 sm:$0xff]  }
   0x6   :  { %v3666_v13 = vld [vmem:[%s5403_s1 + $0x3c4] ss:$8 sps:$4 sm:$0xff]   ;;  %v3669_v15 = vld [vmem:[%s5403_s1 + $0x3c0] ss:$8 sps:$4 sm:$0xff]   ;;  %v3672_v17 = vld [vmem:[%s5403_s1 + $0x3b4] ss:$8 sps:$4 sm:$0xff]  }
   0x7   :  { %655 = vmatpush1.bf16.msra.mxu0 %v3656_v6  ;;  %v3674_v18 = vld [vmem:[%s5403_s1 + $0x2b0] ss:$8 sps:$4 sm:$0xff]   ;;  %v3676_v20 = vld [vmem:[%s5403_s1 + $0x2a4] ss:$8 sps:$4 sm:$0xff]   ;;  %v3680_v22 = vld [vmem:[%s5403_s1 + $0x2a0] ss:$8 sps:$4 sm:$0xff]  }
   0x8   :  { %696 = vmatpush1.bf16.msra.mxu1 %v3657_v7  ;;  %656 = vmatprep.subr.bf16.mxu0 %v3658_v8  ;;  %v3675_v19 = vld [vmem:[%s5403_s1 + $0x3b0] ss:$8 sps:$4 sm:$0xff]   ;;  %v3678_v21 = vld [vmem:[%s5403_s1 + $0x3a4] ss:$8 sps:$4 sm:$0xff]   ;;  %v3681_v23 = vld [vmem:[%s5403_s1 + $0x3a0] ss:$8 sps:$4 sm:$0xff]  }
   0x9   :  { %697 = vmatprep.subr.bf16.mxu1 %v3660_v9  ;;  %v3682_v24 = vld [vmem:[%s5403_s1 + $0x294] ss:$8 sps:$4 sm:$0xff]   ;;  %v3686_v26 = vld [vmem:[%s5403_s1 + $0x290] ss:$8 sps:$4 sm:$0xff]   ;;  %v3688_v28 = vld [vmem:[%s5403_s1 + $0x284] ss:$8 sps:$4 sm:$0xff]  }
   0xa   :  { %v3684_v25 = vld [vmem:[%s5403_s1 + $0x394] ss:$8 sps:$4 sm:$0xff]   ;;  %v3687_v27 = vld [vmem:[%s5403_s1 + $0x390] ss:$8 sps:$4 sm:$0xff]   ;;  %v3690_v29 = vld [vmem:[%s5403_s1 + $0x384] ss:$8 sps:$4 sm:$0xff]  }
   0xb   :  { %657 = vmatpush1.bf16.msra.mxu0 %v3662_v10  ;;  %v3692_v30 = vld [vmem:[%s5403_s1 + $0x280] ss:$8 sps:$4 sm:$0xff]   ;;  %v3694_v32 = vld [vmem:[%s5403_s1 + $0x374] ss:$8 sps:$4 sm:$0xff]   ;;  %v3698_v34 = vld [vmem:[%s5403_s1 + $0x370] ss:$8 sps:$4 sm:$0xff]  }
   0xc   :  { %698 = vmatpush1.bf16.msra.mxu1 %v3663_v11  ;;  %658 = vmatprep.subr.bf16.mxu0 %v3664_v12  ;;  %v3693_v31 = vld [vmem:[%s5403_s1 + $0x380] ss:$8 sps:$4 sm:$0xff]   ;;  %v3696_v33 = vld [vmem:[%s5403_s1 + $0x474] ss:$8 sps:$4 sm:$0xff]   ;;  %v3699_v35 = vld [vmem:[%s5403_s1 + $0x470] ss:$8 sps:$4 sm:$0xff]  }
   0xd   :  { %699 = vmatprep.subr.bf16.mxu1 %v3666_v13  ;;  %v3700_v36 = vld [vmem:[%s5403_s1 + $0x364] ss:$8 sps:$4 sm:$0xff]   ;;  %v3704_v38 = vld [vmem:[%s5403_s1 + $0x360] ss:$8 sps:$4 sm:$0xff]   ;;  %v3706_v40 = vld [vmem:[%s5403_s1 + $0x354] ss:$8 sps:$4 sm:$0xff]  }
   0xe   :  { %v3702_v37 = vld [vmem:[%s5403_s1 + $0x464] ss:$8 sps:$4 sm:$0xff]   ;;  %v3705_v39 = vld [vmem:[%s5403_s1 + $0x460] ss:$8 sps:$4 sm:$0xff]   ;;  %v3708_v41 = vld [vmem:[%s5403_s1 + $0x454] ss:$8 sps:$4 sm:$0xff]  }
   0xf   :  { %659 = vmatpush1.bf16.msra.mxu0 %v3668_v14  ;;  %v3710_v42 = vld [vmem:[%s5403_s1 + $0x350] ss:$8 sps:$4 sm:$0xff]   ;;  %v3712_v44 = vld [vmem:[%s5403_s1 + $0x344] ss:$8 sps:$4 sm:$0xff]   ;;  %v3716_v46 = vld [vmem:[%s5403_s1 + $0x340] ss:$8 sps:$4 sm:$0xff]  }
  0x10   :  { %700 = vmatpush1.bf16.msra.mxu1 %v3669_v15  ;;  %660 = vmatprep.subr.bf16.mxu0 %v3670_v16  ;;  %v3711_v43 = vld [vmem:[%s5403_s1 + $0x450] ss:$8 sps:$4 sm:$0xff]   ;;  %v3714_v45 = vld [vmem:[%s5403_s1 + $0x444] ss:$8 sps:$4 sm:$0xff]   ;;  %v3717_v47 = vld [vmem:[%s5403_s1 + $0x440] ss:$8 sps:$4 sm:$0xff]  }
  0x11   :  { %701 = vmatprep.subr.bf16.mxu1 %v3672_v17  ;;  %v4335_v48 = vld [vmem:[%s5404_s0] sm:$0xff]  ;;  %v107_v49 = vld [vmem:[%s5404_s0 + $0x14] sm:$0x11]  ;;  %v4343_v50 = vld [vmem:[%s5404_s0 + $0x8] sm:$0xff] }
  0x12   :  { %v108_v51 = vld [vmem:[%s5404_s0 + $0x1c] sm:$0x11]  ;;  %v3142_v53 = vcombine.high %v4335_v48, %v107_v49  ;;  %v3722_v58 = vld [vmem:[%s5403_s1 + $0x330] ss:$8 sps:$4 sm:$0xff]   ;;  %v3724_v62 = vld [vmem:[%s5403_s1 + $0x324] ss:$8 sps:$4 sm:$0xff]   ;;  %v3141_v5 = vcombine.low %v4335_v48, %v107_v49 }
  0x13   :  { %661 = vmatpush1.bf16.msra.mxu0 %v3674_v18  ;;  %v3718_v52 = vld [vmem:[%s5403_s1 + $0x334] ss:$8 sps:$4 sm:$0xff]   ;;  %v3144_v55 = vcombine.high %v4343_v50, %v108_v51  ;;  %v3723_v59 = vld [vmem:[%s5403_s1 + $0x430] ss:$8 sps:$4 sm:$0xff]   ;;  %v3726_v0 = vld [vmem:[%s5403_s1 + $0x424] ss:$8 sps:$4 sm:$0xff]   ;;  %v3143_v6 = vcombine.low %v4343_v50, %v108_v51 }
  0x14   :  { %702 = vmatpush1.bf16.msra.mxu1 %v3675_v19  ;;  %662 = vmatprep.subr.bf16.mxu0 %v3676_v20  ;;  %v3720_v54 = vld [vmem:[%s5403_s1 + $0x434] ss:$8 sps:$4 sm:$0xff]   ;;  %v220_v56 = vshrl.u32 %v3142_v53, 16  ;;  %v222_v57 = vshll.u32 %v3142_v53, 16  ;;  %v3728_v3 = vld [vmem:[%s5403_s1 + $0x320] ss:$8 sps:$4 sm:$0xff]  }
  0x15   :  { %703 = vmatprep.subr.bf16.mxu1 %v3678_v21  ;;  %v234_v60 = vshrl.u32 %v3144_v55, 16  ;;  %v236_v61 = vshll.u32 %v3144_v55, 16  ;;  %v3729_v4 = vld [vmem:[%s5403_s1 + $0x420] ss:$8 sps:$4 sm:$0xff]   ;;  %v3730_v8 = vld [vmem:[%s5403_s1 + $0x314] ss:$8 sps:$4 sm:$0xff]  }
  0x16   :  { %v224_v63 = vrot.slane %v222_v57, 1  ;;  %v3732_v9 = vld [vmem:[%s5403_s1 + $0x414] ss:$8 sps:$4 sm:$0xff]   ;;  %v3734_v10 = vld [vmem:[%s5403_s1 + $0x310] ss:$8 sps:$4 sm:$0xff]   ;;  %v215_v12 = vshll.u32 %v3141_v5, 16 }
  0x17   :  { %663 = vmatpush1.bf16.msra.mxu0 %v3680_v22  ;;  %v238_v1 = vrot.slane %v236_v61, 1  ;;  %v3735_v11 = vld [vmem:[%s5403_s1 + $0x410] ss:$8 sps:$4 sm:$0xff]   ;;  %v229_v13 = vshll.u32 %v3143_v6, 16  ;;  %v3736_v14 = vld [vmem:[%s5403_s1 + $0x304] ss:$8 sps:$4 sm:$0xff]  }
  0x18   :  { %704 = vmatpush1.bf16.msra.mxu1 %v3681_v23  ;;  %664 = vmatprep.subr.bf16.mxu0 %v3682_v24  ;;  %v225_v2 = vor.u32 %v224_v63, %v220_v56  ;;  %v3738_v15 = vld [vmem:[%s5403_s1 + $0x404] ss:$8 sps:$4 sm:$0xff]   ;;  %v3740_v16 = vld [vmem:[%s5403_s1 + $0x300] ss:$8 sps:$4 sm:$0xff]   ;;  %v213_v18 = vshrl.u32 %v3141_v5, 16  ;;  %v217_v19 = vrot.slane %v215_v12, 1 }
  0x19   :  { %705 = vmatprep.subr.bf16.mxu1 %v3684_v25  ;;  %v239_v7 = vor.u32 %v238_v1, %v234_v60  ;;  %v3741_v17 = vld [vmem:[%s5403_s1 + $0x400] ss:$8 sps:$4 sm:$0xff]   ;;  %v227_v20 = vshrl.u32 %v3143_v6, 16  ;;  %v231_v21 = vrot.slane %v229_v13, 1  ;;  %v3748_v22 = vld [vmem:[%s5403_s1 + $0x4f4] ss:$8 sps:$4 sm:$0xff]  }
  0x1a   :  { %684 = vmatprep.mubr.bf16.mxu0 %v225_v2  ;;  %v3751_v23 = vld [vmem:[%s5403_s1 + $0x74] ss:$8 sps:$4 sm:$0xff]   ;;  %v218_v24 = vor.u32 %v217_v19, %v213_v18  ;;  %v3778_v49 = vld [vmem:[%s5403_s1 + $0x4a4] ss:$8 sps:$4 sm:$0xff]   ;;  %v3776_v53 = vld [vmem:[%s5403_s1 + $0x4a0] ss:$8 sps:$4 sm:$0xff]  }
  0x1b   :  { %665 = vmatpush1.bf16.msra.mxu0 %v3686_v26  ;;  %725 = vmatprep.mubr.bf16.mxu1 %v239_v7  ;;  %v232_v25 = vor.u32 %v231_v21, %v227_v20  ;;  %v3746_v26 = vld [vmem:[%s5403_s1 + $0x4f0] ss:$8 sps:$4 sm:$0xff]   ;;  %v3781_v51 = vld [vmem:[%s5403_s1 + $0x24] ss:$8 sps:$4 sm:$0xff]   ;;  %v3784_v55 = vld [vmem:[%s5403_s1 + $0x494] ss:$8 sps:$4 sm:$0xff]  }
  0x1c   :  { %706 = vmatpush1.bf16.msra.mxu1 %v3687_v27  ;;  %666 = vmatprep.subr.bf16.mxu0 %v3688_v28  ;;  %v3749_v27 = vld [vmem:[%s5403_s1 + $0x70] ss:$8 sps:$4 sm:$0xff]   ;;  %v3754_v28 = vld [vmem:[%s5403_s1 + $0x4e4] ss:$8 sps:$4 sm:$0xff]   ;;  %v3787_v56 = vld [vmem:[%s5403_s1 + $0x14] ss:$8 sps:$4 sm:$0xff]  }
  0x1d   :  { %707 = vmatprep.subr.bf16.mxu1 %v3690_v29  ;;  %v3757_v29 = vld [vmem:[%s5403_s1 + $0x64] ss:$8 sps:$4 sm:$0xff]   ;;  %v3791_v1 = vld [vmem:[%s5403_s1] ss:$8 sps:$4 sm:$0xff]   ;;  %v3797_v2 = vld [vmem:[%s5403_s1 + $0xf4] ss:$8 sps:$4 sm:$0xff]  }
  0x1e   :  { %v3790_v60 = vld [vmem:[%s5403_s1 + $0x484] ss:$8 sps:$4 sm:$0xff]   ;;  %v3795_v5 = vld [vmem:[%s5403_s1 + $0xf0] ss:$8 sps:$4 sm:$0xff]   ;;  %v3809_v12 = vld [vmem:[%s5403_s1 + $0xd4] ss:$8 sps:$4 sm:$0xff]  }
  0x1f   :  { %667 = vmatpush1.bf16.msra.mxu0 %v3692_v30  ;;  %v3227_v30 = vcombine.high %v4335_v48, %v4335_v48  ;;  %v3793_v61 = vld [vmem:[%s5403_s1 + $0x4] ss:$8 sps:$4 sm:$0xff]   ;;  %v3798_v6 = vld [vmem:[%s5403_s1 + $0x170] ss:$8 sps:$4 sm:$0xff]   ;;  %v3812_v13 = vld [vmem:[%s5403_s1 + $0x154] ss:$8 sps:$4 sm:$0xff]  }
  0x20   :  { %708 = vmatpush1.bf16.msra.mxu1 %v3693_v31  ;;  %668 = vmatprep.subr.bf16.mxu0 %v3694_v32  ;;  %v3752_v31 = vld [vmem:[%s5403_s1 + $0x4e0] ss:$8 sps:$4 sm:$0xff]   ;;  %v3803_v7 = vld [vmem:[%s5403_s1 + $0xe4] ss:$8 sps:$4 sm:$0xff]   ;;  %v3821_v20 = vld [vmem:[%s5403_s1 + $0xb4] ss:$8 sps:$4 sm:$0xff]  }
  0x21   :  { %709 = vmatprep.subr.bf16.mxu1 %v3696_v33  ;;  %v3755_v32 = vld [vmem:[%s5403_s1 + $0x60] ss:$8 sps:$4 sm:$0xff]   ;;  %v3760_v33 = vld [vmem:[%s5403_s1 + $0x4d4] ss:$8 sps:$4 sm:$0xff]  }
  0x22   :  { %v3813_v18 = vld [vmem:[%s5403_s1 + $0xc0] ss:$8 sps:$4 sm:$0xff]   ;;  %v3824_v21 = vld [vmem:[%s5403_s1 + $0x134] ss:$8 sps:$4 sm:$0xff]  }
  0x23   :  { %669 = vmatpush2.bf16.msra.mxu0 %v3698_v34  ;;  %v3763_v34 = vld [vmem:[%s5403_s1 + $0x54] ss:$8 sps:$4 sm:$0xff]   ;;  %v3816_v19 = vld [vmem:[%s5403_s1 + $0x140] ss:$8 sps:$4 sm:$0xff]  }
  0x24   :  { %710 = vmatpush2.bf16.msra.mxu1 %v3699_v35  ;;  %670 = vmatprep.subr.bf16.mxu0 %v3700_v36  ;;  %v4150_v35 = vmov 0   ;;  %v3758_v36 = vld [vmem:[%s5403_s1 + $0x4d0] ss:$8 sps:$4 sm:$0xff]  }
  0x25   :  { %711 = vmatprep.subr.bf16.mxu1 %v3702_v37  ;;  %v3761_v37 = vld [vmem:[%s5403_s1 + $0x50] ss:$8 sps:$4 sm:$0xff]  }
  0x27   :  { %671 = vmatpush2.bf16.msra.mxu0 %v3704_v38  ;;  %v3766_v38 = vld [vmem:[%s5403_s1 + $0x4c4] ss:$8 sps:$4 sm:$0xff]  }
  0x28   :  { %712 = vmatpush2.bf16.msra.mxu1 %v3705_v39  ;;  %672 = vmatprep.subr.bf16.mxu0 %v3706_v40  ;;  %v3769_v39 = vld [vmem:[%s5403_s1 + $0x44] ss:$8 sps:$4 sm:$0xff]   ;;  %v3764_v40 = vld [vmem:[%s5403_s1 + $0x4c0] ss:$8 sps:$4 sm:$0xff]  }
  0x29   :  { %713 = vmatprep.subr.bf16.mxu1 %v3708_v41  ;;  %v3767_v41 = vld [vmem:[%s5403_s1 + $0x40] ss:$8 sps:$4 sm:$0xff]  }
  0x2b   :  { %673 = vmatpush2.bf16.msra.mxu0 %v3710_v42  ;;  %v3772_v42 = vld [vmem:[%s5403_s1 + $0x4b4] ss:$8 sps:$4 sm:$0xff]  }
  0x2c   :  { %714 = vmatpush2.bf16.msra.mxu1 %v3711_v43  ;;  %674 = vmatprep.subr.bf16.mxu0 %v3712_v44  ;;  %v3775_v43 = vld [vmem:[%s5403_s1 + $0x34] ss:$8 sps:$4 sm:$0xff]   ;;  %v3770_v44 = vld [vmem:[%s5403_s1 + $0x4b0] ss:$8 sps:$4 sm:$0xff]  }
  0x2d   :  { %715 = vmatprep.subr.bf16.mxu1 %v3714_v45  ;;  %v3773_v45 = vld [vmem:[%s5403_s1 + $0x30] ss:$8 sps:$4 sm:$0xff]  }
  0x2f   :  { %675 = vmatpush2.bf16.msra.mxu0 %v3716_v46  ;;  %v4466_v46 = vld [vmem:[%s5404_s0 + $0x10] sm:$0xf] }
  0x30   :  { %716 = vmatpush2.bf16.msra.mxu1 %v3717_v47  ;;  %676 = vmatprep.subr.bf16.mxu0 %v3718_v52  ;;  %v109_v47 = vld [vmem:[%s5404_s0 + $0x24] sm:$0x1] }
  0x31   :  { %717 = vmatprep.subr.bf16.mxu1 %v3720_v54  ;;  %v3145_v52 = vcombine.low %v4466_v46, %v109_v47  ;;  %v3779_v54 = vld [vmem:[%s5403_s1 + $0x20] ss:$8 sps:$4 sm:$0xff]   ;;  %v3862_v47 = vld [vmem:[%s5403_s1 + $0x254] ss:$8 sps:$4 sm:$0xff]  }
  0x33   :  { %677 = vmatpush2.bf16.msra.mxu0 %v3722_v58  ;;  %v243_v57 = vshll.u32 %v3145_v52, 16  ;;  %v3782_v58 = vld [vmem:[%s5403_s1 + $0x490] ss:$8 sps:$4 sm:$0xff]  }
  0x34   :  { %718 = vmatpush2.bf16.msra.mxu1 %v3723_v59  ;;  %678 = vmatprep.subr.bf16.mxu0 %v3724_v62  ;;  %v3785_v59 = vld [vmem:[%s5403_s1 + $0x10] ss:$8 sps:$4 sm:$0xff]   ;;  %v241_v62 = vshrl.u32 %v3145_v52, 16  ;;  %v3865_v52 = vld [vmem:[%s5403_s1 + $0x1c4] ss:$8 sps:$4 sm:$0xff]  }
  0x35   :  { %719 = vmatprep.subr.bf16.mxu1 %v3726_v0  ;;  %v245_v63 = vrot.slane %v243_v57, 1  ;;  %v3788_v0 = vld [vmem:[%s5403_s1 + $0x480] ss:$8 sps:$4 sm:$0xff]   ;;  %v3874_v57 = vld [vmem:[%s5403_s1 + $0x234] ss:$8 sps:$4 sm:$0xff]  }
  0x37   :  { %679 = vmatpush2.bf16.msra.mxu0 %v3728_v3  ;;  %v3800_v3 = vld [vmem:[%s5403_s1 + $0x174] ss:$8 sps:$4 sm:$0xff]  }
  0x38   :  { %720 = vmatpush2.bf16.msra.mxu1 %v3729_v4  ;;  %680 = vmatprep.subr.bf16.mxu0 %v3730_v8  ;;  %v246_v4 = vor.u32 %v245_v63, %v241_v62  ;;  %v3806_v8 = vld [vmem:[%s5403_s1 + $0x164] ss:$8 sps:$4 sm:$0xff]   ;;  %v3875_v62 = vld [vmem:[%s5403_s1 + $0x1a0] ss:$8 sps:$4 sm:$0xff]  }
  0x39   :  { %721 = vmatprep.subr.bf16.mxu1 %v3732_v9  ;;  %v3229_v9 = vcombine.high %v4343_v50, %v4343_v50  ;;  %v3878_v63 = vld [vmem:[%s5403_s1 + $0x220] ss:$8 sps:$4 sm:$0xff]  }
  0x3b   :  { %681 = vmatpush2.bf16.msra.mxu0 %v3734_v10  ;;  %v3801_v10 = vld [vmem:[%s5403_s1 + $0xe0] ss:$8 sps:$4 sm:$0xff]  }
  0x3c   :  { %722 = vmatpush2.bf16.msra.mxu1 %v3735_v11  ;;  %682 = vmatprep.subr.bf16.mxu0 %v3736_v14  ;;  %v3804_v11 = vld [vmem:[%s5403_s1 + $0x160] ss:$8 sps:$4 sm:$0xff]   ;;  %v3807_v14 = vld [vmem:[%s5403_s1 + $0xd0] ss:$8 sps:$4 sm:$0xff]  }
  0x3d   :  { %723 = vmatprep.subr.bf16.mxu1 %v3738_v15  ;;  %v3810_v15 = vld [vmem:[%s5403_s1 + $0x150] ss:$8 sps:$4 sm:$0xff]  }
  0x3f   :  { %683 = vmatpush2.bf16.msra.mxu0 %v3740_v16  ;;  %v3815_v16 = vld [vmem:[%s5403_s1 + $0xc4] ss:$8 sps:$4 sm:$0xff]  }
  0x40   :  { %724 = vmatpush2.bf16.msra.mxu1 %v3741_v17  ;;  %734 = vmatprep.subr.bf16.mxu0 %v3748_v22  ;;  %v3818_v17 = vld [vmem:[%s5403_s1 + $0x144] ss:$8 sps:$4 sm:$0xff]   ;;  %v3819_v22 = vld [vmem:[%s5403_s1 + $0xb0] ss:$8 sps:$4 sm:$0xff]  }
  0x41   :  { %1185 = vmatprep.subr.bf16.mxu1 %v3751_v23  ;;  %v3822_v23 = vld [vmem:[%s5403_s1 + $0x130] ss:$8 sps:$4 sm:$0xff]  }
  0x42   :  { %685 = vmatmul.mubr.bf16.vlgmr.msra.gmra.mxu0 %v218_v24  ;;  %v3827_v24 = vld [vmem:[%s5403_s1 + $0xa4] ss:$8 sps:$4 sm:$0xff]  }
  0x43   :  { %726 = vmatmul.mubr.bf16.vlgmr.msra.gmra.mxu1 %v232_v25  ;;  %735 = vmatpush1.bf16.msra.mxu0 %v3746_v26  ;;  %v3830_v25 = vld [vmem:[%s5403_s1 + $0x124] ss:$8 sps:$4 sm:$0xff]   ;;  %v3825_v26 = vld [vmem:[%s5403_s1 + $0xa0] ss:$8 sps:$4 sm:$0xff]  }
  0x44   :  { %1186 = vmatpush1.bf16.msra.mxu1 %v3749_v27  ;;  %736 = vmatprep.subr.bf16.mxu0 %v3754_v28  ;;  %v3828_v27 = vld [vmem:[%s5403_s1 + $0x120] ss:$8 sps:$4 sm:$0xff]   ;;  %v3833_v28 = vld [vmem:[%s5403_s1 + $0x94] ss:$8 sps:$4 sm:$0xff]  }
  0x45   :  { %1187 = vmatprep.subr.bf16.mxu1 %v3757_v29  ;;  %766 = vmatprep.mubr.bf16.mxu0 %v4150_v35  ;;  %v3836_v29 = vld [vmem:[%s5403_s1 + $0x114] ss:$8 sps:$4 sm:$0xff]  }
  0x46   :  { %1217 = vmatprep.mubr.bf16.mxu1 %v3227_v30  ;;  %v3831_v30 = vld [vmem:[%s5403_s1 + $0x90] ss:$8 sps:$4 sm:$0xff]  }
  0x47   :  { %737 = vmatpush1.bf16.msra.mxu0 %v3752_v31  ;;  %v3834_v31 = vld [vmem:[%s5403_s1 + $0x110] ss:$8 sps:$4 sm:$0xff]  }
  0x48   :  { %1188 = vmatpush1.bf16.msra.mxu1 %v3755_v32  ;;  %738 = vmatprep.subr.bf16.mxu0 %v3760_v33  ;;  %v3839_v32 = vld [vmem:[%s5403_s1 + $0x84] ss:$8 sps:$4 sm:$0xff]  }
  0x49   :  { %1189 = vmatprep.subr.bf16.mxu1 %v3763_v34  ;;  %v3842_v33 = vld [vmem:[%s5403_s1 + $0x104] ss:$8 sps:$4 sm:$0xff]   ;;  %v3837_v34 = vld [vmem:[%s5403_s1 + $0x80] ss:$8 sps:$4 sm:$0xff]  }
  0x4b   :  { %739 = vmatpush1.bf16.msra.mxu0 %v3758_v36  ;;  %v3840_v36 = vld [vmem:[%s5403_s1 + $0x100] ss:$8 sps:$4 sm:$0xff]  }
  0x4c   :  { %1190 = vmatpush1.bf16.msra.mxu1 %v3761_v37  ;;  %740 = vmatprep.subr.bf16.mxu0 %v3766_v38  ;;  %v3847_v37 = vld [vmem:[%s5403_s1 + $0x1f4] ss:$8 sps:$4 sm:$0xff]  }
  0x4d   :  { %1191 = vmatprep.subr.bf16.mxu1 %v3769_v39  ;;  %v3850_v38 = vld [vmem:[%s5403_s1 + $0x274] ss:$8 sps:$4 sm:$0xff]   ;;  %v3226_v39 = vcombine.low %v4335_v48, %v4335_v48  ;;  %v3856_v48 = vld [vmem:[%s5403_s1 + $0x264] ss:$8 sps:$4 sm:$0xff]  }
  0x4f   :  { %741 = vmatpush1.bf16.msra.mxu0 %v3764_v40  ;;  %v3845_v40 = vld [vmem:[%s5403_s1 + $0x1f0] ss:$8 sps:$4 sm:$0xff]  }
  0x50   :  { %1192 = vmatpush1.bf16.msra.mxu1 %v3767_v41  ;;  %742 = vmatprep.subr.bf16.mxu0 %v3772_v42  ;;  %v3848_v41 = vld [vmem:[%s5403_s1 + $0x270] ss:$8 sps:$4 sm:$0xff]   ;;  %v3853_v42 = vld [vmem:[%s5403_s1 + $0x1e4] ss:$8 sps:$4 sm:$0xff]  }
  0x51   :  { %1193 = vmatprep.subr.bf16.mxu1 %v3775_v43  ;;  %v3851_v43 = vld [vmem:[%s5403_s1 + $0x1e0] ss:$8 sps:$4 sm:$0xff]  }
  0x53   :  { %743 = vmatpush1.bf16.msra.mxu0 %v3770_v44  ;;  %v3854_v44 = vld [vmem:[%s5403_s1 + $0x260] ss:$8 sps:$4 sm:$0xff]  }
  0x54   :  { %1194 = vmatpush1.bf16.msra.mxu1 %v3773_v45  ;;  %744 = vmatprep.subr.bf16.mxu0 %v3778_v49  ;;  %v3859_v45 = vld [vmem:[%s5403_s1 + $0x1d4] ss:$8 sps:$4 sm:$0xff]   ;;  %v3857_v49 = vld [vmem:[%s5403_s1 + $0x1d0] ss:$8 sps:$4 sm:$0xff]  }
  0x55   :  { %1195 = vmatprep.subr.bf16.mxu1 %v3781_v51  ;;  %v3860_v51 = vld [vmem:[%s5403_s1 + $0x250] ss:$8 sps:$4 sm:$0xff]  }
  0x57   :  { %745 = vmatpush1.bf16.msra.mxu0 %v3776_v53  ;;  %v3868_v53 = vld [vmem:[%s5403_s1 + $0x244] ss:$8 sps:$4 sm:$0xff]  }
  0x58   :  { %1196 = vmatpush1.bf16.msra.mxu1 %v3779_v54  ;;  %746 = vmatprep.subr.bf16.mxu0 %v3784_v55  ;;  %v3863_v54 = vld [vmem:[%s5403_s1 + $0x1c0] ss:$8 sps:$4 sm:$0xff]  }
  0x59   :  { %1197 = vmatprep.subr.bf16.mxu1 %v3787_v56  ;;  %v3866_v55 = vld [vmem:[%s5403_s1 + $0x240] ss:$8 sps:$4 sm:$0xff]   ;;  %v3871_v56 = vld [vmem:[%s5403_s1 + $0x1b4] ss:$8 sps:$4 sm:$0xff]  }
  0x5b   :  { %747 = vmatpush1.bf16.msra.mxu0 %v3782_v58  ;;  %v3869_v58 = vld [vmem:[%s5403_s1 + $0x1b0] ss:$8 sps:$4 sm:$0xff]  }
  0x5c   :  { %1198 = vmatpush1.bf16.msra.mxu1 %v3785_v59  ;;  %748 = vmatprep.subr.bf16.mxu0 %v3790_v60  ;;  %v3872_v59 = vld [vmem:[%s5403_s1 + $0x230] ss:$8 sps:$4 sm:$0xff]   ;;  %v3877_v60 = vld [vmem:[%s5403_s1 + $0x1a4] ss:$8 sps:$4 sm:$0xff]  }
  0x5d   :  { %1199 = vmatprep.subr.bf16.mxu1 %v3793_v61  ;;  %v3880_v61 = vld [vmem:[%s5403_s1 + $0x224] ss:$8 sps:$4 sm:$0xff]  }
  0x5f   :  { %749 = vmatpush1.bf16.msra.mxu0 %v3788_v0  ;;  %v3883_v0 = vld [vmem:[%s5403_s1 + $0x194] ss:$8 sps:$4 sm:$0xff]  }
  0x60   :  { %1200 = vmatpush1.bf16.msra.mxu1 %v3791_v1  ;;  %1226 = vmatprep.subr.bf16.mxu0 %v3800_v3  ;;  %v3886_v1 = vld [vmem:[%s5403_s1 + $0x214] ss:$8 sps:$4 sm:$0xff]   ;;  %v3884_v3 = vld [vmem:[%s5403_s1 + $0x210] ss:$8 sps:$4 sm:$0xff]  }
  0x61   :  { %1201 = vmatprep.subr.bf16.mxu1 %v3797_v2  ;;  %v3881_v2 = vld [vmem:[%s5403_s1 + $0x190] ss:$8 sps:$4 sm:$0xff]  }
  0x62   :  { %767 = vmatmul.mubr.bf16.vlgmr.msra.gmra.mxu0 %v246_v4  ;;  %v3889_v4 = vld [vmem:[%s5403_s1 + $0x184] ss:$8 sps:$4 sm:$0xff]  }
  0x63   :  { %1227 = vmatpush1.bf16.msra.mxu0 %v3798_v6  ;;  %1258 = vmatprep.mubr.bf16.mxu0 %v3229_v9  ;;  %v4702_v6 = vld [vmem:[%s5404_s0 + $0x28] sm:$0xff] }
  0x64   :  { %1202 = vmatpush2.bf16.msra.mxu1 %v3795_v5  ;;  %1228 = vmatprep.subr.bf16.mxu0 %v3806_v8  ;;  %v3892_v5 = vld [vmem:[%s5403_s1 + $0x204] ss:$8 sps:$4 sm:$0xff]   ;;  %v4712_v8 = vld [vmem:[%s5404_s0 + $0x30] sm:$0xff] }
  0x65   :  { %1203 = vmatprep.subr.bf16.mxu1 %v3803_v7  ;;  %v4707_v7 = vld [vmem:[%s5404_s0 + $0x3c] sm:$0x11]  ;;  %v4717_v9 = vld [vmem:[%s5404_s0 + $0x44] sm:$0x11] }
  0x67   :  { %1229 = vmatpush1.bf16.msra.mxu0 %v3804_v11  ;;  %v3400_v11 = vcombine.high %v4712_v8, %v4717_v9 }
  0x68   :  { %1204 = vmatpush2.bf16.msra.mxu1 %v3801_v10  ;;  %1230 = vmatprep.subr.bf16.mxu0 %v3812_v13  ;;  %v3398_v10 = vcombine.high %v4702_v6, %v4707_v7  ;;  %v3890_v13 = vld [vmem:[%s5403_s1 + $0x200] ss:$8 sps:$4 sm:$0xff]  }
  0x69   :  { %1205 = vmatprep.subr.bf16.mxu1 %v3809_v12  ;;  %v3887_v12 = vld [vmem:[%s5403_s1 + $0x180] ss:$8 sps:$4 sm:$0xff]  }
  0x6b   :  { %1231 = vmatpush1.bf16.msra.mxu0 %v3810_v15  ;;  %v1522_v15 = vshll.u32 %v3400_v11, 16 }
  0x6c   :  { %1206 = vmatpush2.bf16.msra.mxu1 %v3807_v14  ;;  %1232 = vmatprep.subr.bf16.mxu0 %v3818_v17  ;;  %v1508_v14 = vshll.u32 %v3398_v10, 16  ;;  %v3901_v17 = vld [vmem:[%s5403_s1 + $0x3f4] ss:$8 sps:$4 sm:$0xff]  }
  0x6d   :  { %1207 = vmatprep.subr.bf16.mxu1 %v3815_v16  ;;  %v3898_v16 = vld [vmem:[%s5403_s1 + $0x2f4] ss:$8 sps:$4 sm:$0xff]  }
  0x6f   :  { %1233 = vmatpush1.bf16.msra.mxu0 %v3816_v19  ;;  %v1510_v19 = vrot.slane %v1508_v14, 1  ;;  %v3973_v14 = vld [vmem:[%s5403_s1 + $0x434] ss:$8 sps:$4 sm:$0xff]  }
  0x70   :  { %1208 = vmatpush2.bf16.msra.mxu1 %v3813_v18  ;;  %1234 = vmatprep.subr.bf16.mxu0 %v3824_v21  ;;  %v1506_v18 = vshrl.u32 %v3398_v10, 16  ;;  %v1524_v21 = vrot.slane %v1522_v15, 1  ;;  %v3967_v10 = vld [vmem:[%s5403_s1 + $0x444] ss:$8 sps:$4 sm:$0xff]   ;;  %v3968_v15 = vld [vmem:[%s5403_s1 + $0x330] ss:$8 sps:$4 sm:$0xff]  }
  0x71   :  { %1209 = vmatprep.subr.bf16.mxu1 %v3821_v20  ;;  %v1520_v20 = vshrl.u32 %v3400_v11, 16  ;;  %v3962_v11 = vld [vmem:[%s5403_s1 + $0x340] ss:$8 sps:$4 sm:$0xff]  }
  0x73   :  { %1235 = vmatpush1.bf16.msra.mxu0 %v3822_v23  ;;  %v3230_v23 = vcombine.low %v4466_v46, %v4466_v46  ;;  %v1511_v46 = vor.u32 %v1510_v19, %v1506_v18  ;;  %v3979_v18 = vld [vmem:[%s5403_s1 + $0x424] ss:$8 sps:$4 sm:$0xff]   ;;  %v3974_v19 = vld [vmem:[%s5403_s1 + $0x320] ss:$8 sps:$4 sm:$0xff]  }
  0x74   :  { %1210 = vmatpush2.bf16.msra.mxu1 %v3819_v22  ;;  %1236 = vmatprep.subr.bf16.mxu0 %v3830_v25  ;;  %v3228_v22 = vcombine.low %v4343_v50, %v4343_v50  ;;  %v3899_v25 = vld [vmem:[%s5403_s1 + $0x3f0] ss:$8 sps:$4 sm:$0xff]   ;;  %v3907_v50 = vld [vmem:[%s5403_s1 + $0x3e4] ss:$8 sps:$4 sm:$0xff]  }
  0x75   :  { %1211 = vmatprep.subr.bf16.mxu1 %v3827_v24  ;;  %v3896_v24 = vld [vmem:[%s5403_s1 + $0x2f0] ss:$8 sps:$4 sm:$0xff]  }
  0x77   :  { %1237 = vmatpush1.bf16.msra.mxu0 %v3828_v27  ;;  %v1525_v27 = vor.u32 %v1524_v21, %v1520_v20  ;;  %v3977_v20 = vld [vmem:[%s5403_s1 + $0x420] ss:$8 sps:$4 sm:$0xff]   ;;  %v3397_v21 = vcombine.low %v4702_v6, %v4707_v7  ;;  %v3983_v7 = vld [vmem:[%s5403_s1 + $0x410] ss:$8 sps:$4 sm:$0xff]  }
  0x78   :  { %1212 = vmatpush2.bf16.msra.mxu1 %v3825_v26  ;;  %1238 = vmatprep.subr.bf16.mxu0 %v3836_v29  ;;  %v3904_v26 = vld [vmem:[%s5403_s1 + $0x2e4] ss:$8 sps:$4 sm:$0xff]   ;;  %v3905_v29 = vld [vmem:[%s5403_s1 + $0x3e0] ss:$8 sps:$4 sm:$0xff]  }
  0x79   :  { %1213 = vmatprep.subr.bf16.mxu1 %v3833_v28  ;;  %v3902_v28 = vld [vmem:[%s5403_s1 + $0x2e0] ss:$8 sps:$4 sm:$0xff]  }
  0x7b   :  { %1239 = vmatpush1.bf16.msra.mxu0 %v3834_v31  ;;  %v3913_v31 = vld [vmem:[%s5403_s1 + $0x3d4] ss:$8 sps:$4 sm:$0xff]  }
  0x7c   :  { %1214 = vmatpush2.bf16.msra.mxu1 %v3831_v30  ;;  %1240 = vmatprep.subr.bf16.mxu0 %v3842_v33  ;;  %v3910_v30 = vld [vmem:[%s5403_s1 + $0x2d4] ss:$8 sps:$4 sm:$0xff]   ;;  %v3911_v33 = vld [vmem:[%s5403_s1 + $0x3d0] ss:$8 sps:$4 sm:$0xff]  }
  0x7d   :  { %1215 = vmatprep.subr.bf16.mxu1 %v3839_v32  ;;  %v3908_v32 = vld [vmem:[%s5403_s1 + $0x2d0] ss:$8 sps:$4 sm:$0xff]  }
  0x7f   :  { %1241 = vmatpush1.bf16.msra.mxu0 %v3840_v36  ;;  %v3919_v36 = vld [vmem:[%s5403_s1 + $0x3c4] ss:$8 sps:$4 sm:$0xff]  }
  0x80   :  { %1216 = vmatpush2.bf16.msra.mxu1 %v3837_v34  ;;  %1242 = vmatprep.subr.bf16.mxu0 %v3847_v37  ;;  %v3916_v34 = vld [vmem:[%s5403_s1 + $0x2c4] ss:$8 sps:$4 sm:$0xff]   ;;  %v3914_v37 = vld [vmem:[%s5403_s1 + $0x2c0] ss:$8 sps:$4 sm:$0xff]  }
  0x81   :  { %1267 = vmatprep.subr.bf16.mxu1 %v3850_v38  ;;  %v3917_v38 = vld [vmem:[%s5403_s1 + $0x3c0] ss:$8 sps:$4 sm:$0xff]  }
  0x83   :  { %1218 = vmatmul.mubr.bf16.vlgmr.msra.gmra.mxu1 %v3226_v39  ;;  %1243 = vmatpush2.bf16.msra.mxu0 %v3845_v40  ;;  %v3922_v39 = vld [vmem:[%s5403_s1 + $0x2b4] ss:$8 sps:$4 sm:$0xff]  }
  0x84   :  { %1268 = vmatpush1.bf16.msra.mxu1 %v3848_v41  ;;  %1244 = vmatprep.subr.bf16.mxu0 %v3853_v42  ;;  %v3925_v40 = vld [vmem:[%s5403_s1 + $0x3b4] ss:$8 sps:$4 sm:$0xff]   ;;  %v3920_v41 = vld [vmem:[%s5403_s1 + $0x2b0] ss:$8 sps:$4 sm:$0xff]  }
  0x85   :  { %1269 = vmatprep.subr.bf16.mxu1 %v3856_v48  ;;  %1299 = vmatprep.mubr.bf16.mxu1 %v4150_v35  ;;  %v3923_v42 = vld [vmem:[%s5403_s1 + $0x3b0] ss:$8 sps:$4 sm:$0xff]   ;;  %v3928_v48 = vld [vmem:[%s5403_s1 + $0x2a4] ss:$8 sps:$4 sm:$0xff]  }
  0x87   :  { %1245 = vmatpush2.bf16.msra.mxu0 %v3851_v43  ;;  %v3931_v43 = vld [vmem:[%s5403_s1 + $0x3a4] ss:$8 sps:$4 sm:$0xff]  }
  0x88   :  { %1270 = vmatpush1.bf16.msra.mxu1 %v3854_v44  ;;  %1246 = vmatprep.subr.bf16.mxu0 %v3859_v45  ;;  %v3926_v44 = vld [vmem:[%s5403_s1 + $0x2a0] ss:$8 sps:$4 sm:$0xff]  }
  0x89   :  { %1271 = vmatprep.subr.bf16.mxu1 %v3862_v47  ;;  %v3929_v45 = vld [vmem:[%s5403_s1 + $0x3a0] ss:$8 sps:$4 sm:$0xff]   ;;  %v3934_v47 = vld [vmem:[%s5403_s1 + $0x294] ss:$8 sps:$4 sm:$0xff]  }
  0x8b   :  { %1247 = vmatpush2.bf16.msra.mxu0 %v3857_v49  ;;  %v3937_v49 = vld [vmem:[%s5403_s1 + $0x394] ss:$8 sps:$4 sm:$0xff]  }
  0x8c   :  { %1272 = vmatpush1.bf16.msra.mxu1 %v3860_v51  ;;  %1248 = vmatprep.subr.bf16.mxu0 %v3865_v52  ;;  %v3932_v51 = vld [vmem:[%s5403_s1 + $0x290] ss:$8 sps:$4 sm:$0xff]  }
  0x8d   :  { %1273 = vmatprep.subr.bf16.mxu1 %v3868_v53  ;;  %v3935_v52 = vld [vmem:[%s5403_s1 + $0x390] ss:$8 sps:$4 sm:$0xff]   ;;  %v3940_v53 = vld [vmem:[%s5403_s1 + $0x284] ss:$8 sps:$4 sm:$0xff]  }
  0x8f   :  { %1249 = vmatpush2.bf16.msra.mxu0 %v3863_v54  ;;  %v3943_v54 = vld [vmem:[%s5403_s1 + $0x384] ss:$8 sps:$4 sm:$0xff]  }
  0x90   :  { %1274 = vmatpush1.bf16.msra.mxu1 %v3866_v55  ;;  %1250 = vmatprep.subr.bf16.mxu0 %v3871_v56  ;;  %v3938_v55 = vld [vmem:[%s5403_s1 + $0x280] ss:$8 sps:$4 sm:$0xff]  }
  0x91   :  { %1275 = vmatprep.subr.bf16.mxu1 %v3874_v57  ;;  %v3941_v56 = vld [vmem:[%s5403_s1 + $0x380] ss:$8 sps:$4 sm:$0xff]   ;;  %v3946_v57 = vld [vmem:[%s5403_s1 + $0x374] ss:$8 sps:$4 sm:$0xff]  }
  0x93   :  { %1251 = vmatpush2.bf16.msra.mxu0 %v3869_v58  ;;  %v3949_v58 = vld [vmem:[%s5403_s1 + $0x474] ss:$8 sps:$4 sm:$0xff]  }
  0x94   :  { %1276 = vmatpush1.bf16.msra.mxu1 %v3872_v59  ;;  %1252 = vmatprep.subr.bf16.mxu0 %v3877_v60  ;;  %v3944_v59 = vld [vmem:[%s5403_s1 + $0x370] ss:$8 sps:$4 sm:$0xff]  }
  0x95   :  { %1277 = vmatprep.subr.bf16.mxu1 %v3880_v61  ;;  %v3947_v60 = vld [vmem:[%s5403_s1 + $0x470] ss:$8 sps:$4 sm:$0xff]   ;;  %v3952_v61 = vld [vmem:[%s5403_s1 + $0x364] ss:$8 sps:$4 sm:$0xff]  }
  0x97   :  { %1253 = vmatpush2.bf16.msra.mxu0 %v3875_v62  ;;  %v3955_v62 = vld [vmem:[%s5403_s1 + $0x464] ss:$8 sps:$4 sm:$0xff]  }
  0x98   :  { %1278 = vmatpush1.bf16.msra.mxu1 %v3878_v63  ;;  %1254 = vmatprep.subr.bf16.mxu0 %v3883_v0  ;;  %v3950_v63 = vld [vmem:[%s5403_s1 + $0x360] ss:$8 sps:$4 sm:$0xff]  }
  0x99   :  { %1279 = vmatprep.subr.bf16.mxu1 %v3886_v1  ;;  %v3953_v0 = vld [vmem:[%s5403_s1 + $0x460] ss:$8 sps:$4 sm:$0xff]   ;;  %v3958_v1 = vld [vmem:[%s5403_s1 + $0x354] ss:$8 sps:$4 sm:$0xff]  }
  0x9b   :  { %1255 = vmatpush2.bf16.msra.mxu0 %v3881_v2  ;;  %v3961_v2 = vld [vmem:[%s5403_s1 + $0x454] ss:$8 sps:$4 sm:$0xff]  }
  0x9c   :  { %1280 = vmatpush1.bf16.msra.mxu1 %v3884_v3  ;;  %1256 = vmatprep.subr.bf16.mxu0 %v3889_v4  ;;  %v3956_v3 = vld [vmem:[%s5403_s1 + $0x350] ss:$8 sps:$4 sm:$0xff]  }
  0x9d   :  { %1281 = vmatprep.subr.bf16.mxu1 %v3892_v5  ;;  %v3959_v4 = vld [vmem:[%s5403_s1 + $0x450] ss:$8 sps:$4 sm:$0xff]   ;;  %v3964_v5 = vld [vmem:[%s5403_s1 + $0x344] ss:$8 sps:$4 sm:$0xff]  }
  0x9f   :  { %1257 = vmatpush2.bf16.msra.mxu0 %v3887_v12  ;;  %v3965_v12 = vld [vmem:[%s5403_s1 + $0x440] ss:$8 sps:$4 sm:$0xff]  }
  0xa0   :  { %1282 = vmatpush1.bf16.msra.mxu1 %v3890_v13  ;;  %1938 = vmatprep.subr.bf16.mxu0 %v3898_v16  ;;  %v3970_v13 = vld [vmem:[%s5403_s1 + $0x334] ss:$8 sps:$4 sm:$0xff]   ;;  %v3971_v16 = vld [vmem:[%s5403_s1 + $0x430] ss:$8 sps:$4 sm:$0xff]  }
  0xa1   :  { %1979 = vmatprep.subr.bf16.mxu1 %v3901_v17  ;;  %v3976_v17 = vld [vmem:[%s5403_s1 + $0x324] ss:$8 sps:$4 sm:$0xff]  }
  0xa2   :  { %1259 = vmatmul.mubr.bf16.vlgmr.msra.gmra.mxu0 %v3228_v22  ;;  %v3399_v22 = vcombine.low %v4712_v8, %v4717_v9  ;;  %v1501_v9 = vshll.u32 %v3397_v21, 16 }
  0xa3   :  { %1300 = vmatmul.mubr.bf16.vlgmr.msra.gmra.mxu1 %v3230_v23  ;;  %1939 = vmatpush1.bf16.msra.mxu0 %v3896_v24  ;;  %v3982_v23 = vld [vmem:[%s5403_s1 + $0x314] ss:$8 sps:$4 sm:$0xff]  }
  0xa4   :  { %1980 = vmatpush1.bf16.msra.mxu1 %v3899_v25  ;;  %1940 = vmatprep.subr.bf16.mxu0 %v3904_v26  ;;  %v3985_v24 = vld [vmem:[%s5403_s1 + $0x414] ss:$8 sps:$4 sm:$0xff]   ;;  %v3980_v25 = vld [vmem:[%s5403_s1 + $0x310] ss:$8 sps:$4 sm:$0xff]   ;;  %v1515_v26 = vshll.u32 %v3399_v22, 16 }
  0xa5   :  { %1981 = vmatprep.subr.bf16.mxu1 %v3907_v50  ;;  %1970 = vmatprep.mubr.bf16.mxu0 %v1511_v46  ;;  %v3988_v50 = vld [vmem:[%s5403_s1 + $0x304] ss:$8 sps:$4 sm:$0xff]  }
  0xa6   :  { %2011 = vmatprep.mubr.bf16.mxu1 %v1525_v27  ;;  %v3991_v46 = vld [vmem:[%s5403_s1 + $0x404] ss:$8 sps:$4 sm:$0xff]   ;;  %v1499_v27 = vshrl.u32 %v3397_v21, 16  ;;  %v4048_v21 = vld [vmem:[%s5403_s1 + $0x170] ss:$8 sps:$4 sm:$0xff]  }
  0xa7   :  { %1941 = vmatpush1.bf16.msra.mxu0 %v3902_v28  ;;  %v1503_v28 = vrot.slane %v1501_v9, 1 }
  0xa8   :  { %1982 = vmatpush1.bf16.msra.mxu1 %v3905_v29  ;;  %1942 = vmatprep.subr.bf16.mxu0 %v3910_v30  ;;  %v1513_v29 = vshrl.u32 %v3399_v22, 16  ;;  %v1517_v30 = vrot.slane %v1515_v26, 1  ;;  %v4053_v22 = vld [vmem:[%s5403_s1 + $0xe4] ss:$8 sps:$4 sm:$0xff]   ;;  %v4051_v26 = vld [vmem:[%s5403_s1 + $0xe0] ss:$8 sps:$4 sm:$0xff]  }
  0xa9   :  { %1983 = vmatprep.subr.bf16.mxu1 %v3913_v31  ;;  %v3986_v31 = vld [vmem:[%s5403_s1 + $0x300] ss:$8 sps:$4 sm:$0xff]  }
  0xab   :  { %1943 = vmatpush1.bf16.msra.mxu0 %v3908_v32  ;;  %v3989_v32 = vld [vmem:[%s5403_s1 + $0x400] ss:$8 sps:$4 sm:$0xff]  }
  0xac   :  { %1984 = vmatpush1.bf16.msra.mxu1 %v3911_v33  ;;  %1944 = vmatprep.subr.bf16.mxu0 %v3916_v34  ;;  %v3998_v33 = vld [vmem:[%s5403_s1 + $0x4f4] ss:$8 sps:$4 sm:$0xff]  }
  0xad   :  { %1985 = vmatprep.subr.bf16.mxu1 %v3919_v36  ;;  %v4001_v34 = vld [vmem:[%s5403_s1 + $0x74] ss:$8 sps:$4 sm:$0xff]   ;;  %v1504_v36 = vor.u32 %v1503_v28, %v1499_v27 }
  0xae   :  { %v4059_v28 = vld [vmem:[%s5403_s1 + $0xd4] ss:$8 sps:$4 sm:$0xff]  }
  0xaf   :  { %1945 = vmatpush1.bf16.msra.mxu0 %v3914_v37  ;;  %v1518_v37 = vor.u32 %v1517_v30, %v1513_v29  ;;  %v4062_v29 = vld [vmem:[%s5403_s1 + $0x154] ss:$8 sps:$4 sm:$0xff]  }
  0xb0   :  { %1986 = vmatpush1.bf16.msra.mxu1 %v3917_v38  ;;  %1946 = vmatprep.subr.bf16.mxu0 %v3922_v39  ;;  %v3996_v38 = vld [vmem:[%s5403_s1 + $0x4f0] ss:$8 sps:$4 sm:$0xff]  }
  0xb1   :  { %1987 = vmatprep.subr.bf16.mxu1 %v3925_v40  ;;  %v3999_v39 = vld [vmem:[%s5403_s1 + $0x70] ss:$8 sps:$4 sm:$0xff]   ;;  %v4004_v40 = vld [vmem:[%s5403_s1 + $0x4e4] ss:$8 sps:$4 sm:$0xff]  }
  0xb3   :  { %1947 = vmatpush1.bf16.msra.mxu0 %v3920_v41  ;;  %v4007_v41 = vld [vmem:[%s5403_s1 + $0x64] ss:$8 sps:$4 sm:$0xff]  }
  0xb4   :  { %1988 = vmatpush1.bf16.msra.mxu1 %v3923_v42  ;;  %1948 = vmatprep.subr.bf16.mxu0 %v3928_v48  ;;  %v3483_v42 = vcombine.high %v4702_v6, %v4702_v6  ;;  %v4002_v48 = vld [vmem:[%s5403_s1 + $0x4e0] ss:$8 sps:$4 sm:$0xff]  }
  0xb5   :  { %1989 = vmatprep.subr.bf16.mxu1 %v3931_v43  ;;  %v4005_v43 = vld [vmem:[%s5403_s1 + $0x60] ss:$8 sps:$4 sm:$0xff]  }
  0xb7   :  { %1949 = vmatpush1.bf16.msra.mxu0 %v3926_v44  ;;  %v4010_v44 = vld [vmem:[%s5403_s1 + $0x4d4] ss:$8 sps:$4 sm:$0xff]  }
  0xb8   :  { %1990 = vmatpush1.bf16.msra.mxu1 %v3929_v45  ;;  %1950 = vmatprep.subr.bf16.mxu0 %v3934_v47  ;;  %v4013_v45 = vld [vmem:[%s5403_s1 + $0x54] ss:$8 sps:$4 sm:$0xff]   ;;  %v4008_v47 = vld [vmem:[%s5403_s1 + $0x4d0] ss:$8 sps:$4 sm:$0xff]  }
  0xb9   :  { %1991 = vmatprep.subr.bf16.mxu1 %v3937_v49  ;;  %v4011_v49 = vld [vmem:[%s5403_s1 + $0x50] ss:$8 sps:$4 sm:$0xff]  }
  0xbb   :  { %1951 = vmatpush1.bf16.msra.mxu0 %v3932_v51  ;;  %v4016_v51 = vld [vmem:[%s5403_s1 + $0x4c4] ss:$8 sps:$4 sm:$0xff]  }
  0xbc   :  { %1992 = vmatpush1.bf16.msra.mxu1 %v3935_v52  ;;  %1952 = vmatprep.subr.bf16.mxu0 %v3940_v53  ;;  %v4019_v52 = vld [vmem:[%s5403_s1 + $0x44] ss:$8 sps:$4 sm:$0xff]   ;;  %v4014_v53 = vld [vmem:[%s5403_s1 + $0x4c0] ss:$8 sps:$4 sm:$0xff]  }
  0xbd   :  { %1993 = vmatprep.subr.bf16.mxu1 %v3943_v54  ;;  %v4017_v54 = vld [vmem:[%s5403_s1 + $0x40] ss:$8 sps:$4 sm:$0xff]  }
  0xbf   :  { %1953 = vmatpush1.bf16.msra.mxu0 %v3938_v55  ;;  %v4022_v55 = vld [vmem:[%s5403_s1 + $0x4b4] ss:$8 sps:$4 sm:$0xff]  }
  0xc0   :  { %1994 = vmatpush1.bf16.msra.mxu1 %v3941_v56  ;;  %1954 = vmatprep.subr.bf16.mxu0 %v3946_v57  ;;  %v4025_v56 = vld [vmem:[%s5403_s1 + $0x34] ss:$8 sps:$4 sm:$0xff]   ;;  %v4020_v57 = vld [vmem:[%s5403_s1 + $0x4b0] ss:$8 sps:$4 sm:$0xff]  }
  0xc1   :  { %1995 = vmatprep.subr.bf16.mxu1 %v3949_v58  ;;  %v4023_v58 = vld [vmem:[%s5403_s1 + $0x30] ss:$8 sps:$4 sm:$0xff]  }
  0xc3   :  { %1955 = vmatpush2.bf16.msra.mxu0 %v3944_v59  ;;  %v4995_v59 = vld [vmem:[%s5404_s0 + $0x38] sm:$0xf] }
  0xc4   :  { %1996 = vmatpush2.bf16.msra.mxu1 %v3947_v60  ;;  %1956 = vmatprep.subr.bf16.mxu0 %v3952_v61  ;;  %v3316_v60 = vld [vmem:[%s5404_s0 + $0x4c] sm:$0x1] }
  0xc5   :  { %1997 = vmatprep.subr.bf16.mxu1 %v3955_v62  ;;  %v4028_v61 = vld [vmem:[%s5403_s1 + $0x4a4] ss:$8 sps:$4 sm:$0xff]  }
  0xc6   :  { %v4031_v62 = vld [vmem:[%s5403_s1 + $0x24] ss:$8 sps:$4 sm:$0xff]  }
  0xc7   :  { %1957 = vmatpush2.bf16.msra.mxu0 %v3950_v63  ;;  %v3401_v63 = vcombine.low %v4995_v59, %v3316_v60  ;;  %v4090_v60 = vld [vmem:[%s5403_s1 + $0x100] ss:$8 sps:$4 sm:$0xff]  }
  0xc8   :  { %1998 = vmatpush2.bf16.msra.mxu1 %v3953_v0  ;;  %1958 = vmatprep.subr.bf16.mxu0 %v3958_v1  ;;  %v4026_v0 = vld [vmem:[%s5403_s1 + $0x4a0] ss:$8 sps:$4 sm:$0xff]  }
  0xc9   :  { %1999 = vmatprep.subr.bf16.mxu1 %v3961_v2  ;;  %v4029_v1 = vld [vmem:[%s5403_s1 + $0x20] ss:$8 sps:$4 sm:$0xff]   ;;  %v4034_v2 = vld [vmem:[%s5403_s1 + $0x494] ss:$8 sps:$4 sm:$0xff]  }
  0xcb   :  { %1959 = vmatpush2.bf16.msra.mxu0 %v3956_v3  ;;  %v4037_v3 = vld [vmem:[%s5403_s1 + $0x14] ss:$8 sps:$4 sm:$0xff]  }
  0xcc   :  { %2000 = vmatpush2.bf16.msra.mxu1 %v3959_v4  ;;  %1960 = vmatprep.subr.bf16.mxu0 %v3964_v5  ;;  %v1529_v4 = vshll.u32 %v3401_v63, 16  ;;  %v4032_v5 = vld [vmem:[%s5403_s1 + $0x490] ss:$8 sps:$4 sm:$0xff]  }
  0xcd   :  { %2001 = vmatprep.subr.bf16.mxu1 %v3967_v10  ;;  %v4035_v10 = vld [vmem:[%s5403_s1 + $0x10] ss:$8 sps:$4 sm:$0xff]  }
  0xcf   :  { %1961 = vmatpush2.bf16.msra.mxu0 %v3962_v11  ;;  %v4040_v11 = vld [vmem:[%s5403_s1 + $0x484] ss:$8 sps:$4 sm:$0xff]  }
  0xd0   :  { %2002 = vmatpush2.bf16.msra.mxu1 %v3965_v12  ;;  %1962 = vmatprep.subr.bf16.mxu0 %v3970_v13  ;;  %v4043_v12 = vld [vmem:[%s5403_s1 + $0x4] ss:$8 sps:$4 sm:$0xff]   ;;  %v1527_v13 = vshrl.u32 %v3401_v63, 16  ;;  %v3482_v63 = vcombine.low %v4702_v6, %v4702_v6 }
  0xd1   :  { %2003 = vmatprep.subr.bf16.mxu1 %v3973_v14  ;;  %v1531_v14 = vrot.slane %v1529_v4, 1  ;;  %v4106_v6 = vld [vmem:[%s5403_s1 + $0x264] ss:$8 sps:$4 sm:$0xff]  }
  0xd3   :  { %1963 = vmatpush2.bf16.msra.mxu0 %v3968_v15  ;;  %v4038_v15 = vld [vmem:[%s5403_s1 + $0x480] ss:$8 sps:$4 sm:$0xff]  }
  0xd4   :  { %2004 = vmatpush2.bf16.msra.mxu1 %v3971_v16  ;;  %1964 = vmatprep.subr.bf16.mxu0 %v3976_v17  ;;  %v4041_v16 = vld [vmem:[%s5403_s1] ss:$8 sps:$4 sm:$0xff]   ;;  %v4047_v17 = vld [vmem:[%s5403_s1 + $0xf4] ss:$8 sps:$4 sm:$0xff]  }
  0xd5   :  { %2005 = vmatprep.subr.bf16.mxu1 %v3979_v18  ;;  %v4050_v18 = vld [vmem:[%s5403_s1 + $0x174] ss:$8 sps:$4 sm:$0xff]  }
  0xd7   :  { %1965 = vmatpush2.bf16.msra.mxu0 %v3974_v19  ;;  %v1532_v19 = vor.u32 %v1531_v14, %v1527_v13  ;;  %v4112_v13 = vld [vmem:[%s5403_s1 + $0x254] ss:$8 sps:$4 sm:$0xff]  }
  0xd8   :  { %2006 = vmatpush2.bf16.msra.mxu1 %v3977_v20  ;;  %1966 = vmatprep.subr.bf16.mxu0 %v3982_v23  ;;  %v4045_v20 = vld [vmem:[%s5403_s1 + $0xf0] ss:$8 sps:$4 sm:$0xff]   ;;  %v4056_v23 = vld [vmem:[%s5403_s1 + $0x164] ss:$8 sps:$4 sm:$0xff]  }
  0xd9   :  { %2007 = vmatprep.subr.bf16.mxu1 %v3985_v24  ;;  %v3485_v24 = vcombine.high %v4712_v8, %v4712_v8 }
  0xdb   :  { %1967 = vmatpush2.bf16.msra.mxu0 %v3980_v25 }
  0xdc   :  { %2008 = vmatpush2.bf16.msra.mxu1 %v3983_v7  ;;  %1968 = vmatprep.subr.bf16.mxu0 %v3988_v50  ;;  %v4054_v50 = vld [vmem:[%s5403_s1 + $0x160] ss:$8 sps:$4 sm:$0xff]  }
  0xdd   :  { %2009 = vmatprep.subr.bf16.mxu1 %v3991_v46 }
  0xdf   :  { %1969 = vmatpush2.bf16.msra.mxu0 %v3986_v31 }
  0xe0   :  { %2010 = vmatpush2.bf16.msra.mxu1 %v3989_v32  ;;  %2020 = vmatprep.subr.bf16.mxu0 %v3998_v33  ;;  %v4057_v33 = vld [vmem:[%s5403_s1 + $0xd0] ss:$8 sps:$4 sm:$0xff]  }
  0xe1   :  { %2471 = vmatprep.subr.bf16.mxu1 %v4001_v34  ;;  %v4060_v34 = vld [vmem:[%s5403_s1 + $0x150] ss:$8 sps:$4 sm:$0xff]  }
  0xe2   :  { %1971 = vmatmul.mubr.bf16.vlgmr.msra.gmra.mxu0 %v1504_v36 }
  0xe3   :  { %2012 = vmatmul.mubr.bf16.vlgmr.msra.gmra.mxu1 %v1518_v37  ;;  %2021 = vmatpush1.bf16.msra.mxu0 %v3996_v38  ;;  %v4065_v38 = vld [vmem:[%s5403_s1 + $0xc4] ss:$8 sps:$4 sm:$0xff]  }
  0xe4   :  { %2472 = vmatpush1.bf16.msra.mxu1 %v3999_v39  ;;  %2022 = vmatprep.subr.bf16.mxu0 %v4004_v40  ;;  %v4068_v39 = vld [vmem:[%s5403_s1 + $0x144] ss:$8 sps:$4 sm:$0xff]   ;;  %v4063_v40 = vld [vmem:[%s5403_s1 + $0xc0] ss:$8 sps:$4 sm:$0xff]  }
  0xe5   :  { %2473 = vmatprep.subr.bf16.mxu1 %v4007_v41  ;;  %2052 = vmatprep.mubr.bf16.mxu0 %v4150_v35  ;;  %v4066_v41 = vld [vmem:[%s5403_s1 + $0x140] ss:$8 sps:$4 sm:$0xff]  }
  0xe6   :  { %2503 = vmatprep.mubr.bf16.mxu1 %v3483_v42  ;;  %v4071_v42 = vld [vmem:[%s5403_s1 + $0xb4] ss:$8 sps:$4 sm:$0xff]  }
  0xe7   :  { %2023 = vmatpush1.bf16.msra.mxu0 %v4002_v48  ;;  %v4074_v48 = vld [vmem:[%s5403_s1 + $0x134] ss:$8 sps:$4 sm:$0xff]  }
  0xe8   :  { %2474 = vmatpush1.bf16.msra.mxu1 %v4005_v43  ;;  %2024 = vmatprep.subr.bf16.mxu0 %v4010_v44  ;;  %v4069_v43 = vld [vmem:[%s5403_s1 + $0xb0] ss:$8 sps:$4 sm:$0xff]  }
  0xe9   :  { %2475 = vmatprep.subr.bf16.mxu1 %v4013_v45  ;;  %v4072_v44 = vld [vmem:[%s5403_s1 + $0x130] ss:$8 sps:$4 sm:$0xff]   ;;  %v4077_v45 = vld [vmem:[%s5403_s1 + $0xa4] ss:$8 sps:$4 sm:$0xff]  }
  0xeb   :  { %2025 = vmatpush1.bf16.msra.mxu0 %v4008_v47  ;;  %v4080_v47 = vld [vmem:[%s5403_s1 + $0x124] ss:$8 sps:$4 sm:$0xff]  }
  0xec   :  { %2476 = vmatpush1.bf16.msra.mxu1 %v4011_v49  ;;  %2026 = vmatprep.subr.bf16.mxu0 %v4016_v51  ;;  %v4075_v49 = vld [vmem:[%s5403_s1 + $0xa0] ss:$8 sps:$4 sm:$0xff]  }
  0xed   :  { %2477 = vmatprep.subr.bf16.mxu1 %v4019_v52  ;;  %v4078_v51 = vld [vmem:[%s5403_s1 + $0x120] ss:$8 sps:$4 sm:$0xff]   ;;  %v4083_v52 = vld [vmem:[%s5403_s1 + $0x94] ss:$8 sps:$4 sm:$0xff]  }
  0xef   :  { %2027 = vmatpush1.bf16.msra.mxu0 %v4014_v53  ;;  %v4086_v53 = vld [vmem:[%s5403_s1 + $0x114] ss:$8 sps:$4 sm:$0xff]  }
  0xf0   :  { %2478 = vmatpush1.bf16.msra.mxu1 %v4017_v54  ;;  %2028 = vmatprep.subr.bf16.mxu0 %v4022_v55  ;;  %v4081_v54 = vld [vmem:[%s5403_s1 + $0x90] ss:$8 sps:$4 sm:$0xff]  }
  0xf1   :  { %2479 = vmatprep.subr.bf16.mxu1 %v4025_v56  ;;  %v4084_v55 = vld [vmem:[%s5403_s1 + $0x110] ss:$8 sps:$4 sm:$0xff]   ;;  %v4089_v56 = vld [vmem:[%s5403_s1 + $0x84] ss:$8 sps:$4 sm:$0xff]  }
  0xf3   :  { %2029 = vmatpush1.bf16.msra.mxu0 %v4020_v57  ;;  %v4092_v57 = vld [vmem:[%s5403_s1 + $0x104] ss:$8 sps:$4 sm:$0xff]  }
  0xf4   :  { %2480 = vmatpush1.bf16.msra.mxu1 %v4023_v58  ;;  %2030 = vmatprep.subr.bf16.mxu0 %v4028_v61  ;;  %v4087_v58 = vld [vmem:[%s5403_s1 + $0x80] ss:$8 sps:$4 sm:$0xff]   ;;  %v4097_v61 = vld [vmem:[%s5403_s1 + $0x1f4] ss:$8 sps:$4 sm:$0xff]  }
  0xf5   :  { %2481 = vmatprep.subr.bf16.mxu1 %v4031_v62  ;;  %v4100_v62 = vld [vmem:[%s5403_s1 + $0x274] ss:$8 sps:$4 sm:$0xff]  }
  0xf7   :  { %2031 = vmatpush1.bf16.msra.mxu0 %v4026_v0  ;;  %v4095_v0 = vld [vmem:[%s5403_s1 + $0x1f0] ss:$8 sps:$4 sm:$0xff]  }
  0xf8   :  { %2482 = vmatpush1.bf16.msra.mxu1 %v4029_v1  ;;  %2032 = vmatprep.subr.bf16.mxu0 %v4034_v2  ;;  %v4098_v1 = vld [vmem:[%s5403_s1 + $0x270] ss:$8 sps:$4 sm:$0xff]   ;;  %v4103_v2 = vld [vmem:[%s5403_s1 + $0x1e4] ss:$8 sps:$4 sm:$0xff]  }
  0xf9   :  { %2483 = vmatprep.subr.bf16.mxu1 %v4037_v3 }
  0xfb   :  { %2033 = vmatpush1.bf16.msra.mxu0 %v4032_v5  ;;  %v4101_v5 = vld [vmem:[%s5403_s1 + $0x1e0] ss:$8 sps:$4 sm:$0xff]  }
  0xfc   :  { %2484 = vmatpush1.bf16.msra.mxu1 %v4035_v10  ;;  %2034 = vmatprep.subr.bf16.mxu0 %v4040_v11  ;;  %v4104_v10 = vld [vmem:[%s5403_s1 + $0x260] ss:$8 sps:$4 sm:$0xff]  }
  0xfd   :  { %2485 = vmatprep.subr.bf16.mxu1 %v4043_v12  ;;  %v4109_v12 = vld [vmem:[%s5403_s1 + $0x1d4] ss:$8 sps:$4 sm:$0xff]  }
  0xff   :  { %2035 = vmatpush1.bf16.msra.mxu0 %v4038_v15 }
 0x100   :  { %2486 = vmatpush1.bf16.msra.mxu1 %v4041_v16  ;;  %2512 = vmatprep.subr.bf16.mxu0 %v4050_v18  ;;  %v4107_v16 = vld [vmem:[%s5403_s1 + $0x1d0] ss:$8 sps:$4 sm:$0xff]  }
 0x101   :  { %2487 = vmatprep.subr.bf16.mxu1 %v4047_v17  ;;  %v4110_v17 = vld [vmem:[%s5403_s1 + $0x250] ss:$8 sps:$4 sm:$0xff]  }
 0x102   :  { %v686_v25 = vpop.f32.mrf.mxu0  ;;  %2053 = vmatmul.mubr.bf16.vlgmr.msra.gmra.mxu0 %v1532_v19  ;;  %v4115_v19 = vld [vmem:[%s5403_s1 + $0x1c4] ss:$8 sps:$4 sm:$0xff]  }
 0x103   :  { %v727_v7 = vpop.f32.mrf.mxu1  ;;  %2513 = vmatpush1.bf16.msra.mxu0 %v4048_v21  ;;  %2544 = vmatprep.mubr.bf16.mxu0 %v3485_v24  ;;  %v4116_v21 = vld [vmem:[%s5403_s1 + $0x240] ss:$8 sps:$4 sm:$0xff]   ;;  %v4119_v24 = vld [vmem:[%s5403_s1 + $0x1b0] ss:$8 sps:$4 sm:$0xff]  }
 0x104   :  { %v5057_v9 = vadd.f32 %v727_v7, %v686_v25  ;;  %2488 = vmatpush2.bf16.msra.mxu1 %v4045_v20  ;;  %v688_v46 = vpop.f32.mrf.mxu0  ;;  %2514 = vmatprep.subr.bf16.mxu0 %v4056_v23  ;;  %v4113_v20 = vld [vmem:[%s5403_s1 + $0x1c0] ss:$8 sps:$4 sm:$0xff]   ;;  %v4124_v23 = vld [vmem:[%s5403_s1 + $0x234] ss:$8 sps:$4 sm:$0xff]   ;;  %v4122_v25 = vld [vmem:[%s5403_s1 + $0x230] ss:$8 sps:$4 sm:$0xff]  }
 0x105   :  { %v729_v27 = vpop.f32.mrf.mxu1  ;;  %2489 = vmatprep.subr.bf16.mxu1 %v4053_v22  ;;  %v4121_v22 = vld [vmem:[%s5403_s1 + $0x1b4] ss:$8 sps:$4 sm:$0xff]   ;;  %v4127_v7 = vld [vmem:[%s5403_s1 + $0x1a4] ss:$8 sps:$4 sm:$0xff]  }
 0x106   :  { %v5071_v30 = vadd.f32 %v729_v27, %v688_v46  ;;  %v690_v31 = vpop.f32.mrf.mxu0  ;;  %v4133_v46 = vld [vmem:[%s5403_s1 + $0x194] ss:$8 sps:$4 sm:$0xff]  }
 0x107   :  { %v731_v32 = vpop.f32.mrf.mxu1  ;;  %2515 = vmatpush1.bf16.msra.mxu0 %v4054_v50  ;;  %v4128_v50 = vld [vmem:[%s5403_s1 + $0x220] ss:$8 sps:$4 sm:$0xff]   ;;  %v4136_v27 = vld [vmem:[%s5403_s1 + $0x214] ss:$8 sps:$4 sm:$0xff]   ;;  %v4142_v31 = vld [vmem:[%s5403_s1 + $0x204] ss:$8 sps:$4 sm:$0xff]  }
 0x108   :  { %2490 = vmatpush2.bf16.msra.mxu1 %v4051_v26  ;;  %v691_v36 = vpop.f32.mrf.mxu0  ;;  %2516 = vmatprep.subr.bf16.mxu0 %v4062_v29  ;;  %v4125_v26 = vld [vmem:[%s5403_s1 + $0x1a0] ss:$8 sps:$4 sm:$0xff]   ;;  %v4134_v29 = vld [vmem:[%s5403_s1 + $0x210] ss:$8 sps:$4 sm:$0xff]  }
 0x109   :  { %v732_v37 = vpop.f32.mrf.mxu1  ;;  %2491 = vmatprep.subr.bf16.mxu1 %v4059_v28  ;;  %v4131_v28 = vld [vmem:[%s5403_s1 + $0x190] ss:$8 sps:$4 sm:$0xff]   ;;  %v4137_v32 = vld [vmem:[%s5403_s1 + $0x180] ss:$8 sps:$4 sm:$0xff]   ;;  %v3486_v36 = vcombine.low %v4995_v59, %v4995_v59 }
 0x10b   :  { %2517 = vmatpush1.bf16.msra.mxu0 %v4060_v34  ;;  %v3484_v34 = vcombine.low %v4712_v8, %v4712_v8 }
 0x10c   :  { %2492 = vmatpush2.bf16.msra.mxu1 %v4057_v33  ;;  %2518 = vmatprep.subr.bf16.mxu0 %v4068_v39  ;;  %v4140_v33 = vld [vmem:[%s5403_s1 + $0x200] ss:$8 sps:$4 sm:$0xff]  }
 0x10d   :  { %2493 = vmatprep.subr.bf16.mxu1 %v4065_v38 }
 0x10f   :  { %2519 = vmatpush1.bf16.msra.mxu0 %v4066_v41 }
 0x110   :  { %2494 = vmatpush2.bf16.msra.mxu1 %v4063_v40  ;;  %2520 = vmatprep.subr.bf16.mxu0 %v4074_v48 }
 0x111   :  { %2495 = vmatprep.subr.bf16.mxu1 %v4071_v42 }
 0x113   :  { %2521 = vmatpush1.bf16.msra.mxu0 %v4072_v44 }
 0x114   :  { %2496 = vmatpush2.bf16.msra.mxu1 %v4069_v43  ;;  %2522 = vmatprep.subr.bf16.mxu0 %v4080_v47 }
 0x115   :  { %2497 = vmatprep.subr.bf16.mxu1 %v4077_v45 }
 0x117   :  { %2523 = vmatpush1.bf16.msra.mxu0 %v4078_v51 }
 0x118   :  { %2498 = vmatpush2.bf16.msra.mxu1 %v4075_v49  ;;  %2524 = vmatprep.subr.bf16.mxu0 %v4086_v53 }
 0x119   :  { %2499 = vmatprep.subr.bf16.mxu1 %v4083_v52 }
 0x11b   :  { %2525 = vmatpush1.bf16.msra.mxu0 %v4084_v55  ;;  %v2645_v55 = vld [vmem:[%s5405_s2 + $0xf8] sm:$0xff] }
 0x11c   :  { %2500 = vmatpush2.bf16.msra.mxu1 %v4081_v54  ;;  %2526 = vmatprep.subr.bf16.mxu0 %v4092_v57  ;;  %v2644_v57 = vld [vmem:[%s5405_s2 + $0xf0] sm:$0xff] }
 0x11d   :  { %2501 = vmatprep.subr.bf16.mxu1 %v4089_v56  ;;  %v2629_v56 = vld [vmem:[%s5405_s2 + $0x78] sm:$0xff] }
 0x11f   :  { %2527 = vmatpush1.bf16.msra.mxu0 %v4090_v60  ;;  %v2643_v60 = vld [vmem:[%s5405_s2 + $0xe8] sm:$0xff] }
 0x120   :  { %2502 = vmatpush2.bf16.msra.mxu1 %v4087_v58  ;;  %2528 = vmatprep.subr.bf16.mxu0 %v4097_v61  ;;  %v2628_v58 = vld [vmem:[%s5405_s2 + $0x70] sm:$0xff]  ;;  %v2627_v61 = vld [vmem:[%s5405_s2 + $0x68] sm:$0xff] }
 0x121   :  { %2553 = vmatprep.subr.bf16.mxu1 %v4100_v62  ;;  %v2642_v62 = vld [vmem:[%s5405_s2 + $0xe0] sm:$0xff] }
 0x122   :  { %v768_v3 = vpop.f32.mrf.mxu0 }
 0x123   :  { %2504 = vmatmul.mubr.bf16.vlgmr.msra.gmra.mxu1 %v3482_v63  ;;  %v5160_v4 = vadd.f32 %v768_v3, %v5057_v9  ;;  %2529 = vmatpush2.bf16.msra.mxu0 %v4095_v0  ;;  %v4130_v9 = vld [vmem:[%s5403_s1 + $0x224] ss:$8 sps:$4 sm:$0xff]   ;;  %v2641_v0 = vld [vmem:[%s5405_s2 + $0xd8] sm:$0xff] }
 0x124   :  { %2554 = vmatpush1.bf16.msra.mxu1 %v4098_v1  ;;  %v770_v11 = vpop.f32.mrf.mxu0  ;;  %2530 = vmatprep.subr.bf16.mxu0 %v4103_v2  ;;  %v2626_v63 = vld [vmem:[%s5405_s2 + $0x60] sm:$0xff]  ;;  %v2625_v1 = vld [vmem:[%s5405_s2 + $0x58] sm:$0xff]  ;;  %v2640_v2 = vld [vmem:[%s5405_s2 + $0xd0] sm:$0xff] }
 0x125   :  { %2555 = vmatprep.subr.bf16.mxu1 %v4106_v6  ;;  %v771_v14 = vadd.f32 %v770_v11, %v5071_v30  ;;  %2585 = vmatprep.mubr.bf16.mxu1 %v4150_v35  ;;  %v4118_v35 = vld [vmem:[%s5403_s1 + $0x244] ss:$8 sps:$4 sm:$0xff]   ;;  %v2624_v6 = vld [vmem:[%s5405_s2 + $0x50] sm:$0xff]  ;;  %v2637_v11 = vld [vmem:[%s5405_s2 + $0xb8] sm:$0xff] }
 0x126   :  { %v772_v15 = vpop.f32.mrf.mxu0  ;;  %v4139_v30 = vld [vmem:[%s5403_s1 + $0x184] ss:$8 sps:$4 sm:$0xff]  }
 0x127   :  { %2531 = vmatpush2.bf16.msra.mxu0 %v4101_v5  ;;  %v2639_v3 = vld [vmem:[%s5405_s2 + $0xc8] sm:$0xff]  ;;  %v2638_v5 = vld [vmem:[%s5405_s2 + $0xc0] sm:$0xff] }
 0x128   :  { %2556 = vmatpush1.bf16.msra.mxu1 %v4104_v10  ;;  %v773_v18 = vpop.f32.mrf.mxu0  ;;  %2532 = vmatprep.subr.bf16.mxu0 %v4109_v12  ;;  %v2622_v10 = vld [vmem:[%s5405_s2 + $0x40] sm:$0xff]  ;;  %v2621_v12 = vld [vmem:[%s5405_s2 + $0x38] sm:$0xff]  ;;  %v2635_v15 = vld [vmem:[%s5405_s2 + $0xa8] sm:$0xff] }
 0x129   :  { %2557 = vmatprep.subr.bf16.mxu1 %v4112_v13  ;;  %v2636_v13 = vld [vmem:[%s5405_s2 + $0xb0] sm:$0xff]  ;;  %v2618_v18 = vld [vmem:[%s5405_s2 + $0x20] sm:$0xff] }
 0x12b   :  { %2533 = vmatpush2.bf16.msra.mxu0 %v4107_v16  ;;  %v2619_v16 = vld [vmem:[%s5405_s2 + $0x28] sm:$0xff] }
 0x12c   :  { %2558 = vmatpush1.bf16.msra.mxu1 %v4110_v17  ;;  %2534 = vmatprep.subr.bf16.mxu0 %v4115_v19  ;;  %v2634_v17 = vld [vmem:[%s5405_s2 + $0xa0] sm:$0xff]  ;;  %v2633_v19 = vld [vmem:[%s5405_s2 + $0x98] sm:$0xff] }
 0x12d   :  { %2559 = vmatprep.subr.bf16.mxu1 %v4118_v35  ;;  %v2617_v35 = vld [vmem:[%s5405_s2 + $0x18] sm:$0xff] }
 0x12f   :  { %2535 = vmatpush2.bf16.msra.mxu0 %v4113_v20  ;;  %v2632_v20 = vld [vmem:[%s5405_s2 + $0x90] sm:$0xff] }
 0x130   :  { %2560 = vmatpush1.bf16.msra.mxu1 %v4116_v21  ;;  %2536 = vmatprep.subr.bf16.mxu0 %v4121_v22  ;;  %v2616_v21 = vld [vmem:[%s5405_s2 + $0x10] sm:$0xff]  ;;  %v2631_v22 = vld [vmem:[%s5405_s2 + $0x88] sm:$0xff] }
 0x131   :  { %2561 = vmatprep.subr.bf16.mxu1 %v4124_v23  ;;  %v2615_v23 = vld [vmem:[%s5405_s2 + $0x8] sm:$0xff] }
 0x133   :  { %2537 = vmatpush2.bf16.msra.mxu0 %v4119_v24  ;;  %v2630_v24 = vld [vmem:[%s5405_s2 + $0x80] sm:$0xff] }
 0x134   :  { %2562 = vmatpush1.bf16.msra.mxu1 %v4122_v25  ;;  %2538 = vmatprep.subr.bf16.mxu0 %v4127_v7  ;;  %v2614_v25 = vld [vmem:[%s5405_s2] sm:$0xff]  ;;  %v2816_v7 = vld [vmem:[%s5406_s3 + $0x38] sm:$0xff] }
 0x135   :  { %2563 = vmatprep.subr.bf16.mxu1 %v4130_v9 }
 0x137   :  { %2539 = vmatpush2.bf16.msra.mxu0 %v4125_v26 }
 0x138   :  { %2564 = vmatpush1.bf16.msra.mxu1 %v4128_v50  ;;  %2540 = vmatprep.subr.bf16.mxu0 %v4133_v46 }
 0x139   :  { %2565 = vmatprep.subr.bf16.mxu1 %v4136_v27 }
 0x13b   :  { %2541 = vmatpush2.bf16.msra.mxu0 %v4131_v28 }
 0x13c   :  { %2566 = vmatpush1.bf16.msra.mxu1 %v4134_v29  ;;  %2542 = vmatprep.subr.bf16.mxu0 %v4139_v30 }
 0x13d   :  { %2567 = vmatprep.subr.bf16.mxu1 %v4142_v31 }
 0x13f   :  { %2543 = vmatpush2.bf16.msra.mxu0 %v4137_v32 }
 0x140   :  { %2568 = vmatpush1.bf16.msra.mxu1 %v4140_v33  ;;  %3573 = vmatprep.subr.mxu0 %v2645_v55 }
 0x141   :  { %3608 = vmatprep.subr.mxu1 %v2645_v55 }
 0x142   :  { %2545 = vmatmul.mubr.bf16.vlgmr.msra.gmra.mxu0 %v3484_v34 }
 0x143   :  { %v1219_v37 = vpop.f32.mrf.mxu1  ;;  %2586 = vmatmul.mubr.bf16.vlgmr.msra.gmra.mxu1 %v3486_v36  ;;  %3574 = vmatpush3.msra.mxu0 %v2629_v56 }
 0x144   :  { %v1220_v38 = vadd.f32 %v1219_v37, %v5160_v4  ;;  %3609 = vmatpush3.msra.mxu1 %v2629_v56  ;;  %3575 = vmatprep.subr.mxu0 %v2644_v57  ;;  %v2623_v4 = vld [vmem:[%s5405_s2 + $0x48] sm:$0xff] }
 0x145   :  { %v1221_v39 = vpop.f32.mrf.mxu1  ;;  %3610 = vmatprep.subr.mxu1 %v2644_v57  ;;  %3576 = vmatpush3.msra.mxu0 %v2628_v58 }
 0x146   :  { %v1222_v40 = vadd.f32 %v1221_v39, %v771_v14  ;;  %3611 = vmatpush3.msra.mxu1 %v2628_v58  ;;  %3577 = vmatprep.subr.mxu0 %v2643_v60  ;;  %v2620_v14 = vld [vmem:[%s5405_s2 + $0x30] sm:$0xff] }
 0x147   :  { %v1223_v41 = vpop.f32.mrf.mxu1  ;;  %3612 = vmatprep.subr.mxu1 %v2643_v60  ;;  %3578 = vmatpush3.msra.mxu0 %v2627_v61 }
 0x148   :  { %3613 = vmatpush3.msra.mxu1 %v2627_v61  ;;  %3579 = vmatprep.subr.mxu0 %v2642_v62 }
 0x149   :  { %v1224_v42 = vpop.f32.mrf.mxu1  ;;  %3614 = vmatprep.subr.mxu1 %v2642_v62  ;;  %3580 = vmatpush3.msra.mxu0 %v2626_v63 }
 0x14a   :  { %3615 = vmatpush3.msra.mxu1 %v2626_v63  ;;  %3581 = vmatprep.subr.mxu0 %v2641_v0 }
 0x14b   :  { %3616 = vmatprep.subr.mxu1 %v2641_v0  ;;  %3582 = vmatpush3.msra.mxu0 %v2625_v1 }
 0x14c   :  { %3617 = vmatpush3.msra.mxu1 %v2625_v1  ;;  %3583 = vmatprep.subr.mxu0 %v2640_v2 }
 0x14d   :  { %3618 = vmatprep.subr.mxu1 %v2640_v2  ;;  %3584 = vmatpush3.msra.mxu0 %v2624_v6 }
 0x14e   :  { %3619 = vmatpush3.msra.mxu1 %v2624_v6  ;;  %3585 = vmatprep.subr.mxu0 %v2639_v3 }
 0x14f   :  { %3620 = vmatprep.subr.mxu1 %v2639_v3  ;;  %3586 = vmatpush3.msra.mxu0 %v2623_v4 }
 0x150   :  { %3621 = vmatpush3.msra.mxu1 %v2623_v4  ;;  %3587 = vmatprep.subr.mxu0 %v2638_v5 }
 0x151   :  { %3622 = vmatprep.subr.mxu1 %v2638_v5  ;;  %3588 = vmatpush3.msra.mxu0 %v2622_v10 }
 0x152   :  { %3623 = vmatpush3.msra.mxu1 %v2622_v10  ;;  %3589 = vmatprep.subr.mxu0 %v2637_v11 }
 0x153   :  { %3624 = vmatprep.subr.mxu1 %v2637_v11  ;;  %3590 = vmatpush3.msra.mxu0 %v2621_v12 }
 0x154   :  { %3625 = vmatpush3.msra.mxu1 %v2621_v12  ;;  %3591 = vmatprep.subr.mxu0 %v2636_v13 }
 0x155   :  { %3626 = vmatprep.subr.mxu1 %v2636_v13  ;;  %3592 = vmatpush3.msra.mxu0 %v2620_v14 }
 0x156   :  { %3627 = vmatpush3.msra.mxu1 %v2620_v14  ;;  %3593 = vmatprep.subr.mxu0 %v2635_v15 }
 0x157   :  { %3628 = vmatprep.subr.mxu1 %v2635_v15  ;;  %3594 = vmatpush3.msra.mxu0 %v2619_v16 }
 0x158   :  { %3629 = vmatpush3.msra.mxu1 %v2619_v16  ;;  %3595 = vmatprep.subr.mxu0 %v2634_v17 }
 0x159   :  { %3630 = vmatprep.subr.mxu1 %v2634_v17  ;;  %3596 = vmatpush3.msra.mxu0 %v2618_v18 }
 0x15a   :  { %3631 = vmatpush3.msra.mxu1 %v2618_v18  ;;  %3597 = vmatprep.subr.mxu0 %v2633_v19 }
 0x15b   :  { %3632 = vmatprep.subr.mxu1 %v2633_v19  ;;  %3598 = vmatpush3.msra.mxu0 %v2617_v35 }
 0x15c   :  { %3633 = vmatpush3.msra.mxu1 %v2617_v35  ;;  %3599 = vmatprep.subr.mxu0 %v2632_v20 }
 0x15d   :  { %3634 = vmatprep.subr.mxu1 %v2632_v20  ;;  %3600 = vmatpush3.msra.mxu0 %v2616_v21 }
 0x15e   :  { %3635 = vmatpush3.msra.mxu1 %v2616_v21  ;;  %3601 = vmatprep.subr.mxu0 %v2631_v22 }
 0x15f   :  { %3636 = vmatprep.subr.mxu1 %v2631_v22  ;;  %3602 = vmatpush3.msra.mxu0 %v2615_v23 }
 0x160   :  { %3637 = vmatpush3.msra.mxu1 %v2615_v23  ;;  %3603 = vmatprep.subr.mxu0 %v2630_v24 }
 0x161   :  { %3638 = vmatprep.subr.mxu1 %v2630_v24  ;;  %3604 = vmatpush3.msra.mxu0 %v2614_v25 }
 0x162   :  { %v1260_v48 = vpop.f32.mrf.mxu0  ;;  %3639 = vmatpush3.msra.mxu1 %v2614_v25  ;;  %2845 = vmatprep.subr.mxu0 %v2816_v7 }
 0x163   :  { %v1301_v43 = vpop.f32.mrf.mxu1  ;;  %v1261_v44 = vadd.f32 %v1260_v48, %v1220_v38  ;;  %2920 = vmatprep.subr.mxu1 %v2816_v7 }
 0x164   :  { %v1262_v45 = vpop.f32.mrf.mxu0 }
 0x165   :  { %v1303_v47 = vpop.f32.mrf.mxu1  ;;  %v5247_v8 = vadd.f32 %v1301_v43, %v1261_v44  ;;  %v1263_v49 = vadd.f32 %v1262_v45, %v1222_v40 }
 0x166   :  { %v1264_v59 = vpop.f32.mrf.mxu0 }
 0x167   :  { %v1305_v51 = vpop.f32.mrf.mxu1  ;;  %v5249_v52 = vadd.f32 %v1303_v47, %v1263_v49  ;;  %v2718_v57 = vmul.f32 %v5247_v8, %v5247_v8 }
 0x168   :  { %v1265_v53 = vpop.f32.mrf.mxu0 }
 0x169   :  { %v1306_v54 = vpop.f32.mrf.mxu1  ;;  %v2719_v62 = vmul.f32 %v5249_v52, %v5249_v52 }
 0x1a2   :  { %v1972_v9 = vpop.f32.mrf.mxu0 }
 0x1a3   :  { %v2013_v26 = vpop.f32.mrf.mxu1 }
 0x1a4   :  { %v2014_v50 = vadd.f32 %v2013_v26, %v1972_v9  ;;  %v1974_v46 = vpop.f32.mrf.mxu0 }
 0x1a5   :  { %v2015_v27 = vpop.f32.mrf.mxu1 }
 0x1a6   :  { %v2016_v28 = vadd.f32 %v2015_v27, %v1974_v46  ;;  %v1976_v29 = vpop.f32.mrf.mxu0  ;;  %v2815_v27 = vld [vmem:[%s5406_s3 + $0x30] sm:$0xff] }
 0x1a7   :  { %v2017_v30 = vpop.f32.mrf.mxu1  ;;  %v2813_v29 = vld [vmem:[%s5406_s3 + $0x20] sm:$0xff] }
 0x1a8   :  { %v1977_v31 = vpop.f32.mrf.mxu0  ;;  %v2812_v30 = vld [vmem:[%s5406_s3 + $0x18] sm:$0xff] }
 0x1a9   :  { %v2018_v32 = vpop.f32.mrf.mxu1  ;;  %v2811_v31 = vld [vmem:[%s5406_s3 + $0x10] sm:$0xff] }
 0x1aa   :  { %v2810_v32 = vld [vmem:[%s5406_s3 + $0x8] sm:$0xff] }
 0x1c2   :  { %v2054_v33 = vpop.f32.mrf.mxu0 }
 0x1c3   :  { %v2055_v42 = vadd.f32 %v2054_v33, %v2014_v50  ;;  %v2809_v33 = vld [vmem:[%s5406_s3] sm:$0xff] }
 0x1c4   :  { %v2056_v34 = vpop.f32.mrf.mxu0 }
 0x1c5   :  { %v2057_v48 = vadd.f32 %v2056_v34, %v2016_v28  ;;  %v2814_v28 = vld [vmem:[%s5406_s3 + $0x28] sm:$0xff]  ;;  %v4151_v34 = vmov 0.0  }
 0x1c6   :  { %v2058_v36 = vpop.f32.mrf.mxu0 }
 0x1c8   :  { %v2059_v37 = vpop.f32.mrf.mxu0 }
 0x1e3   :  { %v2505_v38 = vpop.f32.mrf.mxu1 }
 0x1e4   :  { %v2506_v43 = vadd.f32 %v2505_v38, %v2055_v42 }
 0x1e5   :  { %v2507_v39 = vpop.f32.mrf.mxu1 }
 0x1e6   :  { %v2508_v47 = vadd.f32 %v2507_v39, %v2057_v48 }
 0x1e7   :  { %v2509_v40 = vpop.f32.mrf.mxu1 }
 0x1e9   :  { %v2510_v41 = vpop.f32.mrf.mxu1 }
 0x202   :  { %v2546_v44 = vpop.f32.mrf.mxu0 }
 0x203   :  { %v2587_v45 = vpop.f32.mrf.mxu1  ;;  %v2547_v49 = vadd.f32 %v2546_v44, %v2506_v43 }
 0x204   :  { %v2548_v59 = vpop.f32.mrf.mxu0 }
 0x205   :  { %v2589_v51 = vpop.f32.mrf.mxu1  ;;  %v5350_v53 = vadd.f32 %v2587_v45, %v2547_v49  ;;  %v2549_v54 = vadd.f32 %v2548_v59, %v2508_v47 }
 0x206   :  { %v2550_v55 = vpop.f32.mrf.mxu0 }
 0x207   :  { %v2591_v56 = vpop.f32.mrf.mxu1  ;;  %v2600_v58 = vadd.f32 %v5350_v53, %v5247_v8  ;;  %v2720_v60 = vmul.f32 %v5350_v53, %v5350_v53  ;;  %v5358_v61 = vadd.f32 %v2589_v51, %v2549_v54  ;;  %v4152_v51 = vmov 1966171168  }
 0x208   :  { %v2551_v63 = vpop.f32.mrf.mxu0  ;;  %v2973_v54 = vunpack.c.l.s4 %v4152_v51  ;;  %v2975_v55 = vlaneseq }
 0x209   :  { %v2592_v0 = vpop.f32.mrf.mxu1  ;;  %v2601_v1 = vrot.slane %v2600_v58, 4  ;;  %v2722_v2 = vadd.f32 %v2720_v60, %v2718_v57  ;;  %v2607_v6 = vadd.f32 %v5358_v61, %v5249_v52  ;;  %v2721_v3 = vmul.f32 %v5358_v61, %v5358_v61 }
 0x20a   :  { %v2974_v56 = vunpack.c.0.s8 %v2973_v54  ;;  %v2976_v57 = vshrl.u32 %v2975_v55, 7 }
 0x20b   :  { %v2602_v4 = vadd.f32 %v2601_v1, %v2600_v58  ;;  %v2723_v5 = vrot.slane %v2722_v2, 4  ;;  %v2608_v10 = vrot.slane %v2607_v6, 4  ;;  %v2729_v11 = vadd.f32 %v2721_v3, %v2719_v62 }
 0x20c   :  { %v2977_v62 = vsub.s32 %v2974_v56, %v2976_v57  ;;  %v2990_v0 = vsub.s32 0, %v2976_v57 }
 0x20d   :  { %v2603_v12 = vrot.slane %v2602_v4, 2  ;;  %v2724_v13 = vadd.f32 %v2723_v5, %v2722_v2  ;;  %v2609_v14 = vadd.f32 %v2608_v10, %v2607_v6  ;;  %v2730_v15 = vrot.slane %v2729_v11, 4  ;;  %v3015_v10 = vld [vmem:[%s5408_s5] sm:$0x3] }
 0x20e   :  { %v3007_v5 = vsub.s32 1, %v2976_v57 }
 0x20f   :  { %v2604_v16 = vadd.f32 %v2603_v12, %v2602_v4  ;;  %v2725_v17 = vrot.slane %v2724_v13, 2  ;;  %v2610_v18 = vrot.slane %v2609_v14, 2  ;;  %v2731_v19 = vadd.f32 %v2730_v15, %v2729_v11  ;;  %v2892_v4 = vld [vmem:[%s5407_s4] sm:$0x3] }
 0x211   :  { %v2611_v35 = vadd.f32 %v2610_v18, %v2609_v14  ;;  %v2732_v20 = vrot.slane %v2731_v19, 2  ;;  %v2726_v21 = vadd.f32 %v2725_v17, %v2724_v13  ;;  %v2605_v22 = vrot.slane %v2604_v16, 1 }
 0x212   :  { %v3024_v17 = vrot.slane %v3015_v10, %v3007_v5 }
 0x213   :  { %v2612_v23 = vrot.slane %v2611_v35, 1  ;;  %v2733_v24 = vadd.f32 %v2732_v20, %v2731_v19  ;;  %v2727_v25 = vrot.slane %v2726_v21, 1  ;;  %v2606_v26 = vadd.f32 %v2605_v22, %v2604_v16 }
 0x214   :  { %v3020_v16 = vrot.slane %v3015_v10, %v2990_v0 }
 0x215   :  { %v2613_v7 = vadd.f32 %v2612_v23, %v2611_v35  ;;  %v2734_v9 = vrot.slane %v2733_v24, 1  ;;  %v2728_v46 = vadd.f32 %v2727_v25, %v2726_v21 }
 0x217   :  { %2710 = vmatprep.mubr.f32.mxu0 %v2613_v7  ;;  %v2735_v50 = vadd.f32 %v2734_v9, %v2733_v24 }
 0x218   :  { %2711 = vmatmul.mubr.f32.vlgmr.msra.gmra.mxu0 %v2606_v26 }
 0x219   :  { %2800 = vmatprep.mubr.f32.mxu1 %v2735_v50  ;;  %2846 = vmatpush1.msra.mxu0 %v2815_v27 }
 0x21a   :  { %2801 = vmatmul.mubr.f32.vlgmr.msra.gmra.mxu1 %v2728_v46  ;;  %2847 = vmatprep.subr.mxu0 %v2814_v28 }
 0x21b   :  { %2921 = vmatpush1.msra.mxu1 %v2815_v27  ;;  %2848 = vmatpush1.msra.mxu0 %v2813_v29 }
 0x21c   :  { %2922 = vmatprep.subr.mxu1 %v2814_v28  ;;  %2849 = vmatprep.subr.mxu0 %v2812_v30 }
 0x21d   :  { %2923 = vmatpush1.msra.mxu1 %v2813_v29  ;;  %2850 = vmatpush1.msra.mxu0 %v2811_v31 }
 0x21e   :  { %2924 = vmatprep.subr.mxu1 %v2812_v30  ;;  %2851 = vmatprep.subr.mxu0 %v2810_v32 }
 0x21f   :  { %2925 = vmatpush1.msra.mxu1 %v2811_v31  ;;  %2852 = vmatpush1.msra.mxu0 %v2809_v33 }
 0x220   :  { %2926 = vmatprep.subr.mxu1 %v2810_v32  ;;  %2885 = vmatprep.mubr.f32.mxu0 %v4151_v34 }
 0x221   :  { %2927 = vmatpush1.msra.mxu1 %v2809_v33  ;;  %2960 = vmatprep.mubr.f32.mxu1 %v4151_v34 }
 0x2d8   :  { %v3605_v36 = vpop.f32.mrf.mxu0 }
 0x2da   :  { %v3606_v37 = vpop.f32.mrf.mxu0  ;;  %v3640_v38 = vpop.f32.mrf.mxu1 }
 0x2db   :  { %v3607_v39 = vadd.f32 %v3606_v37, %v3605_v36 }
 0x2dc   :  { %v3641_v40 = vpop.f32.mrf.mxu1 }
 0x2dd   :  { %v2717_v41 = vmul.f32 0.0078125, %v3607_v39  ;;  %v3642_v42 = vadd.f32 %v3641_v40, %v3640_v38 }
 0x2df   :  { %v2807_v48 = vmul.f32 %v2717_v41, %v2717_v41  ;;  %v2806_v43 = vmul.f32 0.0078125, %v3642_v42  ;;  %3567 = vmatmul.mubr.msk.f32.vlgmr.msra.gmra.mxu0 %vm2817_vm0, %v2717_v41 }
 0x2e1   :  { %v2808_v44 = vsub.f32 %v2806_v43, %v2807_v48 }
 0x2e3   :  { %3568 = vmatmul.mubr.msk.f32.vlgmr.msra.gmra.mxu1 %vm2817_vm0, %v2808_v44 }
 0x39f   :  { %v2887_v58 = vpop.f32.mrf.mxu0 }
 0x3a0   :  { %v2991_v3 = vrot.slane %v2887_v58, %v2990_v0 }
 0x3a1   :  { %v2889_v2 = vpop.f32.mrf.mxu0 }
 0x3a2   :  { %v2995_v11 = vrot.slane %v2889_v2, %v2990_v0  ;;  %v2996_v14 = vsub.f32 %v5247_v8, %v2991_v3  ;;  %v2998_v15 = vsub.f32 %v5350_v53, %v2991_v3 }
 0x3a3   :  { %v2962_v45 = vpop.f32.mrf.mxu1 }
 0x3a4   :  { %v2963_v47 = vadd.f32 1e-05, %v2962_v45  ;;  %v2997_v18 = vsub.f32 %v5249_v52, %v2995_v11  ;;  %v2999_v19 = vsub.f32 %v5358_v61, %v2995_v11 }
 0x3a5   :  { %v2964_v49 = vpop.f32.mrf.mxu1 }
 0x3a6   :  { %v2965_v59 = vadd.f32 1e-05, %v2964_v49  ;;  %4146 = vrsqrt.f32 %v2963_v47 }
 0x3a8   :  { %4148 = vrsqrt.f32 %v2965_v59 }
 0x3b3   :  { %v4147_v60 = vpop.eup %4146 }
 0x3b5   :  { %v4149_v63 = vpop.eup %4148 }
 0x3b6   :  { %v2971_v1 = vcombine.low %v4147_v60, %v4149_v63 }
 0x3b8   :  { %v2978_v6 = vrot.slane %v2971_v1, %v2977_v62 }
 0x3ba   :  { %v2985_v12 = vrot.slane %v2978_v6, %v2977_v62 }
 0x3bc   :  { %v2987_v13 = vmul.f32 %v2985_v12, %v2892_v4 }
 0x3be   :  { %v3004_v35 = vrot.slane %v2987_v13, %v2990_v0  ;;  %v3008_v20 = vrot.slane %v2987_v13, %v3007_v5 }
 0x3c0   :  { %v3011_v21 = vmul.f32 %v3004_v35, %v2996_v14  ;;  %v3012_v22 = vmul.f32 %v3008_v20, %v2997_v18  ;;  %v3013_v23 = vmul.f32 %v3004_v35, %v2998_v15  ;;  %v3014_v24 = vmul.f32 %v3008_v20, %v2999_v19 }
 0x3c2   :  { %v3027_v25 = vadd.f32 %v3020_v16, %v3011_v21  ;;  %v3028_v7 = vadd.f32 %v3024_v17, %v3012_v22  ;;  %v3029_v9 = vadd.f32 %v3020_v16, %v3013_v23  ;;  %v3030_v26 = vadd.f32 %v3024_v17, %v3014_v24 }
 0x3c4   :  { %vm3031_vm1 = vcmp.gt.f32.partialorder %v3027_v25, 0.0  ;;  %vm3032_vm2 = vcmp.gt.f32.partialorder %v3028_v7, 0.0  ;;  %vm3033_vm3 = vcmp.gt.f32.partialorder %v3029_v9, 0.0  ;;  %vm3034_vm4 = vcmp.gt.f32.partialorder %v3030_v26, 0.0 }
 0x3c5   :  { %v3035_v8 = vmul.f32 0.2, %v3027_v25  ;;  %v3036_v53 = vmul.f32 0.2, %v3028_v7  ;;  %v3037_v50 = vmul.f32 0.2, %v3029_v9 }
 0x3c6   :  { %v3038_v52 = vmul.f32 0.2, %v3030_v26 }
 0x3c7   :  { %v3039_v46 = vsel %vm3031_vm1, %v3027_v25, %v3035_v8  ;;  %v3040_v61 = vsel %vm3032_vm2, %v3028_v7, %v3036_v53  ;;  %v3041_v27 = vsel %vm3033_vm3, %v3029_v9, %v3037_v50 }
 0x3c8   :  { %v3042_v28 = vsel %vm3034_vm4, %v3030_v26, %v3038_v52  ;;  %v3571_v29 = vpack.c.bf16 %v3040_v61, %v3039_v46 }
 0x3c9   :  { %v3572_v30 = vpack.c.bf16 %v3042_v28, %v3041_v27 }
 0x3ca   :  { %3055 = vst [vmem:[%s5409_s6] sm:$0xff] %v3571_v29 }
 0x3cb   :  { %3056 = vst [vmem:[%s5409_s6 + $0x8] sm:$0xff] %v3572_v30 }

// kernel: tile.119
= control target key start
LH: loop header
LB: loop body
LE: loop exit
PB: predicated region body
PF: predicated region fallthrough
CT: control target
= control target key end

     0   :  { %s1117_s22 = smov 3  ;;  %vm323_vm0 = vcmask 523264   ;;  %s1119_s23 = smov 3  ;;  %vm707_vm1 = vcmask 1047556   ;;  %vm711_vm2 = vcmask 1048064   ;;  %s1703_s0 = inlined_call_operand.vmem [shape: f32[64,4,64], index: 0, kind: input, shape index: {}]   ;;  %s1704_s1 = inlined_call_operand.vmem [shape: f32[64,256], index: 1, kind: output, shape index: {}]  }
   0x1   :  { %v996_v0 = vld [vmem:[%s1703_s0 + $0x1c] sm:$0xf]  ;;  %v997_v1 = vld [vmem:[%s1703_s0 + $0x18] sm:$0xf]  ;;  %v998_v2 = vld [vmem:[%s1703_s0 + $0x14] sm:$0xf] }
   0x2   :  { %289 = vst [vmem:[#allocation0 + $0x38] sm:$0xf] %v996_v0  ;;  %294 = vst [vmem:[#allocation0 + $0x30] sm:$0xf] %v997_v1  ;;  %v999_v3 = vld [vmem:[%s1703_s0 + $0x10] sm:$0xf] }
   0x3   :  { %299 = vst [vmem:[#allocation0 + $0x28] sm:$0xf] %v998_v2  ;;  %v1000_v4 = vld [vmem:[%s1703_s0 + $0xc] sm:$0xf]  ;;  %v1001_v5 = vld [vmem:[%s1703_s0 + $0x8] sm:$0xf] }
   0x4   :  { %304 = vst [vmem:[#allocation0 + $0x20] sm:$0xf] %v999_v3  ;;  %309 = vst [vmem:[#allocation0 + $0x18] sm:$0xf] %v1000_v4  ;;  %v1002_v6 = vld [vmem:[%s1703_s0 + $0x4] sm:$0xf] }
   0x5   :  { %314 = vst [vmem:[#allocation0 + $0x10] sm:$0xf] %v1001_v5  ;;  %v319_v7 = vld [vmem:[%s1703_s0] sm:$0xf]  ;;  %318 = vst [vmem:[#allocation0 + $0x8] sm:$0xf] %v1002_v6 }
   0x6   :  { %320 = vst [vmem:[#allocation0] sm:$0xf] %v319_v7  ;;  %s1121_s24 = smov 3  ;;  %v995_v8 = vld [vmem:[%s1703_s0 + $0x20] sm:$0xf]  ;;  %s338_s27 = smov 3 }
   0x7   :  { %s344_s28 = smov 3  ;;  %284 = vst [vmem:[#allocation0 + $0x40] sm:$0xf] %v995_v8  ;;  %v964_v9 = vld [vmem:[%s1703_s0 + $0x9c] sm:$0xf]  ;;  %s350_s4 = smov 3 }
   0x8   :  { %v965_v10 = vld [vmem:[%s1703_s0 + $0x98] sm:$0xf]  ;;  %s356_s5 = smov 3  ;;  %129 = vst [vmem:[#allocation0 + $0x138] sm:$0xf] %v964_v9  ;;  %s1138_s10 = smov 3 }
   0x9   :  { %134 = vst [vmem:[#allocation0 + $0x130] sm:$0xf] %v965_v10  ;;  %v966_v11 = vld [vmem:[%s1703_s0 + $0x94] sm:$0xf]  ;;  %v967_v12 = vld [vmem:[%s1703_s0 + $0x90] sm:$0xf] }
   0xa   :  { %139 = vst [vmem:[#allocation0 + $0x128] sm:$0xf] %v966_v11  ;;  %144 = vst [vmem:[#allocation0 + $0x120] sm:$0xf] %v967_v12  ;;  %v968_v13 = vld [vmem:[%s1703_s0 + $0x8c] sm:$0xf] }
   0xb   :  { %v969_v14 = vld [vmem:[%s1703_s0 + $0x88] sm:$0xf]  ;;  %149 = vst [vmem:[#allocation0 + $0x118] sm:$0xf] %v968_v13  ;;  %v970_v15 = vld [vmem:[%s1703_s0 + $0x84] sm:$0xf] }
   0xc   :  { %154 = vst [vmem:[#allocation0 + $0x110] sm:$0xf] %v969_v14  ;;  %v971_v16 = vld [vmem:[%s1703_s0 + $0x80] sm:$0xf]  ;;  %v972_v17 = vld [vmem:[%s1703_s0 + $0x7c] sm:$0xf] }
   0xd   :  { %v351_v18 = vld [vmem:[#allocation0 + $0x28] ss:$2 sm:%s350_s4]   ;;  %159 = vst [vmem:[#allocation0 + $0x108] sm:$0xf] %v970_v15  ;;  %164 = vst [vmem:[#allocation0 + $0x100] sm:$0xf] %v971_v16 }
   0xe   :  { %v357_v19 = vld [vmem:[#allocation0 + $0x30] ss:$2 sm:%s356_s5]   ;;  %169 = vst [vmem:[#allocation0 + $0xf8] sm:$0xf] %v972_v17  ;;  %s1155_s21 = smov 3  ;;  %s1157_s25 = smov 3 }
   0xf   :  { %v333_v20 = vld [vmem:[#allocation0 + $0x10] ss:$2 sm:%s1121_s24]   ;;  %v345_v22 = vld [vmem:[#allocation0 + $0x20] ss:$2 sm:%s344_s28]   ;;  %s518_s4 = smov 3  ;;  %s524_s5 = smov 3 }
  0x10   :  { %v339_v21 = vld [vmem:[#allocation0 + $0x18] ss:$2 sm:%s338_s27]   ;;  %1007 = vst.msk [vmem:[%s1704_s1 + $0x5] ss:$8 sm:$0x3] %vm323_vm0, %v351_v18   ;;  %s536_s11 = smov 3 }
  0x11   :  { %1008 = vst.msk [vmem:[%s1704_s1 + $0x6] ss:$8 sm:$0x3] %vm323_vm0, %v357_v19   ;;  %v322_v23 = vld [vmem:[#allocation0] ss:$2 sm:%s1117_s22]   ;;  %s1082_s14 = smov 64  }
  0x12   :  { %v327_v24 = vld [vmem:[#allocation0 + $0x8] ss:$2 sm:%s1119_s23]   ;;  %1004 = vst.msk [vmem:[%s1704_s1 + $0x2] ss:$8 sm:$0x3] %vm323_vm0, %v333_v20   ;;  %s542_s17 = smov 3 }
  0x13   :  { %1005 = vst.msk [vmem:[%s1704_s1 + $0x3] ss:$8 sm:$0x3] %vm323_vm0, %v339_v21   ;;  %1006 = vst.msk [vmem:[%s1704_s1 + $0x4] ss:$8 sm:$0x3] %vm323_vm0, %v345_v22  }
  0x14   :  { %324 = vst.msk [vmem:[%s1704_s1] ss:$8 sm:$0x3] %vm323_vm0, %v322_v23   ;;  %1003 = vst.msk [vmem:[%s1704_s1 + $0x1] ss:$8 sm:$0x3] %vm323_vm0, %v327_v24  }
  0x15   :  { %v704_v25 = vld [vmem:[#allocation0 + $0x1] ss:$8 sm:$0xf]   ;;  %v363_v28 = vld [vmem:[#allocation0 + $0x38] ss:$2 sm:%s1138_s10]   ;;  %s530_s10 = smov 3 }
  0x16   :  { %v706_v26 = vld [vmem:[#allocation0 + $0x1] ss:$8 sm:$0xf0]   ;;  %1009 = vst.msk [vmem:[%s1704_s1 + $0x7] ss:$8 sm:$0x3] %vm323_vm0, %v363_v28  }
  0x17   :  { %v708_v27 = vsel %vm707_vm1, %v706_v26, %v704_v25  ;;  %v963_v29 = vld [vmem:[%s1703_s0 + $0xa0] sm:$0xf]  ;;  %s548_s18 = smov 3  ;;  %v980_v31 = vld [vmem:[%s1703_s0 + $0x5c] sm:$0xf]  ;;  %s554_s6 = smov 3 }
  0x18   :  { %709 = vrot.lane.b32.xlu0 %v708_v27, %s1082_s14  ;;  %v537_v30 = vld [vmem:[#allocation0 + $0x120] ss:$2 sm:%s536_s11]   ;;  %124 = vst [vmem:[#allocation0 + $0x140] sm:$0xf] %v963_v29  ;;  %v525_v32 = vld [vmem:[#allocation0 + $0x110] ss:$2 sm:%s524_s5]  }
  0x19   :  { %v531_v33 = vld [vmem:[#allocation0 + $0x118] ss:$2 sm:%s530_s10]   ;;  %1038 = vst.msk [vmem:[%s1704_s1 + $0x44] ss:$8 sm:$0x3] %vm323_vm0, %v537_v30   ;;  %s1240_s11 = smov 3 }
  0x1a   :  { %v543_v34 = vld [vmem:[#allocation0 + $0x128] ss:$2 sm:%s542_s17]   ;;  %209 = vst [vmem:[#allocation0 + $0xb8] sm:$0xf] %v980_v31  ;;  %v507_v35 = vld [vmem:[#allocation0 + $0xf8] ss:$2 sm:%s1155_s21]  }
  0x1b   :  { %v513_v36 = vld [vmem:[#allocation0 + $0x100] ss:$2 sm:%s1157_s25]   ;;  %1036 = vst.msk [vmem:[%s1704_s1 + $0x42] ss:$8 sm:$0x3] %vm323_vm0, %v525_v32   ;;  %s1262_s27 = smov 3 }
  0x1c   :  { %v519_v37 = vld [vmem:[#allocation0 + $0x108] ss:$2 sm:%s518_s4]   ;;  %1037 = vst.msk [vmem:[%s1704_s1 + $0x43] ss:$8 sm:$0x3] %vm323_vm0, %v531_v33   ;;  %s1264_s28 = smov 3 }
  0x1d   :  { %1039 = vst.msk [vmem:[%s1704_s1 + $0x45] ss:$8 sm:$0x3] %vm323_vm0, %v543_v34   ;;  %1033 = vst.msk [vmem:[%s1704_s1 + $0x37] ss:$8 sm:$0x3] %vm323_vm0, %v507_v35  }
  0x1e   :  { %1034 = vst.msk [vmem:[%s1704_s1 + $0x40] ss:$8 sm:$0x3] %vm323_vm0, %v513_v36   ;;  %1035 = vst.msk [vmem:[%s1704_s1 + $0x41] ss:$8 sm:$0x3] %vm323_vm0, %v519_v37  }
  0x1f   :  { %v725_v38 = vld [vmem:[#allocation0 + $0x101] ss:$8 sm:$0xf]   ;;  %v549_v39 = vld [vmem:[#allocation0 + $0x130] ss:$2 sm:%s548_s18]   ;;  %s434_s2 = smov 3 }
  0x20   :  { %v727_v40 = vld [vmem:[#allocation0 + $0x101] ss:$8 sm:$0xf0]   ;;  %1040 = vst.msk [vmem:[%s1704_s1 + $0x46] ss:$8 sm:$0x3] %vm323_vm0, %v549_v39  }
  0x21   :  { %v981_v41 = vld [vmem:[%s1703_s0 + $0x58] sm:$0xf]  ;;  %v729_v42 = vsel %vm707_vm1, %v727_v40, %v725_v38  ;;  %v982_v43 = vld [vmem:[%s1703_s0 + $0x54] sm:$0xf]  ;;  %v983_v44 = vld [vmem:[%s1703_s0 + $0x50] sm:$0xf] }
  0x22   :  { %214 = vst [vmem:[#allocation0 + $0xb0] sm:$0xf] %v981_v41  ;;  %v984_v45 = vld [vmem:[%s1703_s0 + $0x4c] sm:$0xf]  ;;  %730 = vrot.lane.b32.xlu1 %v729_v42, %s1082_s14  ;;  %219 = vst [vmem:[#allocation0 + $0xa8] sm:$0xf] %v982_v43 }
  0x23   :  { %224 = vst [vmem:[#allocation0 + $0xa0] sm:$0xf] %v983_v44  ;;  %229 = vst [vmem:[#allocation0 + $0x98] sm:$0xf] %v984_v45  ;;  %v985_v46 = vld [vmem:[%s1703_s0 + $0x48] sm:$0xf] }
  0x24   :  { %v986_v47 = vld [vmem:[%s1703_s0 + $0x44] sm:$0xf]  ;;  %v987_v48 = vld [vmem:[%s1703_s0 + $0x40] sm:$0xf]  ;;  %234 = vst [vmem:[#allocation0 + $0x90] sm:$0xf] %v985_v46 }
  0x25   :  { %v555_v49 = vld [vmem:[#allocation0 + $0x138] ss:$2 sm:%s554_s6]   ;;  %239 = vst [vmem:[#allocation0 + $0x88] sm:$0xf] %v986_v47  ;;  %244 = vst [vmem:[#allocation0 + $0x80] sm:$0xf] %v987_v48 }
  0x26   :  { %v979_v50 = vld [vmem:[%s1703_s0 + $0x60] sm:$0xf]  ;;  %1041 = vst.msk [vmem:[%s1704_s1 + $0x47] ss:$8 sm:$0x3] %vm323_vm0, %v555_v49   ;;  %s440_s3 = smov 3 }
  0x27   :  { %204 = vst [vmem:[#allocation0 + $0xc0] sm:$0xf] %v979_v50  ;;  %v948_v51 = vld [vmem:[%s1703_s0 + $0xdc] sm:$0xf]  ;;  %v949_v52 = vld [vmem:[%s1703_s0 + $0xd8] sm:$0xf] }
  0x28   :  { %s446_s8 = smov 3  ;;  %s452_s9 = smov 3  ;;  %49 = vst [vmem:[#allocation0 + $0x1b8] sm:$0xf] %v948_v51  ;;  %54 = vst [vmem:[#allocation0 + $0x1b0] sm:$0xf] %v949_v52 }
  0x29   :  { %v950_v53 = vld [vmem:[%s1703_s0 + $0xd4] sm:$0xf]  ;;  %v951_v54 = vld [vmem:[%s1703_s0 + $0xd0] sm:$0xf]  ;;  %s1285_s16 = smov 3  ;;  %s1293_s24 = smov 3 }
  0x2a   :  { %59 = vst [vmem:[#allocation0 + $0x1a8] sm:$0xf] %v950_v53  ;;  %64 = vst [vmem:[#allocation0 + $0x1a0] sm:$0xf] %v951_v54  ;;  %v952_v55 = vld [vmem:[%s1703_s0 + $0xcc] sm:$0xf] }
  0x2b   :  { %v953_v56 = vld [vmem:[%s1703_s0 + $0xc8] sm:$0xf]  ;;  %69 = vst [vmem:[#allocation0 + $0x198] sm:$0xf] %v952_v55  ;;  %v954_v57 = vld [vmem:[%s1703_s0 + $0xc4] sm:$0xf] }
  0x2c   :  { %74 = vst [vmem:[#allocation0 + $0x190] sm:$0xf] %v953_v56  ;;  %v955_v58 = vld [vmem:[%s1703_s0 + $0xc0] sm:$0xf]  ;;  %v956_v59 = vld [vmem:[%s1703_s0 + $0xbc] sm:$0xf] }
  0x2d   :  { %v453_v60 = vld [vmem:[#allocation0 + $0xb0] ss:$2 sm:%s452_s9]   ;;  %79 = vst [vmem:[#allocation0 + $0x188] sm:$0xf] %v954_v57  ;;  %84 = vst [vmem:[#allocation0 + $0x180] sm:$0xf] %v955_v58 }
  0x2e   :  { %89 = vst [vmem:[#allocation0 + $0x178] sm:$0xf] %v956_v59  ;;  %s1304_s30 = smov 3  ;;  %s1306_s4 = smov 3  ;;  %v947_v61 = vld [vmem:[%s1703_s0 + $0xe0] sm:$0xf] }
  0x2f   :  { %v435_v62 = vld [vmem:[#allocation0 + $0x98] ss:$2 sm:%s434_s2]   ;;  %v447_v0 = vld [vmem:[#allocation0 + $0xa8] ss:$2 sm:%s446_s8]   ;;  %44 = vst [vmem:[#allocation0 + $0x1c0] sm:$0xf] %v947_v61 }
  0x30   :  { %v441_v63 = vld [vmem:[#allocation0 + $0xa0] ss:$2 sm:%s440_s3]   ;;  %1024 = vst.msk [vmem:[%s1704_s1 + $0x26] ss:$8 sm:$0x3] %vm323_vm0, %v453_v60   ;;  %s626_s19 = smov 3 }
  0x31   :  { %v417_v1 = vld [vmem:[#allocation0 + $0x80] ss:$2 sm:%s1240_s11]   ;;  %v429_v3 = vld [vmem:[#allocation0 + $0x90] ss:$2 sm:%s1264_s28]   ;;  %s632_s22 = smov 3  ;;  %s638_s23 = smov 3 }
  0x32   :  { %v423_v2 = vld [vmem:[#allocation0 + $0x88] ss:$2 sm:%s1262_s27]   ;;  %1021 = vst.msk [vmem:[%s1704_s1 + $0x23] ss:$8 sm:$0x3] %vm323_vm0, %v435_v62   ;;  %s644_s8 = smov 3 }
  0x33   :  { %1022 = vst.msk [vmem:[%s1704_s1 + $0x24] ss:$8 sm:$0x3] %vm323_vm0, %v441_v63   ;;  %1023 = vst.msk [vmem:[%s1704_s1 + $0x25] ss:$8 sm:$0x3] %vm323_vm0, %v447_v0  }
  0x34   :  { %1018 = vst.msk [vmem:[%s1704_s1 + $0x20] ss:$8 sm:$0x3] %vm323_vm0, %v417_v1   ;;  %1019 = vst.msk [vmem:[%s1704_s1 + $0x21] ss:$8 sm:$0x3] %vm323_vm0, %v423_v2  }
  0x35   :  { %1020 = vst.msk [vmem:[%s1704_s1 + $0x22] ss:$8 sm:$0x3] %vm323_vm0, %v429_v3   ;;  %v714_v4 = vld [vmem:[#allocation0 + $0x81] ss:$8 sm:$0xf]  }
  0x36   :  { %v716_v5 = vld [vmem:[#allocation0 + $0x81] ss:$8 sm:$0xf0]   ;;  %v459_v7 = vld [vmem:[#allocation0 + $0xb8] ss:$2 sm:%s1285_s16]   ;;  %s620_s16 = smov 3 }
  0x37   :  { %v718_v6 = vsel %vm707_vm1, %v716_v5, %v714_v4  ;;  %v988_v8 = vld [vmem:[%s1703_s0 + $0x3c] sm:$0xf]  ;;  %1025 = vst.msk [vmem:[%s1704_s1 + $0x27] ss:$8 sm:$0x3] %vm323_vm0, %v459_v7   ;;  %s650_s9 = smov 3 }
  0x38   :  { %719 = vrot.lane.b32.xlu0 %v718_v6, %s1082_s14  ;;  %v738_v9 = vld [vmem:[#allocation0 + $0x181] ss:$8 sm:$0xf0]   ;;  %249 = vst [vmem:[#allocation0 + $0x78] sm:$0xf] %v988_v8  ;;  %s1386_s17 = smov 3 }
  0x39   :  { %v621_v10 = vld [vmem:[#allocation0 + $0x190] ss:$2 sm:%s620_s16]   ;;  %v633_v12 = vld [vmem:[#allocation0 + $0x1a0] ss:$2 sm:%s632_s22]   ;;  %s1407_s22 = smov 3  ;;  %s1423_s3 = smov 3 }
  0x3a   :  { %v627_v11 = vld [vmem:[#allocation0 + $0x198] ss:$2 sm:%s626_s19]   ;;  %v615_v15 = vld [vmem:[#allocation0 + $0x188] ss:$2 sm:%s1306_s4]   ;;  %s1393_s19 = smov 3  ;;  %s1425_s11 = smov 3 }
  0x3b   :  { %v603_v13 = vld [vmem:[#allocation0 + $0x178] ss:$2 sm:%s1293_s24]   ;;  %1052 = vst.msk [vmem:[%s1704_s1 + $0x62] ss:$8 sm:$0x3] %vm323_vm0, %v621_v10   ;;  %s1431_s7 = smov 3 }
  0x3c   :  { %v609_v14 = vld [vmem:[#allocation0 + $0x180] ss:$2 sm:%s1304_s30]   ;;  %1053 = vst.msk [vmem:[%s1704_s1 + $0x63] ss:$8 sm:$0x3] %vm323_vm0, %v627_v11   ;;  %s410_s15 = smov 3 }
  0x3d   :  { %1054 = vst.msk [vmem:[%s1704_s1 + $0x64] ss:$8 sm:$0x3] %vm323_vm0, %v633_v12   ;;  %1049 = vst.msk [vmem:[%s1704_s1 + $0x57] ss:$8 sm:$0x3] %vm323_vm0, %v603_v13  }
  0x3e   :  { %1050 = vst.msk [vmem:[%s1704_s1 + $0x60] ss:$8 sm:$0x3] %vm323_vm0, %v609_v14   ;;  %1051 = vst.msk [vmem:[%s1704_s1 + $0x61] ss:$8 sm:$0x3] %vm323_vm0, %v615_v15  }
  0x3f   :  { %v639_v16 = vld [vmem:[#allocation0 + $0x1a8] ss:$2 sm:%s638_s23]   ;;  %v989_v17 = vld [vmem:[%s1703_s0 + $0x38] sm:$0xf]  ;;  %v994_v38 = vld [vmem:[%s1703_s0 + $0x24] sm:$0xf] }
  0x40   :  { %1055 = vst.msk [vmem:[%s1704_s1 + $0x65] ss:$8 sm:$0x3] %vm323_vm0, %v639_v16   ;;  %v736_v18 = vld [vmem:[#allocation0 + $0x181] ss:$8 sm:$0xf]  }
  0x41   :  { %v645_v19 = vld [vmem:[#allocation0 + $0x1b0] ss:$2 sm:%s644_s8]   ;;  %254 = vst [vmem:[#allocation0 + $0x70] sm:$0xf] %v989_v17  ;;  %v740_v20 = vsel %vm707_vm1, %v738_v9, %v736_v18  ;;  %v992_v35 = vld [vmem:[%s1703_s0 + $0x2c] sm:$0xf] }
  0x42   :  { %1056 = vst.msk [vmem:[%s1704_s1 + $0x66] ss:$8 sm:$0x3] %vm323_vm0, %v645_v19   ;;  %v651_v21 = vld [vmem:[#allocation0 + $0x1b8] ss:$2 sm:%s650_s9]   ;;  %741 = vrot.lane.b32.xlu1 %v740_v20, %s1082_s14  ;;  %s404_s8 = smov 3 }
  0x43   :  { %v747_v22 = vld [vmem:[#allocation0 + $0x3] ss:$8 sm:$0xf]   ;;  %1057 = vst.msk [vmem:[%s1704_s1 + $0x67] ss:$8 sm:$0x3] %vm323_vm0, %v651_v21  }
  0x44   :  { %v749_v23 = vld [vmem:[#allocation0 + $0x3] ss:$8 sm:$0xf0]   ;;  %v990_v33 = vld [vmem:[%s1703_s0 + $0x34] sm:$0xf]  ;;  %s1442_s20 = smov 3 }
  0x45   :  { %v758_v24 = vld [vmem:[#allocation0 + $0x83] ss:$8 sm:$0xf]   ;;  %v751_v25 = vsel %vm707_vm1, %v749_v23, %v747_v22  ;;  %259 = vst [vmem:[#allocation0 + $0x68] sm:$0xf] %v990_v33  ;;  %s1459_s5 = smov 3 }
  0x46   :  { %v760_v26 = vld [vmem:[#allocation0 + $0x83] ss:$8 sm:$0xf0]   ;;  %752 = vrot.lane.b32.xlu0 %v751_v25, %s1082_s14  ;;  %269 = vst [vmem:[#allocation0 + $0x58] sm:$0xf] %v992_v35  ;;  %s1461_s6 = smov 3 }
  0x47   :  { %v769_v27 = vld [vmem:[#allocation0 + $0x103] ss:$8 sm:$0xf]   ;;  %v762_v28 = vsel %vm707_vm1, %v760_v26, %v758_v24  ;;  %279 = vst [vmem:[#allocation0 + $0x48] sm:$0xf] %v994_v38  ;;  %s482_s9 = smov 3 }
  0x48   :  { %v771_v29 = vld [vmem:[#allocation0 + $0x103] ss:$8 sm:$0xf0]   ;;  %763 = vrot.lane.b32.xlu1 %v762_v28, %s1082_s14  ;;  %v974_v40 = vld [vmem:[%s1703_s0 + $0x74] sm:$0xf]  ;;  %s488_s10 = smov 3 }
  0x49   :  { %v780_v30 = vld [vmem:[#allocation0 + $0x183] ss:$8 sm:$0xf]   ;;  %v773_v31 = vsel %vm707_vm1, %v771_v29, %v769_v27  ;;  %v405_v42 = vld [vmem:[#allocation0 + $0x70] ss:$2 sm:%s404_s8]   ;;  %s500_s16 = smov 3 }
  0x4a   :  { %v782_v32 = vld [vmem:[#allocation0 + $0x183] ss:$8 sm:$0xf0]   ;;  %774 = vrot.lane.b32.xlu0 %v773_v31, %s1082_s14  ;;  %179 = vst [vmem:[#allocation0 + $0xe8] sm:$0xf] %v974_v40  ;;  %s566_s18 = smov 3 }
  0x4b   :  { %v991_v34 = vld [vmem:[%s1703_s0 + $0x30] sm:$0xf]  ;;  %v993_v36 = vld [vmem:[%s1703_s0 + $0x28] sm:$0xf]  ;;  %v784_v37 = vsel %vm707_vm1, %v782_v32, %v780_v30  ;;  %v973_v39 = vld [vmem:[%s1703_s0 + $0x78] sm:$0xf] }
  0x4c   :  { %264 = vst [vmem:[#allocation0 + $0x60] sm:$0xf] %v991_v34  ;;  %274 = vst [vmem:[#allocation0 + $0x50] sm:$0xf] %v993_v36  ;;  %v975_v41 = vld [vmem:[%s1703_s0 + $0x70] sm:$0xf]  ;;  %785 = vrot.lane.b32.xlu1 %v784_v37, %s1082_s14 }
  0x4d   :  { %174 = vst [vmem:[#allocation0 + $0xf0] sm:$0xf] %v973_v39  ;;  %184 = vst [vmem:[#allocation0 + $0xe0] sm:$0xf] %v975_v41  ;;  %v976_v43 = vld [vmem:[%s1703_s0 + $0x6c] sm:$0xf] }
  0x4e   :  { %1016 = vst.msk [vmem:[%s1704_s1 + $0x16] ss:$8 sm:$0x3] %vm323_vm0, %v405_v42   ;;  %v411_v44 = vld [vmem:[#allocation0 + $0x78] ss:$2 sm:%s410_s15]   ;;  %s656_s26 = smov 3 }
  0x4f   :  { %189 = vst [vmem:[#allocation0 + $0xd8] sm:$0xf] %v976_v43  ;;  %v977_v45 = vld [vmem:[%s1703_s0 + $0x68] sm:$0xf]  ;;  %v978_v46 = vld [vmem:[%s1703_s0 + $0x64] sm:$0xf] }
  0x50   :  { %1017 = vst.msk [vmem:[%s1704_s1 + $0x17] ss:$8 sm:$0x3] %vm323_vm0, %v411_v44   ;;  %194 = vst [vmem:[#allocation0 + $0xd0] sm:$0xf] %v977_v45  ;;  %s662_s24 = smov 3 }
  0x51   :  { %199 = vst [vmem:[#allocation0 + $0xc8] sm:$0xf] %v978_v46  ;;  %v957_v47 = vld [vmem:[%s1703_s0 + $0xb8] sm:$0xf]  ;;  %v958_v48 = vld [vmem:[%s1703_s0 + $0xb4] sm:$0xf] }
  0x52   :  { %94 = vst [vmem:[#allocation0 + $0x170] sm:$0xf] %v957_v47  ;;  %99 = vst [vmem:[#allocation0 + $0x168] sm:$0xf] %v958_v48  ;;  %v959_v49 = vld [vmem:[%s1703_s0 + $0xb0] sm:$0xf] }
  0x53   :  { %v960_v50 = vld [vmem:[%s1703_s0 + $0xac] sm:$0xf]  ;;  %104 = vst [vmem:[#allocation0 + $0x160] sm:$0xf] %v959_v49  ;;  %v961_v52 = vld [vmem:[%s1703_s0 + $0xa8] sm:$0xf] }
  0x54   :  { %v399_v51 = vld [vmem:[#allocation0 + $0x68] ss:$2 sm:%s1431_s7]   ;;  %s494_s7 = smov 3  ;;  %109 = vst [vmem:[#allocation0 + $0x158] sm:$0xf] %v960_v50  ;;  %s668_s29 = smov 3 }
  0x55   :  { %v381_v53 = vld [vmem:[#allocation0 + $0x50] ss:$2 sm:%s1407_s22]   ;;  %v393_v55 = vld [vmem:[#allocation0 + $0x60] ss:$2 sm:%s1425_s11]   ;;  %114 = vst [vmem:[#allocation0 + $0x150] sm:$0xf] %v961_v52 }
  0x56   :  { %v387_v54 = vld [vmem:[#allocation0 + $0x58] ss:$2 sm:%s1423_s3]   ;;  %1015 = vst.msk [vmem:[%s1704_s1 + $0x15] ss:$8 sm:$0x3] %vm323_vm0, %v399_v51   ;;  %s584_s22 = smov 3 }
  0x57   :  { %v369_v56 = vld [vmem:[#allocation0 + $0x40] ss:$2 sm:%s1386_s17]   ;;  %1012 = vst.msk [vmem:[%s1704_s1 + $0x12] ss:$8 sm:$0x3] %vm323_vm0, %v381_v53   ;;  %s590_s3 = smov 3 }
  0x58   :  { %v375_v57 = vld [vmem:[#allocation0 + $0x48] ss:$2 sm:%s1393_s19]   ;;  %1013 = vst.msk [vmem:[%s1704_s1 + $0x13] ss:$8 sm:$0x3] %vm323_vm0, %v387_v54   ;;  %s596_s11 = smov 3 }
  0x59   :  { %1014 = vst.msk [vmem:[%s1704_s1 + $0x14] ss:$8 sm:$0x3] %vm323_vm0, %v393_v55   ;;  %v501_v58 = vld [vmem:[#allocation0 + $0xf0] ss:$2 sm:%s500_s16]   ;;  %s578_s16 = smov 3 }
  0x5a   :  { %1010 = vst.msk [vmem:[%s1704_s1 + $0x10] ss:$8 sm:$0x3] %vm323_vm0, %v369_v56   ;;  %1011 = vst.msk [vmem:[%s1704_s1 + $0x11] ss:$8 sm:$0x3] %vm323_vm0, %v375_v57  }
  0x5b   :  { %v791_v59 = vld [vmem:[#allocation0 + $0x41] ss:$8 sm:$0xf]   ;;  %1032 = vst.msk [vmem:[%s1704_s1 + $0x36] ss:$8 sm:$0x3] %vm323_vm0, %v501_v58  }
  0x5c   :  { %v793_v60 = vld [vmem:[#allocation0 + $0x41] ss:$8 sm:$0xf0]   ;;  %v483_v62 = vld [vmem:[#allocation0 + $0xd8] ss:$2 sm:%s482_s9]   ;;  %s674_s30 = smov 3 }
  0x5d   :  { %v795_v61 = vsel %vm707_vm1, %v793_v60, %v791_v59  ;;  %v489_v63 = vld [vmem:[#allocation0 + $0xe0] ss:$2 sm:%s488_s10]   ;;  %v477_v3 = vld [vmem:[#allocation0 + $0xd0] ss:$2 sm:%s1461_s6]   ;;  %s680_s4 = smov 3  ;;  %s686_s2 = smov 3 }
  0x5e   :  { %v495_v0 = vld [vmem:[#allocation0 + $0xe8] ss:$2 sm:%s494_s7]   ;;  %796 = vrot.lane.b32.xlu0 %v795_v61, %s1082_s14  ;;  %1029 = vst.msk [vmem:[%s1704_s1 + $0x33] ss:$8 sm:$0x3] %vm323_vm0, %v483_v62   ;;  %s572_s7 = smov 3 }
  0x5f   :  { %v465_v1 = vld [vmem:[#allocation0 + $0xc0] ss:$2 sm:%s1442_s20]   ;;  %1030 = vst.msk [vmem:[%s1704_s1 + $0x34] ss:$8 sm:$0x3] %vm323_vm0, %v489_v63   ;;  %s692_s12 = smov 3 }
  0x60   :  { %v471_v2 = vld [vmem:[#allocation0 + $0xc8] ss:$2 sm:%s1459_s5]   ;;  %1031 = vst.msk [vmem:[%s1704_s1 + $0x35] ss:$8 sm:$0x3] %vm323_vm0, %v495_v0   ;;  %s698_s13 = smov 3 }
  0x61   :  { %1026 = vst.msk [vmem:[%s1704_s1 + $0x30] ss:$8 sm:$0x3] %vm323_vm0, %v465_v1   ;;  %1027 = vst.msk [vmem:[%s1704_s1 + $0x31] ss:$8 sm:$0x3] %vm323_vm0, %v471_v2  }
  0x62   :  { %1028 = vst.msk [vmem:[%s1704_s1 + $0x32] ss:$8 sm:$0x3] %vm323_vm0, %v477_v3   ;;  %v802_v4 = vld [vmem:[#allocation0 + $0xc1] ss:$8 sm:$0xf]  }
  0x63   :  { %v804_v5 = vld [vmem:[#allocation0 + $0xc1] ss:$8 sm:$0xf0]   ;;  %v962_v7 = vld [vmem:[%s1703_s0 + $0xa4] sm:$0xf] }
  0x64   :  { %v806_v6 = vsel %vm707_vm1, %v804_v5, %v802_v4  ;;  %v940_v8 = vld [vmem:[%s1703_s0 + $0xfc] sm:$0xf]  ;;  %119 = vst [vmem:[#allocation0 + $0x148] sm:$0xf] %v962_v7  ;;  %v585_v9 = vld [vmem:[#allocation0 + $0x160] ss:$2 sm:%s584_s22]  }
  0x65   :  { %807 = vrot.lane.b32.xlu1 %v806_v6, %s1082_s14  ;;  %v591_v10 = vld [vmem:[#allocation0 + $0x168] ss:$2 sm:%s590_s3]   ;;  %9 = vst [vmem:[#allocation0 + $0x1f8] sm:$0xf] %v940_v8  ;;  %v941_v12 = vld [vmem:[%s1703_s0 + $0xf8] sm:$0xf] }
  0x66   :  { %1046 = vst.msk [vmem:[%s1704_s1 + $0x54] ss:$8 sm:$0x3] %vm323_vm0, %v585_v9   ;;  %1047 = vst.msk [vmem:[%s1704_s1 + $0x55] ss:$8 sm:$0x3] %vm323_vm0, %v591_v10  }
  0x67   :  { %v597_v11 = vld [vmem:[#allocation0 + $0x170] ss:$2 sm:%s596_s11]   ;;  %14 = vst [vmem:[#allocation0 + $0x1f0] sm:$0xf] %v941_v12  ;;  %v944_v15 = vld [vmem:[%s1703_s0 + $0xec] sm:$0xf] }
  0x68   :  { %1048 = vst.msk [vmem:[%s1704_s1 + $0x56] ss:$8 sm:$0x3] %vm323_vm0, %v597_v11   ;;  %v942_v13 = vld [vmem:[%s1703_s0 + $0xf4] sm:$0xf] }
  0x69   :  { %v943_v14 = vld [vmem:[%s1703_s0 + $0xf0] sm:$0xf]  ;;  %19 = vst [vmem:[#allocation0 + $0x1e8] sm:$0xf] %v942_v13  ;;  %v945_v16 = vld [vmem:[%s1703_s0 + $0xe8] sm:$0xf] }
  0x6a   :  { %24 = vst [vmem:[#allocation0 + $0x1e0] sm:$0xf] %v943_v14  ;;  %v946_v17 = vld [vmem:[%s1703_s0 + $0xe4] sm:$0xf]  ;;  %29 = vst [vmem:[#allocation0 + $0x1d8] sm:$0xf] %v944_v15 }
  0x6b   :  { %v815_v18 = vld [vmem:[#allocation0 + $0x141] ss:$8 sm:$0xf0]   ;;  %34 = vst [vmem:[#allocation0 + $0x1d0] sm:$0xf] %v945_v16  ;;  %s560_s0 = smov 3 }
  0x6c   :  { %39 = vst [vmem:[#allocation0 + $0x1c8] sm:$0xf] %v946_v17  ;;  %v835_v19 = vld [vmem:[#allocation0 + $0x43] ss:$8 sm:$0xf]  }
  0x6d   :  { %v837_v20 = vld [vmem:[#allocation0 + $0x43] ss:$8 sm:$0xf0]   ;;  %v813_v21 = vld [vmem:[#allocation0 + $0x141] ss:$8 sm:$0xf]  }
  0x6e   :  { %v561_v22 = vld [vmem:[#allocation0 + $0x140] ss:$2 sm:%s560_s0]   ;;  %v817_v23 = vsel %vm707_vm1, %v815_v18, %v813_v21  ;;  %v573_v25 = vld [vmem:[#allocation0 + $0x150] ss:$2 sm:%s572_s7]   ;;  %v839_v32 = vsel %vm707_vm1, %v837_v20, %v835_v19 }
  0x6f   :  { %1042 = vst.msk [vmem:[%s1704_s1 + $0x50] ss:$8 sm:$0x3] %vm323_vm0, %v561_v22   ;;  %v567_v24 = vld [vmem:[#allocation0 + $0x148] ss:$2 sm:%s566_s18]   ;;  %818 = vrot.lane.b32.xlu0 %v817_v23, %s1082_s14 }
  0x70   :  { %v579_v26 = vld [vmem:[#allocation0 + $0x158] ss:$2 sm:%s578_s16]   ;;  %v846_v27 = vld [vmem:[#allocation0 + $0xc3] ss:$8 sm:$0xf]  }
  0x71   :  { %v848_v28 = vld [vmem:[#allocation0 + $0xc3] ss:$8 sm:$0xf0]   ;;  %1043 = vst.msk [vmem:[%s1704_s1 + $0x51] ss:$8 sm:$0x3] %vm323_vm0, %v567_v24  }
  0x72   :  { %1044 = vst.msk [vmem:[%s1704_s1 + $0x52] ss:$8 sm:$0x3] %vm323_vm0, %v573_v25   ;;  %1045 = vst.msk [vmem:[%s1704_s1 + $0x53] ss:$8 sm:$0x3] %vm323_vm0, %v579_v26   ;;  %v850_v41 = vsel %vm707_vm1, %v848_v28, %v846_v27 }
  0x73   :  { %v857_v29 = vld [vmem:[#allocation0 + $0x143] ss:$8 sm:$0xf]   ;;  %v826_v31 = vld [vmem:[#allocation0 + $0x1c1] ss:$8 sm:$0xf0]   ;;  %840 = vrot.lane.b32.xlu0 %v839_v32, %s1082_s14 }
  0x74   :  { %v859_v30 = vld [vmem:[#allocation0 + $0x143] ss:$8 sm:$0xf0]   ;;  %v824_v33 = vld [vmem:[#allocation0 + $0x1c1] ss:$8 sm:$0xf]  }
  0x75   :  { %v657_v34 = vld [vmem:[#allocation0 + $0x1c0] ss:$2 sm:%s656_s26]   ;;  %v828_v35 = vsel %vm707_vm1, %v826_v31, %v824_v33  ;;  %v669_v37 = vld [vmem:[#allocation0 + $0x1d0] ss:$2 sm:%s668_s29]   ;;  %v861_v42 = vsel %vm707_vm1, %v859_v30, %v857_v29 }
  0x76   :  { %1058 = vst.msk [vmem:[%s1704_s1 + $0x70] ss:$8 sm:$0x3] %vm323_vm0, %v657_v34   ;;  %v663_v36 = vld [vmem:[#allocation0 + $0x1c8] ss:$2 sm:%s662_s24]   ;;  %829 = vrot.lane.b32.xlu1 %v828_v35, %s1082_s14 }
  0x77   :  { %v675_v38 = vld [vmem:[#allocation0 + $0x1d8] ss:$2 sm:%s674_s30]   ;;  %1059 = vst.msk [vmem:[%s1704_s1 + $0x71] ss:$8 sm:$0x3] %vm323_vm0, %v663_v36   ;;  %862 = vrot.lane.b32.xlu0 %v861_v42, %s1082_s14 }
  0x78   :  { %1060 = vst.msk [vmem:[%s1704_s1 + $0x72] ss:$8 sm:$0x3] %vm323_vm0, %v669_v37   ;;  %1061 = vst.msk [vmem:[%s1704_s1 + $0x73] ss:$8 sm:$0x3] %vm323_vm0, %v675_v38  }
  0x79   :  { %v681_v39 = vld [vmem:[#allocation0 + $0x1e0] ss:$2 sm:%s680_s4]   ;;  %v868_v43 = vld [vmem:[#allocation0 + $0x1c3] ss:$8 sm:$0xf]  }
  0x7a   :  { %v687_v40 = vld [vmem:[#allocation0 + $0x1e8] ss:$2 sm:%s686_s2]   ;;  %1062 = vst.msk [vmem:[%s1704_s1 + $0x74] ss:$8 sm:$0x3] %vm323_vm0, %v681_v39   ;;  %851 = vrot.lane.b32.xlu1 %v850_v41, %s1082_s14 }
  0x7b   :  { %1063 = vst.msk [vmem:[%s1704_s1 + $0x75] ss:$8 sm:$0x3] %vm323_vm0, %v687_v40   ;;  %v870_v44 = vld [vmem:[#allocation0 + $0x1c3] ss:$8 sm:$0xf0]  }
  0x7c   :  { %v693_v45 = vld [vmem:[#allocation0 + $0x1f0] ss:$2 sm:%s692_s12]   ;;  %v872_v47 = vsel %vm707_vm1, %v870_v44, %v868_v43 }
  0x7d   :  { %v699_v46 = vld [vmem:[#allocation0 + $0x1f8] ss:$2 sm:%s698_s13]   ;;  %1064 = vst.msk [vmem:[%s1704_s1 + $0x76] ss:$8 sm:$0x3] %vm323_vm0, %v693_v45  }
  0x7e   :  { %1065 = vst.msk [vmem:[%s1704_s1 + $0x77] ss:$8 sm:$0x3] %vm323_vm0, %v699_v46   ;;  %873 = vrot.lane.b32.xlu1 %v872_v47, %s1082_s14 }
  0x8a   :  { %v710_v48 = vpop.permute.xlu0 %709  }
  0x8b   :  { %712 = vst.msk [vmem:[%s1704_s1] sm:$0xff] %vm711_vm2, %v710_v48  }
  0x94   :  { %v731_v49 = vpop.permute.xlu1 %730  }
  0x95   :  { %1067 = vst.msk [vmem:[%s1704_s1 + $0x40] sm:$0xff] %vm711_vm2, %v731_v49  }
  0xaa   :  { %v720_v50 = vpop.permute.xlu0 %719  }
  0xab   :  { %1066 = vst.msk [vmem:[%s1704_s1 + $0x20] sm:$0xff] %vm711_vm2, %v720_v50  }
  0xb4   :  { %v742_v51 = vpop.permute.xlu1 %741  }
  0xb5   :  { %1068 = vst.msk [vmem:[%s1704_s1 + $0x60] sm:$0xff] %vm711_vm2, %v742_v51  }
  0xb8   :  { %v753_v52 = vpop.permute.xlu0 %752  }
  0xb9   :  { %1069 = vst.msk [vmem:[%s1704_s1 + $0x8] sm:$0xff] %vm711_vm2, %v753_v52  }
  0xba   :  { %v764_v53 = vpop.permute.xlu1 %763  }
  0xbb   :  { %1070 = vst.msk [vmem:[%s1704_s1 + $0x28] sm:$0xff] %vm711_vm2, %v764_v53  }
  0xbc   :  { %v775_v54 = vpop.permute.xlu0 %774  }
  0xbd   :  { %1071 = vst.msk [vmem:[%s1704_s1 + $0x48] sm:$0xff] %vm711_vm2, %v775_v54  }
  0xbe   :  { %v786_v55 = vpop.permute.xlu1 %785  }
  0xbf   :  { %1072 = vst.msk [vmem:[%s1704_s1 + $0x68] sm:$0xff] %vm711_vm2, %v786_v55  }
  0xd0   :  { %v797_v56 = vpop.permute.xlu0 %796  }
  0xd1   :  { %1073 = vst.msk [vmem:[%s1704_s1 + $0x10] sm:$0xff] %vm711_vm2, %v797_v56  }
  0xd7   :  { %v808_v57 = vpop.permute.xlu1 %807  }
  0xd8   :  { %1074 = vst.msk [vmem:[%s1704_s1 + $0x30] sm:$0xff] %vm711_vm2, %v808_v57  }
  0xe1   :  { %v819_v58 = vpop.permute.xlu0 %818  }
  0xe2   :  { %1075 = vst.msk [vmem:[%s1704_s1 + $0x50] sm:$0xff] %vm711_vm2, %v819_v58  }
  0xe5   :  { %v841_v60 = vpop.permute.xlu0 %840  }
  0xe6   :  { %1077 = vst.msk [vmem:[%s1704_s1 + $0x18] sm:$0xff] %vm711_vm2, %v841_v60  }
  0xe8   :  { %v830_v59 = vpop.permute.xlu1 %829  }
  0xe9   :  { %1076 = vst.msk [vmem:[%s1704_s1 + $0x70] sm:$0xff] %vm711_vm2, %v830_v59   ;;  %v863_v62 = vpop.permute.xlu0 %862  }
  0xea   :  { %1079 = vst.msk [vmem:[%s1704_s1 + $0x58] sm:$0xff] %vm711_vm2, %v863_v62  }
  0xec   :  { %v852_v61 = vpop.permute.xlu1 %851  }
  0xed   :  { %1078 = vst.msk [vmem:[%s1704_s1 + $0x38] sm:$0xff] %vm711_vm2, %v852_v61  }
  0xf0   :  { %v874_v63 = vpop.permute.xlu1 %873  }
  0xf1   :  { %1080 = vst.msk [vmem:[%s1704_s1 + $0x78] sm:$0xff] %vm711_vm2, %v874_v63  }

// kernel: tile.123
= control target key start
LH: loop header
LB: loop body
LE: loop exit
PB: predicated region body
PF: predicated region fallthrough
CT: control target
= control target key end

     0   :  { %s22_s0 = inlined_call_operand.vmem [shape: f32[64], index: 0, kind: input, shape index: {}]   ;;  %s23_s1 = inlined_call_operand.vmem [shape: f32[4,64], index: 1, kind: output, shape index: {}]  }
   0x1   :  { %v4_v0 = vld [vmem:[%s22_s0] ss:$0 sm:$0xff] }
   0x2   :  { %5 = vst [vmem:[%s23_s1] sm:$0xf] %v4_v0 }

// kernel: tile.124
= control target key start
LH: loop header
LB: loop body
LE: loop exit
PB: predicated region body
PF: predicated region fallthrough
CT: control target
= control target key end

     0   :  { %s7_s8 = smov 3  ;;  %vm9_vm0 = vcmask 523264   ;;  %s34_s9 = smov 64   ;;  %vm16_vm1 = vcmask 1048064   ;;  %s54_s0 = inlined_call_operand.vmem [shape: f32[4,64], index: 0, kind: input, shape index: {}]   ;;  %s55_s1 = inlined_call_operand.vmem [shape: f32[1,256], index: 1, kind: output, shape index: {}]  }
   0x1   :  { %v5_v0 = vld [vmem:[%s54_s0] sm:$0xf]  ;;  %s12_s0 = smov 3 }
   0x2   :  { %6 = vst [vmem:[#allocation1] sm:$0xf] %v5_v0 }
   0x9   :  { %v13_v1 = vld [vmem:[#allocation1 + $0x1] ss:$2 sm:%s12_s0]   ;;  %v8_v2 = vld [vmem:[#allocation1] ss:$2 sm:%s7_s8]  }
   0xa   :  { %14 = vrot.lane.b32.xlu0 %v13_v1, %s34_s9  ;;  %10 = vst.msk [vmem:[#allocation0] ss:$8 sm:$0x3] %vm9_vm0, %v8_v2  }
  0x7c   :  { %v15_v3 = vpop.permute.xlu0 %14  }
  0x7d   :  { %17 = vst.msk [vmem:[#allocation0] ss:$8 sm:$0x3] %vm16_vm1, %v15_v3  }
  0x84   :  { %v22_v4 = vld [vmem:[#allocation0] sm:$0x1]  ;;  %v27_v5 = vld [vmem:[#allocation0 + $0x8] sm:$0x1] }
  0x85   :  { %25 = vst [vmem:[%s55_s1] sm:$0x1] %v22_v4  ;;  %32 = vst [vmem:[%s55_s1 + $0x1] sm:$0x1] %v27_v5 }

// kernel: discriminator_forward.7
= control target key start
LH: loop header
LB: loop body
LE: loop exit
PB: predicated region body
PF: predicated region fallthrough
CT: control target
= control target key end

     0   :  { %vm2831_vm0 = vcmask 523264   ;;  %vm3051_vm3 = vcmask 1043456   ;;  %vm3077_vm4 = vcmask 0   ;;  %s5488_s1 = inlined_call_operand.vmem [shape: bf16[2,640,256], index: 1, kind: input, shape index: {}]   ;;  %s5489_s0 = inlined_call_operand.vmem [shape: bf16[2,5,640], index: 0, kind: input, shape index: {}]   ;;  %s5490_s2 = inlined_call_operand.vmem [shape: f32[256,64], index: 2, kind: input, shape index: {}]   ;;  %s5491_s3 = inlined_call_operand.vmem [shape: f32[64,256], index: 3, kind: input, shape index: {}]   ;;  %s5492_s7 = inlined_call_operand.<no memory space> [shape: f32[1,1], index: 7, kind: input, shape index: {}]   ;;  %s5493_s4 = inlined_call_operand.vmem [shape: f32[1,256], index: 4, kind: input, shape index: {}]   ;;  %s5494_s5 = inlined_call_operand.vmem [shape: f32[1,256], index: 5, kind: input, shape index: {}]   ;;  %s5495_s6 = inlined_call_operand.vmem [shape: f32[4,256], index: 6, kind: input, shape index: {}]   ;;  %s5496_s8 = inlined_call_operand.vmem [shape: f32[2,1], index: 8, kind: output, shape index: {}]  }
   0x1   :  { %v3702_v0 = vld [vmem:[%s5488_s1 + $0x2f4] ss:$8 sps:$4 sm:$0xff]   ;;  %v3706_v2 = vld [vmem:[%s5488_s1 + $0x2f0] ss:$8 sps:$4 sm:$0xff]   ;;  %v3708_v4 = vld [vmem:[%s5488_s1 + $0x2e4] ss:$8 sps:$4 sm:$0xff]  }
   0x2   :  { %v3704_v1 = vld [vmem:[%s5488_s1 + $0x3f4] ss:$8 sps:$4 sm:$0xff]   ;;  %652 = vmatprep.subr.bf16.mxu0 %v3702_v0  ;;  %v3707_v3 = vld [vmem:[%s5488_s1 + $0x3f0] ss:$8 sps:$4 sm:$0xff]   ;;  %v3710_v5 = vld [vmem:[%s5488_s1 + $0x3e4] ss:$8 sps:$4 sm:$0xff]  }
   0x3   :  { %693 = vmatprep.subr.bf16.mxu1 %v3704_v1  ;;  %653 = vmatpush1.bf16.msra.mxu0 %v3706_v2  ;;  %v3712_v6 = vld [vmem:[%s5488_s1 + $0x2e0] ss:$8 sps:$4 sm:$0xff]   ;;  %v3714_v8 = vld [vmem:[%s5488_s1 + $0x2d4] ss:$8 sps:$4 sm:$0xff]   ;;  %v3718_v10 = vld [vmem:[%s5488_s1 + $0x2d0] ss:$8 sps:$4 sm:$0xff]  }
   0x4   :  { %694 = vmatpush1.bf16.msra.mxu1 %v3707_v3  ;;  %654 = vmatprep.subr.bf16.mxu0 %v3708_v4  ;;  %v3713_v7 = vld [vmem:[%s5488_s1 + $0x3e0] ss:$8 sps:$4 sm:$0xff]   ;;  %v3716_v9 = vld [vmem:[%s5488_s1 + $0x3d4] ss:$8 sps:$4 sm:$0xff]   ;;  %v3719_v11 = vld [vmem:[%s5488_s1 + $0x3d0] ss:$8 sps:$4 sm:$0xff]  }
   0x5   :  { %695 = vmatprep.subr.bf16.mxu1 %v3710_v5  ;;  %v3720_v12 = vld [vmem:[%s5488_s1 + $0x2c4] ss:$8 sps:$4 sm:$0xff]   ;;  %v3724_v14 = vld [vmem:[%s5488_s1 + $0x2c0] ss:$8 sps:$4 sm:$0xff]   ;;  %v3726_v16 = vld [vmem:[%s5488_s1 + $0x2b4] ss:$8 sps:$4 sm:$0xff]  }
   0x6   :  { %v3722_v13 = vld [vmem:[%s5488_s1 + $0x3c4] ss:$8 sps:$4 sm:$0xff]   ;;  %v3725_v15 = vld [vmem:[%s5488_s1 + $0x3c0] ss:$8 sps:$4 sm:$0xff]   ;;  %v3728_v17 = vld [vmem:[%s5488_s1 + $0x3b4] ss:$8 sps:$4 sm:$0xff]  }
   0x7   :  { %655 = vmatpush1.bf16.msra.mxu0 %v3712_v6  ;;  %v3730_v18 = vld [vmem:[%s5488_s1 + $0x2b0] ss:$8 sps:$4 sm:$0xff]   ;;  %v3732_v20 = vld [vmem:[%s5488_s1 + $0x2a4] ss:$8 sps:$4 sm:$0xff]   ;;  %v3736_v22 = vld [vmem:[%s5488_s1 + $0x2a0] ss:$8 sps:$4 sm:$0xff]  }
   0x8   :  { %696 = vmatpush1.bf16.msra.mxu1 %v3713_v7  ;;  %656 = vmatprep.subr.bf16.mxu0 %v3714_v8  ;;  %v3731_v19 = vld [vmem:[%s5488_s1 + $0x3b0] ss:$8 sps:$4 sm:$0xff]   ;;  %v3734_v21 = vld [vmem:[%s5488_s1 + $0x3a4] ss:$8 sps:$4 sm:$0xff]   ;;  %v3737_v23 = vld [vmem:[%s5488_s1 + $0x3a0] ss:$8 sps:$4 sm:$0xff]  }
   0x9   :  { %697 = vmatprep.subr.bf16.mxu1 %v3716_v9  ;;  %v3738_v24 = vld [vmem:[%s5488_s1 + $0x294] ss:$8 sps:$4 sm:$0xff]   ;;  %v3742_v26 = vld [vmem:[%s5488_s1 + $0x290] ss:$8 sps:$4 sm:$0xff]   ;;  %v3744_v28 = vld [vmem:[%s5488_s1 + $0x284] ss:$8 sps:$4 sm:$0xff]  }
   0xa   :  { %v3740_v25 = vld [vmem:[%s5488_s1 + $0x394] ss:$8 sps:$4 sm:$0xff]   ;;  %v3743_v27 = vld [vmem:[%s5488_s1 + $0x390] ss:$8 sps:$4 sm:$0xff]   ;;  %v3746_v29 = vld [vmem:[%s5488_s1 + $0x384] ss:$8 sps:$4 sm:$0xff]  }
   0xb   :  { %657 = vmatpush1.bf16.msra.mxu0 %v3718_v10  ;;  %v3748_v30 = vld [vmem:[%s5488_s1 + $0x280] ss:$8 sps:$4 sm:$0xff]   ;;  %v3750_v32 = vld [vmem:[%s5488_s1 + $0x374] ss:$8 sps:$4 sm:$0xff]   ;;  %v3754_v34 = vld [vmem:[%s5488_s1 + $0x370] ss:$8 sps:$4 sm:$0xff]  }
   0xc   :  { %698 = vmatpush1.bf16.msra.mxu1 %v3719_v11  ;;  %658 = vmatprep.subr.bf16.mxu0 %v3720_v12  ;;  %v3749_v31 = vld [vmem:[%s5488_s1 + $0x380] ss:$8 sps:$4 sm:$0xff]   ;;  %v3752_v33 = vld [vmem:[%s5488_s1 + $0x474] ss:$8 sps:$4 sm:$0xff]   ;;  %v3755_v35 = vld [vmem:[%s5488_s1 + $0x470] ss:$8 sps:$4 sm:$0xff]  }
   0xd   :  { %699 = vmatprep.subr.bf16.mxu1 %v3722_v13  ;;  %v3756_v36 = vld [vmem:[%s5488_s1 + $0x364] ss:$8 sps:$4 sm:$0xff]   ;;  %v3760_v38 = vld [vmem:[%s5488_s1 + $0x360] ss:$8 sps:$4 sm:$0xff]   ;;  %v3762_v40 = vld [vmem:[%s5488_s1 + $0x354] ss:$8 sps:$4 sm:$0xff]  }
   0xe   :  { %v3758_v37 = vld [vmem:[%s5488_s1 + $0x464] ss:$8 sps:$4 sm:$0xff]   ;;  %v3761_v39 = vld [vmem:[%s5488_s1 + $0x460] ss:$8 sps:$4 sm:$0xff]   ;;  %v3764_v41 = vld [vmem:[%s5488_s1 + $0x454] ss:$8 sps:$4 sm:$0xff]  }
   0xf   :  { %659 = vmatpush1.bf16.msra.mxu0 %v3724_v14  ;;  %v3766_v42 = vld [vmem:[%s5488_s1 + $0x350] ss:$8 sps:$4 sm:$0xff]   ;;  %v3768_v44 = vld [vmem:[%s5488_s1 + $0x344] ss:$8 sps:$4 sm:$0xff]   ;;  %v3772_v46 = vld [vmem:[%s5488_s1 + $0x340] ss:$8 sps:$4 sm:$0xff]  }
  0x10   :  { %700 = vmatpush1.bf16.msra.mxu1 %v3725_v15  ;;  %660 = vmatprep.subr.bf16.mxu0 %v3726_v16  ;;  %v3767_v43 = vld [vmem:[%s5488_s1 + $0x450] ss:$8 sps:$4 sm:$0xff]   ;;  %v3770_v45 = vld [vmem:[%s5488_s1 + $0x444] ss:$8 sps:$4 sm:$0xff]   ;;  %v3773_v50 = vld [vmem:[%s5488_s1 + $0x440] ss:$8 sps:$4 sm:$0xff]  }
  0x11   :  { %701 = vmatprep.subr.bf16.mxu1 %v3728_v17  ;;  %v115_v47 = vld [vmem:[%s5489_s0] sm:$0x77]  ;;  %v116_v49 = vld [vmem:[%s5489_s0 + $0x8] sm:$0x77]  ;;  %v3774_v51 = vld [vmem:[%s5488_s1 + $0x334] ss:$8 sps:$4 sm:$0xff]  }
  0x12   :  { %v3200_v48 = vcombine.high %v115_v47, %v115_v47  ;;  %v3202_v52 = vcombine.high %v116_v49, %v116_v49  ;;  %v3776_v53 = vld [vmem:[%s5488_s1 + $0x434] ss:$8 sps:$4 sm:$0xff]   ;;  %v3778_v59 = vld [vmem:[%s5488_s1 + $0x330] ss:$8 sps:$4 sm:$0xff]   ;;  %v3780_v62 = vld [vmem:[%s5488_s1 + $0x324] ss:$8 sps:$4 sm:$0xff]   ;;  %v3199_v2 = vcombine.low %v115_v47, %v115_v47  ;;  %v3201_v3 = vcombine.low %v116_v49, %v116_v49 }
  0x13   :  { %661 = vmatpush1.bf16.msra.mxu0 %v3730_v18  ;;  %v3779_v60 = vld [vmem:[%s5488_s1 + $0x430] ss:$8 sps:$4 sm:$0xff]   ;;  %v3782_v63 = vld [vmem:[%s5488_s1 + $0x424] ss:$8 sps:$4 sm:$0xff]   ;;  %v3784_v4 = vld [vmem:[%s5488_s1 + $0x320] ss:$8 sps:$4 sm:$0xff]  }
  0x14   :  { %702 = vmatpush1.bf16.msra.mxu1 %v3731_v19  ;;  %662 = vmatprep.subr.bf16.mxu0 %v3732_v20  ;;  %v220_v54 = vshrl.u32 %v3200_v48, 16  ;;  %v222_v55 = vshll.u32 %v3200_v48, 16  ;;  %v234_v56 = vshrl.u32 %v3202_v52, 16  ;;  %v236_v57 = vshll.u32 %v3202_v52, 16  ;;  %v3785_v5 = vld [vmem:[%s5488_s1 + $0x420] ss:$8 sps:$4 sm:$0xff]  }
  0x15   :  { %703 = vmatprep.subr.bf16.mxu1 %v3734_v21  ;;  %v3786_v6 = vld [vmem:[%s5488_s1 + $0x314] ss:$8 sps:$4 sm:$0xff]   ;;  %v215_v8 = vshll.u32 %v3199_v2, 16  ;;  %v229_v9 = vshll.u32 %v3201_v3, 16  ;;  %v3790_v10 = vld [vmem:[%s5488_s1 + $0x310] ss:$8 sps:$4 sm:$0xff]  }
  0x16   :  { %v224_v58 = vrot.slane %v222_v55, 1  ;;  %v238_v61 = vrot.slane %v236_v57, 1  ;;  %v3788_v7 = vld [vmem:[%s5488_s1 + $0x414] ss:$8 sps:$4 sm:$0xff]   ;;  %v3791_v11 = vld [vmem:[%s5488_s1 + $0x410] ss:$8 sps:$4 sm:$0xff]  }
  0x17   :  { %663 = vmatpush1.bf16.msra.mxu0 %v3736_v22  ;;  %v3792_v12 = vld [vmem:[%s5488_s1 + $0x304] ss:$8 sps:$4 sm:$0xff]   ;;  %v213_v14 = vshrl.u32 %v3199_v2, 16  ;;  %v217_v15 = vrot.slane %v215_v8, 1  ;;  %v227_v16 = vshrl.u32 %v3201_v3, 16  ;;  %v231_v17 = vrot.slane %v229_v9, 1 }
  0x18   :  { %704 = vmatpush1.bf16.msra.mxu1 %v3737_v23  ;;  %664 = vmatprep.subr.bf16.mxu0 %v3738_v24  ;;  %v225_v0 = vor.u32 %v224_v58, %v220_v54  ;;  %v239_v1 = vor.u32 %v238_v61, %v234_v56  ;;  %v3794_v13 = vld [vmem:[%s5488_s1 + $0x404] ss:$8 sps:$4 sm:$0xff]   ;;  %v3796_v18 = vld [vmem:[%s5488_s1 + $0x300] ss:$8 sps:$4 sm:$0xff]   ;;  %v3804_v20 = vld [vmem:[%s5488_s1 + $0x4f4] ss:$8 sps:$4 sm:$0xff]  }
  0x19   :  { %705 = vmatprep.subr.bf16.mxu1 %v3740_v25  ;;  %v3797_v19 = vld [vmem:[%s5488_s1 + $0x400] ss:$8 sps:$4 sm:$0xff]   ;;  %v3807_v21 = vld [vmem:[%s5488_s1 + $0x74] ss:$8 sps:$4 sm:$0xff]   ;;  %v218_v22 = vor.u32 %v217_v15, %v213_v14  ;;  %v232_v23 = vor.u32 %v231_v17, %v227_v16  ;;  %v3802_v24 = vld [vmem:[%s5488_s1 + $0x4f0] ss:$8 sps:$4 sm:$0xff]  }
  0x1a   :  { %684 = vmatprep.mubr.bf16.mxu0 %v225_v0  ;;  %725 = vmatprep.mubr.bf16.mxu1 %v239_v1  ;;  %v3805_v25 = vld [vmem:[%s5488_s1 + $0x70] ss:$8 sps:$4 sm:$0xff]   ;;  %v3840_v48 = vld [vmem:[%s5488_s1 + $0x494] ss:$8 sps:$4 sm:$0xff]   ;;  %v3846_v54 = vld [vmem:[%s5488_s1 + $0x484] ss:$8 sps:$4 sm:$0xff]  }
  0x1b   :  { %665 = vmatpush1.bf16.msra.mxu0 %v3742_v26  ;;  %v3810_v26 = vld [vmem:[%s5488_s1 + $0x4e4] ss:$8 sps:$4 sm:$0xff]   ;;  %v3850_v47 = vld [vmem:[%s5489_s0 + $0x10] ss:$0 sps:$4 sm:$0x77]  }
  0x1c   :  { %706 = vmatpush1.bf16.msra.mxu1 %v3743_v27  ;;  %666 = vmatprep.subr.bf16.mxu0 %v3744_v28  ;;  %v3813_v27 = vld [vmem:[%s5488_s1 + $0x64] ss:$8 sps:$4 sm:$0xff]   ;;  %v3808_v28 = vld [vmem:[%s5488_s1 + $0x4e0] ss:$8 sps:$4 sm:$0xff]   ;;  %v3843_v49 = vld [vmem:[%s5488_s1 + $0x14] ss:$8 sps:$4 sm:$0xff]  }
  0x1d   :  { %707 = vmatprep.subr.bf16.mxu1 %v3746_v29  ;;  %v3811_v29 = vld [vmem:[%s5488_s1 + $0x60] ss:$8 sps:$4 sm:$0xff]   ;;  %v243_v52 = vshll.u32 %v3850_v47, 16  ;;  %v3849_v55 = vld [vmem:[%s5488_s1 + $0x4] ss:$8 sps:$4 sm:$0xff]   ;;  %v241_v58 = vshrl.u32 %v3850_v47, 16 }
  0x1e   :  { %v3844_v57 = vld [vmem:[%s5488_s1 + $0x480] ss:$8 sps:$4 sm:$0xff]   ;;  %v3853_v61 = vld [vmem:[%s5488_s1 + $0xf4] ss:$8 sps:$4 sm:$0xff]   ;;  %v3851_v0 = vld [vmem:[%s5488_s1 + $0xf0] ss:$8 sps:$4 sm:$0xff]  }
  0x1f   :  { %667 = vmatpush1.bf16.msra.mxu0 %v3748_v30  ;;  %v3816_v30 = vld [vmem:[%s5488_s1 + $0x4d4] ss:$8 sps:$4 sm:$0xff]   ;;  %v3854_v1 = vld [vmem:[%s5488_s1 + $0x170] ss:$8 sps:$4 sm:$0xff]   ;;  %v3859_v2 = vld [vmem:[%s5488_s1 + $0xe4] ss:$8 sps:$4 sm:$0xff]  }
  0x20   :  { %708 = vmatpush1.bf16.msra.mxu1 %v3749_v31  ;;  %668 = vmatprep.subr.bf16.mxu0 %v3750_v32  ;;  %v3819_v31 = vld [vmem:[%s5488_s1 + $0x54] ss:$8 sps:$4 sm:$0xff]   ;;  %v4216_v32 = vmov 0   ;;  %v3862_v3 = vld [vmem:[%s5488_s1 + $0x164] ss:$8 sps:$4 sm:$0xff]  }
  0x21   :  { %709 = vmatprep.subr.bf16.mxu1 %v3752_v33  ;;  %v3814_v33 = vld [vmem:[%s5488_s1 + $0x4d0] ss:$8 sps:$4 sm:$0xff]   ;;  %v3877_v14 = vld [vmem:[%s5488_s1 + $0xb4] ss:$8 sps:$4 sm:$0xff]   ;;  %v4626_v16 = vld [vmem:[%s5489_s0 + $0x8] sm:$0x33] }
  0x22   :  { %v3863_v8 = vld [vmem:[%s5488_s1 + $0xd0] ss:$8 sps:$4 sm:$0xff]   ;;  %v3880_v15 = vld [vmem:[%s5488_s1 + $0x134] ss:$8 sps:$4 sm:$0xff]   ;;  %v3287_v17 = vcombine.high %v4626_v16, %v4626_v16  ;;  %v3924_v47 = vld [vmem:[%s5488_s1 + $0x244] ss:$8 sps:$4 sm:$0xff]  }
  0x23   :  { %669 = vmatpush2.bf16.msra.mxu0 %v3754_v34  ;;  %v3817_v34 = vld [vmem:[%s5488_s1 + $0x50] ss:$8 sps:$4 sm:$0xff]  }
  0x24   :  { %710 = vmatpush2.bf16.msra.mxu1 %v3755_v35  ;;  %670 = vmatprep.subr.bf16.mxu0 %v3756_v36  ;;  %v3822_v35 = vld [vmem:[%s5488_s1 + $0x4c4] ss:$8 sps:$4 sm:$0xff]   ;;  %v3866_v9 = vld [vmem:[%s5488_s1 + $0x150] ss:$8 sps:$4 sm:$0xff]  }
  0x25   :  { %711 = vmatprep.subr.bf16.mxu1 %v3758_v37  ;;  %v3825_v36 = vld [vmem:[%s5488_s1 + $0x44] ss:$8 sps:$4 sm:$0xff]   ;;  %v3820_v37 = vld [vmem:[%s5488_s1 + $0x4c0] ss:$8 sps:$4 sm:$0xff]  }
  0x27   :  { %671 = vmatpush2.bf16.msra.mxu0 %v3760_v38  ;;  %v3823_v38 = vld [vmem:[%s5488_s1 + $0x40] ss:$8 sps:$4 sm:$0xff]  }
  0x28   :  { %712 = vmatpush2.bf16.msra.mxu1 %v3761_v39  ;;  %672 = vmatprep.subr.bf16.mxu0 %v3762_v40  ;;  %v3828_v39 = vld [vmem:[%s5488_s1 + $0x4b4] ss:$8 sps:$4 sm:$0xff]  }
  0x29   :  { %713 = vmatprep.subr.bf16.mxu1 %v3764_v41  ;;  %v3831_v40 = vld [vmem:[%s5488_s1 + $0x34] ss:$8 sps:$4 sm:$0xff]   ;;  %v3826_v41 = vld [vmem:[%s5488_s1 + $0x4b0] ss:$8 sps:$4 sm:$0xff]  }
  0x2b   :  { %673 = vmatpush2.bf16.msra.mxu0 %v3766_v42  ;;  %v3829_v42 = vld [vmem:[%s5488_s1 + $0x30] ss:$8 sps:$4 sm:$0xff]  }
  0x2c   :  { %714 = vmatpush2.bf16.msra.mxu1 %v3767_v43  ;;  %674 = vmatprep.subr.bf16.mxu0 %v3768_v44  ;;  %v3834_v43 = vld [vmem:[%s5488_s1 + $0x4a4] ss:$8 sps:$4 sm:$0xff]  }
  0x2d   :  { %715 = vmatprep.subr.bf16.mxu1 %v3770_v45  ;;  %v3837_v44 = vld [vmem:[%s5488_s1 + $0x24] ss:$8 sps:$4 sm:$0xff]   ;;  %v3832_v45 = vld [vmem:[%s5488_s1 + $0x4a0] ss:$8 sps:$4 sm:$0xff]  }
  0x2f   :  { %675 = vmatpush2.bf16.msra.mxu0 %v3772_v46  ;;  %v3835_v46 = vld [vmem:[%s5488_s1 + $0x20] ss:$8 sps:$4 sm:$0xff]  }
  0x30   :  { %716 = vmatpush2.bf16.msra.mxu1 %v3773_v50  ;;  %676 = vmatprep.subr.bf16.mxu0 %v3774_v51  ;;  %v3838_v50 = vld [vmem:[%s5488_s1 + $0x490] ss:$8 sps:$4 sm:$0xff]  }
  0x31   :  { %717 = vmatprep.subr.bf16.mxu1 %v3776_v53  ;;  %v3841_v51 = vld [vmem:[%s5488_s1 + $0x10] ss:$8 sps:$4 sm:$0xff]   ;;  %v4553_v53 = vld [vmem:[%s5489_s0] sm:$0x33] }
  0x32   :  { %v3285_v56 = vcombine.high %v4553_v53, %v4553_v53 }
  0x33   :  { %677 = vmatpush2.bf16.msra.mxu0 %v3778_v59  ;;  %v245_v59 = vrot.slane %v243_v52, 1  ;;  %v3925_v52 = vld [vmem:[%s5488_s1 + $0x1b0] ss:$8 sps:$4 sm:$0xff]  }
  0x34   :  { %718 = vmatpush2.bf16.msra.mxu1 %v3779_v60  ;;  %678 = vmatprep.subr.bf16.mxu0 %v3780_v62  ;;  %v3847_v60 = vld [vmem:[%s5488_s1] ss:$8 sps:$4 sm:$0xff]   ;;  %v3856_v62 = vld [vmem:[%s5488_s1 + $0x174] ss:$8 sps:$4 sm:$0xff]  }
  0x35   :  { %719 = vmatprep.subr.bf16.mxu1 %v3782_v63  ;;  %v246_v63 = vor.u32 %v245_v59, %v241_v58  ;;  %v3939_v58 = vld [vmem:[%s5488_s1 + $0x194] ss:$8 sps:$4 sm:$0xff]  }
  0x36   :  { %v3942_v59 = vld [vmem:[%s5488_s1 + $0x214] ss:$8 sps:$4 sm:$0xff]  }
  0x37   :  { %679 = vmatpush2.bf16.msra.mxu0 %v3784_v4  ;;  %v3857_v4 = vld [vmem:[%s5488_s1 + $0xe0] ss:$8 sps:$4 sm:$0xff]  }
  0x38   :  { %720 = vmatpush2.bf16.msra.mxu1 %v3785_v5  ;;  %680 = vmatprep.subr.bf16.mxu0 %v3786_v6  ;;  %v3860_v5 = vld [vmem:[%s5488_s1 + $0x160] ss:$8 sps:$4 sm:$0xff]   ;;  %v3865_v6 = vld [vmem:[%s5488_s1 + $0xd4] ss:$8 sps:$4 sm:$0xff]  }
  0x39   :  { %721 = vmatprep.subr.bf16.mxu1 %v3788_v7  ;;  %v3868_v7 = vld [vmem:[%s5488_s1 + $0x154] ss:$8 sps:$4 sm:$0xff]  }
  0x3b   :  { %681 = vmatpush2.bf16.msra.mxu0 %v3790_v10  ;;  %v3871_v10 = vld [vmem:[%s5488_s1 + $0xc4] ss:$8 sps:$4 sm:$0xff]  }
  0x3c   :  { %722 = vmatpush2.bf16.msra.mxu1 %v3791_v11  ;;  %682 = vmatprep.subr.bf16.mxu0 %v3792_v12  ;;  %v3874_v11 = vld [vmem:[%s5488_s1 + $0x144] ss:$8 sps:$4 sm:$0xff]   ;;  %v3869_v12 = vld [vmem:[%s5488_s1 + $0xc0] ss:$8 sps:$4 sm:$0xff]  }
  0x3d   :  { %723 = vmatprep.subr.bf16.mxu1 %v3794_v13  ;;  %v3872_v13 = vld [vmem:[%s5488_s1 + $0x140] ss:$8 sps:$4 sm:$0xff]  }
  0x3f   :  { %683 = vmatpush2.bf16.msra.mxu0 %v3796_v18  ;;  %v3875_v18 = vld [vmem:[%s5488_s1 + $0xb0] ss:$8 sps:$4 sm:$0xff]  }
  0x40   :  { %724 = vmatpush2.bf16.msra.mxu1 %v3797_v19  ;;  %734 = vmatprep.subr.bf16.mxu0 %v3804_v20  ;;  %v3878_v19 = vld [vmem:[%s5488_s1 + $0x130] ss:$8 sps:$4 sm:$0xff]   ;;  %v3883_v20 = vld [vmem:[%s5488_s1 + $0xa4] ss:$8 sps:$4 sm:$0xff]  }
  0x41   :  { %1193 = vmatprep.subr.bf16.mxu1 %v3807_v21  ;;  %v3886_v21 = vld [vmem:[%s5488_s1 + $0x124] ss:$8 sps:$4 sm:$0xff]  }
  0x42   :  { %685 = vmatmul.mubr.bf16.vlgmr.msra.gmra.mxu0 %v218_v22  ;;  %v3881_v22 = vld [vmem:[%s5488_s1 + $0xa0] ss:$8 sps:$4 sm:$0xff]  }
  0x43   :  { %726 = vmatmul.mubr.bf16.vlgmr.msra.gmra.mxu1 %v232_v23  ;;  %735 = vmatpush1.bf16.msra.mxu0 %v3802_v24  ;;  %v3884_v23 = vld [vmem:[%s5488_s1 + $0x120] ss:$8 sps:$4 sm:$0xff]   ;;  %v3889_v24 = vld [vmem:[%s5488_s1 + $0x94] ss:$8 sps:$4 sm:$0xff]  }
  0x44   :  { %1194 = vmatpush1.bf16.msra.mxu1 %v3805_v25  ;;  %736 = vmatprep.subr.bf16.mxu0 %v3810_v26  ;;  %v3892_v25 = vld [vmem:[%s5488_s1 + $0x114] ss:$8 sps:$4 sm:$0xff]   ;;  %v3887_v26 = vld [vmem:[%s5488_s1 + $0x90] ss:$8 sps:$4 sm:$0xff]  }
  0x45   :  { %1195 = vmatprep.subr.bf16.mxu1 %v3813_v27  ;;  %766 = vmatprep.mubr.bf16.mxu0 %v4216_v32  ;;  %v3890_v27 = vld [vmem:[%s5488_s1 + $0x110] ss:$8 sps:$4 sm:$0xff]  }
  0x46   :  { %1225 = vmatprep.mubr.bf16.mxu1 %v3285_v56  ;;  %v3931_v56 = vld [vmem:[%s5488_s1 + $0x1a0] ss:$8 sps:$4 sm:$0xff]  }
  0x47   :  { %737 = vmatpush1.bf16.msra.mxu0 %v3808_v28  ;;  %v3895_v28 = vld [vmem:[%s5488_s1 + $0x84] ss:$8 sps:$4 sm:$0xff]  }
  0x48   :  { %1196 = vmatpush1.bf16.msra.mxu1 %v3811_v29  ;;  %738 = vmatprep.subr.bf16.mxu0 %v3816_v30  ;;  %v3898_v29 = vld [vmem:[%s5488_s1 + $0x104] ss:$8 sps:$4 sm:$0xff]   ;;  %v3893_v30 = vld [vmem:[%s5488_s1 + $0x80] ss:$8 sps:$4 sm:$0xff]  }
  0x49   :  { %1197 = vmatprep.subr.bf16.mxu1 %v3819_v31  ;;  %v3896_v31 = vld [vmem:[%s5488_s1 + $0x100] ss:$8 sps:$4 sm:$0xff]  }
  0x4b   :  { %739 = vmatpush1.bf16.msra.mxu0 %v3814_v33  ;;  %v3903_v33 = vld [vmem:[%s5488_s1 + $0x1f4] ss:$8 sps:$4 sm:$0xff]  }
  0x4c   :  { %1198 = vmatpush1.bf16.msra.mxu1 %v3817_v34  ;;  %740 = vmatprep.subr.bf16.mxu0 %v3822_v35  ;;  %v3906_v34 = vld [vmem:[%s5488_s1 + $0x274] ss:$8 sps:$4 sm:$0xff]   ;;  %v3284_v35 = vcombine.low %v4553_v53, %v4553_v53  ;;  %v3928_v53 = vld [vmem:[%s5488_s1 + $0x230] ss:$8 sps:$4 sm:$0xff]  }
  0x4d   :  { %1199 = vmatprep.subr.bf16.mxu1 %v3825_v36  ;;  %v3901_v36 = vld [vmem:[%s5488_s1 + $0x1f0] ss:$8 sps:$4 sm:$0xff]  }
  0x4f   :  { %741 = vmatpush1.bf16.msra.mxu0 %v3820_v37  ;;  %v3904_v37 = vld [vmem:[%s5488_s1 + $0x270] ss:$8 sps:$4 sm:$0xff]  }
  0x50   :  { %1200 = vmatpush1.bf16.msra.mxu1 %v3823_v38  ;;  %742 = vmatprep.subr.bf16.mxu0 %v3828_v39  ;;  %v3909_v38 = vld [vmem:[%s5488_s1 + $0x1e4] ss:$8 sps:$4 sm:$0xff]  }
  0x51   :  { %1201 = vmatprep.subr.bf16.mxu1 %v3831_v40  ;;  %v3912_v39 = vld [vmem:[%s5488_s1 + $0x264] ss:$8 sps:$4 sm:$0xff]   ;;  %v3907_v40 = vld [vmem:[%s5488_s1 + $0x1e0] ss:$8 sps:$4 sm:$0xff]  }
  0x53   :  { %743 = vmatpush1.bf16.msra.mxu0 %v3826_v41  ;;  %v3910_v41 = vld [vmem:[%s5488_s1 + $0x260] ss:$8 sps:$4 sm:$0xff]  }
  0x54   :  { %1202 = vmatpush1.bf16.msra.mxu1 %v3829_v42  ;;  %744 = vmatprep.subr.bf16.mxu0 %v3834_v43  ;;  %v3915_v42 = vld [vmem:[%s5488_s1 + $0x1d4] ss:$8 sps:$4 sm:$0xff]  }
  0x55   :  { %1203 = vmatprep.subr.bf16.mxu1 %v3837_v44  ;;  %v3918_v43 = vld [vmem:[%s5488_s1 + $0x254] ss:$8 sps:$4 sm:$0xff]   ;;  %v3913_v44 = vld [vmem:[%s5488_s1 + $0x1d0] ss:$8 sps:$4 sm:$0xff]  }
  0x57   :  { %745 = vmatpush1.bf16.msra.mxu0 %v3832_v45  ;;  %v3916_v45 = vld [vmem:[%s5488_s1 + $0x250] ss:$8 sps:$4 sm:$0xff]  }
  0x58   :  { %1204 = vmatpush1.bf16.msra.mxu1 %v3835_v46  ;;  %746 = vmatprep.subr.bf16.mxu0 %v3840_v48  ;;  %v3921_v46 = vld [vmem:[%s5488_s1 + $0x1c4] ss:$8 sps:$4 sm:$0xff]   ;;  %v3919_v48 = vld [vmem:[%s5488_s1 + $0x1c0] ss:$8 sps:$4 sm:$0xff]  }
  0x59   :  { %1205 = vmatprep.subr.bf16.mxu1 %v3843_v49  ;;  %v3922_v49 = vld [vmem:[%s5488_s1 + $0x240] ss:$8 sps:$4 sm:$0xff]  }
  0x5b   :  { %747 = vmatpush1.bf16.msra.mxu0 %v3838_v50  ;;  %v3927_v50 = vld [vmem:[%s5488_s1 + $0x1b4] ss:$8 sps:$4 sm:$0xff]  }
  0x5c   :  { %1206 = vmatpush1.bf16.msra.mxu1 %v3841_v51  ;;  %748 = vmatprep.subr.bf16.mxu0 %v3846_v54  ;;  %v3930_v51 = vld [vmem:[%s5488_s1 + $0x234] ss:$8 sps:$4 sm:$0xff]   ;;  %v3933_v54 = vld [vmem:[%s5488_s1 + $0x1a4] ss:$8 sps:$4 sm:$0xff]  }
  0x5d   :  { %1207 = vmatprep.subr.bf16.mxu1 %v3849_v55  ;;  %v3936_v55 = vld [vmem:[%s5488_s1 + $0x224] ss:$8 sps:$4 sm:$0xff]  }
  0x5f   :  { %749 = vmatpush1.bf16.msra.mxu0 %v3844_v57  ;;  %v3934_v57 = vld [vmem:[%s5488_s1 + $0x220] ss:$8 sps:$4 sm:$0xff]  }
  0x60   :  { %1208 = vmatpush1.bf16.msra.mxu1 %v3847_v60  ;;  %1234 = vmatprep.subr.bf16.mxu0 %v3856_v62  ;;  %v3937_v60 = vld [vmem:[%s5488_s1 + $0x190] ss:$8 sps:$4 sm:$0xff]   ;;  %v3945_v62 = vld [vmem:[%s5488_s1 + $0x184] ss:$8 sps:$4 sm:$0xff]  }
  0x61   :  { %1209 = vmatprep.subr.bf16.mxu1 %v3853_v61  ;;  %v3940_v61 = vld [vmem:[%s5488_s1 + $0x210] ss:$8 sps:$4 sm:$0xff]  }
  0x62   :  { %767 = vmatmul.mubr.bf16.vlgmr.msra.gmra.mxu0 %v246_v63  ;;  %v3948_v63 = vld [vmem:[%s5488_s1 + $0x204] ss:$8 sps:$4 sm:$0xff]  }
  0x63   :  { %1235 = vmatpush1.bf16.msra.mxu0 %v3854_v1  ;;  %1266 = vmatprep.mubr.bf16.mxu0 %v3287_v17  ;;  %v4773_v1 = vld [vmem:[%s5489_s0 + $0x1c] sm:$0x77]  ;;  %v3952_v17 = vld [vmem:[%s5488_s1 + $0x2f0] ss:$8 sps:$4 sm:$0xff]  }
  0x64   :  { %1210 = vmatpush2.bf16.msra.mxu1 %v3851_v0  ;;  %1236 = vmatprep.subr.bf16.mxu0 %v3862_v3  ;;  %v4768_v0 = vld [vmem:[%s5489_s0 + $0x14] sm:$0x77]  ;;  %v3458_v3 = vcombine.high %v4773_v1, %v4773_v1 }
  0x65   :  { %1211 = vmatprep.subr.bf16.mxu1 %v3859_v2  ;;  %v3456_v2 = vcombine.high %v4768_v0, %v4768_v0 }
  0x67   :  { %1237 = vmatpush1.bf16.msra.mxu0 %v3860_v5  ;;  %v3946_v5 = vld [vmem:[%s5488_s1 + $0x200] ss:$8 sps:$4 sm:$0xff]  }
  0x68   :  { %1212 = vmatpush2.bf16.msra.mxu1 %v3857_v4  ;;  %1238 = vmatprep.subr.bf16.mxu0 %v3868_v7  ;;  %v3943_v4 = vld [vmem:[%s5488_s1 + $0x180] ss:$8 sps:$4 sm:$0xff]   ;;  %v1522_v7 = vshll.u32 %v3458_v3, 16 }
  0x69   :  { %1213 = vmatprep.subr.bf16.mxu1 %v3865_v6  ;;  %v1508_v6 = vshll.u32 %v3456_v2, 16 }
  0x6b   :  { %1239 = vmatpush1.bf16.msra.mxu0 %v3866_v9  ;;  %v3957_v9 = vld [vmem:[%s5488_s1 + $0x3f4] ss:$8 sps:$4 sm:$0xff]  }
  0x6c   :  { %1214 = vmatpush2.bf16.msra.mxu1 %v3863_v8  ;;  %1240 = vmatprep.subr.bf16.mxu0 %v3874_v11  ;;  %v3954_v8 = vld [vmem:[%s5488_s1 + $0x2f4] ss:$8 sps:$4 sm:$0xff]   ;;  %v1510_v11 = vrot.slane %v1508_v6, 1  ;;  %v4027_v6 = vld [vmem:[%s5488_s1 + $0x430] ss:$8 sps:$4 sm:$0xff]  }
  0x6d   :  { %1215 = vmatprep.subr.bf16.mxu1 %v3871_v10  ;;  %v1506_v10 = vshrl.u32 %v3456_v2, 16  ;;  %v4021_v2 = vld [vmem:[%s5488_s1 + $0x440] ss:$8 sps:$4 sm:$0xff]  }
  0x6f   :  { %1241 = vmatpush1.bf16.msra.mxu0 %v3872_v13  ;;  %v1524_v13 = vrot.slane %v1522_v7, 1  ;;  %v4032_v7 = vld [vmem:[%s5488_s1 + $0x324] ss:$8 sps:$4 sm:$0xff]  }
  0x70   :  { %1216 = vmatpush2.bf16.msra.mxu1 %v3869_v12  ;;  %1242 = vmatprep.subr.bf16.mxu0 %v3880_v15  ;;  %v1520_v12 = vshrl.u32 %v3458_v3, 16  ;;  %v3951_v15 = vld [vmem:[%s5489_s0 + $0x10] ss:$0 sps:$4 sm:$0x33]   ;;  %v4026_v3 = vld [vmem:[%s5488_s1 + $0x334] ss:$8 sps:$4 sm:$0xff]  }
  0x71   :  { %1217 = vmatprep.subr.bf16.mxu1 %v3877_v14  ;;  %v3286_v14 = vcombine.low %v4626_v16, %v4626_v16  ;;  %v3960_v16 = vld [vmem:[%s5488_s1 + $0x2e4] ss:$8 sps:$4 sm:$0xff]  }
  0x73   :  { %1243 = vmatpush1.bf16.msra.mxu0 %v3878_v19  ;;  %v3963_v19 = vld [vmem:[%s5488_s1 + $0x3e4] ss:$8 sps:$4 sm:$0xff]  }
  0x74   :  { %1218 = vmatpush2.bf16.msra.mxu1 %v3875_v18  ;;  %1244 = vmatprep.subr.bf16.mxu0 %v3886_v21  ;;  %v3955_v18 = vld [vmem:[%s5488_s1 + $0x3f0] ss:$8 sps:$4 sm:$0xff]   ;;  %v1525_v21 = vor.u32 %v1524_v13, %v1520_v12  ;;  %v4033_v12 = vld [vmem:[%s5488_s1 + $0x420] ss:$8 sps:$4 sm:$0xff]   ;;  %v4038_v13 = vld [vmem:[%s5488_s1 + $0x314] ss:$8 sps:$4 sm:$0xff]  }
  0x75   :  { %1219 = vmatprep.subr.bf16.mxu1 %v3883_v20  ;;  %v1511_v20 = vor.u32 %v1510_v11, %v1506_v10  ;;  %v3455_v10 = vcombine.low %v4768_v0, %v4768_v0  ;;  %v3457_v11 = vcombine.low %v4773_v1, %v4773_v1  ;;  %v4036_v0 = vld [vmem:[%s5488_s1 + $0x310] ss:$8 sps:$4 sm:$0xff]  }
  0x77   :  { %1245 = vmatpush1.bf16.msra.mxu0 %v3884_v23  ;;  %v3961_v23 = vld [vmem:[%s5488_s1 + $0x3e0] ss:$8 sps:$4 sm:$0xff]   ;;  %v1501_v1 = vshll.u32 %v3455_v10, 16 }
  0x78   :  { %1220 = vmatpush2.bf16.msra.mxu1 %v3881_v22  ;;  %1246 = vmatprep.subr.bf16.mxu0 %v3892_v25  ;;  %v3958_v22 = vld [vmem:[%s5488_s1 + $0x2e0] ss:$8 sps:$4 sm:$0xff]   ;;  %v3969_v25 = vld [vmem:[%s5488_s1 + $0x3d4] ss:$8 sps:$4 sm:$0xff]  }
  0x79   :  { %1221 = vmatprep.subr.bf16.mxu1 %v3889_v24  ;;  %v3966_v24 = vld [vmem:[%s5488_s1 + $0x2d4] ss:$8 sps:$4 sm:$0xff]  }
  0x7b   :  { %1247 = vmatpush1.bf16.msra.mxu0 %v3890_v27  ;;  %v3967_v27 = vld [vmem:[%s5488_s1 + $0x3d0] ss:$8 sps:$4 sm:$0xff]  }
  0x7c   :  { %1222 = vmatpush2.bf16.msra.mxu1 %v3887_v26  ;;  %1248 = vmatprep.subr.bf16.mxu0 %v3898_v29  ;;  %v3964_v26 = vld [vmem:[%s5488_s1 + $0x2d0] ss:$8 sps:$4 sm:$0xff]   ;;  %v3975_v29 = vld [vmem:[%s5488_s1 + $0x3c4] ss:$8 sps:$4 sm:$0xff]  }
  0x7d   :  { %1223 = vmatprep.subr.bf16.mxu1 %v3895_v28  ;;  %v3972_v28 = vld [vmem:[%s5488_s1 + $0x2c4] ss:$8 sps:$4 sm:$0xff]  }
  0x7f   :  { %1249 = vmatpush1.bf16.msra.mxu0 %v3896_v31  ;;  %v3973_v31 = vld [vmem:[%s5488_s1 + $0x3c0] ss:$8 sps:$4 sm:$0xff]  }
  0x80   :  { %1224 = vmatpush2.bf16.msra.mxu1 %v3893_v30  ;;  %1250 = vmatprep.subr.bf16.mxu0 %v3903_v33  ;;  %v3970_v30 = vld [vmem:[%s5488_s1 + $0x2c0] ss:$8 sps:$4 sm:$0xff]   ;;  %v3978_v33 = vld [vmem:[%s5488_s1 + $0x2b4] ss:$8 sps:$4 sm:$0xff]  }
  0x81   :  { %1275 = vmatprep.subr.bf16.mxu1 %v3906_v34  ;;  %v3981_v34 = vld [vmem:[%s5488_s1 + $0x3b4] ss:$8 sps:$4 sm:$0xff]  }
  0x83   :  { %1226 = vmatmul.mubr.bf16.vlgmr.msra.gmra.mxu1 %v3284_v35  ;;  %1251 = vmatpush2.bf16.msra.mxu0 %v3901_v36  ;;  %v3976_v35 = vld [vmem:[%s5488_s1 + $0x2b0] ss:$8 sps:$4 sm:$0xff]  }
  0x84   :  { %1276 = vmatpush1.bf16.msra.mxu1 %v3904_v37  ;;  %1252 = vmatprep.subr.bf16.mxu0 %v3909_v38  ;;  %v3979_v36 = vld [vmem:[%s5488_s1 + $0x3b0] ss:$8 sps:$4 sm:$0xff]   ;;  %v3984_v37 = vld [vmem:[%s5488_s1 + $0x2a4] ss:$8 sps:$4 sm:$0xff]  }
  0x85   :  { %1277 = vmatprep.subr.bf16.mxu1 %v3912_v39  ;;  %1307 = vmatprep.mubr.bf16.mxu1 %v4216_v32  ;;  %v3987_v38 = vld [vmem:[%s5488_s1 + $0x3a4] ss:$8 sps:$4 sm:$0xff]   ;;  %v3982_v39 = vld [vmem:[%s5488_s1 + $0x2a0] ss:$8 sps:$4 sm:$0xff]  }
  0x87   :  { %1253 = vmatpush2.bf16.msra.mxu0 %v3907_v40  ;;  %v3985_v40 = vld [vmem:[%s5488_s1 + $0x3a0] ss:$8 sps:$4 sm:$0xff]  }
  0x88   :  { %1278 = vmatpush1.bf16.msra.mxu1 %v3910_v41  ;;  %1254 = vmatprep.subr.bf16.mxu0 %v3915_v42  ;;  %v3990_v41 = vld [vmem:[%s5488_s1 + $0x294] ss:$8 sps:$4 sm:$0xff]  }
  0x89   :  { %1279 = vmatprep.subr.bf16.mxu1 %v3918_v43  ;;  %v3993_v42 = vld [vmem:[%s5488_s1 + $0x394] ss:$8 sps:$4 sm:$0xff]   ;;  %v3988_v43 = vld [vmem:[%s5488_s1 + $0x290] ss:$8 sps:$4 sm:$0xff]  }
  0x8b   :  { %1255 = vmatpush2.bf16.msra.mxu0 %v3913_v44  ;;  %v3991_v44 = vld [vmem:[%s5488_s1 + $0x390] ss:$8 sps:$4 sm:$0xff]  }
  0x8c   :  { %1280 = vmatpush1.bf16.msra.mxu1 %v3916_v45  ;;  %1256 = vmatprep.subr.bf16.mxu0 %v3921_v46  ;;  %v3996_v45 = vld [vmem:[%s5488_s1 + $0x284] ss:$8 sps:$4 sm:$0xff]  }
  0x8d   :  { %1281 = vmatprep.subr.bf16.mxu1 %v3924_v47  ;;  %v3999_v46 = vld [vmem:[%s5488_s1 + $0x384] ss:$8 sps:$4 sm:$0xff]   ;;  %v3994_v47 = vld [vmem:[%s5488_s1 + $0x280] ss:$8 sps:$4 sm:$0xff]  }
  0x8f   :  { %1257 = vmatpush2.bf16.msra.mxu0 %v3919_v48  ;;  %v3997_v48 = vld [vmem:[%s5488_s1 + $0x380] ss:$8 sps:$4 sm:$0xff]  }
  0x90   :  { %1282 = vmatpush1.bf16.msra.mxu1 %v3922_v49  ;;  %1258 = vmatprep.subr.bf16.mxu0 %v3927_v50  ;;  %v4002_v49 = vld [vmem:[%s5488_s1 + $0x374] ss:$8 sps:$4 sm:$0xff]  }
  0x91   :  { %1283 = vmatprep.subr.bf16.mxu1 %v3930_v51  ;;  %v4005_v50 = vld [vmem:[%s5488_s1 + $0x474] ss:$8 sps:$4 sm:$0xff]   ;;  %v4000_v51 = vld [vmem:[%s5488_s1 + $0x370] ss:$8 sps:$4 sm:$0xff]  }
  0x93   :  { %1259 = vmatpush2.bf16.msra.mxu0 %v3925_v52  ;;  %v4003_v52 = vld [vmem:[%s5488_s1 + $0x470] ss:$8 sps:$4 sm:$0xff]  }
  0x94   :  { %1284 = vmatpush1.bf16.msra.mxu1 %v3928_v53  ;;  %1260 = vmatprep.subr.bf16.mxu0 %v3933_v54  ;;  %v4008_v53 = vld [vmem:[%s5488_s1 + $0x364] ss:$8 sps:$4 sm:$0xff]  }
  0x95   :  { %1285 = vmatprep.subr.bf16.mxu1 %v3936_v55  ;;  %v4011_v54 = vld [vmem:[%s5488_s1 + $0x464] ss:$8 sps:$4 sm:$0xff]   ;;  %v4006_v55 = vld [vmem:[%s5488_s1 + $0x360] ss:$8 sps:$4 sm:$0xff]  }
  0x97   :  { %1261 = vmatpush2.bf16.msra.mxu0 %v3931_v56  ;;  %v4009_v56 = vld [vmem:[%s5488_s1 + $0x460] ss:$8 sps:$4 sm:$0xff]  }
  0x98   :  { %1286 = vmatpush1.bf16.msra.mxu1 %v3934_v57  ;;  %1262 = vmatprep.subr.bf16.mxu0 %v3939_v58  ;;  %v4014_v57 = vld [vmem:[%s5488_s1 + $0x354] ss:$8 sps:$4 sm:$0xff]  }
  0x99   :  { %1287 = vmatprep.subr.bf16.mxu1 %v3942_v59  ;;  %v4017_v58 = vld [vmem:[%s5488_s1 + $0x454] ss:$8 sps:$4 sm:$0xff]   ;;  %v4012_v59 = vld [vmem:[%s5488_s1 + $0x350] ss:$8 sps:$4 sm:$0xff]  }
  0x9b   :  { %1263 = vmatpush2.bf16.msra.mxu0 %v3937_v60  ;;  %v4015_v60 = vld [vmem:[%s5488_s1 + $0x450] ss:$8 sps:$4 sm:$0xff]  }
  0x9c   :  { %1288 = vmatpush1.bf16.msra.mxu1 %v3940_v61  ;;  %1264 = vmatprep.subr.bf16.mxu0 %v3945_v62  ;;  %v4020_v61 = vld [vmem:[%s5488_s1 + $0x344] ss:$8 sps:$4 sm:$0xff]  }
  0x9d   :  { %1289 = vmatprep.subr.bf16.mxu1 %v3948_v63  ;;  %v4023_v62 = vld [vmem:[%s5488_s1 + $0x444] ss:$8 sps:$4 sm:$0xff]   ;;  %v4018_v63 = vld [vmem:[%s5488_s1 + $0x340] ss:$8 sps:$4 sm:$0xff]  }
  0x9f   :  { %1265 = vmatpush2.bf16.msra.mxu0 %v3943_v4  ;;  %v4029_v4 = vld [vmem:[%s5488_s1 + $0x434] ss:$8 sps:$4 sm:$0xff]  }
  0xa0   :  { %1290 = vmatpush1.bf16.msra.mxu1 %v3946_v5  ;;  %1938 = vmatprep.subr.bf16.mxu0 %v3954_v8  ;;  %v4024_v5 = vld [vmem:[%s5488_s1 + $0x330] ss:$8 sps:$4 sm:$0xff]   ;;  %v4035_v8 = vld [vmem:[%s5488_s1 + $0x424] ss:$8 sps:$4 sm:$0xff]  }
  0xa1   :  { %1979 = vmatprep.subr.bf16.mxu1 %v3957_v9  ;;  %v4030_v9 = vld [vmem:[%s5488_s1 + $0x320] ss:$8 sps:$4 sm:$0xff]  }
  0xa2   :  { %1267 = vmatmul.mubr.bf16.vlgmr.msra.gmra.mxu0 %v3286_v14  ;;  %v4041_v14 = vld [vmem:[%s5488_s1 + $0x414] ss:$8 sps:$4 sm:$0xff]  }
  0xa3   :  { %1308 = vmatmul.mubr.bf16.vlgmr.msra.gmra.mxu1 %v3951_v15  ;;  %1939 = vmatpush1.bf16.msra.mxu0 %v3952_v17  ;;  %v1515_v15 = vshll.u32 %v3457_v11, 16  ;;  %v4039_v17 = vld [vmem:[%s5488_s1 + $0x410] ss:$8 sps:$4 sm:$0xff]  }
  0xa4   :  { %1980 = vmatpush1.bf16.msra.mxu1 %v3955_v18  ;;  %1940 = vmatprep.subr.bf16.mxu0 %v3960_v16  ;;  %v4044_v18 = vld [vmem:[%s5488_s1 + $0x304] ss:$8 sps:$4 sm:$0xff]  }
  0xa5   :  { %1981 = vmatprep.subr.bf16.mxu1 %v3963_v19  ;;  %1970 = vmatprep.mubr.bf16.mxu0 %v1511_v20  ;;  %v4047_v16 = vld [vmem:[%s5488_s1 + $0x404] ss:$8 sps:$4 sm:$0xff]   ;;  %v1499_v19 = vshrl.u32 %v3455_v10, 16  ;;  %v1503_v20 = vrot.slane %v1501_v1, 1  ;;  %v4107_v1 = vld [vmem:[%s5488_s1 + $0xe0] ss:$8 sps:$4 sm:$0xff]  }
  0xa6   :  { %2011 = vmatprep.mubr.bf16.mxu1 %v1525_v21  ;;  %v1513_v21 = vshrl.u32 %v3457_v11, 16  ;;  %v4109_v10 = vld [vmem:[%s5488_s1 + $0xe4] ss:$8 sps:$4 sm:$0xff]  }
  0xa7   :  { %1941 = vmatpush1.bf16.msra.mxu0 %v3958_v22  ;;  %v1517_v22 = vrot.slane %v1515_v15, 1  ;;  %v4112_v11 = vld [vmem:[%s5488_s1 + $0x164] ss:$8 sps:$4 sm:$0xff]   ;;  %v4110_v15 = vld [vmem:[%s5488_s1 + $0x160] ss:$8 sps:$4 sm:$0xff]  }
  0xa8   :  { %1982 = vmatpush1.bf16.msra.mxu1 %v3961_v23  ;;  %1942 = vmatprep.subr.bf16.mxu0 %v3966_v24  ;;  %v4042_v23 = vld [vmem:[%s5488_s1 + $0x300] ss:$8 sps:$4 sm:$0xff]  }
  0xa9   :  { %1983 = vmatprep.subr.bf16.mxu1 %v3969_v25  ;;  %v4045_v24 = vld [vmem:[%s5488_s1 + $0x400] ss:$8 sps:$4 sm:$0xff]   ;;  %v4054_v25 = vld [vmem:[%s5488_s1 + $0x4f4] ss:$8 sps:$4 sm:$0xff]  }
  0xab   :  { %1943 = vmatpush1.bf16.msra.mxu0 %v3964_v26  ;;  %v4057_v26 = vld [vmem:[%s5488_s1 + $0x74] ss:$8 sps:$4 sm:$0xff]  }
  0xac   :  { %1984 = vmatpush1.bf16.msra.mxu1 %v3967_v27  ;;  %1944 = vmatprep.subr.bf16.mxu0 %v3972_v28  ;;  %v1504_v27 = vor.u32 %v1503_v20, %v1499_v19  ;;  %v1518_v28 = vor.u32 %v1517_v22, %v1513_v21  ;;  %v4118_v19 = vld [vmem:[%s5488_s1 + $0x154] ss:$8 sps:$4 sm:$0xff]  }
  0xad   :  { %1985 = vmatprep.subr.bf16.mxu1 %v3975_v29  ;;  %v4995_v29 = vld [vmem:[%s5489_s0 + $0x14] sm:$0x33] }
  0xaf   :  { %1945 = vmatpush1.bf16.msra.mxu0 %v3970_v30  ;;  %v4052_v30 = vld [vmem:[%s5488_s1 + $0x4f0] ss:$8 sps:$4 sm:$0xff]  }
  0xb0   :  { %1986 = vmatpush1.bf16.msra.mxu1 %v3973_v31  ;;  %1946 = vmatprep.subr.bf16.mxu0 %v3978_v33  ;;  %v4055_v31 = vld [vmem:[%s5488_s1 + $0x70] ss:$8 sps:$4 sm:$0xff]   ;;  %v4060_v33 = vld [vmem:[%s5488_s1 + $0x4e4] ss:$8 sps:$4 sm:$0xff]  }
  0xb1   :  { %1987 = vmatprep.subr.bf16.mxu1 %v3981_v34  ;;  %v4063_v34 = vld [vmem:[%s5488_s1 + $0x64] ss:$8 sps:$4 sm:$0xff]  }
  0xb3   :  { %1947 = vmatpush1.bf16.msra.mxu0 %v3976_v35  ;;  %v3541_v35 = vcombine.high %v4995_v29, %v4995_v29 }
  0xb4   :  { %1988 = vmatpush1.bf16.msra.mxu1 %v3979_v36  ;;  %1948 = vmatprep.subr.bf16.mxu0 %v3984_v37  ;;  %v4058_v36 = vld [vmem:[%s5488_s1 + $0x4e0] ss:$8 sps:$4 sm:$0xff]  }
  0xb5   :  { %1989 = vmatprep.subr.bf16.mxu1 %v3987_v38  ;;  %v4061_v37 = vld [vmem:[%s5488_s1 + $0x60] ss:$8 sps:$4 sm:$0xff]   ;;  %v4066_v38 = vld [vmem:[%s5488_s1 + $0x4d4] ss:$8 sps:$4 sm:$0xff]  }
  0xb7   :  { %1949 = vmatpush1.bf16.msra.mxu0 %v3982_v39  ;;  %v4069_v39 = vld [vmem:[%s5488_s1 + $0x54] ss:$8 sps:$4 sm:$0xff]  }
  0xb8   :  { %1990 = vmatpush1.bf16.msra.mxu1 %v3985_v40  ;;  %1950 = vmatprep.subr.bf16.mxu0 %v3990_v41  ;;  %v4064_v40 = vld [vmem:[%s5488_s1 + $0x4d0] ss:$8 sps:$4 sm:$0xff]  }
  0xb9   :  { %1991 = vmatprep.subr.bf16.mxu1 %v3993_v42  ;;  %v4067_v41 = vld [vmem:[%s5488_s1 + $0x50] ss:$8 sps:$4 sm:$0xff]   ;;  %v4072_v42 = vld [vmem:[%s5488_s1 + $0x4c4] ss:$8 sps:$4 sm:$0xff]  }
  0xbb   :  { %1951 = vmatpush1.bf16.msra.mxu0 %v3988_v43  ;;  %v4075_v43 = vld [vmem:[%s5488_s1 + $0x44] ss:$8 sps:$4 sm:$0xff]  }
  0xbc   :  { %1992 = vmatpush1.bf16.msra.mxu1 %v3991_v44  ;;  %1952 = vmatprep.subr.bf16.mxu0 %v3996_v45  ;;  %v4070_v44 = vld [vmem:[%s5488_s1 + $0x4c0] ss:$8 sps:$4 sm:$0xff]  }
  0xbd   :  { %1993 = vmatprep.subr.bf16.mxu1 %v3999_v46  ;;  %v4073_v45 = vld [vmem:[%s5488_s1 + $0x40] ss:$8 sps:$4 sm:$0xff]   ;;  %v4078_v46 = vld [vmem:[%s5488_s1 + $0x4b4] ss:$8 sps:$4 sm:$0xff]  }
  0xbf   :  { %1953 = vmatpush1.bf16.msra.mxu0 %v3994_v47  ;;  %v4081_v47 = vld [vmem:[%s5488_s1 + $0x34] ss:$8 sps:$4 sm:$0xff]  }
  0xc0   :  { %1994 = vmatpush1.bf16.msra.mxu1 %v3997_v48  ;;  %1954 = vmatprep.subr.bf16.mxu0 %v4002_v49  ;;  %v4076_v48 = vld [vmem:[%s5488_s1 + $0x4b0] ss:$8 sps:$4 sm:$0xff]  }
  0xc1   :  { %1995 = vmatprep.subr.bf16.mxu1 %v4005_v50  ;;  %v4079_v49 = vld [vmem:[%s5488_s1 + $0x30] ss:$8 sps:$4 sm:$0xff]   ;;  %v4084_v50 = vld [vmem:[%s5488_s1 + $0x4a4] ss:$8 sps:$4 sm:$0xff]  }
  0xc3   :  { %1955 = vmatpush2.bf16.msra.mxu0 %v4000_v51  ;;  %v4087_v51 = vld [vmem:[%s5488_s1 + $0x24] ss:$8 sps:$4 sm:$0xff]  }
  0xc4   :  { %1996 = vmatpush2.bf16.msra.mxu1 %v4003_v52  ;;  %1956 = vmatprep.subr.bf16.mxu0 %v4008_v53  ;;  %v4100_v52 = vld [vmem:[%s5489_s0 + $0x24] ss:$0 sps:$4 sm:$0x77]   ;;  %v4082_v53 = vld [vmem:[%s5488_s1 + $0x4a0] ss:$8 sps:$4 sm:$0xff]  }
  0xc5   :  { %1997 = vmatprep.subr.bf16.mxu1 %v4011_v54  ;;  %v4085_v54 = vld [vmem:[%s5488_s1 + $0x20] ss:$8 sps:$4 sm:$0xff]  }
  0xc7   :  { %1957 = vmatpush2.bf16.msra.mxu0 %v4006_v55  ;;  %v4090_v55 = vld [vmem:[%s5488_s1 + $0x494] ss:$8 sps:$4 sm:$0xff]  }
  0xc8   :  { %1998 = vmatpush2.bf16.msra.mxu1 %v4009_v56  ;;  %1958 = vmatprep.subr.bf16.mxu0 %v4014_v57  ;;  %v4093_v56 = vld [vmem:[%s5488_s1 + $0x14] ss:$8 sps:$4 sm:$0xff]   ;;  %v1529_v57 = vshll.u32 %v4100_v52, 16 }
  0xc9   :  { %1999 = vmatprep.subr.bf16.mxu1 %v4017_v58  ;;  %v4088_v58 = vld [vmem:[%s5488_s1 + $0x490] ss:$8 sps:$4 sm:$0xff]  }
  0xcb   :  { %1959 = vmatpush2.bf16.msra.mxu0 %v4012_v59  ;;  %v4091_v59 = vld [vmem:[%s5488_s1 + $0x10] ss:$8 sps:$4 sm:$0xff]  }
  0xcc   :  { %2000 = vmatpush2.bf16.msra.mxu1 %v4015_v60  ;;  %1960 = vmatprep.subr.bf16.mxu0 %v4020_v61  ;;  %v4096_v60 = vld [vmem:[%s5488_s1 + $0x484] ss:$8 sps:$4 sm:$0xff]  }
  0xcd   :  { %2001 = vmatprep.subr.bf16.mxu1 %v4023_v62  ;;  %v4099_v61 = vld [vmem:[%s5488_s1 + $0x4] ss:$8 sps:$4 sm:$0xff]   ;;  %v1527_v62 = vshrl.u32 %v4100_v52, 16  ;;  %v4151_v52 = vld [vmem:[%s5488_s1 + $0x1f0] ss:$8 sps:$4 sm:$0xff]  }
  0xcf   :  { %1961 = vmatpush2.bf16.msra.mxu0 %v4018_v63  ;;  %v1531_v63 = vrot.slane %v1529_v57, 1  ;;  %v4160_v57 = vld [vmem:[%s5488_s1 + $0x260] ss:$8 sps:$4 sm:$0xff]  }
  0xd0   :  { %2002 = vmatpush2.bf16.msra.mxu1 %v4021_v2  ;;  %1962 = vmatprep.subr.bf16.mxu0 %v4026_v3  ;;  %v4094_v2 = vld [vmem:[%s5488_s1 + $0x480] ss:$8 sps:$4 sm:$0xff]  }
  0xd1   :  { %2003 = vmatprep.subr.bf16.mxu1 %v4029_v4  ;;  %v4097_v3 = vld [vmem:[%s5488_s1] ss:$8 sps:$4 sm:$0xff]   ;;  %v4103_v4 = vld [vmem:[%s5488_s1 + $0xf4] ss:$8 sps:$4 sm:$0xff]  }
  0xd3   :  { %1963 = vmatpush2.bf16.msra.mxu0 %v4024_v5  ;;  %v4106_v5 = vld [vmem:[%s5488_s1 + $0x174] ss:$8 sps:$4 sm:$0xff]  }
  0xd4   :  { %2004 = vmatpush2.bf16.msra.mxu1 %v4027_v6  ;;  %1964 = vmatprep.subr.bf16.mxu0 %v4032_v7  ;;  %v1532_v6 = vor.u32 %v1531_v63, %v1527_v62  ;;  %v5102_v7 = vld [vmem:[%s5489_s0 + $0x1c] sm:$0x33]  ;;  %v4163_v62 = vld [vmem:[%s5488_s1 + $0x1d0] ss:$8 sps:$4 sm:$0xff]  }
  0xd5   :  { %2005 = vmatprep.subr.bf16.mxu1 %v4035_v8  ;;  %v4101_v8 = vld [vmem:[%s5488_s1 + $0xf0] ss:$8 sps:$4 sm:$0xff]  }
  0xd6   :  { %v4166_v63 = vld [vmem:[%s5488_s1 + $0x250] ss:$8 sps:$4 sm:$0xff]  }
  0xd7   :  { %1965 = vmatpush2.bf16.msra.mxu0 %v4030_v9  ;;  %v4104_v9 = vld [vmem:[%s5488_s1 + $0x170] ss:$8 sps:$4 sm:$0xff]  }
  0xd8   :  { %2006 = vmatpush2.bf16.msra.mxu1 %v4033_v12  ;;  %1966 = vmatprep.subr.bf16.mxu0 %v4038_v13  ;;  %v3543_v12 = vcombine.high %v5102_v7, %v5102_v7 }
  0xd9   :  { %2007 = vmatprep.subr.bf16.mxu1 %v4041_v14 }
  0xdb   :  { %1967 = vmatpush2.bf16.msra.mxu0 %v4036_v0 }
  0xdc   :  { %2008 = vmatpush2.bf16.msra.mxu1 %v4039_v17  ;;  %1968 = vmatprep.subr.bf16.mxu0 %v4044_v18 }
  0xdd   :  { %2009 = vmatprep.subr.bf16.mxu1 %v4047_v16  ;;  %v4115_v16 = vld [vmem:[%s5488_s1 + $0xd4] ss:$8 sps:$4 sm:$0xff]  }
  0xdf   :  { %1969 = vmatpush2.bf16.msra.mxu0 %v4042_v23  ;;  %v4113_v23 = vld [vmem:[%s5488_s1 + $0xd0] ss:$8 sps:$4 sm:$0xff]  }
  0xe0   :  { %2010 = vmatpush2.bf16.msra.mxu1 %v4045_v24  ;;  %2020 = vmatprep.subr.bf16.mxu0 %v4054_v25  ;;  %v4116_v24 = vld [vmem:[%s5488_s1 + $0x150] ss:$8 sps:$4 sm:$0xff]  }
  0xe1   :  { %2479 = vmatprep.subr.bf16.mxu1 %v4057_v26 }
  0xe2   :  { %1971 = vmatmul.mubr.bf16.vlgmr.msra.gmra.mxu0 %v1504_v27  ;;  %v4121_v27 = vld [vmem:[%s5488_s1 + $0xc4] ss:$8 sps:$4 sm:$0xff]  }
  0xe3   :  { %2012 = vmatmul.mubr.bf16.vlgmr.msra.gmra.mxu1 %v1518_v28  ;;  %2021 = vmatpush1.bf16.msra.mxu0 %v4052_v30  ;;  %v4124_v28 = vld [vmem:[%s5488_s1 + $0x144] ss:$8 sps:$4 sm:$0xff]   ;;  %v4119_v30 = vld [vmem:[%s5488_s1 + $0xc0] ss:$8 sps:$4 sm:$0xff]  }
  0xe4   :  { %2480 = vmatpush1.bf16.msra.mxu1 %v4055_v31  ;;  %2022 = vmatprep.subr.bf16.mxu0 %v4060_v33  ;;  %v4122_v31 = vld [vmem:[%s5488_s1 + $0x140] ss:$8 sps:$4 sm:$0xff]   ;;  %v4127_v33 = vld [vmem:[%s5488_s1 + $0xb4] ss:$8 sps:$4 sm:$0xff]  }
  0xe5   :  { %2481 = vmatprep.subr.bf16.mxu1 %v4063_v34  ;;  %2052 = vmatprep.mubr.bf16.mxu0 %v4216_v32  ;;  %v4130_v34 = vld [vmem:[%s5488_s1 + $0x134] ss:$8 sps:$4 sm:$0xff]  }
  0xe6   :  { %2511 = vmatprep.mubr.bf16.mxu1 %v3541_v35  ;;  %v4125_v35 = vld [vmem:[%s5488_s1 + $0xb0] ss:$8 sps:$4 sm:$0xff]  }
  0xe7   :  { %2023 = vmatpush1.bf16.msra.mxu0 %v4058_v36  ;;  %v4128_v36 = vld [vmem:[%s5488_s1 + $0x130] ss:$8 sps:$4 sm:$0xff]  }
  0xe8   :  { %2482 = vmatpush1.bf16.msra.mxu1 %v4061_v37  ;;  %2024 = vmatprep.subr.bf16.mxu0 %v4066_v38  ;;  %v4133_v37 = vld [vmem:[%s5488_s1 + $0xa4] ss:$8 sps:$4 sm:$0xff]  }
  0xe9   :  { %2483 = vmatprep.subr.bf16.mxu1 %v4069_v39  ;;  %v4136_v38 = vld [vmem:[%s5488_s1 + $0x124] ss:$8 sps:$4 sm:$0xff]   ;;  %v4131_v39 = vld [vmem:[%s5488_s1 + $0xa0] ss:$8 sps:$4 sm:$0xff]  }
  0xeb   :  { %2025 = vmatpush1.bf16.msra.mxu0 %v4064_v40  ;;  %v4134_v40 = vld [vmem:[%s5488_s1 + $0x120] ss:$8 sps:$4 sm:$0xff]  }
  0xec   :  { %2484 = vmatpush1.bf16.msra.mxu1 %v4067_v41  ;;  %2026 = vmatprep.subr.bf16.mxu0 %v4072_v42  ;;  %v4139_v41 = vld [vmem:[%s5488_s1 + $0x94] ss:$8 sps:$4 sm:$0xff]  }
  0xed   :  { %2485 = vmatprep.subr.bf16.mxu1 %v4075_v43  ;;  %v4142_v42 = vld [vmem:[%s5488_s1 + $0x114] ss:$8 sps:$4 sm:$0xff]   ;;  %v4137_v43 = vld [vmem:[%s5488_s1 + $0x90] ss:$8 sps:$4 sm:$0xff]  }
  0xef   :  { %2027 = vmatpush1.bf16.msra.mxu0 %v4070_v44  ;;  %v4140_v44 = vld [vmem:[%s5488_s1 + $0x110] ss:$8 sps:$4 sm:$0xff]  }
  0xf0   :  { %2486 = vmatpush1.bf16.msra.mxu1 %v4073_v45  ;;  %2028 = vmatprep.subr.bf16.mxu0 %v4078_v46  ;;  %v4145_v45 = vld [vmem:[%s5488_s1 + $0x84] ss:$8 sps:$4 sm:$0xff]  }
  0xf1   :  { %2487 = vmatprep.subr.bf16.mxu1 %v4081_v47  ;;  %v4148_v46 = vld [vmem:[%s5488_s1 + $0x104] ss:$8 sps:$4 sm:$0xff]   ;;  %v4143_v47 = vld [vmem:[%s5488_s1 + $0x80] ss:$8 sps:$4 sm:$0xff]  }
  0xf3   :  { %2029 = vmatpush1.bf16.msra.mxu0 %v4076_v48  ;;  %v4146_v48 = vld [vmem:[%s5488_s1 + $0x100] ss:$8 sps:$4 sm:$0xff]  }
  0xf4   :  { %2488 = vmatpush1.bf16.msra.mxu1 %v4079_v49  ;;  %2030 = vmatprep.subr.bf16.mxu0 %v4084_v50  ;;  %v4153_v49 = vld [vmem:[%s5488_s1 + $0x1f4] ss:$8 sps:$4 sm:$0xff]  }
  0xf5   :  { %2489 = vmatprep.subr.bf16.mxu1 %v4087_v51  ;;  %v4156_v50 = vld [vmem:[%s5488_s1 + $0x274] ss:$8 sps:$4 sm:$0xff]   ;;  %v3540_v51 = vcombine.low %v4995_v29, %v4995_v29  ;;  %v4162_v29 = vld [vmem:[%s5488_s1 + $0x264] ss:$8 sps:$4 sm:$0xff]  }
  0xf7   :  { %2031 = vmatpush1.bf16.msra.mxu0 %v4082_v53  ;;  %v4154_v53 = vld [vmem:[%s5488_s1 + $0x270] ss:$8 sps:$4 sm:$0xff]  }
  0xf8   :  { %2490 = vmatpush1.bf16.msra.mxu1 %v4085_v54  ;;  %2032 = vmatprep.subr.bf16.mxu0 %v4090_v55  ;;  %v4159_v54 = vld [vmem:[%s5488_s1 + $0x1e4] ss:$8 sps:$4 sm:$0xff]  }
  0xf9   :  { %2491 = vmatprep.subr.bf16.mxu1 %v4093_v56  ;;  %v4157_v56 = vld [vmem:[%s5488_s1 + $0x1e0] ss:$8 sps:$4 sm:$0xff]  }
  0xfb   :  { %2033 = vmatpush1.bf16.msra.mxu0 %v4088_v58 }
  0xfc   :  { %2492 = vmatpush1.bf16.msra.mxu1 %v4091_v59  ;;  %2034 = vmatprep.subr.bf16.mxu0 %v4096_v60  ;;  %v4165_v59 = vld [vmem:[%s5488_s1 + $0x1d4] ss:$8 sps:$4 sm:$0xff]  }
  0xfd   :  { %2493 = vmatprep.subr.bf16.mxu1 %v4099_v61  ;;  %v4168_v60 = vld [vmem:[%s5488_s1 + $0x254] ss:$8 sps:$4 sm:$0xff]  }
  0xff   :  { %2035 = vmatpush1.bf16.msra.mxu0 %v4094_v2 }
 0x100   :  { %2494 = vmatpush1.bf16.msra.mxu1 %v4097_v3  ;;  %2520 = vmatprep.subr.bf16.mxu0 %v4106_v5  ;;  %v4171_v3 = vld [vmem:[%s5488_s1 + $0x1c4] ss:$8 sps:$4 sm:$0xff]   ;;  %v4172_v5 = vld [vmem:[%s5488_s1 + $0x240] ss:$8 sps:$4 sm:$0xff]  }
 0x101   :  { %2495 = vmatprep.subr.bf16.mxu1 %v4103_v4  ;;  %v4169_v4 = vld [vmem:[%s5488_s1 + $0x1c0] ss:$8 sps:$4 sm:$0xff]  }
 0x102   :  { %v686_v13 = vpop.f32.mrf.mxu0  ;;  %2053 = vmatmul.mubr.bf16.vlgmr.msra.gmra.mxu0 %v1532_v6  ;;  %v4177_v6 = vld [vmem:[%s5488_s1 + $0x1b4] ss:$8 sps:$4 sm:$0xff]  }
 0x103   :  { %v727_v14 = vpop.f32.mrf.mxu1  ;;  %2521 = vmatpush1.bf16.msra.mxu0 %v4104_v9  ;;  %2552 = vmatprep.mubr.bf16.mxu0 %v3543_v12  ;;  %v4175_v9 = vld [vmem:[%s5488_s1 + $0x1b0] ss:$8 sps:$4 sm:$0xff]   ;;  %v4186_v12 = vld [vmem:[%s5488_s1 + $0x224] ss:$8 sps:$4 sm:$0xff]  }
 0x104   :  { %v5118_v0 = vadd.f32 %v727_v14, %v686_v13  ;;  %2496 = vmatpush2.bf16.msra.mxu1 %v4101_v8  ;;  %v688_v17 = vpop.f32.mrf.mxu0  ;;  %2522 = vmatprep.subr.bf16.mxu0 %v4112_v11  ;;  %v4180_v8 = vld [vmem:[%s5488_s1 + $0x234] ss:$8 sps:$4 sm:$0xff]   ;;  %v4183_v11 = vld [vmem:[%s5488_s1 + $0x1a4] ss:$8 sps:$4 sm:$0xff]   ;;  %v4181_v13 = vld [vmem:[%s5488_s1 + $0x1a0] ss:$8 sps:$4 sm:$0xff]  }
 0x105   :  { %v729_v18 = vpop.f32.mrf.mxu1  ;;  %2497 = vmatprep.subr.bf16.mxu1 %v4109_v10  ;;  %v4178_v10 = vld [vmem:[%s5488_s1 + $0x230] ss:$8 sps:$4 sm:$0xff]   ;;  %v4184_v14 = vld [vmem:[%s5488_s1 + $0x220] ss:$8 sps:$4 sm:$0xff]  }
 0x106   :  { %v5132_v20 = vadd.f32 %v729_v18, %v688_v17  ;;  %v690_v21 = vpop.f32.mrf.mxu0  ;;  %v4187_v17 = vld [vmem:[%s5488_s1 + $0x190] ss:$8 sps:$4 sm:$0xff]  }
 0x107   :  { %v731_v22 = vpop.f32.mrf.mxu1  ;;  %2523 = vmatpush1.bf16.msra.mxu0 %v4110_v15  ;;  %v4192_v15 = vld [vmem:[%s5488_s1 + $0x214] ss:$8 sps:$4 sm:$0xff]   ;;  %v4190_v18 = vld [vmem:[%s5488_s1 + $0x210] ss:$8 sps:$4 sm:$0xff]   ;;  %v4193_v21 = vld [vmem:[%s5488_s1 + $0x180] ss:$8 sps:$4 sm:$0xff]  }
 0x108   :  { %2498 = vmatpush2.bf16.msra.mxu1 %v4107_v1  ;;  %v691_v25 = vpop.f32.mrf.mxu0  ;;  %2524 = vmatprep.subr.bf16.mxu0 %v4118_v19  ;;  %v4189_v1 = vld [vmem:[%s5488_s1 + $0x194] ss:$8 sps:$4 sm:$0xff]   ;;  %v4198_v19 = vld [vmem:[%s5488_s1 + $0x204] ss:$8 sps:$4 sm:$0xff]   ;;  %v4196_v22 = vld [vmem:[%s5488_s1 + $0x200] ss:$8 sps:$4 sm:$0xff]  }
 0x109   :  { %v732_v26 = vpop.f32.mrf.mxu1  ;;  %2499 = vmatprep.subr.bf16.mxu1 %v4115_v16  ;;  %v4195_v16 = vld [vmem:[%s5488_s1 + $0x184] ss:$8 sps:$4 sm:$0xff]  }
 0x10b   :  { %2525 = vmatpush1.bf16.msra.mxu0 %v4116_v24  ;;  %v4201_v24 = vld [vmem:[%s5489_s0 + $0x24] ss:$0 sps:$4 sm:$0x33]  }
 0x10c   :  { %2500 = vmatpush2.bf16.msra.mxu1 %v4113_v23  ;;  %2526 = vmatprep.subr.bf16.mxu0 %v4124_v28  ;;  %v3542_v23 = vcombine.low %v5102_v7, %v5102_v7 }
 0x10d   :  { %2501 = vmatprep.subr.bf16.mxu1 %v4121_v27 }
 0x10f   :  { %2527 = vmatpush1.bf16.msra.mxu0 %v4122_v31 }
 0x110   :  { %2502 = vmatpush2.bf16.msra.mxu1 %v4119_v30  ;;  %2528 = vmatprep.subr.bf16.mxu0 %v4130_v34 }
 0x111   :  { %2503 = vmatprep.subr.bf16.mxu1 %v4127_v33 }
 0x113   :  { %2529 = vmatpush1.bf16.msra.mxu0 %v4128_v36 }
 0x114   :  { %2504 = vmatpush2.bf16.msra.mxu1 %v4125_v35  ;;  %2530 = vmatprep.subr.bf16.mxu0 %v4136_v38 }
 0x115   :  { %2505 = vmatprep.subr.bf16.mxu1 %v4133_v37 }
 0x117   :  { %2531 = vmatpush1.bf16.msra.mxu0 %v4134_v40 }
 0x118   :  { %2506 = vmatpush2.bf16.msra.mxu1 %v4131_v39  ;;  %2532 = vmatprep.subr.bf16.mxu0 %v4142_v42 }
 0x119   :  { %2507 = vmatprep.subr.bf16.mxu1 %v4139_v41 }
 0x11b   :  { %2533 = vmatpush1.bf16.msra.mxu0 %v4140_v44 }
 0x11c   :  { %2508 = vmatpush2.bf16.msra.mxu1 %v4137_v43  ;;  %2534 = vmatprep.subr.bf16.mxu0 %v4148_v46  ;;  %v2654_v46 = vld [vmem:[%s5490_s2 + $0xf0] sm:$0xff] }
 0x11d   :  { %2509 = vmatprep.subr.bf16.mxu1 %v4145_v45 }
 0x11f   :  { %2535 = vmatpush1.bf16.msra.mxu0 %v4146_v48  ;;  %v2653_v48 = vld [vmem:[%s5490_s2 + $0xe8] sm:$0xff] }
 0x120   :  { %2510 = vmatpush2.bf16.msra.mxu1 %v4143_v47  ;;  %2536 = vmatprep.subr.bf16.mxu0 %v4153_v49  ;;  %v2638_v47 = vld [vmem:[%s5490_s2 + $0x70] sm:$0xff]  ;;  %v2637_v49 = vld [vmem:[%s5490_s2 + $0x68] sm:$0xff] }
 0x121   :  { %2561 = vmatprep.subr.bf16.mxu1 %v4156_v50  ;;  %v2652_v50 = vld [vmem:[%s5490_s2 + $0xe0] sm:$0xff] }
 0x122   :  { %v5220_v55 = vpop.f32.mrf.mxu0 }
 0x123   :  { %2512 = vmatmul.mubr.bf16.vlgmr.msra.gmra.mxu1 %v3540_v51  ;;  %2537 = vmatpush2.bf16.msra.mxu0 %v4151_v52  ;;  %v769_v30 = vadd.f32 %v5220_v55, %v5118_v0  ;;  %v2655_v0 = vld [vmem:[%s5490_s2 + $0xf8] sm:$0xff]  ;;  %v2636_v51 = vld [vmem:[%s5490_s2 + $0x60] sm:$0xff]  ;;  %v2649_v55 = vld [vmem:[%s5490_s2 + $0xc8] sm:$0xff] }
 0x124   :  { %2562 = vmatpush1.bf16.msra.mxu1 %v4154_v53  ;;  %v5228_v58 = vpop.f32.mrf.mxu0  ;;  %2538 = vmatprep.subr.bf16.mxu0 %v4159_v54  ;;  %v2651_v52 = vld [vmem:[%s5490_s2 + $0xd8] sm:$0xff]  ;;  %v2650_v54 = vld [vmem:[%s5490_s2 + $0xd0] sm:$0xff] }
 0x125   :  { %2563 = vmatprep.subr.bf16.mxu1 %v4162_v29  ;;  %2593 = vmatprep.mubr.bf16.mxu1 %v4216_v32  ;;  %v4174_v32 = vld [vmem:[%s5488_s1 + $0x244] ss:$8 sps:$4 sm:$0xff]   ;;  %v771_v31 = vadd.f32 %v5228_v58, %v5132_v20  ;;  %v2639_v20 = vld [vmem:[%s5490_s2 + $0x78] sm:$0xff]  ;;  %v2634_v29 = vld [vmem:[%s5490_s2 + $0x50] sm:$0xff] }
 0x126   :  { %v772_v61 = vpop.f32.mrf.mxu0  ;;  %v2635_v53 = vld [vmem:[%s5490_s2 + $0x58] sm:$0xff]  ;;  %v2632_v58 = vld [vmem:[%s5490_s2 + $0x40] sm:$0xff] }
 0x127   :  { %2539 = vmatpush2.bf16.msra.mxu0 %v4157_v56  ;;  %v2633_v56 = vld [vmem:[%s5490_s2 + $0x48] sm:$0xff]  ;;  %v2646_v61 = vld [vmem:[%s5490_s2 + $0xb0] sm:$0xff] }
 0x128   :  { %2564 = vmatpush1.bf16.msra.mxu1 %v4160_v57  ;;  %v773_v2 = vpop.f32.mrf.mxu0  ;;  %2540 = vmatprep.subr.bf16.mxu0 %v4165_v59  ;;  %v2648_v57 = vld [vmem:[%s5490_s2 + $0xc0] sm:$0xff]  ;;  %v2647_v59 = vld [vmem:[%s5490_s2 + $0xb8] sm:$0xff] }
 0x129   :  { %2565 = vmatprep.subr.bf16.mxu1 %v4168_v60  ;;  %v2631_v60 = vld [vmem:[%s5490_s2 + $0x38] sm:$0xff]  ;;  %v2629_v2 = vld [vmem:[%s5490_s2 + $0x28] sm:$0xff] }
 0x12b   :  { %2541 = vmatpush2.bf16.msra.mxu0 %v4163_v62  ;;  %v2630_v62 = vld [vmem:[%s5490_s2 + $0x30] sm:$0xff] }
 0x12c   :  { %2566 = vmatpush1.bf16.msra.mxu1 %v4166_v63  ;;  %2542 = vmatprep.subr.bf16.mxu0 %v4171_v3  ;;  %v2645_v63 = vld [vmem:[%s5490_s2 + $0xa8] sm:$0xff]  ;;  %v2644_v3 = vld [vmem:[%s5490_s2 + $0xa0] sm:$0xff] }
 0x12d   :  { %2567 = vmatprep.subr.bf16.mxu1 %v4174_v32  ;;  %v2628_v32 = vld [vmem:[%s5490_s2 + $0x20] sm:$0xff] }
 0x12f   :  { %2543 = vmatpush2.bf16.msra.mxu0 %v4169_v4  ;;  %v2643_v4 = vld [vmem:[%s5490_s2 + $0x98] sm:$0xff] }
 0x130   :  { %2568 = vmatpush1.bf16.msra.mxu1 %v4172_v5  ;;  %2544 = vmatprep.subr.bf16.mxu0 %v4177_v6  ;;  %v2627_v5 = vld [vmem:[%s5490_s2 + $0x18] sm:$0xff]  ;;  %v2642_v6 = vld [vmem:[%s5490_s2 + $0x90] sm:$0xff] }
 0x131   :  { %2569 = vmatprep.subr.bf16.mxu1 %v4180_v8  ;;  %v2626_v8 = vld [vmem:[%s5490_s2 + $0x10] sm:$0xff] }
 0x133   :  { %2545 = vmatpush2.bf16.msra.mxu0 %v4175_v9  ;;  %v2641_v9 = vld [vmem:[%s5490_s2 + $0x88] sm:$0xff] }
 0x134   :  { %2570 = vmatpush1.bf16.msra.mxu1 %v4178_v10  ;;  %2546 = vmatprep.subr.bf16.mxu0 %v4183_v11  ;;  %v2625_v10 = vld [vmem:[%s5490_s2 + $0x8] sm:$0xff]  ;;  %v2640_v11 = vld [vmem:[%s5490_s2 + $0x80] sm:$0xff] }
 0x135   :  { %2571 = vmatprep.subr.bf16.mxu1 %v4186_v12  ;;  %v2624_v12 = vld [vmem:[%s5490_s2] sm:$0xff] }
 0x137   :  { %2547 = vmatpush2.bf16.msra.mxu0 %v4181_v13 }
 0x138   :  { %2572 = vmatpush1.bf16.msra.mxu1 %v4184_v14  ;;  %2548 = vmatprep.subr.bf16.mxu0 %v4189_v1 }
 0x139   :  { %2573 = vmatprep.subr.bf16.mxu1 %v4192_v15  ;;  %v2830_v15 = vld [vmem:[%s5491_s3 + $0x78] sm:$0xff] }
 0x13b   :  { %2549 = vmatpush2.bf16.msra.mxu0 %v4187_v17 }
 0x13c   :  { %2574 = vmatpush1.bf16.msra.mxu1 %v4190_v18  ;;  %2550 = vmatprep.subr.bf16.mxu0 %v4195_v16 }
 0x13d   :  { %2575 = vmatprep.subr.bf16.mxu1 %v4198_v19 }
 0x13f   :  { %2551 = vmatpush2.bf16.msra.mxu0 %v4193_v21 }
 0x140   :  { %2576 = vmatpush1.bf16.msra.mxu1 %v4196_v22  ;;  %3629 = vmatprep.subr.mxu0 %v2655_v0 }
 0x141   :  { %3664 = vmatprep.subr.mxu1 %v2655_v0 }
 0x142   :  { %2553 = vmatmul.mubr.bf16.vlgmr.msra.gmra.mxu0 %v3542_v23 }
 0x143   :  { %v1227_v25 = vpop.f32.mrf.mxu1  ;;  %2594 = vmatmul.mubr.bf16.vlgmr.msra.gmra.mxu1 %v4201_v24  ;;  %3630 = vmatpush3.msra.mxu0 %v2639_v20 }
 0x144   :  { %v1228_v33 = vadd.f32 %v1227_v25, %v769_v30  ;;  %3665 = vmatpush3.msra.mxu1 %v2639_v20  ;;  %3631 = vmatprep.subr.mxu0 %v2654_v46 }
 0x145   :  { %v1229_v26 = vpop.f32.mrf.mxu1  ;;  %3666 = vmatprep.subr.mxu1 %v2654_v46  ;;  %3632 = vmatpush3.msra.mxu0 %v2638_v47 }
 0x146   :  { %v1230_v35 = vadd.f32 %v1229_v26, %v771_v31  ;;  %3667 = vmatpush3.msra.mxu1 %v2638_v47  ;;  %3633 = vmatprep.subr.mxu0 %v2653_v48 }
 0x147   :  { %v1231_v27 = vpop.f32.mrf.mxu1  ;;  %3668 = vmatprep.subr.mxu1 %v2653_v48  ;;  %3634 = vmatpush3.msra.mxu0 %v2637_v49 }
 0x148   :  { %3669 = vmatpush3.msra.mxu1 %v2637_v49  ;;  %3635 = vmatprep.subr.mxu0 %v2652_v50 }
 0x149   :  { %v1232_v28 = vpop.f32.mrf.mxu1  ;;  %3670 = vmatprep.subr.mxu1 %v2652_v50  ;;  %3636 = vmatpush3.msra.mxu0 %v2636_v51 }
 0x14a   :  { %3671 = vmatpush3.msra.mxu1 %v2636_v51  ;;  %3637 = vmatprep.subr.mxu0 %v2651_v52 }
 0x14b   :  { %3672 = vmatprep.subr.mxu1 %v2651_v52  ;;  %3638 = vmatpush3.msra.mxu0 %v2635_v53 }
 0x14c   :  { %3673 = vmatpush3.msra.mxu1 %v2635_v53  ;;  %3639 = vmatprep.subr.mxu0 %v2650_v54 }
 0x14d   :  { %3674 = vmatprep.subr.mxu1 %v2650_v54  ;;  %3640 = vmatpush3.msra.mxu0 %v2634_v29 }
 0x14e   :  { %3675 = vmatpush3.msra.mxu1 %v2634_v29  ;;  %3641 = vmatprep.subr.mxu0 %v2649_v55 }
 0x14f   :  { %3676 = vmatprep.subr.mxu1 %v2649_v55  ;;  %3642 = vmatpush3.msra.mxu0 %v2633_v56 }
 0x150   :  { %3677 = vmatpush3.msra.mxu1 %v2633_v56  ;;  %3643 = vmatprep.subr.mxu0 %v2648_v57 }
 0x151   :  { %3678 = vmatprep.subr.mxu1 %v2648_v57  ;;  %3644 = vmatpush3.msra.mxu0 %v2632_v58 }
 0x152   :  { %3679 = vmatpush3.msra.mxu1 %v2632_v58  ;;  %3645 = vmatprep.subr.mxu0 %v2647_v59 }
 0x153   :  { %3680 = vmatprep.subr.mxu1 %v2647_v59  ;;  %3646 = vmatpush3.msra.mxu0 %v2631_v60 }
 0x154   :  { %3681 = vmatpush3.msra.mxu1 %v2631_v60  ;;  %3647 = vmatprep.subr.mxu0 %v2646_v61 }
 0x155   :  { %3682 = vmatprep.subr.mxu1 %v2646_v61  ;;  %3648 = vmatpush3.msra.mxu0 %v2630_v62 }
 0x156   :  { %3683 = vmatpush3.msra.mxu1 %v2630_v62  ;;  %3649 = vmatprep.subr.mxu0 %v2645_v63 }
 0x157   :  { %3684 = vmatprep.subr.mxu1 %v2645_v63  ;;  %3650 = vmatpush3.msra.mxu0 %v2629_v2 }
 0x158   :  { %3685 = vmatpush3.msra.mxu1 %v2629_v2  ;;  %3651 = vmatprep.subr.mxu0 %v2644_v3 }
 0x159   :  { %3686 = vmatprep.subr.mxu1 %v2644_v3  ;;  %3652 = vmatpush3.msra.mxu0 %v2628_v32 }
 0x15a   :  { %3687 = vmatpush3.msra.mxu1 %v2628_v32  ;;  %3653 = vmatprep.subr.mxu0 %v2643_v4 }
 0x15b   :  { %3688 = vmatprep.subr.mxu1 %v2643_v4  ;;  %3654 = vmatpush3.msra.mxu0 %v2627_v5 }
 0x15c   :  { %3689 = vmatpush3.msra.mxu1 %v2627_v5  ;;  %3655 = vmatprep.subr.mxu0 %v2642_v6 }
 0x15d   :  { %3690 = vmatprep.subr.mxu1 %v2642_v6  ;;  %3656 = vmatpush3.msra.mxu0 %v2626_v8 }
 0x15e   :  { %3691 = vmatpush3.msra.mxu1 %v2626_v8  ;;  %3657 = vmatprep.subr.mxu0 %v2641_v9 }
 0x15f   :  { %3692 = vmatprep.subr.mxu1 %v2641_v9  ;;  %3658 = vmatpush3.msra.mxu0 %v2625_v10 }
 0x160   :  { %3693 = vmatpush3.msra.mxu1 %v2625_v10  ;;  %3659 = vmatprep.subr.mxu0 %v2640_v11 }
 0x161   :  { %3694 = vmatprep.subr.mxu1 %v2640_v11  ;;  %3660 = vmatpush3.msra.mxu0 %v2624_v12 }
 0x162   :  { %v1268_v7 = vpop.f32.mrf.mxu0  ;;  %3695 = vmatpush3.msra.mxu1 %v2624_v12  ;;  %2851 = vmatprep.subr.mxu0 %v2830_v15  ;;  %v2829_v12 = vld [vmem:[%s5491_s3 + $0x70] sm:$0xff] }
 0x163   :  { %v1309_v34 = vpop.f32.mrf.mxu1  ;;  %v1269_v36 = vadd.f32 %v1268_v7, %v1228_v33  ;;  %2926 = vmatprep.subr.mxu1 %v2830_v15  ;;  %v2827_v15 = vld [vmem:[%s5491_s3 + $0x60] sm:$0xff] }
 0x164   :  { %v1270_v37 = vpop.f32.mrf.mxu0 }
 0x165   :  { %v1311_v38 = vpop.f32.mrf.mxu1  ;;  %v1310_v39 = vadd.f32 %v1309_v34, %v1269_v36  ;;  %v1271_v40 = vadd.f32 %v1270_v37, %v1230_v35 }
 0x166   :  { %v1272_v41 = vpop.f32.mrf.mxu0 }
 0x167   :  { %v1313_v42 = vpop.f32.mrf.mxu1  ;;  %1316 = vst [vmem:[#allocation2] sm:$0xf] %v1310_v39  ;;  %v1312_v43 = vadd.f32 %v1311_v38, %v1271_v40 }
 0x168   :  { %v1273_v44 = vpop.f32.mrf.mxu0 }
 0x169   :  { %v1314_v45 = vpop.f32.mrf.mxu1  ;;  %1317 = vst [vmem:[#allocation2 + $0x8] sm:$0xf] %v1312_v43 }
 0x1a2   :  { %v1972_v13 = vpop.f32.mrf.mxu0 }
 0x1a3   :  { %v2013_v14 = vpop.f32.mrf.mxu1 }
 0x1a4   :  { %v2014_v1 = vadd.f32 %v2013_v14, %v1972_v13  ;;  %v1974_v17 = vpop.f32.mrf.mxu0  ;;  %v2828_v14 = vld [vmem:[%s5491_s3 + $0x68] sm:$0xff] }
 0x1a5   :  { %v2015_v18 = vpop.f32.mrf.mxu1 }
 0x1a6   :  { %v2016_v16 = vadd.f32 %v2015_v18, %v1974_v17  ;;  %v1976_v19 = vpop.f32.mrf.mxu0  ;;  %v2826_v17 = vld [vmem:[%s5491_s3 + $0x58] sm:$0xff]  ;;  %v2825_v18 = vld [vmem:[%s5491_s3 + $0x50] sm:$0xff] }
 0x1a7   :  { %v2017_v21 = vpop.f32.mrf.mxu1  ;;  %v2823_v19 = vld [vmem:[%s5491_s3 + $0x40] sm:$0xff] }
 0x1a8   :  { %v1977_v22 = vpop.f32.mrf.mxu0  ;;  %v2822_v21 = vld [vmem:[%s5491_s3 + $0x38] sm:$0xff] }
 0x1a9   :  { %v2018_v23 = vpop.f32.mrf.mxu1  ;;  %v2821_v22 = vld [vmem:[%s5491_s3 + $0x30] sm:$0xff] }
 0x1aa   :  { %v2820_v23 = vld [vmem:[%s5491_s3 + $0x28] sm:$0xff] }
 0x1c2   :  { %v2054_v24 = vpop.f32.mrf.mxu0 }
 0x1c3   :  { %v2055_v7 = vadd.f32 %v2054_v24, %v2014_v1  ;;  %v2819_v24 = vld [vmem:[%s5491_s3 + $0x20] sm:$0xff] }
 0x1c4   :  { %v2056_v25 = vpop.f32.mrf.mxu0 }
 0x1c5   :  { %v2057_v34 = vadd.f32 %v2056_v25, %v2016_v16  ;;  %v2824_v16 = vld [vmem:[%s5491_s3 + $0x48] sm:$0xff]  ;;  %v2818_v25 = vld [vmem:[%s5491_s3 + $0x18] sm:$0xff] }
 0x1c6   :  { %v2058_v26 = vpop.f32.mrf.mxu0 }
 0x1c7   :  { %v2817_v26 = vld [vmem:[%s5491_s3 + $0x10] sm:$0xff] }
 0x1c8   :  { %v2059_v27 = vpop.f32.mrf.mxu0 }
 0x1c9   :  { %v2816_v27 = vld [vmem:[%s5491_s3 + $0x8] sm:$0xff] }
 0x1e3   :  { %v2513_v28 = vpop.f32.mrf.mxu1 }
 0x1e4   :  { %v2514_v35 = vadd.f32 %v2513_v28, %v2055_v7  ;;  %v2815_v28 = vld [vmem:[%s5491_s3] sm:$0xff] }
 0x1e5   :  { %v2515_v30 = vpop.f32.mrf.mxu1 }
 0x1e6   :  { %v2516_v38 = vadd.f32 %v2515_v30, %v2057_v34  ;;  %v4217_v30 = vmov 0.0  }
 0x1e7   :  { %v2517_v31 = vpop.f32.mrf.mxu1 }
 0x1e9   :  { %v2518_v33 = vpop.f32.mrf.mxu1 }
 0x202   :  { %v2554_v36 = vpop.f32.mrf.mxu0 }
 0x203   :  { %v2595_v37 = vpop.f32.mrf.mxu1  ;;  %v2555_v39 = vadd.f32 %v2554_v36, %v2514_v35 }
 0x204   :  { %v2556_v40 = vpop.f32.mrf.mxu0 }
 0x205   :  { %v2597_v41 = vpop.f32.mrf.mxu1  ;;  %v2596_v42 = vadd.f32 %v2595_v37, %v2555_v39  ;;  %v2557_v43 = vadd.f32 %v2556_v40, %v2516_v38 }
 0x206   :  { %v2558_v44 = vpop.f32.mrf.mxu0 }
 0x207   :  { %v2599_v45 = vpop.f32.mrf.mxu1  ;;  %v2604_v0 = vrot.slane %v2596_v42, 4  ;;  %v2598_v20 = vadd.f32 %v2597_v41, %v2557_v43  ;;  %v13_v41 = vstv %s5492_s7 }
 0x208   :  { %v2559_v46 = vpop.f32.mrf.mxu0  ;;  %14 = vst [vmem:[#allocation3] sm:$0x1] %v13_v41 }
 0x209   :  { %v2600_v47 = vpop.f32.mrf.mxu1  ;;  %2608 = vst [vmem:[#allocation2] sm:$0xf0] %v2604_v0  ;;  %v2605_v48 = vrot.slane %v2598_v20, 4  ;;  %v4218_v0 = vmov 1966171168   ;;  %v2989_v46 = vlaneseq }
 0x20a   :  { %v2987_v20 = vunpack.c.l.s4 %v4218_v0 }
 0x20b   :  { %2609 = vst [vmem:[#allocation2 + $0x8] sm:$0xf0] %v2605_v48  ;;  %v2990_v48 = vshrl.u32 %v2989_v46, 7 }
 0x20c   :  { %v2988_v47 = vunpack.c.0.s8 %v2987_v20 }
 0x210   :  { %v5411_v49 = vld [vmem:[#allocation2] sm:$0xff] }
 0x211   :  { %v2612_v50 = vrot.slane %v5411_v49, 4  ;;  %v2728_v51 = vmul.f32 %v5411_v49, %v5411_v49 }
 0x212   :  { %v5416_v52 = vld [vmem:[#allocation2 + $0x8] sm:$0xff] }
 0x213   :  { %v2618_v53 = vrot.slane %v5416_v52, 4  ;;  %v2613_v54 = vadd.f32 %v2612_v50, %v5411_v49  ;;  %v2729_v29 = vmul.f32 %v5416_v52, %v5416_v52  ;;  %v2730_v55 = vrot.slane %v2728_v51, 4 }
 0x215   :  { %v2619_v56 = vadd.f32 %v2618_v53, %v5416_v52  ;;  %v2614_v57 = vrot.slane %v2613_v54, 2  ;;  %v2736_v58 = vrot.slane %v2729_v29, 4  ;;  %v2731_v59 = vadd.f32 %v2730_v55, %v2728_v51 }
 0x216   :  { %v2991_v53 = vsub.s32 %v2988_v47, %v2990_v48 }
 0x217   :  { %v2620_v60 = vrot.slane %v2619_v56, 2  ;;  %v2615_v61 = vadd.f32 %v2614_v57, %v2613_v54  ;;  %v2737_v62 = vadd.f32 %v2736_v58, %v2729_v29  ;;  %v2732_v63 = vrot.slane %v2731_v59, 2  ;;  %v2906_v58 = vld [vmem:[%s5493_s4] sm:$0x3] }
 0x218   :  { %v3004_v29 = vsub.s32 0, %v2990_v48 }
 0x219   :  { %v2621_v2 = vadd.f32 %v2620_v60, %v2619_v56  ;;  %v2738_v3 = vrot.slane %v2737_v62, 2  ;;  %v2733_v32 = vadd.f32 %v2732_v63, %v2731_v59  ;;  %v2616_v4 = vrot.slane %v2615_v61, 1  ;;  %v3025_v63 = vld [vmem:[%s5494_s5] sm:$0x3] }
 0x21a   :  { %v3019_v60 = vsub.s32 1, %v2990_v48 }
 0x21b   :  { %v2622_v5 = vrot.slane %v2621_v2, 1  ;;  %v2739_v6 = vadd.f32 %v2738_v3, %v2737_v62  ;;  %v2734_v8 = vrot.slane %v2733_v32, 1  ;;  %v2617_v11 = vadd.f32 %v2616_v4, %v2615_v61 }
 0x21c   :  { %v3030_v3 = vrot.slane %v3025_v63, %v3004_v29 }
 0x21d   :  { %v2623_v9 = vadd.f32 %v2622_v5, %v2621_v2  ;;  %v2740_v10 = vrot.slane %v2739_v6, 1  ;;  %v2735_v1 = vadd.f32 %v2734_v8, %v2733_v32  ;;  %v3034_v32 = vrot.slane %v3025_v63, %v3019_v60 }
 0x21f   :  { %2720 = vmatprep.mubr.f32.mxu0 %v2623_v9  ;;  %v2741_v13 = vadd.f32 %v2740_v10, %v2739_v6 }
 0x220   :  { %2721 = vmatmul.mubr.f32.vlgmr.msra.gmra.mxu0 %v2617_v11  ;;  %v3045_v11 = vld [vmem:[%s5495_s6] sm:$0xff] }
 0x221   :  { %2806 = vmatprep.mubr.f32.mxu1 %v2741_v13  ;;  %2852 = vmatpush1.msra.mxu0 %v2829_v12 }
 0x222   :  { %2807 = vmatmul.mubr.f32.vlgmr.msra.gmra.mxu1 %v2735_v1  ;;  %2853 = vmatprep.subr.mxu0 %v2828_v14  ;;  %v3079_v1 = vcombine.low %v3045_v11, %v3045_v11 }
 0x223   :  { %2854 = vmatpush1.msra.mxu0 %v2827_v15  ;;  %2927 = vmatpush1.msra.mxu1 %v2829_v12 }
 0x224   :  { %2855 = vmatprep.subr.mxu0 %v2826_v17  ;;  %2928 = vmatprep.subr.mxu1 %v2828_v14  ;;  %v3047_v14 = vcombine.high %v3045_v11, %v3045_v11 }
 0x225   :  { %2856 = vmatpush1.msra.mxu0 %v2825_v18  ;;  %2929 = vmatpush1.msra.mxu1 %v2827_v15 }
 0x226   :  { %2857 = vmatprep.subr.mxu0 %v2824_v16  ;;  %2930 = vmatprep.subr.mxu1 %v2826_v17 }
 0x227   :  { %2858 = vmatpush1.msra.mxu0 %v2823_v19  ;;  %2931 = vmatpush1.msra.mxu1 %v2825_v18 }
 0x228   :  { %2859 = vmatprep.subr.mxu0 %v2822_v21  ;;  %2932 = vmatprep.subr.mxu1 %v2824_v16 }
 0x229   :  { %2933 = vmatpush1.msra.mxu1 %v2823_v19  ;;  %2860 = vmatpush1.msra.mxu0 %v2821_v22 }
 0x22a   :  { %2934 = vmatprep.subr.mxu1 %v2822_v21  ;;  %2861 = vmatprep.subr.mxu0 %v2820_v23 }
 0x22b   :  { %2935 = vmatpush1.msra.mxu1 %v2821_v22  ;;  %2862 = vmatpush1.msra.mxu0 %v2819_v24 }
 0x22c   :  { %2936 = vmatprep.subr.mxu1 %v2820_v23  ;;  %2863 = vmatprep.subr.mxu0 %v2818_v25 }
 0x22d   :  { %2937 = vmatpush1.msra.mxu1 %v2819_v24  ;;  %2864 = vmatpush1.msra.mxu0 %v2817_v26 }
 0x22e   :  { %2938 = vmatprep.subr.mxu1 %v2818_v25  ;;  %2865 = vmatprep.subr.mxu0 %v2816_v27 }
 0x22f   :  { %2939 = vmatpush1.msra.mxu1 %v2817_v26  ;;  %2866 = vmatpush1.msra.mxu0 %v2815_v28 }
 0x230   :  { %2940 = vmatprep.subr.mxu1 %v2816_v27  ;;  %2899 = vmatprep.mubr.f32.mxu0 %v4217_v30 }
 0x231   :  { %2941 = vmatpush1.msra.mxu1 %v2815_v28  ;;  %2974 = vmatprep.mubr.f32.mxu1 %v4217_v30 }
 0x2e0   :  { %v3661_v31 = vpop.f32.mrf.mxu0 }
 0x2e2   :  { %v3662_v33 = vpop.f32.mrf.mxu0  ;;  %v3696_v7 = vpop.f32.mrf.mxu1 }
 0x2e3   :  { %v3663_v34 = vadd.f32 %v3662_v33, %v3661_v31 }
 0x2e4   :  { %v3697_v35 = vpop.f32.mrf.mxu1 }
 0x2e5   :  { %v2727_v36 = vmul.f32 0.03125, %v3663_v34  ;;  %v3698_v37 = vadd.f32 %v3697_v35, %v3696_v7 }
 0x2e7   :  { %v2813_v38 = vmul.f32 %v2727_v36, %v2727_v36  ;;  %v2812_v39 = vmul.f32 0.03125, %v3698_v37  ;;  %3625 = vmatmul.mubr.msk.f32.vlgmr.msra.gmra.mxu0 %vm2831_vm0, %v2727_v36 }
 0x2e9   :  { %v2814_v40 = vsub.f32 %v2812_v39, %v2813_v38 }
 0x2eb   :  { %3626 = vmatmul.mubr.msk.f32.vlgmr.msra.gmra.mxu1 %vm2831_vm0, %v2814_v40 }
 0x3a7   :  { %v2901_v50 = vpop.f32.mrf.mxu0 }
 0x3a8   :  { %v3005_v59 = vrot.slane %v2901_v50, %v3004_v29 }
 0x3a9   :  { %v2903_v56 = vpop.f32.mrf.mxu0 }
 0x3aa   :  { %v3009_v61 = vrot.slane %v2903_v56, %v3004_v29  ;;  %v3010_v4 = vsub.f32 %v5411_v49, %v3005_v59 }
 0x3ab   :  { %v2976_v42 = vpop.f32.mrf.mxu1 }
 0x3ac   :  { %v2977_v43 = vadd.f32 1e-05, %v2976_v42  ;;  %v3011_v5 = vsub.f32 %v5416_v52, %v3009_v61 }
 0x3ad   :  { %v2978_v44 = vpop.f32.mrf.mxu1 }
 0x3ae   :  { %v2979_v45 = vadd.f32 1e-05, %v2978_v44  ;;  %4204 = vrsqrt.f32 %v2977_v43 }
 0x3b0   :  { %4206 = vrsqrt.f32 %v2979_v45 }
 0x3bb   :  { %v4205_v51 = vpop.eup %4204 }
 0x3bd   :  { %v4207_v54 = vpop.eup %4206 }
 0x3be   :  { %v2985_v55 = vcombine.low %v4205_v51, %v4207_v54 }
 0x3c0   :  { %v2992_v57 = vrot.slane %v2985_v55, %v2991_v53 }
 0x3c2   :  { %v2999_v62 = vrot.slane %v2992_v57, %v2991_v53  ;;  %v3106_v57 = vld [vmem:[#allocation3] sm:$0x1] }
 0x3c4   :  { %v3001_v2 = vmul.f32 %v2999_v62, %v2906_v58 }
 0x3c6   :  { %v3016_v6 = vrot.slane %v3001_v2, %v3004_v29  ;;  %v3020_v8 = vrot.slane %v3001_v2, %v3019_v60  ;;  %v3069_v29 = vld [vmem:[#allocation3] sm:$0x1] }
 0x3c8   :  { %v3023_v9 = vmul.f32 %v3016_v6, %v3010_v4  ;;  %v3024_v10 = vmul.f32 %v3020_v8, %v3011_v5 }
 0x3ca   :  { %v3037_v12 = vadd.f32 %v3030_v3, %v3023_v9  ;;  %v3038_v13 = vadd.f32 %v3034_v32, %v3024_v10 }
 0x3cc   :  { %vm3039_vm1 = vcmp.gt.f32.partialorder %v3037_v12, 0.0  ;;  %vm3040_vm2 = vcmp.gt.f32.partialorder %v3038_v13, 0.0  ;;  %v3041_v15 = vmul.f32 0.2, %v3037_v12  ;;  %v3042_v17 = vmul.f32 0.2, %v3038_v13 }
 0x3ce   :  { %v3043_v18 = vsel %vm3039_vm1, %v3037_v12, %v3041_v15  ;;  %v3044_v49 = vsel %vm3040_vm2, %v3038_v13, %v3042_v17 }
 0x3cf   :  { %v3049_v52 = vmul.f32 %v3045_v11, %v3043_v18  ;;  %v3050_v16 = vmul.f32 %v3047_v14, %v3044_v49  ;;  %v3081_v19 = vmul.f32 %v3079_v1, %v3043_v18  ;;  %v3082_v21 = vmul.f32 %v3045_v11, %v3044_v49 }
 0x3d1   :  { %v3052_v22 = vsel %vm3051_vm3, %v3049_v52, 0.0  ;;  %v3059_v23 = vsel %vm3051_vm3, %v3050_v16, 0.0  ;;  %v3085_v24 = vrot.slane %v3081_v19, 4  ;;  %v3086_v25 = vrot.slane %v3082_v21, 4 }
 0x3d2   :  { %v3053_v26 = vrot.slane %v3052_v22, 4  ;;  %v3060_v27 = vrot.slane %v3059_v23, 4 }
 0x3d3   :  { %v3089_v28 = vsel %vm3051_vm3, %v3085_v24, 0.0  ;;  %v3096_v30 = vsel %vm3051_vm3, %v3086_v25, 0.0 }
 0x3d4   :  { %v3054_v31 = vadd.f32 %v3053_v26, %v3052_v22  ;;  %v3061_v33 = vadd.f32 %v3060_v27, %v3059_v23  ;;  %v3090_v7 = vrot.slane %v3089_v28, 4  ;;  %v3097_v34 = vrot.slane %v3096_v30, 4 }
 0x3d6   :  { %v3055_v35 = vrot.slane %v3054_v31, 2  ;;  %v3062_v36 = vrot.slane %v3061_v33, 2  ;;  %v3091_v37 = vadd.f32 %v3090_v7, %v3089_v28  ;;  %v3098_v38 = vadd.f32 %v3097_v34, %v3096_v30 }
 0x3d8   :  { %v3056_v39 = vadd.f32 %v3055_v35, %v3054_v31  ;;  %v3063_v40 = vadd.f32 %v3062_v36, %v3061_v33  ;;  %v3092_v41 = vrot.slane %v3091_v37, 2  ;;  %v3099_v42 = vrot.slane %v3098_v38, 2 }
 0x3da   :  { %v3057_v43 = vrot.slane %v3056_v39, 1  ;;  %v3064_v44 = vrot.slane %v3063_v40, 1  ;;  %v3093_v45 = vadd.f32 %v3092_v41, %v3091_v37  ;;  %v3100_v0 = vadd.f32 %v3099_v42, %v3098_v38 }
 0x3dc   :  { %v3058_v20 = vadd.f32 %v3057_v43, %v3056_v39  ;;  %v3065_v46 = vadd.f32 %v3064_v44, %v3063_v40  ;;  %v3094_v47 = vrot.slane %v3093_v45, 1  ;;  %v3101_v48 = vrot.slane %v3100_v0, 1 }
 0x3de   :  { %v3066_v50 = vadd.f32 %v3065_v46, %v3058_v20  ;;  %v3095_v51 = vadd.f32 %v3094_v47, %v3093_v45  ;;  %v3102_v53 = vadd.f32 %v3101_v48, %v3100_v0 }
 0x3e0   :  { %3067 = vadd.xlane.f32.xlu0 %v3066_v50  ;;  %v3103_v54 = vadd.f32 %v3102_v53, %v3095_v51 }
 0x3e4   :  { %3104 = vadd.xlane.f32.xlu0 %v3103_v54 }
 0x469   :  { %v3068_v55 = vpop.xlane.xlu0 %3067 }
 0x46a   :  { %v3070_v56 = vadd.f32 %v3069_v29, %v3068_v55 }
 0x46c   :  { %v3627_v58 = vmul.f32 -1.442695, %v3070_v56 }
 0x46d   :  { %v3105_v59 = vpop.xlane.xlu0 %3104 }
 0x46e   :  { %4208 = vpow2.f32 %v3627_v58  ;;  %v3107_v60 = vadd.f32 %v3106_v57, %v3105_v59 }
 0x470   :  { %v3628_v61 = vmul.f32 -1.442695, %v3107_v60 }
 0x472   :  { %4210 = vpow2.f32 %v3628_v61 }
 0x47b   :  { %v4209_v62 = vpop.eup %4208 }
 0x47c   :  { %v3074_v63 = vadd.f32 1.0, %v4209_v62 }
 0x47e   :  { %4212 = vrcp.f32 %v3074_v63 }
 0x47f   :  { %v4211_v2 = vpop.eup %4210 }
 0x480   :  { %v3111_v3 = vadd.f32 1.0, %v4211_v2 }
 0x482   :  { %4214 = vrcp.f32 %v3111_v3 }
 0x48b   :  { %v4213_v32 = vpop.eup %4212 }
 0x48c   :  { %3078 = vst.msk [vmem:[%s5496_s8] sm:$0x1] %vm3077_vm4, %v4213_v32 }
 0x48f   :  { %v4215_v4 = vpop.eup %4214 }
 0x490   :  { %3114 = vst.msk [vmem:[%s5496_s8 + $0x1] sm:$0x1] %vm3077_vm4, %v4215_v4 }

</bundles_post_ra>
